<compile_context>
chip_gen: v6e
topology: v6e:2x2x1
jax: 0.10.0
libtpu: 0.0.40
codegen_flags: <defaults>
</compile_context>

<pallas_src>
import jax
import jax.numpy as jnp
from jax import lax
from jax.experimental import pallas as pl
from jax.experimental.pallas import tpu as pltpu


def _round_up(x, m):
    return ((x + m - 1) // m) * m


# --------------------------------------------------------------------------------
# Pass 1 kernel: full 2-layer LSTM recurrence over the sequence in one invocation.
# --------------------------------------------------------------------------------
def _lstm_seq_kernel(seq_ref,                       # (T, Bp, E)  time-major input
                     wih0_ref, whh0_ref, b0_ref,    # layer-0 LSTM weights (padded)
                     wih1_ref, whh1_ref, b1_ref,    # layer-1 LSTM weights (padded)
                     h_out_ref):                    # (T, Bp, Hp) layer-1 hidden out
    T, Bp, _ = seq_ref.shape
    Hp = whh0_ref.shape[0]

    # Load every weight once; they stay resident for the whole sequence.
    wih0 = wih0_ref[...]
    whh0 = whh0_ref[...]
    b0 = b0_ref[...]
    wih1 = wih1_ref[...]
    whh1 = whh1_ref[...]
    b1 = b1_ref[...]

    def cell(x, h, c, wih, whh, b):
        gates = (jnp.dot(x, wih, preferred_element_type=jnp.float32)
                 + jnp.dot(h, whh, preferred_element_type=jnp.float32)
                 + b)
        # Hp is a multiple of 128, so every gate slice is lane-aligned.
        i = jax.nn.sigmoid(gates[:, 0 * Hp:1 * Hp])
        f = jax.nn.sigmoid(gates[:, 1 * Hp:2 * Hp])
        g = jnp.tanh(gates[:, 2 * Hp:3 * Hp])
        o = jax.nn.sigmoid(gates[:, 3 * Hp:4 * Hp])
        c_new = f * c + i * g
        h_new = o * jnp.tanh(c_new)
        return h_new, c_new

    def body(t, carry):
        h0, c0, h1, c1 = carry
        x_t = seq_ref[t]                                        # (Bp, E)
        h0, c0 = cell(x_t, h0, c0, wih0, whh0, b0)
        h1, c1 = cell(h0, h1, c1, wih1, whh1, b1)
        h_out_ref[t] = h1
        return (h0, c0, h1, c1)

    z = jnp.zeros((Bp, Hp), jnp.float32)
    carry = (z, z, z, z)
    if T <= 32:
        # Short fixed trip count: unroll for LLO scheduler visibility.
        for t in range(T):
            carry = body(t, carry)
    else:
        lax.fori_loop(0, T, body, carry)


# --------------------------------------------------------------------------------
# Pass 2 kernel: hoisted output projection as a lane-dense tiled matmul.
# --------------------------------------------------------------------------------
def _proj_kernel(h_ref, w_ref, b_ref, out_ref):
    out_ref[...] = (jnp.dot(h_ref[...], w_ref[...],
                            preferred_element_type=jnp.float32)
                    + b_ref[...])


# --------------------------------------------------------------------------------
# Padding helpers (gate-aligned zero padding; mathematically exact).
# --------------------------------------------------------------------------------
def _pad_gate_cols(w, H, Hp):
    """(in, 4H) -> (in, 4Hp): gate g's H columns go to columns [g*Hp, g*Hp+H)."""
    out = jnp.zeros((w.shape[0], 4 * Hp), w.dtype)
    for g in range(4):
        out = out.at[:, g * Hp:g * Hp + H].set(w[:, g * H:(g + 1) * H])
    return out


def _pad_rows(w, Rp):
    return jnp.zeros((Rp, w.shape[1]), w.dtype).at[:w.shape[0], :].set(w)


# --------------------------------------------------------------------------------
# Wrapper
# --------------------------------------------------------------------------------
def decoder_forward_pallas(x_feat, captions, params):
    """x_feat: (B, E) image features; captions: (B, L) int32 token ids.
    Returns logits (B, T, V) with T = L (image feature + L-1 shifted tokens)."""
    B, E = x_feat.shape
    H = params["whh0"].shape[0]
    V = params["wlin"].shape[1]

    # Teacher-forcing input sequence (embedding gather + concat stay in XLA).
    emb = jnp.take(params["embedding"], captions[:, :-1], axis=0)  # (B, L-1, E)
    inputs = jnp.concatenate([x_feat[:, None, :], emb], axis=1)    # (B, T, E)
    T = inputs.shape[1]

    # Padded sizes: batch -> sublane multiple (8), hidden/vocab -> lane multiple (128).
    Bp = _round_up(B, 8)
    Hp = _round_up(H, 128)
    Vp = _round_up(V, 128)

    # Time-major, batch-padded sequence for the recurrent kernel.
    seq = jnp.transpose(inputs, (1, 0, 2))                     # (T, B, E)
    seq = jnp.pad(seq, ((0, 0), (0, Bp - B), (0, 0)))          # (T, Bp, E)

    # Gate-aligned, zero-padded weights (padded hidden lanes stay identically 0).
    wih0 = _pad_gate_cols(params["wih0"], H, Hp)                   # (E,  4Hp)
    whh0 = _pad_rows(_pad_gate_cols(params["whh0"], H, Hp), Hp)    # (Hp, 4Hp)
    b0 = _pad_gate_cols(params["b0"], H, Hp)                       # (1,  4Hp)
    wih1 = _pad_rows(_pad_gate_cols(params["wih1"], H, Hp), Hp)    # (Hp, 4Hp)
    whh1 = _pad_rows(_pad_gate_cols(params["whh1"], H, Hp), Hp)    # (Hp, 4Hp)
    b1 = _pad_gate_cols(params["b1"], H, Hp)                       # (1,  4Hp)
    wlin = jnp.pad(params["wlin"], ((0, Hp - H), (0, Vp - V)))     # (Hp, Vp)
    blin = jnp.pad(params["blin"], ((0, 0), (0, Vp - V)))          # (1,  Vp)

    # ---- Pass 1: recurrence — single grid step, weights loaded once -----------
    def full(shape):
        nd = len(shape)
        return pl.BlockSpec(shape, lambda i, nd=nd: (0,) * nd)

    hs_tm = pl.pallas_call(
        _lstm_seq_kernel,
        out_shape=jax.ShapeDtypeStruct((T, Bp, Hp), jnp.float32),
        grid=(1,),
        in_specs=[
            full((T, Bp, E)),
            full((E, 4 * Hp)), full((Hp, 4 * Hp)), full((1, 4 * Hp)),
            full((Hp, 4 * Hp)), full((Hp, 4 * Hp)), full((1, 4 * Hp)),
        ],
        out_specs=full((T, Bp, Hp)),
        compiler_params=pltpu.CompilerParams(
            dimension_semantics=("arbitrary",)),
    )(seq, wih0, whh0, b0, wih1, whh1, b1)

    # Batch-first hidden states: transpose the *small* (T*Bp*Hp) array so the
    # large logits array is produced batch-first directly (no logits transpose).
    hs_bf = jnp.transpose(hs_tm, (1, 0, 2)).reshape(Bp * T, Hp)   # (M, Hp)
    M = Bp * T

    # ---- Pass 2: hoisted output projection — tiled (M, Hp) x (Hp, Vp) ---------
    def pick_tile(n, candidates=(512, 256, 128)):
        for c in candidates:
            if n % c == 0:
                return c
        return n

    TM = pick_tile(M)
    TN = pick_tile(Vp)

    logits_p = pl.pallas_call(
        _proj_kernel,
        out_shape=jax.ShapeDtypeStruct((M, Vp), jnp.float32),
        grid=(M // TM, Vp // TN),
        in_specs=[
            pl.BlockSpec((TM, Hp), lambda i, j: (i, 0)),
            pl.BlockSpec((Hp, TN), lambda i, j: (0, j)),
            pl.BlockSpec((1, TN), lambda i, j: (0, j)),
        ],
        out_specs=pl.BlockSpec((TM, TN), lambda i, j: (i, j)),
        compiler_params=pltpu.CompilerParams(
            dimension_semantics=("parallel", "parallel")),
    )(hs_bf, wlin, blin)

    return logits_p.reshape(Bp, T, Vp)[:B, :, :V]                 # (B, T, V)


# --------------------------------------------------------------------------------
# Pure-JAX reference (same math, unpadded) for a sanity check.
# --------------------------------------------------------------------------------
def _lstm_cell_ref(x, h, c, wih, whh, b):
    gates = jnp.dot(x, wih) + jnp.dot(h, whh) + b
    H = h.shape[-1]
    i = jax.nn.sigmoid(gates[:, 0 * H:1 * H])
    f = jax.nn.sigmoid(gates[:, 1 * H:2 * H])
    g = jnp.tanh(gates[:, 2 * H:3 * H])
    o = jax.nn.sigmoid(gates[:, 3 * H:4 * H])
    c_new = f * c + i * g
    h_new = o * jnp.tanh(c_new)
    return h_new, c_new


def decoder_forward_ref(x_feat, captions, params):
    emb = jnp.take(params["embedding"], captions[:, :-1], axis=0)
    inputs = jnp.concatenate([x_feat[:, None, :], emb], axis=1)  # (B, T, E)
    B = inputs.shape[0]
    H = params["whh0"].shape[0]

    def step(carry, x_t):
        h0, c0, h1, c1 = carry
        h0, c0 = _lstm_cell_ref(x_t, h0, c0, params["wih0"], params["whh0"], params["b0"])
        h1, c1 = _lstm_cell_ref(h0, h1, c1, params["wih1"], params["whh1"], params["b1"])
        logits = jnp.dot(h1, params["wlin"]) + params["blin"]
        return (h0, c0, h1, c1), logits

    zeros = jnp.zeros((B, H), jnp.float32)
    _, logits_tm = jax.lax.scan(step, (zeros, zeros, zeros, zeros),
                                jnp.transpose(inputs, (1, 0, 2)))
    return jnp.transpose(logits_tm, (1, 0, 2))


def init_params(key, vocab_size, embedding_size, hidden_size):
    """Deterministic synthetic parameters matching the module's shapes.
    LSTM weights are stored pre-transposed: wih* (in, 4H), whh* (H, 4H);
    biases of a layer are pre-summed (b_ih + b_hh) into a single (1, 4H) row."""
    ks = jax.random.split(key, 9)
    s = 0.1
    E, H, V = embedding_size, hidden_size, vocab_size
    return {
        "embedding": s * jax.random.normal(ks[0], (V, E), jnp.float32),
        "wih0": s * jax.random.normal(ks[1], (E, 4 * H), jnp.float32),
        "whh0": s * jax.random.normal(ks[2], (H, 4 * H), jnp.float32),
        "b0":   s * jax.random.normal(ks[3], (1, 4 * H), jnp.float32),
        "wih1": s * jax.random.normal(ks[4], (H, 4 * H), jnp.float32),
        "whh1": s * jax.random.normal(ks[5], (H, 4 * H), jnp.float32),
        "b1":   s * jax.random.normal(ks[6], (1, 4 * H), jnp.float32),
        "wlin": s * jax.random.normal(ks[7], (H, V), jnp.float32),
        "blin": s * jax.random.normal(ks[8], (1, V), jnp.float32),
    }


if __name__ == "__main__":
    B = 2            # batch
    E = 32           # embedding_size
    H = 32           # hidden_size
    V = 64           # len(vocab)
    L = 8            # caption length (T = L after shift + image feature)

    key = jax.random.PRNGKey(0)
    k_x, k_cap, k_p = jax.random.split(key, 3)

    x_feat = jax.random.normal(k_x, (B, E), jnp.float32)           # image features
    captions = jax.random.randint(k_cap, (B, L), 1, V, jnp.int32)  # token ids
    params = init_params(k_p, V, E, H)

    out = decoder_forward_pallas(x_feat, captions, params)
    out = jax.block_until_ready(out)

    ref = decoder_forward_ref(x_feat, captions, params)
    assert out.shape == (B, L, V), out.shape
    assert jnp.allclose(out, ref, atol=1e-4, rtol=1e-4), "mismatch vs reference"

    print("KERNEL_OK")
</pallas_src>

<mosaic_0001>
module attributes {stable_mosaic.version = 11 : i64} {
  func.func @_lstm_seq_kernel(%arg0: i32, %arg1: memref<8x8x32xf32, #tpu.memory_space<vmem>>, %arg2: memref<32x512xf32, #tpu.memory_space<vmem>>, %arg3: memref<128x512xf32, #tpu.memory_space<vmem>>, %arg4: memref<1x512xf32, #tpu.memory_space<vmem>>, %arg5: memref<128x512xf32, #tpu.memory_space<vmem>>, %arg6: memref<128x512xf32, #tpu.memory_space<vmem>>, %arg7: memref<1x512xf32, #tpu.memory_space<vmem>>, %arg8: memref<8x8x128xf32, #tpu.memory_space<vmem>>) attributes {dimension_semantics = [#tpu.dimension_semantics<arbitrary>], iteration_bounds = array<i64: 1>, scalar_prefetch = 0 : i64, scratch_operands = 0 : i64, tpu.core_type = #tpu.core_type<tc>, window_params = [{pipeline_mode = #tpu.pipeline_mode<synchronous>, transform_indices = @transform_0, window_bounds = array<i64: 8, 8, 32>}, {pipeline_mode = #tpu.pipeline_mode<synchronous>, transform_indices = @transform_1, window_bounds = array<i64: 32, 512>}, {pipeline_mode = #tpu.pipeline_mode<synchronous>, transform_indices = @transform_2, window_bounds = array<i64: 128, 512>}, {pipeline_mode = #tpu.pipeline_mode<synchronous>, transform_indices = @transform_3, window_bounds = array<i64: 1, 512>}, {pipeline_mode = #tpu.pipeline_mode<synchronous>, transform_indices = @transform_4, window_bounds = array<i64: 128, 512>}, {pipeline_mode = #tpu.pipeline_mode<synchronous>, transform_indices = @transform_5, window_bounds = array<i64: 128, 512>}, {pipeline_mode = #tpu.pipeline_mode<synchronous>, transform_indices = @transform_6, window_bounds = array<i64: 1, 512>}, {pipeline_mode = #tpu.pipeline_mode<synchronous>, transform_indices = @transform_7, window_bounds = array<i64: 8, 8, 128>}]} {
    %c0 = arith.constant 0 : index
    %c0_0 = arith.constant 0 : index
    %0 = vector.load %arg2[%c0, %c0_0] : memref<32x512xf32, #tpu.memory_space<vmem>>, vector<32x512xf32>
    %c0_1 = arith.constant 0 : index
    %c0_2 = arith.constant 0 : index
    %1 = vector.load %arg3[%c0_1, %c0_2] : memref<128x512xf32, #tpu.memory_space<vmem>>, vector<128x512xf32>
    %c0_3 = arith.constant 0 : index
    %c0_4 = arith.constant 0 : index
    %2 = vector.load %arg4[%c0_3, %c0_4] : memref<1x512xf32, #tpu.memory_space<vmem>>, vector<1x512xf32>
    %c0_5 = arith.constant 0 : index
    %c0_6 = arith.constant 0 : index
    %3 = vector.load %arg5[%c0_5, %c0_6] : memref<128x512xf32, #tpu.memory_space<vmem>>, vector<128x512xf32>
    %c0_7 = arith.constant 0 : index
    %c0_8 = arith.constant 0 : index
    %4 = vector.load %arg6[%c0_7, %c0_8] : memref<128x512xf32, #tpu.memory_space<vmem>>, vector<128x512xf32>
    %c0_9 = arith.constant 0 : index
    %c0_10 = arith.constant 0 : index
    %5 = vector.load %arg7[%c0_9, %c0_10] : memref<1x512xf32, #tpu.memory_space<vmem>>, vector<1x512xf32>
    %cst = arith.constant 0.000000e+00 : f32
    %6 = vector.broadcast %cst : f32 to vector<8x128xf32>
    %c0_11 = arith.constant 0 : index
    %c0_12 = arith.constant 0 : index
    %c0_13 = arith.constant 0 : index
    %7 = vector.load %arg1[%c0_11, %c0_12, %c0_13] : memref<8x8x32xf32, #tpu.memory_space<vmem>>, vector<1x8x32xf32>
    %8 = vector.shape_cast %7 : vector<1x8x32xf32> to vector<8x32xf32>
    %cst_14 = arith.constant dense<0.000000e+00> : vector<8x512xf32>
    %9 = tpu.matmul %8, %0, %cst_14 {dimension_numbers = #tpu.dot_dimension_numbers<[1], [0], [0], [1], [0, 0, 1, 1], [], []>} : vector<8x32xf32>, vector<32x512xf32>, vector<8x512xf32> -> vector<8x512xf32>
    %cst_15 = arith.constant dense<0.000000e+00> : vector<8x512xf32>
    %10 = tpu.matmul %6, %1, %cst_15 {dimension_numbers = #tpu.dot_dimension_numbers<[1], [0], [0], [1], [0, 0, 1, 1], [], []>} : vector<8x128xf32>, vector<128x512xf32>, vector<8x512xf32> -> vector<8x512xf32>
    %11 = arith.addf %9, %10 : vector<8x512xf32>
    %12 = vector.broadcast %2 : vector<1x512xf32> to vector<8x512xf32>
    %13 = arith.addf %11, %12 : vector<8x512xf32>
    %14 = vector.extract_strided_slice %13 {offsets = [0, 0], sizes = [8, 128], strides = [1, 1]} : vector<8x512xf32> to vector<8x128xf32>
    %15 = arith.negf %14 : vector<8x128xf32>
    %16 = math.exp %15 : vector<8x128xf32>
    %cst_16 = arith.constant 1.000000e+00 : f32
    %17 = vector.broadcast %cst_16 : f32 to vector<8x128xf32>
    %18 = arith.addf %17, %16 : vector<8x128xf32>
    %19 = arith.divf %17, %18 : vector<8x128xf32>
    %20 = vector.extract_strided_slice %13 {offsets = [0, 128], sizes = [8, 128], strides = [1, 1]} : vector<8x512xf32> to vector<8x128xf32>
    %21 = arith.negf %20 : vector<8x128xf32>
    %22 = math.exp %21 : vector<8x128xf32>
    %cst_17 = arith.constant 1.000000e+00 : f32
    %23 = vector.broadcast %cst_17 : f32 to vector<8x128xf32>
    %24 = arith.addf %23, %22 : vector<8x128xf32>
    %25 = arith.divf %23, %24 : vector<8x128xf32>
    %26 = vector.extract_strided_slice %13 {offsets = [0, 256], sizes = [8, 128], strides = [1, 1]} : vector<8x512xf32> to vector<8x128xf32>
    %27 = math.tanh %26 : vector<8x128xf32>
    %28 = vector.extract_strided_slice %13 {offsets = [0, 384], sizes = [8, 128], strides = [1, 1]} : vector<8x512xf32> to vector<8x128xf32>
    %29 = arith.negf %28 : vector<8x128xf32>
    %30 = math.exp %29 : vector<8x128xf32>
    %cst_18 = arith.constant 1.000000e+00 : f32
    %31 = vector.broadcast %cst_18 : f32 to vector<8x128xf32>
    %32 = arith.addf %31, %30 : vector<8x128xf32>
    %33 = arith.divf %31, %32 : vector<8x128xf32>
    %34 = arith.mulf %25, %6 : vector<8x128xf32>
    %35 = arith.mulf %19, %27 : vector<8x128xf32>
    %36 = arith.addf %34, %35 : vector<8x128xf32>
    %37 = math.tanh %36 : vector<8x128xf32>
    %38 = arith.mulf %33, %37 : vector<8x128xf32>
    %cst_19 = arith.constant dense<0.000000e+00> : vector<8x512xf32>
    %39 = tpu.matmul %38, %3, %cst_19 {dimension_numbers = #tpu.dot_dimension_numbers<[1], [0], [0], [1], [0, 0, 1, 1], [], []>} : vector<8x128xf32>, vector<128x512xf32>, vector<8x512xf32> -> vector<8x512xf32>
    %cst_20 = arith.constant dense<0.000000e+00> : vector<8x512xf32>
    %40 = tpu.matmul %6, %4, %cst_20 {dimension_numbers = #tpu.dot_dimension_numbers<[1], [0], [0], [1], [0, 0, 1, 1], [], []>} : vector<8x128xf32>, vector<128x512xf32>, vector<8x512xf32> -> vector<8x512xf32>
    %41 = arith.addf %39, %40 : vector<8x512xf32>
    %42 = vector.broadcast %5 : vector<1x512xf32> to vector<8x512xf32>
    %43 = arith.addf %41, %42 : vector<8x512xf32>
    %44 = vector.extract_strided_slice %43 {offsets = [0, 0], sizes = [8, 128], strides = [1, 1]} : vector<8x512xf32> to vector<8x128xf32>
    %45 = arith.negf %44 : vector<8x128xf32>
    %46 = math.exp %45 : vector<8x128xf32>
    %cst_21 = arith.constant 1.000000e+00 : f32
    %47 = vector.broadcast %cst_21 : f32 to vector<8x128xf32>
    %48 = arith.addf %47, %46 : vector<8x128xf32>
    %49 = arith.divf %47, %48 : vector<8x128xf32>
    %50 = vector.extract_strided_slice %43 {offsets = [0, 128], sizes = [8, 128], strides = [1, 1]} : vector<8x512xf32> to vector<8x128xf32>
    %51 = arith.negf %50 : vector<8x128xf32>
    %52 = math.exp %51 : vector<8x128xf32>
    %cst_22 = arith.constant 1.000000e+00 : f32
    %53 = vector.broadcast %cst_22 : f32 to vector<8x128xf32>
    %54 = arith.addf %53, %52 : vector<8x128xf32>
    %55 = arith.divf %53, %54 : vector<8x128xf32>
    %56 = vector.extract_strided_slice %43 {offsets = [0, 256], sizes = [8, 128], strides = [1, 1]} : vector<8x512xf32> to vector<8x128xf32>
    %57 = math.tanh %56 : vector<8x128xf32>
    %58 = vector.extract_strided_slice %43 {offsets = [0, 384], sizes = [8, 128], strides = [1, 1]} : vector<8x512xf32> to vector<8x128xf32>
    %59 = arith.negf %58 : vector<8x128xf32>
    %60 = math.exp %59 : vector<8x128xf32>
    %cst_23 = arith.constant 1.000000e+00 : f32
    %61 = vector.broadcast %cst_23 : f32 to vector<8x128xf32>
    %62 = arith.addf %61, %60 : vector<8x128xf32>
    %63 = arith.divf %61, %62 : vector<8x128xf32>
    %64 = arith.mulf %55, %6 : vector<8x128xf32>
    %65 = arith.mulf %49, %57 : vector<8x128xf32>
    %66 = arith.addf %64, %65 : vector<8x128xf32>
    %67 = math.tanh %66 : vector<8x128xf32>
    %68 = arith.mulf %63, %67 : vector<8x128xf32>
    %c0_24 = arith.constant 0 : index
    %c0_25 = arith.constant 0 : index
    %c0_26 = arith.constant 0 : index
    %69 = vector.load %arg8[%c0_24, %c0_25, %c0_26] : memref<8x8x128xf32, #tpu.memory_space<vmem>>, vector<1x8x128xf32>
    %70 = vector.shape_cast %69 : vector<1x8x128xf32> to vector<8x128xf32>
    %71 = vector.shape_cast %68 : vector<8x128xf32> to vector<1x8x128xf32>
    tpu.vector_store %arg8[%c0_24, %c0_25, %c0_26], %71 {strides = array<i32>} : memref<8x8x128xf32, #tpu.memory_space<vmem>>, vector<1x8x128xf32>,
    %c1 = arith.constant 1 : index
    %c0_27 = arith.constant 0 : index
    %c0_28 = arith.constant 0 : index
    %72 = vector.load %arg1[%c1, %c0_27, %c0_28] : memref<8x8x32xf32, #tpu.memory_space<vmem>>, vector<1x8x32xf32>
    %73 = vector.shape_cast %72 : vector<1x8x32xf32> to vector<8x32xf32>
    %cst_29 = arith.constant dense<0.000000e+00> : vector<8x512xf32>
    %74 = tpu.matmul %73, %0, %cst_29 {dimension_numbers = #tpu.dot_dimension_numbers<[1], [0], [0], [1], [0, 0, 1, 1], [], []>} : vector<8x32xf32>, vector<32x512xf32>, vector<8x512xf32> -> vector<8x512xf32>
    %cst_30 = arith.constant dense<0.000000e+00> : vector<8x512xf32>
    %75 = tpu.matmul %38, %1, %cst_30 {dimension_numbers = #tpu.dot_dimension_numbers<[1], [0], [0], [1], [0, 0, 1, 1], [], []>} : vector<8x128xf32>, vector<128x512xf32>, vector<8x512xf32> -> vector<8x512xf32>
    %76 = arith.addf %74, %75 : vector<8x512xf32>
    %77 = vector.broadcast %2 : vector<1x512xf32> to vector<8x512xf32>
    %78 = arith.addf %76, %77 : vector<8x512xf32>
    %79 = vector.extract_strided_slice %78 {offsets = [0, 0], sizes = [8, 128], strides = [1, 1]} : vector<8x512xf32> to vector<8x128xf32>
    %80 = arith.negf %79 : vector<8x128xf32>
    %81 = math.exp %80 : vector<8x128xf32>
    %cst_31 = arith.constant 1.000000e+00 : f32
    %82 = vector.broadcast %cst_31 : f32 to vector<8x128xf32>
    %83 = arith.addf %82, %81 : vector<8x128xf32>
    %84 = arith.divf %82, %83 : vector<8x128xf32>
    %85 = vector.extract_strided_slice %78 {offsets = [0, 128], sizes = [8, 128], strides = [1, 1]} : vector<8x512xf32> to vector<8x128xf32>
    %86 = arith.negf %85 : vector<8x128xf32>
    %87 = math.exp %86 : vector<8x128xf32>
    %cst_32 = arith.constant 1.000000e+00 : f32
    %88 = vector.broadcast %cst_32 : f32 to vector<8x128xf32>
    %89 = arith.addf %88, %87 : vector<8x128xf32>
    %90 = arith.divf %88, %89 : vector<8x128xf32>
    %91 = vector.extract_strided_slice %78 {offsets = [0, 256], sizes = [8, 128], strides = [1, 1]} : vector<8x512xf32> to vector<8x128xf32>
    %92 = math.tanh %91 : vector<8x128xf32>
    %93 = vector.extract_strided_slice %78 {offsets = [0, 384], sizes = [8, 128], strides = [1, 1]} : vector<8x512xf32> to vector<8x128xf32>
    %94 = arith.negf %93 : vector<8x128xf32>
    %95 = math.exp %94 : vector<8x128xf32>
    %cst_33 = arith.constant 1.000000e+00 : f32
    %96 = vector.broadcast %cst_33 : f32 to vector<8x128xf32>
    %97 = arith.addf %96, %95 : vector<8x128xf32>
    %98 = arith.divf %96, %97 : vector<8x128xf32>
    %99 = arith.mulf %90, %36 : vector<8x128xf32>
    %100 = arith.mulf %84, %92 : vector<8x128xf32>
    %101 = arith.addf %99, %100 : vector<8x128xf32>
    %102 = math.tanh %101 : vector<8x128xf32>
    %103 = arith.mulf %98, %102 : vector<8x128xf32>
    %cst_34 = arith.constant dense<0.000000e+00> : vector<8x512xf32>
    %104 = tpu.matmul %103, %3, %cst_34 {dimension_numbers = #tpu.dot_dimension_numbers<[1], [0], [0], [1], [0, 0, 1, 1], [], []>} : vector<8x128xf32>, vector<128x512xf32>, vector<8x512xf32> -> vector<8x512xf32>
    %cst_35 = arith.constant dense<0.000000e+00> : vector<8x512xf32>
    %105 = tpu.matmul %68, %4, %cst_35 {dimension_numbers = #tpu.dot_dimension_numbers<[1], [0], [0], [1], [0, 0, 1, 1], [], []>} : vector<8x128xf32>, vector<128x512xf32>, vector<8x512xf32> -> vector<8x512xf32>
    %106 = arith.addf %104, %105 : vector<8x512xf32>
    %107 = vector.broadcast %5 : vector<1x512xf32> to vector<8x512xf32>
    %108 = arith.addf %106, %107 : vector<8x512xf32>
    %109 = vector.extract_strided_slice %108 {offsets = [0, 0], sizes = [8, 128], strides = [1, 1]} : vector<8x512xf32> to vector<8x128xf32>
    %110 = arith.negf %109 : vector<8x128xf32>
    %111 = math.exp %110 : vector<8x128xf32>
    %cst_36 = arith.constant 1.000000e+00 : f32
    %112 = vector.broadcast %cst_36 : f32 to vector<8x128xf32>
    %113 = arith.addf %112, %111 : vector<8x128xf32>
    %114 = arith.divf %112, %113 : vector<8x128xf32>
    %115 = vector.extract_strided_slice %108 {offsets = [0, 128], sizes = [8, 128], strides = [1, 1]} : vector<8x512xf32> to vector<8x128xf32>
    %116 = arith.negf %115 : vector<8x128xf32>
    %117 = math.exp %116 : vector<8x128xf32>
    %cst_37 = arith.constant 1.000000e+00 : f32
    %118 = vector.broadcast %cst_37 : f32 to vector<8x128xf32>
    %119 = arith.addf %118, %117 : vector<8x128xf32>
    %120 = arith.divf %118, %119 : vector<8x128xf32>
    %121 = vector.extract_strided_slice %108 {offsets = [0, 256], sizes = [8, 128], strides = [1, 1]} : vector<8x512xf32> to vector<8x128xf32>
    %122 = math.tanh %121 : vector<8x128xf32>
    %123 = vector.extract_strided_slice %108 {offsets = [0, 384], sizes = [8, 128], strides = [1, 1]} : vector<8x512xf32> to vector<8x128xf32>
    %124 = arith.negf %123 : vector<8x128xf32>
    %125 = math.exp %124 : vector<8x128xf32>
    %cst_38 = arith.constant 1.000000e+00 : f32
    %126 = vector.broadcast %cst_38 : f32 to vector<8x128xf32>
    %127 = arith.addf %126, %125 : vector<8x128xf32>
    %128 = arith.divf %126, %127 : vector<8x128xf32>
    %129 = arith.mulf %120, %66 : vector<8x128xf32>
    %130 = arith.mulf %114, %122 : vector<8x128xf32>
    %131 = arith.addf %129, %130 : vector<8x128xf32>
    %132 = math.tanh %131 : vector<8x128xf32>
    %133 = arith.mulf %128, %132 : vector<8x128xf32>
    %c1_39 = arith.constant 1 : index
    %c0_40 = arith.constant 0 : index
    %c0_41 = arith.constant 0 : index
    %134 = vector.load %arg8[%c1_39, %c0_40, %c0_41] : memref<8x8x128xf32, #tpu.memory_space<vmem>>, vector<1x8x128xf32>
    %135 = vector.shape_cast %134 : vector<1x8x128xf32> to vector<8x128xf32>
    %136 = vector.shape_cast %133 : vector<8x128xf32> to vector<1x8x128xf32>
    tpu.vector_store %arg8[%c1_39, %c0_40, %c0_41], %136 {strides = array<i32>} : memref<8x8x128xf32, #tpu.memory_space<vmem>>, vector<1x8x128xf32>,
    %c2 = arith.constant 2 : index
    %c0_42 = arith.constant 0 : index
    %c0_43 = arith.constant 0 : index
    %137 = vector.load %arg1[%c2, %c0_42, %c0_43] : memref<8x8x32xf32, #tpu.memory_space<vmem>>, vector<1x8x32xf32>
    %138 = vector.shape_cast %137 : vector<1x8x32xf32> to vector<8x32xf32>
    %cst_44 = arith.constant dense<0.000000e+00> : vector<8x512xf32>
    %139 = tpu.matmul %138, %0, %cst_44 {dimension_numbers = #tpu.dot_dimension_numbers<[1], [0], [0], [1], [0, 0, 1, 1], [], []>} : vector<8x32xf32>, vector<32x512xf32>, vector<8x512xf32> -> vector<8x512xf32>
    %cst_45 = arith.constant dense<0.000000e+00> : vector<8x512xf32>
    %140 = tpu.matmul %103, %1, %cst_45 {dimension_numbers = #tpu.dot_dimension_numbers<[1], [0], [0], [1], [0, 0, 1, 1], [], []>} : vector<8x128xf32>, vector<128x512xf32>, vector<8x512xf32> -> vector<8x512xf32>
    %141 = arith.addf %139, %140 : vector<8x512xf32>
    %142 = vector.broadcast %2 : vector<1x512xf32> to vector<8x512xf32>
    %143 = arith.addf %141, %142 : vector<8x512xf32>
    %144 = vector.extract_strided_slice %143 {offsets = [0, 0], sizes = [8, 128], strides = [1, 1]} : vector<8x512xf32> to vector<8x128xf32>
    %145 = arith.negf %144 : vector<8x128xf32>
    %146 = math.exp %145 : vector<8x128xf32>
    %cst_46 = arith.constant 1.000000e+00 : f32
    %147 = vector.broadcast %cst_46 : f32 to vector<8x128xf32>
    %148 = arith.addf %147, %146 : vector<8x128xf32>
    %149 = arith.divf %147, %148 : vector<8x128xf32>
    %150 = vector.extract_strided_slice %143 {offsets = [0, 128], sizes = [8, 128], strides = [1, 1]} : vector<8x512xf32> to vector<8x128xf32>
    %151 = arith.negf %150 : vector<8x128xf32>
    %152 = math.exp %151 : vector<8x128xf32>
    %cst_47 = arith.constant 1.000000e+00 : f32
    %153 = vector.broadcast %cst_47 : f32 to vector<8x128xf32>
    %154 = arith.addf %153, %152 : vector<8x128xf32>
    %155 = arith.divf %153, %154 : vector<8x128xf32>
    %156 = vector.extract_strided_slice %143 {offsets = [0, 256], sizes = [8, 128], strides = [1, 1]} : vector<8x512xf32> to vector<8x128xf32>
    %157 = math.tanh %156 : vector<8x128xf32>
    %158 = vector.extract_strided_slice %143 {offsets = [0, 384], sizes = [8, 128], strides = [1, 1]} : vector<8x512xf32> to vector<8x128xf32>
    %159 = arith.negf %158 : vector<8x128xf32>
    %160 = math.exp %159 : vector<8x128xf32>
    %cst_48 = arith.constant 1.000000e+00 : f32
    %161 = vector.broadcast %cst_48 : f32 to vector<8x128xf32>
    %162 = arith.addf %161, %160 : vector<8x128xf32>
    %163 = arith.divf %161, %162 : vector<8x128xf32>
    %164 = arith.mulf %155, %101 : vector<8x128xf32>
    %165 = arith.mulf %149, %157 : vector<8x128xf32>
    %166 = arith.addf %164, %165 : vector<8x128xf32>
    %167 = math.tanh %166 : vector<8x128xf32>
    %168 = arith.mulf %163, %167 : vector<8x128xf32>
    %cst_49 = arith.constant dense<0.000000e+00> : vector<8x512xf32>
    %169 = tpu.matmul %168, %3, %cst_49 {dimension_numbers = #tpu.dot_dimension_numbers<[1], [0], [0], [1], [0, 0, 1, 1], [], []>} : vector<8x128xf32>, vector<128x512xf32>, vector<8x512xf32> -> vector<8x512xf32>
    %cst_50 = arith.constant dense<0.000000e+00> : vector<8x512xf32>
    %170 = tpu.matmul %133, %4, %cst_50 {dimension_numbers = #tpu.dot_dimension_numbers<[1], [0], [0], [1], [0, 0, 1, 1], [], []>} : vector<8x128xf32>, vector<128x512xf32>, vector<8x512xf32> -> vector<8x512xf32>
    %171 = arith.addf %169, %170 : vector<8x512xf32>
    %172 = vector.broadcast %5 : vector<1x512xf32> to vector<8x512xf32>
    %173 = arith.addf %171, %172 : vector<8x512xf32>
    %174 = vector.extract_strided_slice %173 {offsets = [0, 0], sizes = [8, 128], strides = [1, 1]} : vector<8x512xf32> to vector<8x128xf32>
    %175 = arith.negf %174 : vector<8x128xf32>
    %176 = math.exp %175 : vector<8x128xf32>
    %cst_51 = arith.constant 1.000000e+00 : f32
    %177 = vector.broadcast %cst_51 : f32 to vector<8x128xf32>
    %178 = arith.addf %177, %176 : vector<8x128xf32>
    %179 = arith.divf %177, %178 : vector<8x128xf32>
    %180 = vector.extract_strided_slice %173 {offsets = [0, 128], sizes = [8, 128], strides = [1, 1]} : vector<8x512xf32> to vector<8x128xf32>
    %181 = arith.negf %180 : vector<8x128xf32>
    %182 = math.exp %181 : vector<8x128xf32>
    %cst_52 = arith.constant 1.000000e+00 : f32
    %183 = vector.broadcast %cst_52 : f32 to vector<8x128xf32>
    %184 = arith.addf %183, %182 : vector<8x128xf32>
    %185 = arith.divf %183, %184 : vector<8x128xf32>
    %186 = vector.extract_strided_slice %173 {offsets = [0, 256], sizes = [8, 128], strides = [1, 1]} : vector<8x512xf32> to vector<8x128xf32>
    %187 = math.tanh %186 : vector<8x128xf32>
    %188 = vector.extract_strided_slice %173 {offsets = [0, 384], sizes = [8, 128], strides = [1, 1]} : vector<8x512xf32> to vector<8x128xf32>
    %189 = arith.negf %188 : vector<8x128xf32>
    %190 = math.exp %189 : vector<8x128xf32>
    %cst_53 = arith.constant 1.000000e+00 : f32
    %191 = vector.broadcast %cst_53 : f32 to vector<8x128xf32>
    %192 = arith.addf %191, %190 : vector<8x128xf32>
    %193 = arith.divf %191, %192 : vector<8x128xf32>
    %194 = arith.mulf %185, %131 : vector<8x128xf32>
    %195 = arith.mulf %179, %187 : vector<8x128xf32>
    %196 = arith.addf %194, %195 : vector<8x128xf32>
    %197 = math.tanh %196 : vector<8x128xf32>
    %198 = arith.mulf %193, %197 : vector<8x128xf32>
    %c2_54 = arith.constant 2 : index
    %c0_55 = arith.constant 0 : index
    %c0_56 = arith.constant 0 : index
    %199 = vector.load %arg8[%c2_54, %c0_55, %c0_56] : memref<8x8x128xf32, #tpu.memory_space<vmem>>, vector<1x8x128xf32>
    %200 = vector.shape_cast %199 : vector<1x8x128xf32> to vector<8x128xf32>
    %201 = vector.shape_cast %198 : vector<8x128xf32> to vector<1x8x128xf32>
    tpu.vector_store %arg8[%c2_54, %c0_55, %c0_56], %201 {strides = array<i32>} : memref<8x8x128xf32, #tpu.memory_space<vmem>>, vector<1x8x128xf32>,
    %c3 = arith.constant 3 : index
    %c0_57 = arith.constant 0 : index
    %c0_58 = arith.constant 0 : index
    %202 = vector.load %arg1[%c3, %c0_57, %c0_58] : memref<8x8x32xf32, #tpu.memory_space<vmem>>, vector<1x8x32xf32>
    %203 = vector.shape_cast %202 : vector<1x8x32xf32> to vector<8x32xf32>
    %cst_59 = arith.constant dense<0.000000e+00> : vector<8x512xf32>
    %204 = tpu.matmul %203, %0, %cst_59 {dimension_numbers = #tpu.dot_dimension_numbers<[1], [0], [0], [1], [0, 0, 1, 1], [], []>} : vector<8x32xf32>, vector<32x512xf32>, vector<8x512xf32> -> vector<8x512xf32>
    %cst_60 = arith.constant dense<0.000000e+00> : vector<8x512xf32>
    %205 = tpu.matmul %168, %1, %cst_60 {dimension_numbers = #tpu.dot_dimension_numbers<[1], [0], [0], [1], [0, 0, 1, 1], [], []>} : vector<8x128xf32>, vector<128x512xf32>, vector<8x512xf32> -> vector<8x512xf32>
    %206 = arith.addf %204, %205 : vector<8x512xf32>
    %207 = vector.broadcast %2 : vector<1x512xf32> to vector<8x512xf32>
    %208 = arith.addf %206, %207 : vector<8x512xf32>
    %209 = vector.extract_strided_slice %208 {offsets = [0, 0], sizes = [8, 128], strides = [1, 1]} : vector<8x512xf32> to vector<8x128xf32>
    %210 = arith.negf %209 : vector<8x128xf32>
    %211 = math.exp %210 : vector<8x128xf32>
    %cst_61 = arith.constant 1.000000e+00 : f32
    %212 = vector.broadcast %cst_61 : f32 to vector<8x128xf32>
    %213 = arith.addf %212, %211 : vector<8x128xf32>
    %214 = arith.divf %212, %213 : vector<8x128xf32>
    %215 = vector.extract_strided_slice %208 {offsets = [0, 128], sizes = [8, 128], strides = [1, 1]} : vector<8x512xf32> to vector<8x128xf32>
    %216 = arith.negf %215 : vector<8x128xf32>
    %217 = math.exp %216 : vector<8x128xf32>
    %cst_62 = arith.constant 1.000000e+00 : f32
    %218 = vector.broadcast %cst_62 : f32 to vector<8x128xf32>
    %219 = arith.addf %218, %217 : vector<8x128xf32>
    %220 = arith.divf %218, %219 : vector<8x128xf32>
    %221 = vector.extract_strided_slice %208 {offsets = [0, 256], sizes = [8, 128], strides = [1, 1]} : vector<8x512xf32> to vector<8x128xf32>
    %222 = math.tanh %221 : vector<8x128xf32>
    %223 = vector.extract_strided_slice %208 {offsets = [0, 384], sizes = [8, 128], strides = [1, 1]} : vector<8x512xf32> to vector<8x128xf32>
    %224 = arith.negf %223 : vector<8x128xf32>
    %225 = math.exp %224 : vector<8x128xf32>
    %cst_63 = arith.constant 1.000000e+00 : f32
    %226 = vector.broadcast %cst_63 : f32 to vector<8x128xf32>
    %227 = arith.addf %226, %225 : vector<8x128xf32>
    %228 = arith.divf %226, %227 : vector<8x128xf32>
    %229 = arith.mulf %220, %166 : vector<8x128xf32>
    %230 = arith.mulf %214, %222 : vector<8x128xf32>
    %231 = arith.addf %229, %230 : vector<8x128xf32>
    %232 = math.tanh %231 : vector<8x128xf32>
    %233 = arith.mulf %228, %232 : vector<8x128xf32>
    %cst_64 = arith.constant dense<0.000000e+00> : vector<8x512xf32>
    %234 = tpu.matmul %233, %3, %cst_64 {dimension_numbers = #tpu.dot_dimension_numbers<[1], [0], [0], [1], [0, 0, 1, 1], [], []>} : vector<8x128xf32>, vector<128x512xf32>, vector<8x512xf32> -> vector<8x512xf32>
    %cst_65 = arith.constant dense<0.000000e+00> : vector<8x512xf32>
    %235 = tpu.matmul %198, %4, %cst_65 {dimension_numbers = #tpu.dot_dimension_numbers<[1], [0], [0], [1], [0, 0, 1, 1], [], []>} : vector<8x128xf32>, vector<128x512xf32>, vector<8x512xf32> -> vector<8x512xf32>
    %236 = arith.addf %234, %235 : vector<8x512xf32>
    %237 = vector.broadcast %5 : vector<1x512xf32> to vector<8x512xf32>
    %238 = arith.addf %236, %237 : vector<8x512xf32>
    %239 = vector.extract_strided_slice %238 {offsets = [0, 0], sizes = [8, 128], strides = [1, 1]} : vector<8x512xf32> to vector<8x128xf32>
    %240 = arith.negf %239 : vector<8x128xf32>
    %241 = math.exp %240 : vector<8x128xf32>
    %cst_66 = arith.constant 1.000000e+00 : f32
    %242 = vector.broadcast %cst_66 : f32 to vector<8x128xf32>
    %243 = arith.addf %242, %241 : vector<8x128xf32>
    %244 = arith.divf %242, %243 : vector<8x128xf32>
    %245 = vector.extract_strided_slice %238 {offsets = [0, 128], sizes = [8, 128], strides = [1, 1]} : vector<8x512xf32> to vector<8x128xf32>
    %246 = arith.negf %245 : vector<8x128xf32>
    %247 = math.exp %246 : vector<8x128xf32>
    %cst_67 = arith.constant 1.000000e+00 : f32
    %248 = vector.broadcast %cst_67 : f32 to vector<8x128xf32>
    %249 = arith.addf %248, %247 : vector<8x128xf32>
    %250 = arith.divf %248, %249 : vector<8x128xf32>
    %251 = vector.extract_strided_slice %238 {offsets = [0, 256], sizes = [8, 128], strides = [1, 1]} : vector<8x512xf32> to vector<8x128xf32>
    %252 = math.tanh %251 : vector<8x128xf32>
    %253 = vector.extract_strided_slice %238 {offsets = [0, 384], sizes = [8, 128], strides = [1, 1]} : vector<8x512xf32> to vector<8x128xf32>
    %254 = arith.negf %253 : vector<8x128xf32>
    %255 = math.exp %254 : vector<8x128xf32>
    %cst_68 = arith.constant 1.000000e+00 : f32
    %256 = vector.broadcast %cst_68 : f32 to vector<8x128xf32>
    %257 = arith.addf %256, %255 : vector<8x128xf32>
    %258 = arith.divf %256, %257 : vector<8x128xf32>
    %259 = arith.mulf %250, %196 : vector<8x128xf32>
    %260 = arith.mulf %244, %252 : vector<8x128xf32>
    %261 = arith.addf %259, %260 : vector<8x128xf32>
    %262 = math.tanh %261 : vector<8x128xf32>
    %263 = arith.mulf %258, %262 : vector<8x128xf32>
    %c3_69 = arith.constant 3 : index
    %c0_70 = arith.constant 0 : index
    %c0_71 = arith.constant 0 : index
    %264 = vector.load %arg8[%c3_69, %c0_70, %c0_71] : memref<8x8x128xf32, #tpu.memory_space<vmem>>, vector<1x8x128xf32>
    %265 = vector.shape_cast %264 : vector<1x8x128xf32> to vector<8x128xf32>
    %266 = vector.shape_cast %263 : vector<8x128xf32> to vector<1x8x128xf32>
    tpu.vector_store %arg8[%c3_69, %c0_70, %c0_71], %266 {strides = array<i32>} : memref<8x8x128xf32, #tpu.memory_space<vmem>>, vector<1x8x128xf32>,
    %c4 = arith.constant 4 : index
    %c0_72 = arith.constant 0 : index
    %c0_73 = arith.constant 0 : index
    %267 = vector.load %arg1[%c4, %c0_72, %c0_73] : memref<8x8x32xf32, #tpu.memory_space<vmem>>, vector<1x8x32xf32>
    %268 = vector.shape_cast %267 : vector<1x8x32xf32> to vector<8x32xf32>
    %cst_74 = arith.constant dense<0.000000e+00> : vector<8x512xf32>
    %269 = tpu.matmul %268, %0, %cst_74 {dimension_numbers = #tpu.dot_dimension_numbers<[1], [0], [0], [1], [0, 0, 1, 1], [], []>} : vector<8x32xf32>, vector<32x512xf32>, vector<8x512xf32> -> vector<8x512xf32>
    %cst_75 = arith.constant dense<0.000000e+00> : vector<8x512xf32>
    %270 = tpu.matmul %233, %1, %cst_75 {dimension_numbers = #tpu.dot_dimension_numbers<[1], [0], [0], [1], [0, 0, 1, 1], [], []>} : vector<8x128xf32>, vector<128x512xf32>, vector<8x512xf32> -> vector<8x512xf32>
    %271 = arith.addf %269, %270 : vector<8x512xf32>
    %272 = vector.broadcast %2 : vector<1x512xf32> to vector<8x512xf32>
    %273 = arith.addf %271, %272 : vector<8x512xf32>
    %274 = vector.extract_strided_slice %273 {offsets = [0, 0], sizes = [8, 128], strides = [1, 1]} : vector<8x512xf32> to vector<8x128xf32>
    %275 = arith.negf %274 : vector<8x128xf32>
    %276 = math.exp %275 : vector<8x128xf32>
    %cst_76 = arith.constant 1.000000e+00 : f32
    %277 = vector.broadcast %cst_76 : f32 to vector<8x128xf32>
    %278 = arith.addf %277, %276 : vector<8x128xf32>
    %279 = arith.divf %277, %278 : vector<8x128xf32>
    %280 = vector.extract_strided_slice %273 {offsets = [0, 128], sizes = [8, 128], strides = [1, 1]} : vector<8x512xf32> to vector<8x128xf32>
    %281 = arith.negf %280 : vector<8x128xf32>
    %282 = math.exp %281 : vector<8x128xf32>
    %cst_77 = arith.constant 1.000000e+00 : f32
    %283 = vector.broadcast %cst_77 : f32 to vector<8x128xf32>
    %284 = arith.addf %283, %282 : vector<8x128xf32>
    %285 = arith.divf %283, %284 : vector<8x128xf32>
    %286 = vector.extract_strided_slice %273 {offsets = [0, 256], sizes = [8, 128], strides = [1, 1]} : vector<8x512xf32> to vector<8x128xf32>
    %287 = math.tanh %286 : vector<8x128xf32>
    %288 = vector.extract_strided_slice %273 {offsets = [0, 384], sizes = [8, 128], strides = [1, 1]} : vector<8x512xf32> to vector<8x128xf32>
    %289 = arith.negf %288 : vector<8x128xf32>
    %290 = math.exp %289 : vector<8x128xf32>
    %cst_78 = arith.constant 1.000000e+00 : f32
    %291 = vector.broadcast %cst_78 : f32 to vector<8x128xf32>
    %292 = arith.addf %291, %290 : vector<8x128xf32>
    %293 = arith.divf %291, %292 : vector<8x128xf32>
    %294 = arith.mulf %285, %231 : vector<8x128xf32>
    %295 = arith.mulf %279, %287 : vector<8x128xf32>
    %296 = arith.addf %294, %295 : vector<8x128xf32>
    %297 = math.tanh %296 : vector<8x128xf32>
    %298 = arith.mulf %293, %297 : vector<8x128xf32>
    %cst_79 = arith.constant dense<0.000000e+00> : vector<8x512xf32>
    %299 = tpu.matmul %298, %3, %cst_79 {dimension_numbers = #tpu.dot_dimension_numbers<[1], [0], [0], [1], [0, 0, 1, 1], [], []>} : vector<8x128xf32>, vector<128x512xf32>, vector<8x512xf32> -> vector<8x512xf32>
    %cst_80 = arith.constant dense<0.000000e+00> : vector<8x512xf32>
    %300 = tpu.matmul %263, %4, %cst_80 {dimension_numbers = #tpu.dot_dimension_numbers<[1], [0], [0], [1], [0, 0, 1, 1], [], []>} : vector<8x128xf32>, vector<128x512xf32>, vector<8x512xf32> -> vector<8x512xf32>
    %301 = arith.addf %299, %300 : vector<8x512xf32>
    %302 = vector.broadcast %5 : vector<1x512xf32> to vector<8x512xf32>
    %303 = arith.addf %301, %302 : vector<8x512xf32>
    %304 = vector.extract_strided_slice %303 {offsets = [0, 0], sizes = [8, 128], strides = [1, 1]} : vector<8x512xf32> to vector<8x128xf32>
    %305 = arith.negf %304 : vector<8x128xf32>
    %306 = math.exp %305 : vector<8x128xf32>
    %cst_81 = arith.constant 1.000000e+00 : f32
    %307 = vector.broadcast %cst_81 : f32 to vector<8x128xf32>
    %308 = arith.addf %307, %306 : vector<8x128xf32>
    %309 = arith.divf %307, %308 : vector<8x128xf32>
    %310 = vector.extract_strided_slice %303 {offsets = [0, 128], sizes = [8, 128], strides = [1, 1]} : vector<8x512xf32> to vector<8x128xf32>
    %311 = arith.negf %310 : vector<8x128xf32>
    %312 = math.exp %311 : vector<8x128xf32>
    %cst_82 = arith.constant 1.000000e+00 : f32
    %313 = vector.broadcast %cst_82 : f32 to vector<8x128xf32>
    %314 = arith.addf %313, %312 : vector<8x128xf32>
    %315 = arith.divf %313, %314 : vector<8x128xf32>
    %316 = vector.extract_strided_slice %303 {offsets = [0, 256], sizes = [8, 128], strides = [1, 1]} : vector<8x512xf32> to vector<8x128xf32>
    %317 = math.tanh %316 : vector<8x128xf32>
    %318 = vector.extract_strided_slice %303 {offsets = [0, 384], sizes = [8, 128], strides = [1, 1]} : vector<8x512xf32> to vector<8x128xf32>
    %319 = arith.negf %318 : vector<8x128xf32>
    %320 = math.exp %319 : vector<8x128xf32>
    %cst_83 = arith.constant 1.000000e+00 : f32
    %321 = vector.broadcast %cst_83 : f32 to vector<8x128xf32>
    %322 = arith.addf %321, %320 : vector<8x128xf32>
    %323 = arith.divf %321, %322 : vector<8x128xf32>
    %324 = arith.mulf %315, %261 : vector<8x128xf32>
    %325 = arith.mulf %309, %317 : vector<8x128xf32>
    %326 = arith.addf %324, %325 : vector<8x128xf32>
    %327 = math.tanh %326 : vector<8x128xf32>
    %328 = arith.mulf %323, %327 : vector<8x128xf32>
    %c4_84 = arith.constant 4 : index
    %c0_85 = arith.constant 0 : index
    %c0_86 = arith.constant 0 : index
    %329 = vector.load %arg8[%c4_84, %c0_85, %c0_86] : memref<8x8x128xf32, #tpu.memory_space<vmem>>, vector<1x8x128xf32>
    %330 = vector.shape_cast %329 : vector<1x8x128xf32> to vector<8x128xf32>
    %331 = vector.shape_cast %328 : vector<8x128xf32> to vector<1x8x128xf32>
    tpu.vector_store %arg8[%c4_84, %c0_85, %c0_86], %331 {strides = array<i32>} : memref<8x8x128xf32, #tpu.memory_space<vmem>>, vector<1x8x128xf32>,
    %c5 = arith.constant 5 : index
    %c0_87 = arith.constant 0 : index
    %c0_88 = arith.constant 0 : index
    %332 = vector.load %arg1[%c5, %c0_87, %c0_88] : memref<8x8x32xf32, #tpu.memory_space<vmem>>, vector<1x8x32xf32>
    %333 = vector.shape_cast %332 : vector<1x8x32xf32> to vector<8x32xf32>
    %cst_89 = arith.constant dense<0.000000e+00> : vector<8x512xf32>
    %334 = tpu.matmul %333, %0, %cst_89 {dimension_numbers = #tpu.dot_dimension_numbers<[1], [0], [0], [1], [0, 0, 1, 1], [], []>} : vector<8x32xf32>, vector<32x512xf32>, vector<8x512xf32> -> vector<8x512xf32>
    %cst_90 = arith.constant dense<0.000000e+00> : vector<8x512xf32>
    %335 = tpu.matmul %298, %1, %cst_90 {dimension_numbers = #tpu.dot_dimension_numbers<[1], [0], [0], [1], [0, 0, 1, 1], [], []>} : vector<8x128xf32>, vector<128x512xf32>, vector<8x512xf32> -> vector<8x512xf32>
    %336 = arith.addf %334, %335 : vector<8x512xf32>
    %337 = vector.broadcast %2 : vector<1x512xf32> to vector<8x512xf32>
    %338 = arith.addf %336, %337 : vector<8x512xf32>
    %339 = vector.extract_strided_slice %338 {offsets = [0, 0], sizes = [8, 128], strides = [1, 1]} : vector<8x512xf32> to vector<8x128xf32>
    %340 = arith.negf %339 : vector<8x128xf32>
    %341 = math.exp %340 : vector<8x128xf32>
    %cst_91 = arith.constant 1.000000e+00 : f32
    %342 = vector.broadcast %cst_91 : f32 to vector<8x128xf32>
    %343 = arith.addf %342, %341 : vector<8x128xf32>
    %344 = arith.divf %342, %343 : vector<8x128xf32>
    %345 = vector.extract_strided_slice %338 {offsets = [0, 128], sizes = [8, 128], strides = [1, 1]} : vector<8x512xf32> to vector<8x128xf32>
    %346 = arith.negf %345 : vector<8x128xf32>
    %347 = math.exp %346 : vector<8x128xf32>
    %cst_92 = arith.constant 1.000000e+00 : f32
    %348 = vector.broadcast %cst_92 : f32 to vector<8x128xf32>
    %349 = arith.addf %348, %347 : vector<8x128xf32>
    %350 = arith.divf %348, %349 : vector<8x128xf32>
    %351 = vector.extract_strided_slice %338 {offsets = [0, 256], sizes = [8, 128], strides = [1, 1]} : vector<8x512xf32> to vector<8x128xf32>
    %352 = math.tanh %351 : vector<8x128xf32>
    %353 = vector.extract_strided_slice %338 {offsets = [0, 384], sizes = [8, 128], strides = [1, 1]} : vector<8x512xf32> to vector<8x128xf32>
    %354 = arith.negf %353 : vector<8x128xf32>
    %355 = math.exp %354 : vector<8x128xf32>
    %cst_93 = arith.constant 1.000000e+00 : f32
    %356 = vector.broadcast %cst_93 : f32 to vector<8x128xf32>
    %357 = arith.addf %356, %355 : vector<8x128xf32>
    %358 = arith.divf %356, %357 : vector<8x128xf32>
    %359 = arith.mulf %350, %296 : vector<8x128xf32>
    %360 = arith.mulf %344, %352 : vector<8x128xf32>
    %361 = arith.addf %359, %360 : vector<8x128xf32>
    %362 = math.tanh %361 : vector<8x128xf32>
    %363 = arith.mulf %358, %362 : vector<8x128xf32>
    %cst_94 = arith.constant dense<0.000000e+00> : vector<8x512xf32>
    %364 = tpu.matmul %363, %3, %cst_94 {dimension_numbers = #tpu.dot_dimension_numbers<[1], [0], [0], [1], [0, 0, 1, 1], [], []>} : vector<8x128xf32>, vector<128x512xf32>, vector<8x512xf32> -> vector<8x512xf32>
    %cst_95 = arith.constant dense<0.000000e+00> : vector<8x512xf32>
    %365 = tpu.matmul %328, %4, %cst_95 {dimension_numbers = #tpu.dot_dimension_numbers<[1], [0], [0], [1], [0, 0, 1, 1], [], []>} : vector<8x128xf32>, vector<128x512xf32>, vector<8x512xf32> -> vector<8x512xf32>
    %366 = arith.addf %364, %365 : vector<8x512xf32>
    %367 = vector.broadcast %5 : vector<1x512xf32> to vector<8x512xf32>
    %368 = arith.addf %366, %367 : vector<8x512xf32>
    %369 = vector.extract_strided_slice %368 {offsets = [0, 0], sizes = [8, 128], strides = [1, 1]} : vector<8x512xf32> to vector<8x128xf32>
    %370 = arith.negf %369 : vector<8x128xf32>
    %371 = math.exp %370 : vector<8x128xf32>
    %cst_96 = arith.constant 1.000000e+00 : f32
    %372 = vector.broadcast %cst_96 : f32 to vector<8x128xf32>
    %373 = arith.addf %372, %371 : vector<8x128xf32>
    %374 = arith.divf %372, %373 : vector<8x128xf32>
    %375 = vector.extract_strided_slice %368 {offsets = [0, 128], sizes = [8, 128], strides = [1, 1]} : vector<8x512xf32> to vector<8x128xf32>
    %376 = arith.negf %375 : vector<8x128xf32>
    %377 = math.exp %376 : vector<8x128xf32>
    %cst_97 = arith.constant 1.000000e+00 : f32
    %378 = vector.broadcast %cst_97 : f32 to vector<8x128xf32>
    %379 = arith.addf %378, %377 : vector<8x128xf32>
    %380 = arith.divf %378, %379 : vector<8x128xf32>
    %381 = vector.extract_strided_slice %368 {offsets = [0, 256], sizes = [8, 128], strides = [1, 1]} : vector<8x512xf32> to vector<8x128xf32>
    %382 = math.tanh %381 : vector<8x128xf32>
    %383 = vector.extract_strided_slice %368 {offsets = [0, 384], sizes = [8, 128], strides = [1, 1]} : vector<8x512xf32> to vector<8x128xf32>
    %384 = arith.negf %383 : vector<8x128xf32>
    %385 = math.exp %384 : vector<8x128xf32>
    %cst_98 = arith.constant 1.000000e+00 : f32
    %386 = vector.broadcast %cst_98 : f32 to vector<8x128xf32>
    %387 = arith.addf %386, %385 : vector<8x128xf32>
    %388 = arith.divf %386, %387 : vector<8x128xf32>
    %389 = arith.mulf %380, %326 : vector<8x128xf32>
    %390 = arith.mulf %374, %382 : vector<8x128xf32>
    %391 = arith.addf %389, %390 : vector<8x128xf32>
    %392 = math.tanh %391 : vector<8x128xf32>
    %393 = arith.mulf %388, %392 : vector<8x128xf32>
    %c5_99 = arith.constant 5 : index
    %c0_100 = arith.constant 0 : index
    %c0_101 = arith.constant 0 : index
    %394 = vector.load %arg8[%c5_99, %c0_100, %c0_101] : memref<8x8x128xf32, #tpu.memory_space<vmem>>, vector<1x8x128xf32>
    %395 = vector.shape_cast %394 : vector<1x8x128xf32> to vector<8x128xf32>
    %396 = vector.shape_cast %393 : vector<8x128xf32> to vector<1x8x128xf32>
    tpu.vector_store %arg8[%c5_99, %c0_100, %c0_101], %396 {strides = array<i32>} : memref<8x8x128xf32, #tpu.memory_space<vmem>>, vector<1x8x128xf32>,
    %c6 = arith.constant 6 : index
    %c0_102 = arith.constant 0 : index
    %c0_103 = arith.constant 0 : index
    %397 = vector.load %arg1[%c6, %c0_102, %c0_103] : memref<8x8x32xf32, #tpu.memory_space<vmem>>, vector<1x8x32xf32>
    %398 = vector.shape_cast %397 : vector<1x8x32xf32> to vector<8x32xf32>
    %cst_104 = arith.constant dense<0.000000e+00> : vector<8x512xf32>
    %399 = tpu.matmul %398, %0, %cst_104 {dimension_numbers = #tpu.dot_dimension_numbers<[1], [0], [0], [1], [0, 0, 1, 1], [], []>} : vector<8x32xf32>, vector<32x512xf32>, vector<8x512xf32> -> vector<8x512xf32>
    %cst_105 = arith.constant dense<0.000000e+00> : vector<8x512xf32>
    %400 = tpu.matmul %363, %1, %cst_105 {dimension_numbers = #tpu.dot_dimension_numbers<[1], [0], [0], [1], [0, 0, 1, 1], [], []>} : vector<8x128xf32>, vector<128x512xf32>, vector<8x512xf32> -> vector<8x512xf32>
    %401 = arith.addf %399, %400 : vector<8x512xf32>
    %402 = vector.broadcast %2 : vector<1x512xf32> to vector<8x512xf32>
    %403 = arith.addf %401, %402 : vector<8x512xf32>
    %404 = vector.extract_strided_slice %403 {offsets = [0, 0], sizes = [8, 128], strides = [1, 1]} : vector<8x512xf32> to vector<8x128xf32>
    %405 = arith.negf %404 : vector<8x128xf32>
    %406 = math.exp %405 : vector<8x128xf32>
    %cst_106 = arith.constant 1.000000e+00 : f32
    %407 = vector.broadcast %cst_106 : f32 to vector<8x128xf32>
    %408 = arith.addf %407, %406 : vector<8x128xf32>
    %409 = arith.divf %407, %408 : vector<8x128xf32>
    %410 = vector.extract_strided_slice %403 {offsets = [0, 128], sizes = [8, 128], strides = [1, 1]} : vector<8x512xf32> to vector<8x128xf32>
    %411 = arith.negf %410 : vector<8x128xf32>
    %412 = math.exp %411 : vector<8x128xf32>
    %cst_107 = arith.constant 1.000000e+00 : f32
    %413 = vector.broadcast %cst_107 : f32 to vector<8x128xf32>
    %414 = arith.addf %413, %412 : vector<8x128xf32>
    %415 = arith.divf %413, %414 : vector<8x128xf32>
    %416 = vector.extract_strided_slice %403 {offsets = [0, 256], sizes = [8, 128], strides = [1, 1]} : vector<8x512xf32> to vector<8x128xf32>
    %417 = math.tanh %416 : vector<8x128xf32>
    %418 = vector.extract_strided_slice %403 {offsets = [0, 384], sizes = [8, 128], strides = [1, 1]} : vector<8x512xf32> to vector<8x128xf32>
    %419 = arith.negf %418 : vector<8x128xf32>
    %420 = math.exp %419 : vector<8x128xf32>
    %cst_108 = arith.constant 1.000000e+00 : f32
    %421 = vector.broadcast %cst_108 : f32 to vector<8x128xf32>
    %422 = arith.addf %421, %420 : vector<8x128xf32>
    %423 = arith.divf %421, %422 : vector<8x128xf32>
    %424 = arith.mulf %415, %361 : vector<8x128xf32>
    %425 = arith.mulf %409, %417 : vector<8x128xf32>
    %426 = arith.addf %424, %425 : vector<8x128xf32>
    %427 = math.tanh %426 : vector<8x128xf32>
    %428 = arith.mulf %423, %427 : vector<8x128xf32>
    %cst_109 = arith.constant dense<0.000000e+00> : vector<8x512xf32>
    %429 = tpu.matmul %428, %3, %cst_109 {dimension_numbers = #tpu.dot_dimension_numbers<[1], [0], [0], [1], [0, 0, 1, 1], [], []>} : vector<8x128xf32>, vector<128x512xf32>, vector<8x512xf32> -> vector<8x512xf32>
    %cst_110 = arith.constant dense<0.000000e+00> : vector<8x512xf32>
    %430 = tpu.matmul %393, %4, %cst_110 {dimension_numbers = #tpu.dot_dimension_numbers<[1], [0], [0], [1], [0, 0, 1, 1], [], []>} : vector<8x128xf32>, vector<128x512xf32>, vector<8x512xf32> -> vector<8x512xf32>
    %431 = arith.addf %429, %430 : vector<8x512xf32>
    %432 = vector.broadcast %5 : vector<1x512xf32> to vector<8x512xf32>
    %433 = arith.addf %431, %432 : vector<8x512xf32>
    %434 = vector.extract_strided_slice %433 {offsets = [0, 0], sizes = [8, 128], strides = [1, 1]} : vector<8x512xf32> to vector<8x128xf32>
    %435 = arith.negf %434 : vector<8x128xf32>
    %436 = math.exp %435 : vector<8x128xf32>
    %cst_111 = arith.constant 1.000000e+00 : f32
    %437 = vector.broadcast %cst_111 : f32 to vector<8x128xf32>
    %438 = arith.addf %437, %436 : vector<8x128xf32>
    %439 = arith.divf %437, %438 : vector<8x128xf32>
    %440 = vector.extract_strided_slice %433 {offsets = [0, 128], sizes = [8, 128], strides = [1, 1]} : vector<8x512xf32> to vector<8x128xf32>
    %441 = arith.negf %440 : vector<8x128xf32>
    %442 = math.exp %441 : vector<8x128xf32>
    %cst_112 = arith.constant 1.000000e+00 : f32
    %443 = vector.broadcast %cst_112 : f32 to vector<8x128xf32>
    %444 = arith.addf %443, %442 : vector<8x128xf32>
    %445 = arith.divf %443, %444 : vector<8x128xf32>
    %446 = vector.extract_strided_slice %433 {offsets = [0, 256], sizes = [8, 128], strides = [1, 1]} : vector<8x512xf32> to vector<8x128xf32>
    %447 = math.tanh %446 : vector<8x128xf32>
    %448 = vector.extract_strided_slice %433 {offsets = [0, 384], sizes = [8, 128], strides = [1, 1]} : vector<8x512xf32> to vector<8x128xf32>
    %449 = arith.negf %448 : vector<8x128xf32>
    %450 = math.exp %449 : vector<8x128xf32>
    %cst_113 = arith.constant 1.000000e+00 : f32
    %451 = vector.broadcast %cst_113 : f32 to vector<8x128xf32>
    %452 = arith.addf %451, %450 : vector<8x128xf32>
    %453 = arith.divf %451, %452 : vector<8x128xf32>
    %454 = arith.mulf %445, %391 : vector<8x128xf32>
    %455 = arith.mulf %439, %447 : vector<8x128xf32>
    %456 = arith.addf %454, %455 : vector<8x128xf32>
    %457 = math.tanh %456 : vector<8x128xf32>
    %458 = arith.mulf %453, %457 : vector<8x128xf32>
    %c6_114 = arith.constant 6 : index
    %c0_115 = arith.constant 0 : index
    %c0_116 = arith.constant 0 : index
    %459 = vector.load %arg8[%c6_114, %c0_115, %c0_116] : memref<8x8x128xf32, #tpu.memory_space<vmem>>, vector<1x8x128xf32>
    %460 = vector.shape_cast %459 : vector<1x8x128xf32> to vector<8x128xf32>
    %461 = vector.shape_cast %458 : vector<8x128xf32> to vector<1x8x128xf32>
    tpu.vector_store %arg8[%c6_114, %c0_115, %c0_116], %461 {strides = array<i32>} : memref<8x8x128xf32, #tpu.memory_space<vmem>>, vector<1x8x128xf32>,
    %c7 = arith.constant 7 : index
    %c0_117 = arith.constant 0 : index
    %c0_118 = arith.constant 0 : index
    %462 = vector.load %arg1[%c7, %c0_117, %c0_118] : memref<8x8x32xf32, #tpu.memory_space<vmem>>, vector<1x8x32xf32>
    %463 = vector.shape_cast %462 : vector<1x8x32xf32> to vector<8x32xf32>
    %cst_119 = arith.constant dense<0.000000e+00> : vector<8x512xf32>
    %464 = tpu.matmul %463, %0, %cst_119 {dimension_numbers = #tpu.dot_dimension_numbers<[1], [0], [0], [1], [0, 0, 1, 1], [], []>} : vector<8x32xf32>, vector<32x512xf32>, vector<8x512xf32> -> vector<8x512xf32>
    %cst_120 = arith.constant dense<0.000000e+00> : vector<8x512xf32>
    %465 = tpu.matmul %428, %1, %cst_120 {dimension_numbers = #tpu.dot_dimension_numbers<[1], [0], [0], [1], [0, 0, 1, 1], [], []>} : vector<8x128xf32>, vector<128x512xf32>, vector<8x512xf32> -> vector<8x512xf32>
    %466 = arith.addf %464, %465 : vector<8x512xf32>
    %467 = vector.broadcast %2 : vector<1x512xf32> to vector<8x512xf32>
    %468 = arith.addf %466, %467 : vector<8x512xf32>
    %469 = vector.extract_strided_slice %468 {offsets = [0, 0], sizes = [8, 128], strides = [1, 1]} : vector<8x512xf32> to vector<8x128xf32>
    %470 = arith.negf %469 : vector<8x128xf32>
    %471 = math.exp %470 : vector<8x128xf32>
    %cst_121 = arith.constant 1.000000e+00 : f32
    %472 = vector.broadcast %cst_121 : f32 to vector<8x128xf32>
    %473 = arith.addf %472, %471 : vector<8x128xf32>
    %474 = arith.divf %472, %473 : vector<8x128xf32>
    %475 = vector.extract_strided_slice %468 {offsets = [0, 128], sizes = [8, 128], strides = [1, 1]} : vector<8x512xf32> to vector<8x128xf32>
    %476 = arith.negf %475 : vector<8x128xf32>
    %477 = math.exp %476 : vector<8x128xf32>
    %cst_122 = arith.constant 1.000000e+00 : f32
    %478 = vector.broadcast %cst_122 : f32 to vector<8x128xf32>
    %479 = arith.addf %478, %477 : vector<8x128xf32>
    %480 = arith.divf %478, %479 : vector<8x128xf32>
    %481 = vector.extract_strided_slice %468 {offsets = [0, 256], sizes = [8, 128], strides = [1, 1]} : vector<8x512xf32> to vector<8x128xf32>
    %482 = math.tanh %481 : vector<8x128xf32>
    %483 = vector.extract_strided_slice %468 {offsets = [0, 384], sizes = [8, 128], strides = [1, 1]} : vector<8x512xf32> to vector<8x128xf32>
    %484 = arith.negf %483 : vector<8x128xf32>
    %485 = math.exp %484 : vector<8x128xf32>
    %cst_123 = arith.constant 1.000000e+00 : f32
    %486 = vector.broadcast %cst_123 : f32 to vector<8x128xf32>
    %487 = arith.addf %486, %485 : vector<8x128xf32>
    %488 = arith.divf %486, %487 : vector<8x128xf32>
    %489 = arith.mulf %480, %426 : vector<8x128xf32>
    %490 = arith.mulf %474, %482 : vector<8x128xf32>
    %491 = arith.addf %489, %490 : vector<8x128xf32>
    %492 = math.tanh %491 : vector<8x128xf32>
    %493 = arith.mulf %488, %492 : vector<8x128xf32>
    %cst_124 = arith.constant dense<0.000000e+00> : vector<8x512xf32>
    %494 = tpu.matmul %493, %3, %cst_124 {dimension_numbers = #tpu.dot_dimension_numbers<[1], [0], [0], [1], [0, 0, 1, 1], [], []>} : vector<8x128xf32>, vector<128x512xf32>, vector<8x512xf32> -> vector<8x512xf32>
    %cst_125 = arith.constant dense<0.000000e+00> : vector<8x512xf32>
    %495 = tpu.matmul %458, %4, %cst_125 {dimension_numbers = #tpu.dot_dimension_numbers<[1], [0], [0], [1], [0, 0, 1, 1], [], []>} : vector<8x128xf32>, vector<128x512xf32>, vector<8x512xf32> -> vector<8x512xf32>
    %496 = arith.addf %494, %495 : vector<8x512xf32>
    %497 = vector.broadcast %5 : vector<1x512xf32> to vector<8x512xf32>
    %498 = arith.addf %496, %497 : vector<8x512xf32>
    %499 = vector.extract_strided_slice %498 {offsets = [0, 0], sizes = [8, 128], strides = [1, 1]} : vector<8x512xf32> to vector<8x128xf32>
    %500 = arith.negf %499 : vector<8x128xf32>
    %501 = math.exp %500 : vector<8x128xf32>
    %cst_126 = arith.constant 1.000000e+00 : f32
    %502 = vector.broadcast %cst_126 : f32 to vector<8x128xf32>
    %503 = arith.addf %502, %501 : vector<8x128xf32>
    %504 = arith.divf %502, %503 : vector<8x128xf32>
    %505 = vector.extract_strided_slice %498 {offsets = [0, 128], sizes = [8, 128], strides = [1, 1]} : vector<8x512xf32> to vector<8x128xf32>
    %506 = arith.negf %505 : vector<8x128xf32>
    %507 = math.exp %506 : vector<8x128xf32>
    %cst_127 = arith.constant 1.000000e+00 : f32
    %508 = vector.broadcast %cst_127 : f32 to vector<8x128xf32>
    %509 = arith.addf %508, %507 : vector<8x128xf32>
    %510 = arith.divf %508, %509 : vector<8x128xf32>
    %511 = vector.extract_strided_slice %498 {offsets = [0, 256], sizes = [8, 128], strides = [1, 1]} : vector<8x512xf32> to vector<8x128xf32>
    %512 = math.tanh %511 : vector<8x128xf32>
    %513 = vector.extract_strided_slice %498 {offsets = [0, 384], sizes = [8, 128], strides = [1, 1]} : vector<8x512xf32> to vector<8x128xf32>
    %514 = arith.negf %513 : vector<8x128xf32>
    %515 = math.exp %514 : vector<8x128xf32>
    %cst_128 = arith.constant 1.000000e+00 : f32
    %516 = vector.broadcast %cst_128 : f32 to vector<8x128xf32>
    %517 = arith.addf %516, %515 : vector<8x128xf32>
    %518 = arith.divf %516, %517 : vector<8x128xf32>
    %519 = arith.mulf %510, %456 : vector<8x128xf32>
    %520 = arith.mulf %504, %512 : vector<8x128xf32>
    %521 = arith.addf %519, %520 : vector<8x128xf32>
    %522 = math.tanh %521 : vector<8x128xf32>
    %523 = arith.mulf %518, %522 : vector<8x128xf32>
    %c7_129 = arith.constant 7 : index
    %c0_130 = arith.constant 0 : index
    %c0_131 = arith.constant 0 : index
    %524 = vector.load %arg8[%c7_129, %c0_130, %c0_131] : memref<8x8x128xf32, #tpu.memory_space<vmem>>, vector<1x8x128xf32>
    %525 = vector.shape_cast %524 : vector<1x8x128xf32> to vector<8x128xf32>
    %526 = vector.shape_cast %523 : vector<8x128xf32> to vector<1x8x128xf32>
    tpu.vector_store %arg8[%c7_129, %c0_130, %c0_131], %526 {strides = array<i32>} : memref<8x8x128xf32, #tpu.memory_space<vmem>>, vector<1x8x128xf32>,
    return
  }
  func.func @transform_0(%arg0: i32) -> (i32, i32, i32) {
    %c0_i32 = arith.constant 0 : i32
    %c0_i32_0 = arith.constant 0 : i32
    %c0_i32_1 = arith.constant 0 : i32
    %c0_i32_2 = arith.constant 0 : i32
    return %c0_i32, %c0_i32_0, %c0_i32_1 : i32, i32, i32
  }
  func.func @transform_1(%arg0: i32) -> (i32, i32) {
    %c0_i32 = arith.constant 0 : i32
    %c0_i32_0 = arith.constant 0 : i32
    %c0_i32_1 = arith.constant 0 : i32
    return %c0_i32, %c0_i32_0 : i32, i32
  }
  func.func @transform_2(%arg0: i32) -> (i32, i32) {
    %c0_i32 = arith.constant 0 : i32
    %c0_i32_0 = arith.constant 0 : i32
    %c0_i32_1 = arith.constant 0 : i32
    return %c0_i32, %c0_i32_0 : i32, i32
  }
  func.func @transform_3(%arg0: i32) -> (i32, i32) {
    %c0_i32 = arith.constant 0 : i32
    %c0_i32_0 = arith.constant 0 : i32
    %c0_i32_1 = arith.constant 0 : i32
    return %c0_i32, %c0_i32_0 : i32, i32
  }
  func.func @transform_4(%arg0: i32) -> (i32, i32) {
    %c0_i32 = arith.constant 0 : i32
    %c0_i32_0 = arith.constant 0 : i32
    %c0_i32_1 = arith.constant 0 : i32
    return %c0_i32, %c0_i32_0 : i32, i32
  }
  func.func @transform_5(%arg0: i32) -> (i32, i32) {
    %c0_i32 = arith.constant 0 : i32
    %c0_i32_0 = arith.constant 0 : i32
    %c0_i32_1 = arith.constant 0 : i32
    return %c0_i32, %c0_i32_0 : i32, i32
  }
  func.func @transform_6(%arg0: i32) -> (i32, i32) {
    %c0_i32 = arith.constant 0 : i32
    %c0_i32_0 = arith.constant 0 : i32
    %c0_i32_1 = arith.constant 0 : i32
    return %c0_i32, %c0_i32_0 : i32, i32
  }
  func.func @transform_7(%arg0: i32) -> (i32, i32, i32) {
    %c0_i32 = arith.constant 0 : i32
    %c0_i32_0 = arith.constant 0 : i32
    %c0_i32_1 = arith.constant 0 : i32
    %c0_i32_2 = arith.constant 0 : i32
    return %c0_i32, %c0_i32_0, %c0_i32_1 : i32, i32, i32
  }
}

</mosaic_0001>

<bundles_post_ra>
// kernel: tpu_custom_call.1
= control target key start
LH: loop header
LB: loop body
LE: loop exit
PB: predicated region body
PF: predicated region fallthrough
CT: control target
= control target key end

     0   :  { %12 = vsyncpa [#allocation3], 0  ;;  %s10201_s0 = inlined_call_operand.hbm [shape: f32[8,8,32], index: 0, kind: input, shape index: {}]   ;;  %s10202_s1 = inlined_call_operand.hbm [shape: f32[32,512], index: 1, kind: input, shape index: {}]   ;;  %s10203_s2 = inlined_call_operand.hbm [shape: f32[128,512], index: 2, kind: input, shape index: {}]   ;;  %s10204_s3 = inlined_call_operand.vmem [shape: f32[1,512], index: 3, kind: input, shape index: {}]   ;;  %s10205_s4 = inlined_call_operand.hbm [shape: f32[128,512], index: 4, kind: input, shape index: {}]   ;;  %s10206_s5 = inlined_call_operand.hbm [shape: f32[128,512], index: 5, kind: input, shape index: {}]   ;;  %s10207_s6 = inlined_call_operand.vmem [shape: f32[1,512], index: 6, kind: input, shape index: {}]   ;;  %s10208_s7 = inlined_call_operand.hbm [shape: f32[8,8,128], index: 7, kind: output, shape index: {}]  }
   0x1   :  { %13 = vsyncpa [#allocation6], 0 }
   0x2   :  { %14 = vsyncpa [#allocation9], 0 }
   0x3   :  { %15 = vsyncpa [#allocation4], 0  ;;  %s6496_s24 = smov [#allocation5]  }
   0x4   :  { %s33_s25 = sshll.u32 %s6496_s24, 4  ;;  %s34_s25 = int_to_ptr.vmem [resolvable:$true] %s33_s25 }
   0x5   :  { %s6376_s26 = scalar_lea.vmem %s34_s25, 2048  ;;  %p6381_p1 = scmp.lt.s32.totalorder %s34_s25, %s34_s25 }
   0x6   :  { %p6377_p0 = scmp.ne.s32.totalorder %s34_s25, %s6376_s26  ;;  %p6382_p2 = scmp.lt.s32.totalorder %s6376_s26, %s6376_s26 }
   0x8   :  { %p6383_p3 = por %p6382_p2, %p6381_p1 }
   0xa   :  { %p6384_p4 = pnand %p6383_p3, %p6377_p0 }
   0xc   :  { %6387 = shalt.err (!%p6384_p4)
}
   0xd   :  { %s6497_s27 = smov 512   ;;  %s6498_s28 = smov 32  }
   0xe   :  { %39 = dma.hbm_to_vmem [thread:$0]  %s10202_s1, 2048, %s34_s25, [#allocation6], %s6497_s27, %s6497_s27, %s6498_s28  }
   0xf   :  { %s6499_s8 = smov [#allocation8]   ;;  %s6500_s10 = smov [#allocation2]  }
  0x10   :  { %s59_s9 = sshll.u32 %s6499_s8, 4  ;;  %s21_s11 = sshll.u32 %s6500_s10, 4  ;;  %s60_s9 = int_to_ptr.vmem [resolvable:$true] %s59_s9  ;;  %s22_s11 = int_to_ptr.vmem [resolvable:$true] %s21_s11 }
  0x11   :  { %s6396_s12 = scalar_lea.vmem %s60_s9, 8192  ;;  %p6401_p6 = scmp.lt.s32.totalorder %s60_s9, %s60_s9 }
  0x12   :  { %p6397_p5 = scmp.ne.s32.totalorder %s60_s9, %s6396_s12  ;;  %p6402_p7 = scmp.lt.s32.totalorder %s6396_s12, %s6396_s12 }
  0x14   :  { %p6403_p8 = por %p6402_p7, %p6401_p6 }
  0x16   :  { %p6404_p9 = pnand %p6403_p8, %p6397_p5 }
  0x18   :  { %6407 = shalt.err (!%p6404_p9)
}
  0x19   :  { %65 = dma.hbm_to_vmem [thread:$0]  %s10205_s4, 8192, %s60_s9, [#allocation9], %s6497_s27, %s6497_s27, %s6498_s28  }
  0x1a   :  { %s6416_s1 = scalar_lea.vmem %s22_s11, 1024  ;;  %p6421_p11 = scmp.lt.s32.totalorder %s22_s11, %s22_s11 }
  0x1b   :  { %p6417_p10 = scmp.ne.s32.totalorder %s22_s11, %s6416_s1  ;;  %p6422_p12 = scmp.lt.s32.totalorder %s6416_s1, %s6416_s1 }
  0x1d   :  { %p6423_p13 = por %p6422_p12, %p6421_p11 }
  0x1f   :  { %p6424_p0 = pnand %p6423_p13, %p6417_p10 }
  0x21   :  { %6427 = shalt.err (!%p6424_p0)
}
  0x22   :  { %s6501_s15 = smov 128   ;;  %s6502_s16 = smov 8  }
  0x23   :  { %27 = dma.hbm_to_vmem [thread:$0]  %s10201_s0, 1024, %s22_s11, [#allocation3], %s6501_s15, %s6501_s15, %s6502_s16  }
  0x24   :  { %s6503_s19 = smov [#allocation7]   ;;  %s6504_s4 = smov [#allocation10]  }
  0x25   :  { %s45_s20 = sshll.u32 %s6503_s19, 4  ;;  %s71_s21 = sshll.u32 %s6504_s4, 4  ;;  %s46_s20 = int_to_ptr.vmem [resolvable:$true] %s45_s20  ;;  %s72_s21 = int_to_ptr.vmem [resolvable:$true] %s71_s21 }
  0x26   :  { %s6436_s22 = scalar_lea.vmem %s46_s20, 8192  ;;  %p6441_p2 = scmp.lt.s32.totalorder %s46_s20, %s46_s20 }
  0x27   :  { %p6437_p1 = scmp.ne.s32.totalorder %s46_s20, %s6436_s22  ;;  %p6442_p3 = scmp.lt.s32.totalorder %s6436_s22, %s6436_s22 }
  0x29   :  { %p6443_p4 = por %p6442_p3, %p6441_p2 }
  0x2b   :  { %p6444_p5 = pnand %p6443_p4, %p6437_p1 }
  0x2d   :  { %6447 = shalt.err (!%p6444_p5)
}
  0x2e   :  { %51 = dma.hbm_to_vmem [thread:$0]  %s10203_s2, 8192, %s46_s20, [#allocation6], %s6497_s27, %s6497_s27, %s6498_s28  }
  0x2f   :  { %s6456_s0 = scalar_lea.vmem %s72_s21, 8192  ;;  %p6461_p7 = scmp.lt.s32.totalorder %s72_s21, %s72_s21 }
  0x30   :  { %p6457_p6 = scmp.ne.s32.totalorder %s72_s21, %s6456_s0  ;;  %p6462_p8 = scmp.lt.s32.totalorder %s6456_s0, %s6456_s0 }
  0x32   :  { %p6463_p9 = por %p6462_p8, %p6461_p7 }
  0x34   :  { %p6464_p10 = pnand %p6463_p9, %p6457_p6 }
  0x36   :  { %6467 = shalt.err (!%p6464_p10)
}
  0x37   :  { %77 = dma.hbm_to_vmem [thread:$0]  %s10206_s5, 8192, %s72_s21, [#allocation9], %s6497_s27, %s6497_s27, %s6498_s28  }
  0x38   :  { %6488 = dma.done.wait [#allocation3], 1024  }
  0x39   :  { %6489 = vsyncadd [#allocation3], 4294966272 }
  0x3a   :  { %6490 = dma.done.wait [#allocation6], 10240  }
  0x3b   :  { %6491 = vsyncadd [#allocation6], 4294957056 }
  0x3c   :  { %6492 = dma.done.wait [#allocation9], 16384  }
  0x3d   :  { %6493 = vsyncadd [#allocation9], 4294950912  ;;  %v10209_v0 = vmov 0.0   ;;  %v6579_v1 = vld [vmem:[#allocation7 + $0x1e8] sm:$0xff]  ;;  %v6581_v2 = vld [vmem:[#allocation7 + $0x1e0] sm:$0xff]  ;;  %vm448_vm0 = vcmask 261120  }
  0x3e   :  { %370 = vmatprep.mubr.f32.mxu0 %v10209_v0  ;;  %441 = vmatprep.mubr.f32.mxu1 %v10209_v0  ;;  %v6583_v3 = vld [vmem:[#allocation7 + $0x1c8] sm:$0xff]  ;;  %v6586_v4 = vld [vmem:[#allocation7 + $0x1c0] sm:$0xff]  ;;  %v6594_v7 = vld [vmem:[#allocation7 + $0x1f8] sm:$0xff] }
  0x3f   :  { %306 = vmatprep.subr.mxu0 %v6579_v1  ;;  %v6589_v5 = vld [vmem:[#allocation7 + $0x1a8] sm:$0xff]  ;;  %v6592_v6 = vld [vmem:[#allocation7 + $0x1a0] sm:$0xff]  ;;  %377 = vmatprep.subr.mxu1 %v6594_v7  ;;  %v6600_v9 = vld [vmem:[#allocation7 + $0x1f0] sm:$0xff] }
  0x40   :  { %307 = vmatpush1.msra.mxu0 %v6581_v2  ;;  %v6597_v8 = vld [vmem:[#allocation7 + $0x188] sm:$0xff]  ;;  %v6602_v10 = vld [vmem:[#allocation7 + $0x1d8] sm:$0xff]  ;;  %v6605_v11 = vld [vmem:[#allocation7 + $0x180] sm:$0xff]  ;;  %378 = vmatpush1.msra.mxu1 %v6600_v9 }
  0x41   :  { %308 = vmatprep.subr.mxu0 %v6583_v3  ;;  %v6608_v12 = vld [vmem:[#allocation7 + $0x1d0] sm:$0xff]  ;;  %v6611_v13 = vld [vmem:[#allocation7 + $0x168] sm:$0xff]  ;;  %379 = vmatprep.subr.mxu1 %v6602_v10  ;;  %v6614_v14 = vld [vmem:[#allocation7 + $0x1b8] sm:$0xff] }
  0x42   :  { %309 = vmatpush1.msra.mxu0 %v6586_v4  ;;  %v6616_v15 = vld [vmem:[#allocation7 + $0x1b0] sm:$0xff]  ;;  %v6619_v16 = vld [vmem:[#allocation7 + $0x160] sm:$0xff]  ;;  %380 = vmatpush1.msra.mxu1 %v6608_v12  ;;  %v6622_v17 = vld [vmem:[#allocation7 + $0x198] sm:$0xff] }
  0x43   :  { %310 = vmatprep.subr.mxu0 %v6589_v5  ;;  %v6625_v18 = vld [vmem:[#allocation7 + $0x148] sm:$0xff]  ;;  %381 = vmatprep.subr.mxu1 %v6614_v14  ;;  %v6628_v19 = vld [vmem:[#allocation7 + $0x190] sm:$0xff]  ;;  %v6631_v20 = vld [vmem:[#allocation7 + $0x140] sm:$0xff] }
  0x44   :  { %311 = vmatpush1.msra.mxu0 %v6592_v6  ;;  %382 = vmatpush1.msra.mxu1 %v6616_v15  ;;  %v6634_v21 = vld [vmem:[#allocation7 + $0x178] sm:$0xff]  ;;  %v6637_v22 = vld [vmem:[#allocation7 + $0x128] sm:$0xff]  ;;  %v6640_v23 = vld [vmem:[#allocation7 + $0x170] sm:$0xff] }
  0x45   :  { %312 = vmatprep.subr.mxu0 %v6597_v8  ;;  %383 = vmatprep.subr.mxu1 %v6622_v17  ;;  %v6643_v24 = vld [vmem:[#allocation7 + $0x120] sm:$0xff]  ;;  %v6646_v25 = vld [vmem:[#allocation7 + $0x158] sm:$0xff]  ;;  %v6649_v26 = vld [vmem:[#allocation7 + $0x108] sm:$0xff] }
  0x46   :  { %313 = vmatpush1.msra.mxu0 %v6605_v11  ;;  %384 = vmatpush1.msra.mxu1 %v6628_v19  ;;  %v6652_v27 = vld [vmem:[#allocation7 + $0x150] sm:$0xff]  ;;  %v6655_v28 = vld [vmem:[#allocation7 + $0x100] sm:$0xff]  ;;  %v6658_v29 = vld [vmem:[#allocation7 + $0x138] sm:$0xff] }
  0x47   :  { %314 = vmatprep.subr.mxu0 %v6611_v13  ;;  %385 = vmatprep.subr.mxu1 %v6634_v21  ;;  %v6661_v30 = vld [vmem:[#allocation7 + $0xe8] sm:$0xff]  ;;  %v6664_v31 = vld [vmem:[#allocation7 + $0x130] sm:$0xff]  ;;  %v6667_v32 = vld [vmem:[#allocation7 + $0xe0] sm:$0xff] }
  0x48   :  { %315 = vmatpush1.msra.mxu0 %v6619_v16  ;;  %386 = vmatpush1.msra.mxu1 %v6640_v23  ;;  %v6670_v33 = vld [vmem:[#allocation7 + $0x118] sm:$0xff]  ;;  %v6673_v34 = vld [vmem:[#allocation7 + $0xc8] sm:$0xff]  ;;  %v6676_v35 = vld [vmem:[#allocation7 + $0x110] sm:$0xff] }
  0x49   :  { %316 = vmatprep.subr.mxu0 %v6625_v18  ;;  %387 = vmatprep.subr.mxu1 %v6646_v25  ;;  %v6679_v36 = vld [vmem:[#allocation7 + $0xc0] sm:$0xff]  ;;  %v6682_v37 = vld [vmem:[#allocation7 + $0xf8] sm:$0xff]  ;;  %v6685_v38 = vld [vmem:[#allocation7 + $0xa8] sm:$0xff] }
  0x4a   :  { %317 = vmatpush1.msra.mxu0 %v6631_v20  ;;  %388 = vmatpush1.msra.mxu1 %v6652_v27  ;;  %v6688_v39 = vld [vmem:[#allocation7 + $0xf0] sm:$0xff]  ;;  %v6691_v40 = vld [vmem:[#allocation7 + $0xa0] sm:$0xff]  ;;  %v6694_v41 = vld [vmem:[#allocation7 + $0xd8] sm:$0xff] }
  0x4b   :  { %318 = vmatprep.subr.mxu0 %v6637_v22  ;;  %389 = vmatprep.subr.mxu1 %v6658_v29  ;;  %v6697_v42 = vld [vmem:[#allocation7 + $0x88] sm:$0xff]  ;;  %v6700_v43 = vld [vmem:[#allocation7 + $0xd0] sm:$0xff]  ;;  %v6703_v44 = vld [vmem:[#allocation7 + $0x80] sm:$0xff] }
  0x4c   :  { %319 = vmatpush1.msra.mxu0 %v6643_v24  ;;  %390 = vmatpush1.msra.mxu1 %v6664_v31  ;;  %10855 = vst [vmem:[#allocation16_spill] sm:$0xff] %v6703_v44  ;;  %v6706_v45 = vld [vmem:[#allocation7 + $0xb8] sm:$0xff]  ;;  %v6709_v46 = vld [vmem:[#allocation7 + $0x68] sm:$0xff]  ;;  %v6712_v47 = vld [vmem:[#allocation7 + $0xb0] sm:$0xff] }
  0x4d   :  { %320 = vmatprep.subr.mxu0 %v6649_v26  ;;  %391 = vmatprep.subr.mxu1 %v6670_v33  ;;  %10856 = vst [vmem:[#allocation17_spill] sm:$0xff] %v6709_v46  ;;  %v6715_v48 = vld [vmem:[#allocation7 + $0x60] sm:$0xff]  ;;  %v6718_v49 = vld [vmem:[#allocation7 + $0x98] sm:$0xff]  ;;  %v6721_v50 = vld [vmem:[#allocation7 + $0x48] sm:$0xff] }
  0x4e   :  { %321 = vmatpush1.msra.mxu0 %v6655_v28  ;;  %392 = vmatpush1.msra.mxu1 %v6676_v35  ;;  %10857 = vst [vmem:[#allocation18_spill] sm:$0xff] %v6715_v48  ;;  %10858 = vst [vmem:[#allocation19_spill] sm:$0xff] %v6721_v50  ;;  %v6724_v51 = vld [vmem:[#allocation7 + $0x90] sm:$0xff]  ;;  %v6727_v52 = vld [vmem:[#allocation7 + $0x40] sm:$0xff] }
  0x4f   :  { %322 = vmatprep.subr.mxu0 %v6661_v30  ;;  %393 = vmatprep.subr.mxu1 %v6682_v37  ;;  %10859 = vst [vmem:[#allocation20_spill] sm:$0xff] %v6724_v51  ;;  %10860 = vst [vmem:[#allocation21_spill] sm:$0xff] %v6727_v52  ;;  %v6730_v53 = vld [vmem:[#allocation7 + $0x78] sm:$0xff]  ;;  %v6733_v54 = vld [vmem:[#allocation7 + $0x28] sm:$0xff] }
  0x50   :  { %323 = vmatpush1.msra.mxu0 %v6667_v32  ;;  %394 = vmatpush1.msra.mxu1 %v6688_v39  ;;  %10861 = vst [vmem:[#allocation22_spill] sm:$0xff] %v6730_v53  ;;  %10862 = vst [vmem:[#allocation23_spill] sm:$0xff] %v6733_v54  ;;  %v6736_v55 = vld [vmem:[#allocation7 + $0x70] sm:$0xff]  ;;  %v6739_v56 = vld [vmem:[#allocation7 + $0x20] sm:$0xff] }
  0x51   :  { %324 = vmatprep.subr.mxu0 %v6673_v34  ;;  %395 = vmatprep.subr.mxu1 %v6694_v41  ;;  %10863 = vst [vmem:[#allocation24_spill] sm:$0xff] %v6736_v55  ;;  %10864 = vst [vmem:[#allocation25_spill] sm:$0xff] %v6739_v56  ;;  %v6742_v57 = vld [vmem:[#allocation7 + $0x58] sm:$0xff]  ;;  %v6745_v58 = vld [vmem:[#allocation7 + $0x8] sm:$0xff] }
  0x52   :  { %325 = vmatpush1.msra.mxu0 %v6679_v36  ;;  %396 = vmatpush1.msra.mxu1 %v6700_v43  ;;  %10865 = vst [vmem:[#allocation26_spill] sm:$0xff] %v6742_v57  ;;  %10866 = vst [vmem:[#allocation27_spill] sm:$0xff] %v6745_v58  ;;  %v6748_v59 = vld [vmem:[#allocation7 + $0x50] sm:$0xff]  ;;  %v6751_v60 = vld [vmem:[#allocation7] sm:$0xff] }
  0x53   :  { %326 = vmatprep.subr.mxu0 %v6685_v38  ;;  %397 = vmatprep.subr.mxu1 %v6706_v45  ;;  %10867 = vst [vmem:[#allocation28_spill] sm:$0xff] %v6748_v59  ;;  %10868 = vst [vmem:[#allocation29_spill] sm:$0xff] %v6751_v60  ;;  %v6754_v61 = vld [vmem:[#allocation7 + $0x38] sm:$0xff]  ;;  %v6757_v62 = vld [vmem:[#allocation5 + $0x68] sm:$0xff] }
  0x54   :  { %327 = vmatpush1.msra.mxu0 %v6691_v40  ;;  %398 = vmatpush1.msra.mxu1 %v6712_v47  ;;  %10869 = vst [vmem:[#allocation30_spill] sm:$0xff] %v6754_v61  ;;  %10870 = vst [vmem:[#allocation31_spill] sm:$0xff] %v6757_v62  ;;  %v6761_v63 = vld [vmem:[#allocation5 + $0x60] sm:$0xff]  ;;  %v6764_v0 = vld [vmem:[#allocation7 + $0x30] sm:$0xff] }
  0x55   :  { %328 = vmatprep.subr.mxu0 %v6697_v42  ;;  %399 = vmatprep.subr.mxu1 %v6718_v49  ;;  %10871 = vst [vmem:[#allocation32_spill] sm:$0xff] %v6761_v63  ;;  %10872 = vst [vmem:[#allocation33_spill] sm:$0xff] %v6764_v0 }
  0x56   :  { %329 = vmatpush1.msra.mxu0 %v6703_v44  ;;  %400 = vmatpush1.msra.mxu1 %v6724_v51 }
  0x57   :  { %330 = vmatprep.subr.mxu0 %v6709_v46  ;;  %401 = vmatprep.subr.mxu1 %v6730_v53 }
  0x58   :  { %331 = vmatpush1.msra.mxu0 %v6715_v48  ;;  %402 = vmatpush1.msra.mxu1 %v6736_v55 }
  0x59   :  { %332 = vmatprep.subr.mxu0 %v6721_v50  ;;  %403 = vmatprep.subr.mxu1 %v6742_v57  ;;  %v6774_v57 = vld [vmem:[#allocation5 + $0x40] sm:$0xff]  ;;  %v7164_v50 = vld [vmem:[#allocation8 + $0x78] sm:$0xff] }
  0x5a   :  { %333 = vmatpush1.msra.mxu0 %v6727_v52  ;;  %404 = vmatpush1.msra.mxu1 %v6748_v59  ;;  %v6770_v52 = vld [vmem:[#allocation7 + $0x18] sm:$0xff]  ;;  %10876 = vst [vmem:[#allocation36_spill] sm:$0xff] %v6774_v57  ;;  %v6780_v59 = vld [vmem:[#allocation7 + $0x10] sm:$0xff]  ;;  %11003 = vst [vmem:[#allocation163_spill] sm:$0xff] %v7164_v50 }
  0x5b   :  { %334 = vmatprep.subr.mxu0 %v6733_v54  ;;  %v6767_v54 = vld [vmem:[#allocation5 + $0x48] sm:$0xff]  ;;  %405 = vmatprep.subr.mxu1 %v6754_v61  ;;  %10874 = vst [vmem:[#allocation35_spill] sm:$0xff] %v6770_v52  ;;  %10878 = vst [vmem:[#allocation38_spill] sm:$0xff] %v6780_v59  ;;  %v6786_v61 = vld [vmem:[#allocation5 + $0x78] sm:$0xff] }
  0x5c   :  { %335 = vmatpush1.msra.mxu0 %v6739_v56  ;;  %10873 = vst [vmem:[#allocation34_spill] sm:$0xff] %v6767_v54  ;;  %v10875_v56 = vmov 0.0   ;;  %406 = vmatpush1.msra.mxu1 %v6764_v0  ;;  %10880 = vst [vmem:[#allocation40_spill] sm:$0xff] %v6786_v61  ;;  %v6796_v0 = vld [vmem:[#allocation5 + $0x70] sm:$0xff] }
  0x5d   :  { %336 = vmatprep.subr.mxu0 %v6745_v58  ;;  %v6777_v58 = vld [vmem:[#allocation5 + $0x28] sm:$0xff]  ;;  %407 = vmatprep.subr.mxu1 %v6770_v52  ;;  %10883 = vst [vmem:[#allocation43_spill] sm:$0xff] %v6796_v0  ;;  %v6800_v52 = vld [vmem:[#allocation5 + $0x58] sm:$0xff] }
  0x5e   :  { %337 = vmatpush1.msra.mxu0 %v6751_v60  ;;  %10877 = vst [vmem:[#allocation37_spill] sm:$0xff] %v6777_v58  ;;  %v6783_v60 = vld [vmem:[#allocation5 + $0x20] sm:$0xff]  ;;  %408 = vmatpush1.msra.mxu1 %v6780_v59  ;;  %10884 = vst [vmem:[#allocation44_spill] sm:$0xff] %v6800_v52  ;;  %v7148_v59 = vld [vmem:[#allocation8 + $0x88] sm:$0xff] }
  0x5f   :  { %371 = vmatmul.mubr.f32.vlgmr.msra.gmra.mxu0 %v10875_v56  ;;  %476 = vmatprep.subr.mxu0 %v6757_v62  ;;  %10879 = vst [vmem:[#allocation39_spill] sm:$0xff] %v6783_v60  ;;  %v6789_v62 = vld [vmem:[#allocation5 + $0x8] sm:$0xff]  ;;  %10998 = vst [vmem:[#allocation158_spill] sm:$0xff] %v7148_v59 }
  0x60   :  { %477 = vmatpush1.msra.mxu0 %v6761_v63  ;;  %10881 = vst [vmem:[#allocation41_spill] sm:$0xff] %v6789_v62  ;;  %516 = vmatprep.mubr.f32.mxu0 %v10875_v56  ;;  %v6793_v63 = vld [vmem:[#allocation5] sm:$0xff] }
  0x61   :  { %478 = vmatprep.subr.mxu0 %v6767_v54  ;;  %10882 = vst [vmem:[#allocation42_spill] sm:$0xff] %v6793_v63  ;;  %v305_v54 = vld [vmem:[#allocation2] sm:$0xff]  ;;  %547 = vmatprep.subr.mxu1 %v6786_v61  ;;  %v6815_v61 = vld [vmem:[#allocation5 + $0x18] sm:$0xff] }
  0x62   :  { %479 = vmatpush1.msra.mxu0 %v6774_v57  ;;  %442 = vmatmul.mubr.f32.vlgmr.msra.gmra.mxu1 %v10875_v56  ;;  %v6804_v57 = vld [vmem:[#allocation5 + $0x50] sm:$0xff]  ;;  %10888 = vst [vmem:[#allocation48_spill] sm:$0xff] %v6815_v61 }
  0x63   :  { %480 = vmatprep.subr.mxu0 %v6777_v58  ;;  %10885 = vst [vmem:[#allocation45_spill] sm:$0xff] %v6804_v57  ;;  %548 = vmatpush1.msra.mxu1 %v6796_v0  ;;  %v6808_v58 = vld [vmem:[#allocation5 + $0x38] sm:$0xff]  ;;  %v6856_v0 = vld [vmem:[#allocation10 + $0x188] sm:$0xff] }
  0x64   :  { %481 = vmatpush1.msra.mxu0 %v6783_v60  ;;  %10886 = vst [vmem:[#allocation46_spill] sm:$0xff] %v6808_v58  ;;  %549 = vmatprep.subr.mxu1 %v6800_v52  ;;  %v6812_v60 = vld [vmem:[#allocation5 + $0x30] sm:$0xff]  ;;  %10901 = vst [vmem:[#allocation61_spill] sm:$0xff] %v6856_v0 }
  0x65   :  { %482 = vmatprep.subr.mxu0 %v6789_v62  ;;  %10887 = vst [vmem:[#allocation47_spill] sm:$0xff] %v6812_v60  ;;  %550 = vmatpush1.msra.mxu1 %v6804_v57  ;;  %v6819_v62 = vld [vmem:[#allocation5 + $0x10] sm:$0xff]  ;;  %v6830_v57 = vld [vmem:[#allocation10 + $0x1e0] sm:$0xff] }
  0x66   :  { %483 = vmatpush1.msra.mxu0 %v6793_v63  ;;  %587 = vmatprep.mubr.f32.mxu1 %v10875_v56  ;;  %10889 = vst [vmem:[#allocation49_spill] sm:$0xff] %v6819_v62  ;;  %v6827_v63 = vld [vmem:[#allocation10 + $0x1e8] sm:$0xff]  ;;  %10891 = vst [vmem:[#allocation51_spill] sm:$0xff] %v6830_v57  ;;  %v6848_v52 = vld [vmem:[#allocation10 + $0x1d0] sm:$0xff] }
  0x67   :  { %5413 = vmatmul.mubr.msk.f32.vlgmr.msra.gmra.mxu0 %vm448_vm0, %v305_v54  ;;  %551 = vmatprep.subr.mxu1 %v6808_v58  ;;  %10890 = vst [vmem:[#allocation50_spill] sm:$0xff] %v6827_v63  ;;  %v6832_v58 = vld [vmem:[#allocation10 + $0x1f8] sm:$0xff]  ;;  %10898 = vst [vmem:[#allocation58_spill] sm:$0xff] %v6848_v52 }
  0x68   :  { %707 = vmatprep.mubr.f32.mxu0 %v10875_v56  ;;  %552 = vmatpush1.msra.mxu1 %v6812_v60  ;;  %10892 = vst [vmem:[#allocation52_spill] sm:$0xff] %v6832_v58  ;;  %v6836_v60 = vld [vmem:[#allocation10 + $0x1c8] sm:$0xff] }
  0x69   :  { %553 = vmatprep.subr.mxu1 %v6815_v61  ;;  %643 = vmatprep.subr.mxu0 %v6827_v63  ;;  %10893 = vst [vmem:[#allocation53_spill] sm:$0xff] %v6836_v60  ;;  %v6838_v61 = vld [vmem:[#allocation10 + $0x1f0] sm:$0xff]  ;;  %v6846_v63 = vld [vmem:[#allocation10 + $0x1a8] sm:$0xff] }
  0x6a   :  { %554 = vmatpush1.msra.mxu1 %v6819_v62  ;;  %644 = vmatpush1.msra.mxu0 %v6830_v57  ;;  %10894 = vst [vmem:[#allocation54_spill] sm:$0xff] %v6838_v61  ;;  %v6840_v62 = vld [vmem:[#allocation10 + $0x1c0] sm:$0xff]  ;;  %10897 = vst [vmem:[#allocation57_spill] sm:$0xff] %v6846_v63 }
  0x6b   :  { %5414 = vmatmul.mubr.msk.f32.vlgmr.msra.gmra.mxu1 %vm448_vm0, %v305_v54  ;;  %714 = vmatprep.subr.mxu1 %v6832_v58  ;;  %10895 = vst [vmem:[#allocation55_spill] sm:$0xff] %v6840_v62  ;;  %v6844_v54 = vld [vmem:[#allocation10 + $0x1d8] sm:$0xff]  ;;  %v6852_v57 = vld [vmem:[#allocation10 + $0x1a0] sm:$0xff] }
  0x6c   :  { %778 = vmatprep.mubr.f32.mxu1 %v10875_v56  ;;  %645 = vmatprep.subr.mxu0 %v6836_v60  ;;  %10896 = vst [vmem:[#allocation56_spill] sm:$0xff] %v6844_v54  ;;  %10899 = vst [vmem:[#allocation59_spill] sm:$0xff] %v6852_v57  ;;  %v6854_v58 = vld [vmem:[#allocation10 + $0x1b8] sm:$0xff]  ;;  %v6860_v60 = vld [vmem:[#allocation10 + $0x1b0] sm:$0xff] }
  0x6d   :  { %715 = vmatpush1.msra.mxu1 %v6838_v61  ;;  %646 = vmatpush1.msra.mxu0 %v6840_v62  ;;  %10900 = vst [vmem:[#allocation60_spill] sm:$0xff] %v6854_v58  ;;  %10902 = vst [vmem:[#allocation62_spill] sm:$0xff] %v6860_v60  ;;  %v6866_v62 = vld [vmem:[#allocation10 + $0x180] sm:$0xff]  ;;  %v7140_v61 = vld [vmem:[#allocation8 + $0xb8] sm:$0xff] }
  0x6e   :  { %716 = vmatprep.subr.mxu1 %v6844_v54  ;;  %647 = vmatprep.subr.mxu0 %v6846_v63  ;;  %10903 = vst [vmem:[#allocation63_spill] sm:$0xff] %v6866_v62  ;;  %v6868_v54 = vld [vmem:[#allocation10 + $0x198] sm:$0xff]  ;;  %v6872_v63 = vld [vmem:[#allocation10 + $0x168] sm:$0xff]  ;;  %10995 = vst [vmem:[#allocation155_spill] sm:$0xff] %v7140_v61 }
  0x6f   :  { %717 = vmatpush1.msra.mxu1 %v6848_v52  ;;  %648 = vmatpush1.msra.mxu0 %v6852_v57  ;;  %10904 = vst [vmem:[#allocation64_spill] sm:$0xff] %v6868_v54  ;;  %10905 = vst [vmem:[#allocation65_spill] sm:$0xff] %v6872_v63  ;;  %v6874_v52 = vld [vmem:[#allocation10 + $0x190] sm:$0xff]  ;;  %v6878_v57 = vld [vmem:[#allocation10 + $0x160] sm:$0xff] }
  0x70   :  { %718 = vmatprep.subr.mxu1 %v6854_v58  ;;  %649 = vmatprep.subr.mxu0 %v6856_v0  ;;  %10906 = vst [vmem:[#allocation66_spill] sm:$0xff] %v6874_v52  ;;  %10907 = vst [vmem:[#allocation67_spill] sm:$0xff] %v6878_v57  ;;  %v6880_v0 = vld [vmem:[#allocation10 + $0x178] sm:$0xff] }
  0x71   :  { %719 = vmatpush1.msra.mxu1 %v6860_v60  ;;  %650 = vmatpush1.msra.mxu0 %v6866_v62  ;;  %10908 = vst [vmem:[#allocation68_spill] sm:$0xff] %v6880_v0  ;;  %v6884_v60 = vld [vmem:[#allocation10 + $0x148] sm:$0xff]  ;;  %v6886_v62 = vld [vmem:[#allocation10 + $0x170] sm:$0xff]  ;;  %v7046_v58 = vld [vmem:[#allocation8 + $0x1b8] sm:$0xff] }
  0x72   :  { %720 = vmatprep.subr.mxu1 %v6868_v54  ;;  %651 = vmatprep.subr.mxu0 %v6872_v63  ;;  %10909 = vst [vmem:[#allocation69_spill] sm:$0xff] %v6884_v60  ;;  %10910 = vst [vmem:[#allocation70_spill] sm:$0xff] %v6886_v62  ;;  %v6890_v54 = vld [vmem:[#allocation10 + $0x140] sm:$0xff]  ;;  %v6892_v63 = vld [vmem:[#allocation10 + $0x158] sm:$0xff] }
  0x73   :  { %721 = vmatpush1.msra.mxu1 %v6874_v52  ;;  %652 = vmatpush1.msra.mxu0 %v6878_v57  ;;  %10911 = vst [vmem:[#allocation71_spill] sm:$0xff] %v6890_v54  ;;  %10912 = vst [vmem:[#allocation72_spill] sm:$0xff] %v6892_v63  ;;  %v6896_v52 = vld [vmem:[#allocation10 + $0x128] sm:$0xff]  ;;  %v6898_v57 = vld [vmem:[#allocation10 + $0x150] sm:$0xff] }
  0x74   :  { %722 = vmatprep.subr.mxu1 %v6880_v0  ;;  %653 = vmatprep.subr.mxu0 %v6884_v60  ;;  %10913 = vst [vmem:[#allocation73_spill] sm:$0xff] %v6896_v52  ;;  %10914 = vst [vmem:[#allocation74_spill] sm:$0xff] %v6898_v57  ;;  %v6902_v0 = vld [vmem:[#allocation10 + $0x120] sm:$0xff]  ;;  %v6904_v60 = vld [vmem:[#allocation10 + $0x138] sm:$0xff] }
  0x75   :  { %723 = vmatpush1.msra.mxu1 %v6886_v62  ;;  %654 = vmatpush1.msra.mxu0 %v6890_v54  ;;  %10915 = vst [vmem:[#allocation75_spill] sm:$0xff] %v6902_v0  ;;  %10916 = vst [vmem:[#allocation76_spill] sm:$0xff] %v6904_v60  ;;  %v6908_v62 = vld [vmem:[#allocation10 + $0x108] sm:$0xff]  ;;  %v6910_v54 = vld [vmem:[#allocation10 + $0x130] sm:$0xff] }
  0x76   :  { %724 = vmatprep.subr.mxu1 %v6892_v63  ;;  %655 = vmatprep.subr.mxu0 %v6896_v52  ;;  %10917 = vst [vmem:[#allocation77_spill] sm:$0xff] %v6908_v62  ;;  %10918 = vst [vmem:[#allocation78_spill] sm:$0xff] %v6910_v54  ;;  %v6914_v63 = vld [vmem:[#allocation10 + $0x100] sm:$0xff]  ;;  %v6916_v52 = vld [vmem:[#allocation10 + $0x118] sm:$0xff] }
  0x77   :  { %725 = vmatpush1.msra.mxu1 %v6898_v57  ;;  %656 = vmatpush1.msra.mxu0 %v6902_v0  ;;  %10919 = vst [vmem:[#allocation79_spill] sm:$0xff] %v6914_v63  ;;  %10920 = vst [vmem:[#allocation80_spill] sm:$0xff] %v6916_v52  ;;  %v6920_v57 = vld [vmem:[#allocation10 + $0xe8] sm:$0xff]  ;;  %v6922_v0 = vld [vmem:[#allocation10 + $0x110] sm:$0xff] }
  0x78   :  { %726 = vmatprep.subr.mxu1 %v6904_v60  ;;  %657 = vmatprep.subr.mxu0 %v6908_v62  ;;  %10921 = vst [vmem:[#allocation81_spill] sm:$0xff] %v6920_v57  ;;  %10922 = vst [vmem:[#allocation82_spill] sm:$0xff] %v6922_v0  ;;  %v6926_v60 = vld [vmem:[#allocation10 + $0xe0] sm:$0xff]  ;;  %v6928_v62 = vld [vmem:[#allocation10 + $0xf8] sm:$0xff] }
  0x79   :  { %727 = vmatpush1.msra.mxu1 %v6910_v54  ;;  %658 = vmatpush1.msra.mxu0 %v6914_v63  ;;  %10923 = vst [vmem:[#allocation83_spill] sm:$0xff] %v6926_v60  ;;  %10924 = vst [vmem:[#allocation84_spill] sm:$0xff] %v6928_v62  ;;  %v6932_v54 = vld [vmem:[#allocation10 + $0xc8] sm:$0xff]  ;;  %v6934_v63 = vld [vmem:[#allocation10 + $0xf0] sm:$0xff] }
  0x7a   :  { %728 = vmatprep.subr.mxu1 %v6916_v52  ;;  %659 = vmatprep.subr.mxu0 %v6920_v57  ;;  %10925 = vst [vmem:[#allocation85_spill] sm:$0xff] %v6932_v54  ;;  %10926 = vst [vmem:[#allocation86_spill] sm:$0xff] %v6934_v63  ;;  %v6938_v52 = vld [vmem:[#allocation10 + $0xc0] sm:$0xff]  ;;  %v6940_v57 = vld [vmem:[#allocation10 + $0xd8] sm:$0xff] }
  0x7b   :  { %729 = vmatpush1.msra.mxu1 %v6922_v0  ;;  %660 = vmatpush1.msra.mxu0 %v6926_v60  ;;  %10927 = vst [vmem:[#allocation87_spill] sm:$0xff] %v6938_v52  ;;  %10928 = vst [vmem:[#allocation88_spill] sm:$0xff] %v6940_v57  ;;  %v6944_v0 = vld [vmem:[#allocation10 + $0xa8] sm:$0xff]  ;;  %v6946_v60 = vld [vmem:[#allocation10 + $0xd0] sm:$0xff] }
  0x7c   :  { %730 = vmatprep.subr.mxu1 %v6928_v62  ;;  %661 = vmatprep.subr.mxu0 %v6932_v54  ;;  %10929 = vst [vmem:[#allocation89_spill] sm:$0xff] %v6944_v0  ;;  %10930 = vst [vmem:[#allocation90_spill] sm:$0xff] %v6946_v60  ;;  %v6950_v62 = vld [vmem:[#allocation10 + $0xa0] sm:$0xff]  ;;  %v6952_v54 = vld [vmem:[#allocation10 + $0xb8] sm:$0xff] }
  0x7d   :  { %731 = vmatpush1.msra.mxu1 %v6934_v63  ;;  %662 = vmatpush1.msra.mxu0 %v6938_v52  ;;  %10931 = vst [vmem:[#allocation91_spill] sm:$0xff] %v6950_v62  ;;  %10932 = vst [vmem:[#allocation92_spill] sm:$0xff] %v6952_v54  ;;  %v6956_v63 = vld [vmem:[#allocation10 + $0x88] sm:$0xff]  ;;  %v6958_v52 = vld [vmem:[#allocation10 + $0xb0] sm:$0xff] }
  0x7e   :  { %732 = vmatprep.subr.mxu1 %v6940_v57  ;;  %663 = vmatprep.subr.mxu0 %v6944_v0  ;;  %10933 = vst [vmem:[#allocation93_spill] sm:$0xff] %v6956_v63  ;;  %10934 = vst [vmem:[#allocation94_spill] sm:$0xff] %v6958_v52  ;;  %v6962_v57 = vld [vmem:[#allocation10 + $0x80] sm:$0xff]  ;;  %v6964_v0 = vld [vmem:[#allocation10 + $0x98] sm:$0xff] }
  0x7f   :  { %733 = vmatpush1.msra.mxu1 %v6946_v60  ;;  %664 = vmatpush1.msra.mxu0 %v6950_v62  ;;  %10935 = vst [vmem:[#allocation95_spill] sm:$0xff] %v6962_v57  ;;  %10936 = vst [vmem:[#allocation96_spill] sm:$0xff] %v6964_v0  ;;  %v6968_v60 = vld [vmem:[#allocation10 + $0x68] sm:$0xff]  ;;  %v6970_v62 = vld [vmem:[#allocation10 + $0x90] sm:$0xff] }
  0x80   :  { %734 = vmatprep.subr.mxu1 %v6952_v54  ;;  %665 = vmatprep.subr.mxu0 %v6956_v63  ;;  %10937 = vst [vmem:[#allocation97_spill] sm:$0xff] %v6968_v60  ;;  %10938 = vst [vmem:[#allocation98_spill] sm:$0xff] %v6970_v62  ;;  %v6974_v54 = vld [vmem:[#allocation10 + $0x60] sm:$0xff]  ;;  %v6976_v63 = vld [vmem:[#allocation10 + $0x78] sm:$0xff] }
  0x81   :  { %735 = vmatpush1.msra.mxu1 %v6958_v52  ;;  %666 = vmatpush1.msra.mxu0 %v6962_v57  ;;  %10939 = vst [vmem:[#allocation99_spill] sm:$0xff] %v6974_v54  ;;  %10940 = vst [vmem:[#allocation100_spill] sm:$0xff] %v6976_v63  ;;  %v6980_v52 = vld [vmem:[#allocation10 + $0x48] sm:$0xff]  ;;  %v6982_v57 = vld [vmem:[#allocation10 + $0x70] sm:$0xff] }
  0x82   :  { %736 = vmatprep.subr.mxu1 %v6964_v0  ;;  %667 = vmatprep.subr.mxu0 %v6968_v60  ;;  %10941 = vst [vmem:[#allocation101_spill] sm:$0xff] %v6980_v52  ;;  %10942 = vst [vmem:[#allocation102_spill] sm:$0xff] %v6982_v57  ;;  %v6986_v0 = vld [vmem:[#allocation10 + $0x40] sm:$0xff]  ;;  %v6988_v60 = vld [vmem:[#allocation10 + $0x58] sm:$0xff] }
  0x83   :  { %737 = vmatpush1.msra.mxu1 %v6970_v62  ;;  %668 = vmatpush1.msra.mxu0 %v6974_v54  ;;  %10943 = vst [vmem:[#allocation103_spill] sm:$0xff] %v6986_v0  ;;  %10944 = vst [vmem:[#allocation104_spill] sm:$0xff] %v6988_v60  ;;  %v6992_v62 = vld [vmem:[#allocation10 + $0x28] sm:$0xff]  ;;  %v6994_v54 = vld [vmem:[#allocation10 + $0x50] sm:$0xff] }
  0x84   :  { %738 = vmatprep.subr.mxu1 %v6976_v63  ;;  %669 = vmatprep.subr.mxu0 %v6980_v52  ;;  %10945 = vst [vmem:[#allocation105_spill] sm:$0xff] %v6992_v62  ;;  %10946 = vst [vmem:[#allocation106_spill] sm:$0xff] %v6994_v54  ;;  %v6998_v63 = vld [vmem:[#allocation10 + $0x20] sm:$0xff]  ;;  %v7000_v52 = vld [vmem:[#allocation10 + $0x38] sm:$0xff] }
  0x85   :  { %739 = vmatpush1.msra.mxu1 %v6982_v57  ;;  %670 = vmatpush1.msra.mxu0 %v6986_v0  ;;  %10947 = vst [vmem:[#allocation107_spill] sm:$0xff] %v6998_v63  ;;  %10948 = vst [vmem:[#allocation108_spill] sm:$0xff] %v7000_v52  ;;  %v7004_v57 = vld [vmem:[#allocation10 + $0x8] sm:$0xff]  ;;  %v7006_v0 = vld [vmem:[#allocation10 + $0x30] sm:$0xff] }
  0x86   :  { %740 = vmatprep.subr.mxu1 %v6988_v60  ;;  %671 = vmatprep.subr.mxu0 %v6992_v62  ;;  %10949 = vst [vmem:[#allocation109_spill] sm:$0xff] %v7004_v57  ;;  %10950 = vst [vmem:[#allocation110_spill] sm:$0xff] %v7006_v0  ;;  %v7010_v60 = vld [vmem:[#allocation10] sm:$0xff]  ;;  %v7012_v62 = vld [vmem:[#allocation10 + $0x18] sm:$0xff] }
  0x87   :  { %741 = vmatpush1.msra.mxu1 %v6994_v54  ;;  %672 = vmatpush1.msra.mxu0 %v6998_v63  ;;  %10951 = vst [vmem:[#allocation111_spill] sm:$0xff] %v7010_v60  ;;  %10952 = vst [vmem:[#allocation112_spill] sm:$0xff] %v7012_v62  ;;  %v7016_v54 = vld [vmem:[#allocation10 + $0x10] sm:$0xff]  ;;  %v7020_v63 = vld [vmem:[#allocation8 + $0x1e8] sm:$0xff] }
  0x88   :  { %742 = vmatprep.subr.mxu1 %v7000_v52  ;;  %673 = vmatprep.subr.mxu0 %v7004_v57  ;;  %10953 = vst [vmem:[#allocation113_spill] sm:$0xff] %v7016_v54  ;;  %10954 = vst [vmem:[#allocation114_spill] sm:$0xff] %v7020_v63  ;;  %v7022_v52 = vld [vmem:[#allocation8 + $0x1f8] sm:$0xff]  ;;  %v7026_v57 = vld [vmem:[#allocation8 + $0x1e0] sm:$0xff] }
  0x89   :  { %743 = vmatpush1.msra.mxu1 %v7006_v0  ;;  %674 = vmatpush1.msra.mxu0 %v7010_v60  ;;  %10955 = vst [vmem:[#allocation115_spill] sm:$0xff] %v7022_v52  ;;  %10956 = vst [vmem:[#allocation116_spill] sm:$0xff] %v7026_v57  ;;  %v7028_v0 = vld [vmem:[#allocation8 + $0x1f0] sm:$0xff]  ;;  %v7032_v60 = vld [vmem:[#allocation8 + $0x1c8] sm:$0xff] }
  0x8a   :  { %744 = vmatprep.subr.mxu1 %v7012_v62  ;;  %708 = vmatmul.mubr.f32.vlgmr.msra.gmra.mxu0 %v10875_v56  ;;  %10957 = vst [vmem:[#allocation117_spill] sm:$0xff] %v7028_v0  ;;  %10958 = vst [vmem:[#allocation118_spill] sm:$0xff] %v7032_v60  ;;  %v7034_v62 = vld [vmem:[#allocation8 + $0x1d8] sm:$0xff] }
  0x8b   :  { %745 = vmatpush1.msra.mxu1 %v7016_v54  ;;  %785 = vmatprep.subr.mxu0 %v7020_v63  ;;  %10959 = vst [vmem:[#allocation119_spill] sm:$0xff] %v7034_v62  ;;  %v7038_v54 = vld [vmem:[#allocation8 + $0x1c0] sm:$0xff]  ;;  %v7040_v63 = vld [vmem:[#allocation8 + $0x1d0] sm:$0xff]  ;;  %10963 = vst [vmem:[#allocation123_spill] sm:$0xff] %v7046_v58 }
  0x8c   :  { %856 = vmatprep.subr.mxu1 %v7022_v52  ;;  %779 = vmatmul.mubr.f32.vlgmr.msra.gmra.mxu1 %v10875_v56  ;;  %10960 = vst [vmem:[#allocation120_spill] sm:$0xff] %v7038_v54  ;;  %10961 = vst [vmem:[#allocation121_spill] sm:$0xff] %v7040_v63  ;;  %v7044_v52 = vld [vmem:[#allocation8 + $0x1a8] sm:$0xff] }
  0x8d   :  { %786 = vmatpush1.msra.mxu0 %v7026_v57  ;;  %857 = vmatpush1.msra.mxu1 %v7028_v0  ;;  %10962 = vst [vmem:[#allocation122_spill] sm:$0xff] %v7044_v52  ;;  %v7050_v57 = vld [vmem:[#allocation8 + $0x1a0] sm:$0xff]  ;;  %v7052_v0 = vld [vmem:[#allocation8 + $0x1b0] sm:$0xff] }
  0x8e   :  { %787 = vmatprep.subr.mxu0 %v7032_v60  ;;  %858 = vmatprep.subr.mxu1 %v7034_v62  ;;  %10964 = vst [vmem:[#allocation124_spill] sm:$0xff] %v7050_v57  ;;  %10965 = vst [vmem:[#allocation125_spill] sm:$0xff] %v7052_v0  ;;  %v7056_v60 = vld [vmem:[#allocation8 + $0x188] sm:$0xff]  ;;  %v7058_v62 = vld [vmem:[#allocation8 + $0x198] sm:$0xff] }
  0x8f   :  { %788 = vmatpush1.msra.mxu0 %v7038_v54  ;;  %859 = vmatpush1.msra.mxu1 %v7040_v63  ;;  %10966 = vst [vmem:[#allocation126_spill] sm:$0xff] %v7056_v60  ;;  %10967 = vst [vmem:[#allocation127_spill] sm:$0xff] %v7058_v62  ;;  %v7062_v54 = vld [vmem:[#allocation8 + $0x180] sm:$0xff]  ;;  %v7064_v63 = vld [vmem:[#allocation8 + $0x190] sm:$0xff] }
  0x90   :  { %789 = vmatprep.subr.mxu0 %v7044_v52  ;;  %860 = vmatprep.subr.mxu1 %v7046_v58  ;;  %10968 = vst [vmem:[#allocation128_spill] sm:$0xff] %v7062_v54  ;;  %10969 = vst [vmem:[#allocation129_spill] sm:$0xff] %v7064_v63  ;;  %v7068_v52 = vld [vmem:[#allocation8 + $0x168] sm:$0xff]  ;;  %v7070_v58 = vld [vmem:[#allocation8 + $0x178] sm:$0xff] }
  0x91   :  { %790 = vmatpush1.msra.mxu0 %v7050_v57  ;;  %861 = vmatpush1.msra.mxu1 %v7052_v0  ;;  %10970 = vst [vmem:[#allocation130_spill] sm:$0xff] %v7068_v52  ;;  %10971 = vst [vmem:[#allocation131_spill] sm:$0xff] %v7070_v58  ;;  %v7074_v57 = vld [vmem:[#allocation8 + $0x160] sm:$0xff]  ;;  %v7076_v0 = vld [vmem:[#allocation8 + $0x170] sm:$0xff] }
  0x92   :  { %791 = vmatprep.subr.mxu0 %v7056_v60  ;;  %862 = vmatprep.subr.mxu1 %v7058_v62  ;;  %10972 = vst [vmem:[#allocation132_spill] sm:$0xff] %v7074_v57  ;;  %10973 = vst [vmem:[#allocation133_spill] sm:$0xff] %v7076_v0  ;;  %v7080_v60 = vld [vmem:[#allocation8 + $0x148] sm:$0xff]  ;;  %v7082_v62 = vld [vmem:[#allocation8 + $0x158] sm:$0xff] }
  0x93   :  { %792 = vmatpush1.msra.mxu0 %v7062_v54  ;;  %863 = vmatpush1.msra.mxu1 %v7064_v63  ;;  %10974 = vst [vmem:[#allocation134_spill] sm:$0xff] %v7080_v60  ;;  %10975 = vst [vmem:[#allocation135_spill] sm:$0xff] %v7082_v62  ;;  %v7086_v54 = vld [vmem:[#allocation8 + $0x140] sm:$0xff]  ;;  %v7088_v63 = vld [vmem:[#allocation8 + $0x150] sm:$0xff] }
  0x94   :  { %793 = vmatprep.subr.mxu0 %v7068_v52  ;;  %864 = vmatprep.subr.mxu1 %v7070_v58  ;;  %10976 = vst [vmem:[#allocation136_spill] sm:$0xff] %v7086_v54  ;;  %10977 = vst [vmem:[#allocation137_spill] sm:$0xff] %v7088_v63  ;;  %v7092_v52 = vld [vmem:[#allocation8 + $0x128] sm:$0xff]  ;;  %v7094_v58 = vld [vmem:[#allocation8 + $0x138] sm:$0xff] }
  0x95   :  { %794 = vmatpush1.msra.mxu0 %v7074_v57  ;;  %865 = vmatpush1.msra.mxu1 %v7076_v0  ;;  %10978 = vst [vmem:[#allocation138_spill] sm:$0xff] %v7092_v52  ;;  %10979 = vst [vmem:[#allocation139_spill] sm:$0xff] %v7094_v58  ;;  %v7098_v57 = vld [vmem:[#allocation8 + $0x120] sm:$0xff]  ;;  %v7100_v0 = vld [vmem:[#allocation8 + $0x130] sm:$0xff] }
  0x96   :  { %795 = vmatprep.subr.mxu0 %v7080_v60  ;;  %866 = vmatprep.subr.mxu1 %v7082_v62  ;;  %10980 = vst [vmem:[#allocation140_spill] sm:$0xff] %v7098_v57  ;;  %10981 = vst [vmem:[#allocation141_spill] sm:$0xff] %v7100_v0  ;;  %v7104_v60 = vld [vmem:[#allocation8 + $0x108] sm:$0xff]  ;;  %v7106_v62 = vld [vmem:[#allocation8 + $0x118] sm:$0xff] }
  0x97   :  { %796 = vmatpush1.msra.mxu0 %v7086_v54  ;;  %867 = vmatpush1.msra.mxu1 %v7088_v63  ;;  %10982 = vst [vmem:[#allocation142_spill] sm:$0xff] %v7104_v60  ;;  %10983 = vst [vmem:[#allocation143_spill] sm:$0xff] %v7106_v62  ;;  %v7110_v54 = vld [vmem:[#allocation8 + $0x100] sm:$0xff]  ;;  %v7112_v63 = vld [vmem:[#allocation8 + $0x110] sm:$0xff] }
  0x98   :  { %797 = vmatprep.subr.mxu0 %v7092_v52  ;;  %868 = vmatprep.subr.mxu1 %v7094_v58  ;;  %10984 = vst [vmem:[#allocation144_spill] sm:$0xff] %v7110_v54  ;;  %10985 = vst [vmem:[#allocation145_spill] sm:$0xff] %v7112_v63  ;;  %v7116_v52 = vld [vmem:[#allocation8 + $0xe8] sm:$0xff]  ;;  %v7118_v58 = vld [vmem:[#allocation8 + $0xf8] sm:$0xff] }
  0x99   :  { %798 = vmatpush1.msra.mxu0 %v7098_v57  ;;  %869 = vmatpush1.msra.mxu1 %v7100_v0  ;;  %10986 = vst [vmem:[#allocation146_spill] sm:$0xff] %v7116_v52  ;;  %10987 = vst [vmem:[#allocation147_spill] sm:$0xff] %v7118_v58  ;;  %v7122_v57 = vld [vmem:[#allocation8 + $0xe0] sm:$0xff]  ;;  %v7124_v0 = vld [vmem:[#allocation8 + $0xf0] sm:$0xff] }
  0x9a   :  { %799 = vmatprep.subr.mxu0 %v7104_v60  ;;  %870 = vmatprep.subr.mxu1 %v7106_v62  ;;  %10988 = vst [vmem:[#allocation148_spill] sm:$0xff] %v7122_v57  ;;  %10989 = vst [vmem:[#allocation149_spill] sm:$0xff] %v7124_v0  ;;  %v7128_v60 = vld [vmem:[#allocation8 + $0xc8] sm:$0xff]  ;;  %v7130_v62 = vld [vmem:[#allocation8 + $0xd8] sm:$0xff] }
  0x9b   :  { %800 = vmatpush1.msra.mxu0 %v7110_v54  ;;  %871 = vmatpush1.msra.mxu1 %v7112_v63  ;;  %10990 = vst [vmem:[#allocation150_spill] sm:$0xff] %v7128_v60  ;;  %10991 = vst [vmem:[#allocation151_spill] sm:$0xff] %v7130_v62  ;;  %v7132_v54 = vld [vmem:[#allocation8 + $0xc0] sm:$0xff]  ;;  %v7136_v63 = vld [vmem:[#allocation8 + $0xd0] sm:$0xff] }
  0x9c   :  { %801 = vmatprep.subr.mxu0 %v7116_v52  ;;  %872 = vmatprep.subr.mxu1 %v7118_v58  ;;  %10992 = vst [vmem:[#allocation152_spill] sm:$0xff] %v7132_v54  ;;  %10993 = vst [vmem:[#allocation153_spill] sm:$0xff] %v7136_v63  ;;  %v7138_v52 = vld [vmem:[#allocation8 + $0xa8] sm:$0xff]  ;;  %v7146_v58 = vld [vmem:[#allocation8 + $0xb0] sm:$0xff] }
  0x9d   :  { %802 = vmatpush1.msra.mxu0 %v7122_v57  ;;  %873 = vmatpush1.msra.mxu1 %v7124_v0  ;;  %10994 = vst [vmem:[#allocation154_spill] sm:$0xff] %v7138_v52  ;;  %v7144_v57 = vld [vmem:[#allocation8 + $0xa0] sm:$0xff]  ;;  %10997 = vst [vmem:[#allocation157_spill] sm:$0xff] %v7146_v58 }
  0x9e   :  { %803 = vmatprep.subr.mxu0 %v7128_v60  ;;  %874 = vmatprep.subr.mxu1 %v7130_v62  ;;  %10996 = vst [vmem:[#allocation156_spill] sm:$0xff] %v7144_v57  ;;  %v7152_v60 = vld [vmem:[#allocation8 + $0x98] sm:$0xff]  ;;  %v7154_v0 = vld [vmem:[#allocation8 + $0x80] sm:$0xff]  ;;  %v7158_v62 = vld [vmem:[#allocation8 + $0x90] sm:$0xff] }
  0x9f   :  { %804 = vmatpush1.msra.mxu0 %v7132_v54  ;;  %875 = vmatpush1.msra.mxu1 %v7136_v63  ;;  %10999 = vst [vmem:[#allocation159_spill] sm:$0xff] %v7152_v60  ;;  %11000 = vst [vmem:[#allocation160_spill] sm:$0xff] %v7154_v0  ;;  %v7160_v54 = vld [vmem:[#allocation8 + $0x68] sm:$0xff]  ;;  %v7166_v63 = vld [vmem:[#allocation8 + $0x60] sm:$0xff] }
  0xa0   :  { %805 = vmatprep.subr.mxu0 %v7138_v52  ;;  %876 = vmatprep.subr.mxu1 %v7140_v61  ;;  %11001 = vst [vmem:[#allocation161_spill] sm:$0xff] %v7158_v62  ;;  %11002 = vst [vmem:[#allocation162_spill] sm:$0xff] %v7160_v54  ;;  %v7170_v52 = vld [vmem:[#allocation8 + $0x70] sm:$0xff]  ;;  %v7172_v61 = vld [vmem:[#allocation8 + $0x48] sm:$0xff] }
  0xa1   :  { %806 = vmatpush1.msra.mxu0 %v7144_v57  ;;  %877 = vmatpush1.msra.mxu1 %v7146_v58  ;;  %11004 = vst [vmem:[#allocation164_spill] sm:$0xff] %v7166_v63  ;;  %11005 = vst [vmem:[#allocation165_spill] sm:$0xff] %v7170_v52  ;;  %v7176_v57 = vld [vmem:[#allocation8 + $0x58] sm:$0xff]  ;;  %v7178_v58 = vld [vmem:[#allocation8 + $0x40] sm:$0xff] }
  0xa2   :  { %807 = vmatprep.subr.mxu0 %v7148_v59  ;;  %878 = vmatprep.subr.mxu1 %v7152_v60  ;;  %11006 = vst [vmem:[#allocation166_spill] sm:$0xff] %v7172_v61  ;;  %11007 = vst [vmem:[#allocation167_spill] sm:$0xff] %v7176_v57  ;;  %v7182_v59 = vld [vmem:[#allocation8 + $0x50] sm:$0xff]  ;;  %v7184_v60 = vld [vmem:[#allocation8 + $0x28] sm:$0xff] }
  0xa3   :  { %808 = vmatpush1.msra.mxu0 %v7154_v0  ;;  %879 = vmatpush1.msra.mxu1 %v7158_v62  ;;  %11008 = vst [vmem:[#allocation168_spill] sm:$0xff] %v7178_v58  ;;  %11009 = vst [vmem:[#allocation169_spill] sm:$0xff] %v7182_v59  ;;  %v7188_v0 = vld [vmem:[#allocation8 + $0x38] sm:$0xff]  ;;  %v7190_v62 = vld [vmem:[#allocation8 + $0x20] sm:$0xff] }
  0xa4   :  { %809 = vmatprep.subr.mxu0 %v7160_v54  ;;  %880 = vmatprep.subr.mxu1 %v7164_v50  ;;  %11010 = vst [vmem:[#allocation170_spill] sm:$0xff] %v7184_v60  ;;  %11011 = vst [vmem:[#allocation171_spill] sm:$0xff] %v7188_v0  ;;  %v7194_v54 = vld [vmem:[#allocation8 + $0x30] sm:$0xff]  ;;  %v7196_v50 = vld [vmem:[#allocation8 + $0x8] sm:$0xff] }
  0xa5   :  { %810 = vmatpush1.msra.mxu0 %v7166_v63  ;;  %881 = vmatpush1.msra.mxu1 %v7170_v52  ;;  %11012 = vst [vmem:[#allocation172_spill] sm:$0xff] %v7190_v62  ;;  %11013 = vst [vmem:[#allocation173_spill] sm:$0xff] %v7194_v54  ;;  %v7200_v63 = vld [vmem:[#allocation8 + $0x18] sm:$0xff]  ;;  %v7202_v52 = vld [vmem:[#allocation8] sm:$0xff] }
  0xa6   :  { %811 = vmatprep.subr.mxu0 %v7172_v61  ;;  %882 = vmatprep.subr.mxu1 %v7176_v57  ;;  %11014 = vst [vmem:[#allocation174_spill] sm:$0xff] %v7196_v50  ;;  %11015 = vst [vmem:[#allocation175_spill] sm:$0xff] %v7200_v63  ;;  %v7206_v61 = vld [vmem:[#allocation8 + $0x10] sm:$0xff] }
  0xa7   :  { %812 = vmatpush1.msra.mxu0 %v7178_v58  ;;  %883 = vmatpush1.msra.mxu1 %v7182_v59  ;;  %11016 = vst [vmem:[#allocation176_spill] sm:$0xff] %v7202_v52  ;;  %11017 = vst [vmem:[#allocation177_spill] sm:$0xff] %v7206_v61 }
  0xa8   :  { %813 = vmatprep.subr.mxu0 %v7184_v60  ;;  %884 = vmatprep.subr.mxu1 %v7188_v0 }
  0xa9   :  { %814 = vmatpush1.msra.mxu0 %v7190_v62  ;;  %885 = vmatpush1.msra.mxu1 %v7194_v54  ;;  %v595_v62 = vlaneseq }
  0xaa   :  { %815 = vmatprep.subr.mxu0 %v7196_v50  ;;  %886 = vmatprep.subr.mxu1 %v7200_v63 }
  0xab   :  { %816 = vmatpush1.msra.mxu0 %v7202_v52  ;;  %887 = vmatpush1.msra.mxu1 %v7206_v61  ;;  %v7217_v0 = vshrl.u32 %v595_v62, 7  ;;  %v175_v52 = vld [vmem:[%s10204_s3] sm:$0xf] }
  0xac   :  { %849 = vmatprep.mubr.f32.mxu0 %v10875_v56  ;;  %920 = vmatprep.mubr.f32.mxu1 %v10875_v56 }
  0xad   :  { %979 = vmatprep.subr.mxu0 %v6579_v1  ;;  %1050 = vmatprep.subr.mxu1 %v6594_v7  ;;  %v10373_v50 = vsub.s32 0, %v7217_v0  ;;  %v10375_v61 = vsub.s32 1, %v7217_v0  ;;  %v10376_v51 = vsub.s32 3, %v7217_v0 }
  0xaf   :  { %v7226_v59 = vrot.slane %v175_v52, %v10373_v50  ;;  %v7230_v62 = vrot.slane %v175_v52, %v10375_v61  ;;  %v605_v61 = vsub.s32 2, %v7217_v0 }
  0xb1   :  { %11018 = vst [vmem:[#allocation178_spill] sm:$0xff] %v7230_v62 }
 0x11f   :  { %v372_v54 = vpop.f32.mrf.mxu0 }
 0x121   :  { %v374_v63 = vpop.f32.mrf.mxu0 }
 0x122   :  { %v443_v60 = vpop.f32.mrf.mxu1 }
 0x124   :  { %v445_v57 = vpop.f32.mrf.mxu1 }
 0x127   :  { %v518_v1 = vpop.f32.mrf.mxu0 }
 0x128   :  { %v519_v7 = vadd.f32 %v518_v1, %v372_v54  ;;  %v7237_v1 = vrot.slane %v175_v52, %v10376_v51 }
 0x129   :  { %v520_v58 = vpop.f32.mrf.mxu0 }
 0x12a   :  { %v615_v56 = vadd.f32 %v7226_v59, %v519_v7  ;;  %v521_v55 = vadd.f32 %v520_v58, %v374_v63  ;;  %11019 = vst [vmem:[#allocation179_spill] sm:$0xff] %v7237_v1 }
 0x12b   :  { %v589_v46 = vpop.f32.mrf.mxu1 }
 0x12c   :  { %v5415_v48 = vmul.f32 -1.442695, %v615_v56  ;;  %v616_v53 = vadd.f32 %v7230_v62, %v521_v55  ;;  %v590_v58 = vadd.f32 %v589_v46, %v443_v60  ;;  %v7243_v55 = vrot.slane %v175_v52, %v605_v61 }
 0x12d   :  { %v591_v44 = vpop.f32.mrf.mxu1 }
 0x12e   :  { %5488 = vpow2.f32 %v5415_v48  ;;  %v5416_v50 = vmul.f32 -1.442695, %v616_v53  ;;  %v592_v54 = vadd.f32 %v591_v44, %v445_v57  ;;  %v617_v48 = vadd.f32 %v7243_v55, %v590_v58 }
 0x130   :  { %5490 = vpow2.f32 %v5416_v50  ;;  %v618_v7 = vadd.f32 %v7237_v1, %v592_v54 }
 0x132   :  { %v5417_v56 = vmul.f32 -1.442695, %v618_v7 }
 0x134   :  { %5492 = vpow2.f32 %v5417_v56  ;;  %v11066_v56 = vld [vmem:[#allocation62_spill] sm:$0xff] }
 0x13b   :  { %v5489_v63 = vpop.eup %5488 }
 0x13c   :  { %v622_v53 = vadd.f32 1.0, %v5489_v63 }
 0x13d   :  { %v5491_v50 = vpop.eup %5490 }
 0x13e   :  { %5494 = vrcp.f32 %v622_v53  ;;  %v628_v44 = vadd.f32 1.0, %v5491_v50  ;;  %v11068_v53 = vld [vmem:[#allocation64_spill] sm:$0xff]  ;;  %v11069_v50 = vld [vmem:[#allocation63_spill] sm:$0xff] }
 0x13f   :  { %5496 = vtanh.f32 %v617_v48  ;;  %v11067_v48 = vld [vmem:[#allocation61_spill] sm:$0xff] }
 0x140   :  { %5498 = vrcp.f32 %v628_v44  ;;  %v11070_v44 = vld [vmem:[#allocation66_spill] sm:$0xff] }
 0x141   :  { %v5493_v57 = vpop.eup %5492 }
 0x142   :  { %v635_v46 = vadd.f32 1.0, %v5493_v57  ;;  %v11071_v57 = vld [vmem:[#allocation65_spill] sm:$0xff] }
 0x144   :  { %5500 = vrcp.f32 %v635_v46  ;;  %v11073_v46 = vld [vmem:[#allocation67_spill] sm:$0xff] }
 0x14b   :  { %v5495_v51 = vpop.eup %5494 }
 0x14c   :  { %v5497_v62 = vpop.eup %5496 }
 0x14d   :  { %v5499_v54 = vpop.eup %5498  ;;  %v639_v1 = vmul.f32 %v5497_v62, %v5495_v51  ;;  %v11063_v51 = vld [vmem:[#allocation57_spill] sm:$0xff]  ;;  %v11064_v62 = vld [vmem:[#allocation60_spill] sm:$0xff] }
 0x14e   :  { %v638_v60 = vmul.f32 0.0, %v5499_v54  ;;  %v11072_v54 = vld [vmem:[#allocation68_spill] sm:$0xff] }
 0x150   :  { %v7246_v52 = vadd.f32 %v639_v1, %v638_v60  ;;  %v11065_v1 = vld [vmem:[#allocation59_spill] sm:$0xff]  ;;  %v11074_v60 = vld [vmem:[#allocation70_spill] sm:$0xff] }
 0x151   :  { %v5501_v7 = vpop.eup %5500 }
 0x152   :  { %5502 = vtanh.f32 %v7246_v52 }
 0x15f   :  { %v5503_v58 = vpop.eup %5502 }
 0x160   :  { %v7249_v63 = vmul.f32 %v5503_v58, %v5501_v7  ;;  %v11075_v7 = vld [vmem:[#allocation69_spill] sm:$0xff]  ;;  %v11076_v58 = vld [vmem:[#allocation72_spill] sm:$0xff] }
 0x162   :  { %850 = vmatmul.mubr.f32.vlgmr.msra.gmra.mxu0 %v7249_v63  ;;  %921 = vmatmul.mubr.f32.vlgmr.msra.gmra.mxu1 %v7249_v63 }
 0x163   :  { %980 = vmatpush1.msra.mxu0 %v6581_v2  ;;  %1051 = vmatpush1.msra.mxu1 %v6600_v9  ;;  %v11020_v2 = vld [vmem:[#allocation16_spill] sm:$0xff]  ;;  %v11026_v9 = vld [vmem:[#allocation19_spill] sm:$0xff] }
 0x164   :  { %981 = vmatprep.subr.mxu0 %v6583_v3  ;;  %1052 = vmatprep.subr.mxu1 %v6602_v10  ;;  %v11021_v3 = vld [vmem:[#allocation20_spill] sm:$0xff]  ;;  %v11027_v10 = vld [vmem:[#allocation26_spill] sm:$0xff] }
 0x165   :  { %982 = vmatpush1.msra.mxu0 %v6586_v4  ;;  %1053 = vmatpush1.msra.mxu1 %v6608_v12  ;;  %v11022_v4 = vld [vmem:[#allocation17_spill] sm:$0xff]  ;;  %v11029_v12 = vld [vmem:[#allocation28_spill] sm:$0xff] }
 0x166   :  { %983 = vmatprep.subr.mxu0 %v6589_v5  ;;  %1054 = vmatprep.subr.mxu1 %v6614_v14  ;;  %v11023_v5 = vld [vmem:[#allocation22_spill] sm:$0xff] }
 0x167   :  { %984 = vmatpush1.msra.mxu0 %v6592_v6  ;;  %1055 = vmatpush1.msra.mxu1 %v6616_v15  ;;  %v11024_v6 = vld [vmem:[#allocation18_spill] sm:$0xff]  ;;  %v11032_v15 = vld [vmem:[#allocation25_spill] sm:$0xff] }
 0x168   :  { %985 = vmatprep.subr.mxu0 %v6597_v8  ;;  %1056 = vmatprep.subr.mxu1 %v6622_v17  ;;  %v11025_v8 = vld [vmem:[#allocation24_spill] sm:$0xff]  ;;  %v11031_v14 = vld [vmem:[#allocation30_spill] sm:$0xff]  ;;  %v11034_v17 = vld [vmem:[#allocation27_spill] sm:$0xff] }
 0x169   :  { %986 = vmatpush1.msra.mxu0 %v6605_v11  ;;  %1057 = vmatpush1.msra.mxu1 %v6628_v19  ;;  %v11028_v11 = vld [vmem:[#allocation21_spill] sm:$0xff] }
 0x16a   :  { %987 = vmatprep.subr.mxu0 %v6611_v13  ;;  %1058 = vmatprep.subr.mxu1 %v6634_v21  ;;  %v11030_v13 = vld [vmem:[#allocation23_spill] sm:$0xff]  ;;  %v11036_v19 = vld [vmem:[#allocation29_spill] sm:$0xff]  ;;  %v11038_v21 = vld [vmem:[#allocation38_spill] sm:$0xff] }
 0x16b   :  { %988 = vmatpush1.msra.mxu0 %v6619_v16  ;;  %1059 = vmatpush1.msra.mxu1 %v6640_v23  ;;  %v11033_v16 = vld [vmem:[#allocation33_spill] sm:$0xff]  ;;  %v11040_v23 = vld [vmem:[#allocation40_spill] sm:$0xff] }
 0x16c   :  { %989 = vmatprep.subr.mxu0 %v6625_v18  ;;  %1060 = vmatprep.subr.mxu1 %v6646_v25  ;;  %v11035_v18 = vld [vmem:[#allocation35_spill] sm:$0xff] }
 0x16d   :  { %990 = vmatpush1.msra.mxu0 %v6631_v20  ;;  %1061 = vmatpush1.msra.mxu1 %v6652_v27  ;;  %v11037_v20 = vmov 0.0   ;;  %v11042_v25 = vld [vmem:[#allocation43_spill] sm:$0xff]  ;;  %v11044_v27 = vld [vmem:[#allocation44_spill] sm:$0xff] }
 0x16e   :  { %991 = vmatprep.subr.mxu0 %v6637_v22  ;;  %1062 = vmatprep.subr.mxu1 %v6658_v29  ;;  %v11039_v22 = vld [vmem:[#allocation31_spill] sm:$0xff]  ;;  %v11046_v29 = vld [vmem:[#allocation45_spill] sm:$0xff] }
 0x16f   :  { %992 = vmatpush1.msra.mxu0 %v6643_v24  ;;  %1063 = vmatpush1.msra.mxu1 %v6664_v31  ;;  %v11041_v24 = vld [vmem:[#allocation32_spill] sm:$0xff]  ;;  %v11048_v31 = vld [vmem:[#allocation46_spill] sm:$0xff] }
 0x170   :  { %993 = vmatprep.subr.mxu0 %v6649_v26  ;;  %1064 = vmatprep.subr.mxu1 %v6670_v33  ;;  %v11043_v26 = vld [vmem:[#allocation34_spill] sm:$0xff]  ;;  %v11050_v33 = vld [vmem:[#allocation47_spill] sm:$0xff] }
 0x171   :  { %994 = vmatpush1.msra.mxu0 %v6655_v28  ;;  %1065 = vmatpush1.msra.mxu1 %v6676_v35  ;;  %v11045_v28 = vld [vmem:[#allocation36_spill] sm:$0xff] }
 0x172   :  { %995 = vmatprep.subr.mxu0 %v6661_v30  ;;  %1066 = vmatprep.subr.mxu1 %v6682_v37  ;;  %v11047_v30 = vld [vmem:[#allocation37_spill] sm:$0xff]  ;;  %v11052_v35 = vld [vmem:[#allocation48_spill] sm:$0xff]  ;;  %v11053_v37 = vld [vmem:[#allocation42_spill] sm:$0xff] }
 0x173   :  { %996 = vmatpush1.msra.mxu0 %v6667_v32  ;;  %1067 = vmatpush1.msra.mxu1 %v6688_v39  ;;  %v11049_v32 = vld [vmem:[#allocation39_spill] sm:$0xff]  ;;  %v11055_v39 = vld [vmem:[#allocation50_spill] sm:$0xff] }
 0x174   :  { %997 = vmatprep.subr.mxu0 %v6673_v34  ;;  %1068 = vmatprep.subr.mxu1 %v6694_v41  ;;  %v11051_v34 = vld [vmem:[#allocation41_spill] sm:$0xff]  ;;  %v11057_v41 = vld [vmem:[#allocation51_spill] sm:$0xff] }
 0x175   :  { %998 = vmatpush1.msra.mxu0 %v6679_v36  ;;  %1069 = vmatpush1.msra.mxu1 %v6700_v43  ;;  %v978_v36 = vld [vmem:[#allocation2 + $0x8] sm:$0xff] }
 0x176   :  { %999 = vmatprep.subr.mxu0 %v6685_v38  ;;  %1070 = vmatprep.subr.mxu1 %v6706_v45  ;;  %v11054_v38 = vld [vmem:[#allocation49_spill] sm:$0xff]  ;;  %v11060_v45 = vld [vmem:[#allocation56_spill] sm:$0xff] }
 0x177   :  { %1000 = vmatpush1.msra.mxu0 %v6691_v40  ;;  %1071 = vmatpush1.msra.mxu1 %v6712_v47  ;;  %v11056_v40 = vld [vmem:[#allocation52_spill] sm:$0xff]  ;;  %v11059_v43 = vld [vmem:[#allocation53_spill] sm:$0xff]  ;;  %v11061_v47 = vld [vmem:[#allocation55_spill] sm:$0xff] }
 0x178   :  { %1001 = vmatprep.subr.mxu0 %v6697_v42  ;;  %1072 = vmatprep.subr.mxu1 %v6718_v49  ;;  %v11058_v42 = vld [vmem:[#allocation54_spill] sm:$0xff] }
 0x179   :  { %1002 = vmatpush1.msra.mxu0 %v11020_v2  ;;  %1073 = vmatpush1.msra.mxu1 %v11021_v3  ;;  %v11062_v49 = vld [vmem:[#allocation58_spill] sm:$0xff]  ;;  %v11079_v3 = vld [vmem:[#allocation73_spill] sm:$0xff] }
 0x17a   :  { %1003 = vmatprep.subr.mxu0 %v11022_v4  ;;  %1074 = vmatprep.subr.mxu1 %v11023_v5  ;;  %v11078_v2 = vld [vmem:[#allocation74_spill] sm:$0xff]  ;;  %v11080_v4 = vld [vmem:[#allocation76_spill] sm:$0xff]  ;;  %v11081_v5 = vld [vmem:[#allocation75_spill] sm:$0xff] }
 0x17b   :  { %1004 = vmatpush1.msra.mxu0 %v11024_v6  ;;  %1075 = vmatpush1.msra.mxu1 %v11025_v8  ;;  %v11082_v6 = vld [vmem:[#allocation78_spill] sm:$0xff]  ;;  %v11083_v8 = vld [vmem:[#allocation77_spill] sm:$0xff] }
 0x17c   :  { %1005 = vmatprep.subr.mxu0 %v11026_v9  ;;  %1076 = vmatprep.subr.mxu1 %v11027_v10  ;;  %v11084_v9 = vld [vmem:[#allocation80_spill] sm:$0xff]  ;;  %v11085_v10 = vld [vmem:[#allocation79_spill] sm:$0xff] }
 0x17d   :  { %1006 = vmatpush1.msra.mxu0 %v11028_v11  ;;  %1077 = vmatpush1.msra.mxu1 %v11029_v12  ;;  %v11086_v11 = vld [vmem:[#allocation82_spill] sm:$0xff]  ;;  %v11087_v12 = vld [vmem:[#allocation81_spill] sm:$0xff] }
 0x17e   :  { %1007 = vmatprep.subr.mxu0 %v11030_v13  ;;  %1078 = vmatprep.subr.mxu1 %v11031_v14  ;;  %v11088_v13 = vld [vmem:[#allocation84_spill] sm:$0xff]  ;;  %v11089_v14 = vld [vmem:[#allocation83_spill] sm:$0xff] }
 0x17f   :  { %1008 = vmatpush1.msra.mxu0 %v11032_v15  ;;  %1079 = vmatpush1.msra.mxu1 %v11033_v16  ;;  %v11090_v15 = vld [vmem:[#allocation86_spill] sm:$0xff]  ;;  %v11091_v16 = vld [vmem:[#allocation85_spill] sm:$0xff] }
 0x180   :  { %1009 = vmatprep.subr.mxu0 %v11034_v17  ;;  %1080 = vmatprep.subr.mxu1 %v11035_v18  ;;  %v11092_v17 = vld [vmem:[#allocation88_spill] sm:$0xff]  ;;  %v11093_v18 = vld [vmem:[#allocation87_spill] sm:$0xff] }
 0x181   :  { %1010 = vmatpush1.msra.mxu0 %v11036_v19  ;;  %1043 = vmatprep.mubr.f32.mxu0 %v11037_v20  ;;  %v11094_v19 = vld [vmem:[#allocation90_spill] sm:$0xff] }
 0x182   :  { %1081 = vmatpush1.msra.mxu1 %v11038_v21  ;;  %1114 = vmatprep.mubr.f32.mxu1 %v11037_v20  ;;  %v11095_v21 = vld [vmem:[#allocation89_spill] sm:$0xff] }
 0x183   :  { %1044 = vmatmul.mubr.f32.vlgmr.msra.gmra.mxu0 %v7249_v63  ;;  %1115 = vmatmul.mubr.f32.vlgmr.msra.gmra.mxu1 %v7249_v63  ;;  %v11077_v63 = vld [vmem:[#allocation71_spill] sm:$0xff] }
 0x184   :  { %1148 = vmatprep.subr.mxu0 %v11039_v22  ;;  %1219 = vmatprep.subr.mxu1 %v11040_v23  ;;  %v11096_v22 = vld [vmem:[#allocation92_spill] sm:$0xff]  ;;  %v11097_v23 = vld [vmem:[#allocation91_spill] sm:$0xff] }
 0x185   :  { %1149 = vmatpush1.msra.mxu0 %v11041_v24  ;;  %1220 = vmatpush1.msra.mxu1 %v11042_v25  ;;  %v11098_v24 = vld [vmem:[#allocation94_spill] sm:$0xff]  ;;  %v11099_v25 = vld [vmem:[#allocation93_spill] sm:$0xff] }
 0x186   :  { %1150 = vmatprep.subr.mxu0 %v11043_v26  ;;  %1221 = vmatprep.subr.mxu1 %v11044_v27  ;;  %v11100_v26 = vld [vmem:[#allocation96_spill] sm:$0xff]  ;;  %v11101_v27 = vld [vmem:[#allocation95_spill] sm:$0xff] }
 0x187   :  { %1151 = vmatpush1.msra.mxu0 %v11045_v28  ;;  %1222 = vmatpush1.msra.mxu1 %v11046_v29  ;;  %v11102_v28 = vld [vmem:[#allocation98_spill] sm:$0xff]  ;;  %v11103_v29 = vld [vmem:[#allocation97_spill] sm:$0xff] }
 0x188   :  { %1152 = vmatprep.subr.mxu0 %v11047_v30  ;;  %1223 = vmatprep.subr.mxu1 %v11048_v31  ;;  %v11104_v30 = vld [vmem:[#allocation100_spill] sm:$0xff]  ;;  %v11105_v31 = vld [vmem:[#allocation99_spill] sm:$0xff] }
 0x189   :  { %1153 = vmatpush1.msra.mxu0 %v11049_v32  ;;  %1224 = vmatpush1.msra.mxu1 %v11050_v33  ;;  %v11106_v32 = vld [vmem:[#allocation102_spill] sm:$0xff]  ;;  %v11107_v33 = vld [vmem:[#allocation101_spill] sm:$0xff] }
 0x18a   :  { %1154 = vmatprep.subr.mxu0 %v11051_v34  ;;  %1225 = vmatprep.subr.mxu1 %v11052_v35  ;;  %v11108_v34 = vld [vmem:[#allocation104_spill] sm:$0xff]  ;;  %v11109_v35 = vld [vmem:[#allocation103_spill] sm:$0xff] }
 0x18b   :  { %1155 = vmatpush1.msra.mxu0 %v11053_v37  ;;  %1188 = vmatprep.mubr.f32.mxu0 %v11037_v20  ;;  %v11111_v37 = vld [vmem:[#allocation105_spill] sm:$0xff] }
 0x18c   :  { %1226 = vmatpush1.msra.mxu1 %v11054_v38  ;;  %1259 = vmatprep.mubr.f32.mxu1 %v11037_v20  ;;  %v11112_v38 = vld [vmem:[#allocation108_spill] sm:$0xff] }
 0x18d   :  { %5421 = vmatmul.mubr.msk.f32.vlgmr.msra.gmra.mxu0 %vm448_vm0, %v978_v36  ;;  %5422 = vmatmul.mubr.msk.f32.vlgmr.msra.gmra.mxu1 %vm448_vm0, %v978_v36  ;;  %v11110_v36 = vld [vmem:[#allocation106_spill] sm:$0xff] }
 0x18e   :  { %1294 = vmatprep.subr.mxu0 %v11055_v39  ;;  %1365 = vmatprep.subr.mxu1 %v11056_v40  ;;  %v11113_v39 = vld [vmem:[#allocation107_spill] sm:$0xff]  ;;  %v11114_v40 = vld [vmem:[#allocation110_spill] sm:$0xff] }
 0x18f   :  { %1295 = vmatpush1.msra.mxu0 %v11057_v41  ;;  %1366 = vmatpush1.msra.mxu1 %v11058_v42  ;;  %v11115_v41 = vld [vmem:[#allocation109_spill] sm:$0xff]  ;;  %v11116_v42 = vld [vmem:[#allocation112_spill] sm:$0xff] }
 0x190   :  { %1296 = vmatprep.subr.mxu0 %v11059_v43  ;;  %1367 = vmatprep.subr.mxu1 %v11060_v45  ;;  %v11117_v43 = vld [vmem:[#allocation111_spill] sm:$0xff]  ;;  %v11118_v45 = vld [vmem:[#allocation113_spill] sm:$0xff] }
 0x191   :  { %1297 = vmatpush1.msra.mxu0 %v11061_v47  ;;  %1368 = vmatpush1.msra.mxu1 %v11062_v49  ;;  %v11119_v47 = vld [vmem:[#allocation114_spill] sm:$0xff]  ;;  %v11120_v49 = vld [vmem:[#allocation115_spill] sm:$0xff] }
 0x192   :  { %1298 = vmatprep.subr.mxu0 %v11063_v51  ;;  %1369 = vmatprep.subr.mxu1 %v11064_v62  ;;  %v709_v51 = vpop.f32.mrf.mxu0  ;;  %v304_v62 = vld [vmem:[%s10207_s6] sm:$0xf]  ;;  %s6506_s6 = smov [#allocation11]  }
 0x193   :  { %1299 = vmatpush1.msra.mxu0 %v11065_v1  ;;  %1370 = vmatpush1.msra.mxu1 %v11066_v56  ;;  %v780_v1 = vpop.f32.mrf.mxu1  ;;  %s5399_s28 = sshll.u32 %s6506_s6, 4  ;;  %s5400_s28 = int_to_ptr.vmem [resolvable:$true] %s5399_s28 }
 0x194   :  { %1300 = vmatprep.subr.mxu0 %v11067_v48  ;;  %1371 = vmatprep.subr.mxu1 %v11068_v53  ;;  %v711_v56 = vpop.f32.mrf.mxu0  ;;  %v11121_v48 = vsub.s32 0, %v7217_v0  ;;  %s6468_s29 = scalar_lea.vmem %s5400_s28, 1024  ;;  %p6473_p12 = scmp.lt.s32.totalorder %s5400_s28, %s5400_s28 }
 0x195   :  { %1301 = vmatpush1.msra.mxu0 %v11069_v50  ;;  %1372 = vmatpush1.msra.mxu1 %v11070_v44  ;;  %v782_v44 = vpop.f32.mrf.mxu1  ;;  %p6469_p11 = scmp.ne.s32.totalorder %s5400_s28, %s6468_s29  ;;  %p6474_p13 = scmp.lt.s32.totalorder %s6468_s29, %s6468_s29 }
 0x196   :  { %1302 = vmatprep.subr.mxu0 %v11071_v57  ;;  %1373 = vmatprep.subr.mxu1 %v11072_v54  ;;  %v7412_v53 = vrot.slane %v304_v62, %v11121_v48  ;;  %v11122_v54 = vsub.s32 1, %v7217_v0  ;;  %v11128_v48 = vld [vmem:[#allocation118_spill] sm:$0xff] }
 0x197   :  { %1303 = vmatpush1.msra.mxu0 %v11073_v46  ;;  %1374 = vmatpush1.msra.mxu1 %v11074_v60  ;;  %p6475_p0 = por %p6474_p13, %p6473_p12 }
 0x198   :  { %1304 = vmatprep.subr.mxu0 %v11075_v7  ;;  %1375 = vmatprep.subr.mxu1 %v11076_v58  ;;  %v7416_v46 = vrot.slane %v304_v62, %v11122_v54 }
 0x199   :  { %1305 = vmatpush1.msra.mxu0 %v11077_v63  ;;  %1376 = vmatpush1.msra.mxu1 %v11078_v2  ;;  %p6476_p1 = pnand %p6475_p0, %p6469_p11 }
 0x19a   :  { %1306 = vmatprep.subr.mxu0 %v11079_v3  ;;  %1377 = vmatprep.subr.mxu1 %v11080_v4 }
 0x19b   :  { %1307 = vmatpush1.msra.mxu0 %v11081_v5  ;;  %1378 = vmatpush1.msra.mxu1 %v11082_v6 }
 0x19c   :  { %1308 = vmatprep.subr.mxu0 %v11083_v8  ;;  %1379 = vmatprep.subr.mxu1 %v11084_v9  ;;  %v11123_v8 = vsub.s32 3, %v7217_v0 }
 0x19d   :  { %1309 = vmatpush1.msra.mxu0 %v11085_v10  ;;  %1380 = vmatpush1.msra.mxu1 %v11086_v11 }
 0x19e   :  { %1310 = vmatprep.subr.mxu0 %v11087_v12  ;;  %1381 = vmatprep.subr.mxu1 %v11088_v13  ;;  %v7422_v9 = vrot.slane %v304_v62, %v11123_v8  ;;  %v7427_v12 = vrot.slane %v304_v62, %v605_v61  ;;  %v11126_v62 = vld [vmem:[#allocation116_spill] sm:$0xff] }
 0x19f   :  { %1311 = vmatpush1.msra.mxu0 %v11089_v14  ;;  %1382 = vmatpush1.msra.mxu1 %v11090_v15 }
 0x1a0   :  { %1312 = vmatprep.subr.mxu0 %v11091_v16  ;;  %1383 = vmatprep.subr.mxu1 %v11092_v17 }
 0x1a1   :  { %1313 = vmatpush1.msra.mxu0 %v11093_v18  ;;  %1384 = vmatpush1.msra.mxu1 %v11094_v19 }
 0x1a2   :  { %1314 = vmatprep.subr.mxu0 %v11095_v21  ;;  %1385 = vmatprep.subr.mxu1 %v11096_v22 }
 0x1a3   :  { %1315 = vmatpush1.msra.mxu0 %v11097_v23  ;;  %1386 = vmatpush1.msra.mxu1 %v11098_v24 }
 0x1a4   :  { %1316 = vmatprep.subr.mxu0 %v11099_v25  ;;  %1387 = vmatprep.subr.mxu1 %v11100_v26 }
 0x1a5   :  { %1317 = vmatpush1.msra.mxu0 %v11101_v27  ;;  %1388 = vmatpush1.msra.mxu1 %v11102_v28 }
 0x1a6   :  { %1318 = vmatprep.subr.mxu0 %v11103_v29  ;;  %1389 = vmatprep.subr.mxu1 %v11104_v30 }
 0x1a7   :  { %1319 = vmatpush1.msra.mxu0 %v11105_v31  ;;  %1390 = vmatpush1.msra.mxu1 %v11106_v32 }
 0x1a8   :  { %1320 = vmatprep.subr.mxu0 %v11107_v33  ;;  %1391 = vmatprep.subr.mxu1 %v11108_v34 }
 0x1a9   :  { %1321 = vmatpush1.msra.mxu0 %v11109_v35  ;;  %1392 = vmatpush1.msra.mxu1 %v11110_v36 }
 0x1aa   :  { %1322 = vmatprep.subr.mxu0 %v11111_v37  ;;  %1393 = vmatprep.subr.mxu1 %v11112_v38  ;;  %v11124_v37 = vld [vmem:[#allocation178_spill] sm:$0xff] }
 0x1ab   :  { %1323 = vmatpush1.msra.mxu0 %v11113_v39  ;;  %1394 = vmatpush1.msra.mxu1 %v11114_v40 }
 0x1ac   :  { %1324 = vmatprep.subr.mxu0 %v11115_v41  ;;  %1395 = vmatprep.subr.mxu1 %v11116_v42 }
 0x1ad   :  { %1325 = vmatpush1.msra.mxu0 %v11117_v43  ;;  %1358 = vmatprep.mubr.f32.mxu0 %v11037_v20 }
 0x1ae   :  { %1396 = vmatpush1.msra.mxu1 %v11118_v45  ;;  %1429 = vmatprep.mubr.f32.mxu1 %v11037_v20  ;;  %v11125_v45 = vld [vmem:[#allocation179_spill] sm:$0xff] }
 0x1af   :  { %1436 = vmatprep.subr.mxu0 %v11119_v47  ;;  %1507 = vmatprep.subr.mxu1 %v11120_v49 }
 0x222   :  { %v851_v50 = vpop.f32.mrf.mxu0  ;;  %v922_v58 = vpop.f32.mrf.mxu1 }
 0x223   :  { %v852_v57 = vadd.f32 %v851_v50, %v709_v51  ;;  %v923_v11 = vadd.f32 %v922_v58, %v780_v1  ;;  %v11127_v1 = vld [vmem:[#allocation117_spill] sm:$0xff]  ;;  %v11129_v50 = vld [vmem:[#allocation119_spill] sm:$0xff] }
 0x224   :  { %v853_v60 = vpop.f32.mrf.mxu0  ;;  %v924_v5 = vpop.f32.mrf.mxu1  ;;  %v11133_v58 = vld [vmem:[#allocation123_spill] sm:$0xff] }
 0x225   :  { %v948_v7 = vadd.f32 %v7412_v53, %v852_v57  ;;  %v854_v63 = vadd.f32 %v853_v60, %v711_v56  ;;  %v925_v6 = vadd.f32 %v924_v5, %v782_v44  ;;  %v950_v15 = vadd.f32 %v7427_v12, %v923_v11  ;;  %v11130_v44 = vld [vmem:[#allocation120_spill] sm:$0xff]  ;;  %v11131_v57 = vld [vmem:[#allocation121_spill] sm:$0xff]  ;;  %v11136_v5 = vld [vmem:[#allocation126_spill] sm:$0xff] }
 0x226   :  { %v11139_v11 = vld [vmem:[#allocation129_spill] sm:$0xff] }
 0x227   :  { %v5418_v2 = vmul.f32 -1.442695, %v948_v7  ;;  %v949_v3 = vadd.f32 %v7416_v46, %v854_v63  ;;  %v951_v10 = vadd.f32 %v7422_v9, %v925_v6  ;;  %v11132_v7 = vld [vmem:[#allocation122_spill] sm:$0xff]  ;;  %v11137_v6 = vld [vmem:[#allocation127_spill] sm:$0xff] }
 0x229   :  { %5504 = vpow2.f32 %v5418_v2  ;;  %v5419_v4 = vmul.f32 -1.442695, %v949_v3  ;;  %v5420_v13 = vmul.f32 -1.442695, %v951_v10  ;;  %v11134_v2 = vld [vmem:[#allocation124_spill] sm:$0xff]  ;;  %v11135_v3 = vld [vmem:[#allocation125_spill] sm:$0xff] }
 0x22a   :  { %v11138_v10 = vld [vmem:[#allocation128_spill] sm:$0xff] }
 0x22b   :  { %5506 = vpow2.f32 %v5419_v4 }
 0x22c   :  { %5508 = vpow2.f32 %v5420_v13  ;;  %v11140_v13 = vld [vmem:[#allocation130_spill] sm:$0xff] }
 0x236   :  { %v5505_v14 = vpop.eup %5504 }
 0x237   :  { %v955_v16 = vadd.f32 1.0, %v5505_v14  ;;  %v11141_v14 = vld [vmem:[#allocation131_spill] sm:$0xff] }
 0x238   :  { %v5507_v17 = vpop.eup %5506 }
 0x239   :  { %5510 = vrcp.f32 %v955_v16  ;;  %v961_v18 = vadd.f32 1.0, %v5507_v17  ;;  %v5509_v19 = vpop.eup %5508  ;;  %v11143_v16 = vld [vmem:[#allocation133_spill] sm:$0xff]  ;;  %v11144_v17 = vld [vmem:[#allocation134_spill] sm:$0xff] }
 0x23a   :  { %5512 = vtanh.f32 %v950_v15  ;;  %v968_v25 = vadd.f32 1.0, %v5509_v19  ;;  %v11142_v15 = vld [vmem:[#allocation132_spill] sm:$0xff] }
 0x23b   :  { %5514 = vrcp.f32 %v961_v18  ;;  %v11145_v18 = vld [vmem:[#allocation135_spill] sm:$0xff]  ;;  %v11146_v19 = vld [vmem:[#allocation136_spill] sm:$0xff] }
 0x23c   :  { %5516 = vrcp.f32 %v968_v25  ;;  %v11151_v25 = vld [vmem:[#allocation141_spill] sm:$0xff] }
 0x243   :  { %v1045_v23 = vpop.f32.mrf.mxu0  ;;  %v1116_v26 = vpop.f32.mrf.mxu1 }
 0x245   :  { %v1047_v28 = vpop.f32.mrf.mxu0  ;;  %v1118_v30 = vpop.f32.mrf.mxu1 }
 0x246   :  { %v5511_v21 = vpop.eup %5510 }
 0x247   :  { %v5513_v22 = vpop.eup %5512 }
 0x248   :  { %v5515_v24 = vpop.eup %5514  ;;  %v972_v61 = vmul.f32 %v5513_v22, %v5511_v21  ;;  %v11147_v21 = vld [vmem:[#allocation137_spill] sm:$0xff]  ;;  %v11148_v22 = vld [vmem:[#allocation138_spill] sm:$0xff] }
 0x249   :  { %v971_v0 = vmul.f32 0.0, %v5515_v24  ;;  %v5517_v42 = vpop.eup %5516  ;;  %v11150_v24 = vld [vmem:[#allocation140_spill] sm:$0xff] }
 0x24b   :  { %v7430_v27 = vadd.f32 %v972_v61, %v971_v0  ;;  %v11152_v0 = vld [vmem:[#allocation142_spill] sm:$0xff]  ;;  %v11153_v61 = vld [vmem:[#allocation143_spill] sm:$0xff] }
 0x24d   :  { %5518 = vtanh.f32 %v7430_v27  ;;  %v1190_v29 = vpop.f32.mrf.mxu0  ;;  %v1261_v34 = vpop.f32.mrf.mxu1 }
 0x24e   :  { %v1191_v31 = vadd.f32 %v1190_v29, %v1045_v23  ;;  %v1262_v51 = vadd.f32 %v1261_v34, %v1116_v26  ;;  %v11149_v23 = vld [vmem:[#allocation139_spill] sm:$0xff]  ;;  %v11154_v26 = vld [vmem:[#allocation144_spill] sm:$0xff]  ;;  %v11156_v29 = vld [vmem:[#allocation146_spill] sm:$0xff] }
 0x24f   :  { %v1192_v32 = vpop.f32.mrf.mxu0  ;;  %v1263_v40 = vpop.f32.mrf.mxu1  ;;  %v11161_v34 = vld [vmem:[#allocation151_spill] sm:$0xff] }
 0x250   :  { %v1266_v33 = vadd.f32 %v1191_v31, %v7226_v59  ;;  %v1193_v35 = vadd.f32 %v1192_v32, %v1047_v28  ;;  %v1264_v41 = vadd.f32 %v1263_v40, %v1118_v30  ;;  %v1268_v60 = vadd.f32 %v1262_v51, %v7243_v55  ;;  %v11155_v28 = vld [vmem:[#allocation145_spill] sm:$0xff]  ;;  %v11157_v30 = vld [vmem:[#allocation147_spill] sm:$0xff]  ;;  %v11158_v31 = vld [vmem:[#allocation148_spill] sm:$0xff] }
 0x251   :  { %v11159_v32 = vld [vmem:[#allocation149_spill] sm:$0xff]  ;;  %v11164_v40 = vld [vmem:[#allocation154_spill] sm:$0xff] }
 0x252   :  { %v5423_v36 = vmul.f32 -1.442695, %v1266_v33  ;;  %v1267_v38 = vadd.f32 %v1193_v35, %v11124_v37  ;;  %v1269_v47 = vadd.f32 %v1264_v41, %v11125_v45  ;;  %v11160_v33 = vld [vmem:[#allocation150_spill] sm:$0xff]  ;;  %v11165_v41 = vld [vmem:[#allocation155_spill] sm:$0xff] }
 0x254   :  { %5520 = vpow2.f32 %v5423_v36  ;;  %v5424_v39 = vmul.f32 -1.442695, %v1267_v38  ;;  %v5425_v56 = vmul.f32 -1.442695, %v1269_v47  ;;  %v11162_v36 = vld [vmem:[#allocation152_spill] sm:$0xff]  ;;  %v11163_v38 = vld [vmem:[#allocation153_spill] sm:$0xff] }
 0x255   :  { %v11167_v47 = vld [vmem:[#allocation157_spill] sm:$0xff] }
 0x256   :  { %5522 = vpow2.f32 %v5424_v39 }
 0x257   :  { %5524 = vpow2.f32 %v5425_v56 }
 0x25a   :  { %v5519_v43 = vpop.eup %5518 }
 0x25b   :  { %v975_v49 = vmul.f32 %v5519_v43, %v5517_v42  ;;  %v11166_v43 = vld [vmem:[#allocation156_spill] sm:$0xff] }
 0x25d   :  { %976 = vst [vmem:[#allocation11] sm:$0xff] %v975_v49  ;;  %1359 = vmatmul.mubr.f32.vlgmr.msra.gmra.mxu0 %v975_v49  ;;  %1430 = vmatmul.mubr.f32.vlgmr.msra.gmra.mxu1 %v975_v49 }
 0x25e   :  { %1437 = vmatpush1.msra.mxu0 %v11126_v62  ;;  %1508 = vmatpush1.msra.mxu1 %v11127_v1  ;;  %v11168_v62 = vld [vmem:[#allocation158_spill] sm:$0xff]  ;;  %v11169_v1 = vld [vmem:[#allocation159_spill] sm:$0xff] }
 0x25f   :  { %1438 = vmatprep.subr.mxu0 %v11128_v48  ;;  %1509 = vmatprep.subr.mxu1 %v11129_v50  ;;  %v11170_v50 = vld [vmem:[#allocation160_spill] sm:$0xff] }
 0x260   :  { %1439 = vmatpush1.msra.mxu0 %v11130_v44  ;;  %1510 = vmatpush1.msra.mxu1 %v11131_v57  ;;  %v11171_v44 = vld [vmem:[#allocation161_spill] sm:$0xff]  ;;  %v11172_v57 = vld [vmem:[#allocation162_spill] sm:$0xff] }
 0x261   :  { %v5521_v54 = vpop.eup %5520  ;;  %1440 = vmatprep.subr.mxu0 %v11132_v7  ;;  %1511 = vmatprep.subr.mxu1 %v11133_v58  ;;  %v11175_v7 = vld [vmem:[#allocation165_spill] sm:$0xff] }
 0x262   :  { %v1273_v63 = vadd.f32 1.0, %v5521_v54  ;;  %1441 = vmatpush1.msra.mxu0 %v11134_v2  ;;  %1512 = vmatpush1.msra.mxu1 %v11135_v3  ;;  %v11173_v54 = vld [vmem:[#allocation163_spill] sm:$0xff]  ;;  %v11179_v3 = vld [vmem:[#allocation169_spill] sm:$0xff] }
 0x263   :  { %v5523_v4 = vpop.eup %5522  ;;  %1442 = vmatprep.subr.mxu0 %v11136_v5  ;;  %1513 = vmatprep.subr.mxu1 %v11137_v6  ;;  %v11177_v2 = vld [vmem:[#allocation167_spill] sm:$0xff]  ;;  %v11182_v6 = vld [vmem:[#allocation172_spill] sm:$0xff] }
 0x264   :  { %5526 = vrcp.f32 %v1273_v63  ;;  %v1279_v8 = vadd.f32 1.0, %v5523_v4  ;;  %1443 = vmatpush1.msra.mxu0 %v11138_v10  ;;  %1514 = vmatpush1.msra.mxu1 %v11139_v11  ;;  %v5525_v35 = vpop.eup %5524  ;;  %v11176_v63 = vld [vmem:[#allocation166_spill] sm:$0xff]  ;;  %v11181_v5 = vld [vmem:[#allocation171_spill] sm:$0xff] }
 0x265   :  { %5528 = vtanh.f32 %v1268_v60  ;;  %1444 = vmatprep.subr.mxu0 %v11140_v13  ;;  %1515 = vmatprep.subr.mxu1 %v11141_v14  ;;  %v1286_v51 = vadd.f32 1.0, %v5525_v35  ;;  %v11174_v60 = vld [vmem:[#allocation164_spill] sm:$0xff]  ;;  %v11180_v4 = vld [vmem:[#allocation170_spill] sm:$0xff]  ;;  %v11185_v11 = vld [vmem:[#allocation175_spill] sm:$0xff] }
 0x266   :  { %5530 = vrcp.f32 %v1279_v8  ;;  %1445 = vmatpush1.msra.mxu0 %v11142_v15  ;;  %1516 = vmatpush1.msra.mxu1 %v11143_v16  ;;  %v11183_v8 = vld [vmem:[#allocation173_spill] sm:$0xff]  ;;  %v11184_v10 = vld [vmem:[#allocation174_spill] sm:$0xff]  ;;  %v11186_v13 = vld [vmem:[#allocation176_spill] sm:$0xff] }
 0x267   :  { %1446 = vmatprep.subr.mxu0 %v11144_v17  ;;  %1517 = vmatprep.subr.mxu1 %v11145_v18  ;;  %5532 = vrcp.f32 %v1286_v51  ;;  %v11187_v14 = vld [vmem:[#allocation177_spill] sm:$0xff]  ;;  %v7508_v16 = vld [vmem:[#allocation7 + $0x1f8] sm:$0xff]  ;;  %v7590_v51 = vld [vmem:[#allocation7 + $0x130] sm:$0xff] }
 0x268   :  { %1447 = vmatpush1.msra.mxu0 %v11146_v19  ;;  %1518 = vmatpush1.msra.mxu1 %v11147_v21  ;;  %v7505_v15 = vld [vmem:[#allocation7 + $0x1e8] sm:$0xff]  ;;  %v7515_v21 = vld [vmem:[#allocation7 + $0x1e0] sm:$0xff]  ;;  %v7560_v35 = vld [vmem:[#allocation7 + $0x178] sm:$0xff] }
 0x269   :  { %1448 = vmatprep.subr.mxu0 %v11148_v22  ;;  %1519 = vmatprep.subr.mxu1 %v11149_v23  ;;  %v7518_v22 = vld [vmem:[#allocation7 + $0x1f0] sm:$0xff]  ;;  %v7521_v23 = vld [vmem:[#allocation7 + $0x1c8] sm:$0xff] }
 0x26a   :  { %1449 = vmatpush1.msra.mxu0 %v11150_v24  ;;  %1520 = vmatpush1.msra.mxu1 %v11151_v25  ;;  %v7524_v24 = vld [vmem:[#allocation7 + $0x1d8] sm:$0xff]  ;;  %v7527_v25 = vld [vmem:[#allocation7 + $0x1c0] sm:$0xff] }
 0x26b   :  { %1450 = vmatprep.subr.mxu0 %v11152_v0  ;;  %1521 = vmatprep.subr.mxu1 %v11153_v61  ;;  %v7530_v0 = vld [vmem:[#allocation7 + $0x1d0] sm:$0xff]  ;;  %v7533_v61 = vld [vmem:[#allocation7 + $0x1a8] sm:$0xff] }
 0x26c   :  { %1451 = vmatpush1.msra.mxu0 %v11154_v26  ;;  %1522 = vmatpush1.msra.mxu1 %v11155_v28  ;;  %v7536_v26 = vld [vmem:[#allocation7 + $0x1b8] sm:$0xff]  ;;  %v7539_v28 = vld [vmem:[#allocation7 + $0x1a0] sm:$0xff] }
 0x26d   :  { %1452 = vmatprep.subr.mxu0 %v11156_v29  ;;  %1523 = vmatprep.subr.mxu1 %v11157_v30  ;;  %v7542_v29 = vld [vmem:[#allocation7 + $0x1b0] sm:$0xff]  ;;  %v7545_v30 = vld [vmem:[#allocation7 + $0x188] sm:$0xff] }
 0x26e   :  { %1453 = vmatpush1.msra.mxu0 %v11158_v31  ;;  %1524 = vmatpush1.msra.mxu1 %v11159_v32  ;;  %v7548_v31 = vld [vmem:[#allocation7 + $0x198] sm:$0xff]  ;;  %v7551_v32 = vld [vmem:[#allocation7 + $0x180] sm:$0xff] }
 0x26f   :  { %1454 = vmatprep.subr.mxu0 %v11160_v33  ;;  %1525 = vmatprep.subr.mxu1 %v11161_v34  ;;  %v7554_v33 = vld [vmem:[#allocation7 + $0x190] sm:$0xff]  ;;  %v7557_v34 = vld [vmem:[#allocation7 + $0x168] sm:$0xff] }
 0x270   :  { %1455 = vmatpush1.msra.mxu0 %v11162_v36  ;;  %1526 = vmatpush1.msra.mxu1 %v11163_v38  ;;  %v7563_v36 = vld [vmem:[#allocation7 + $0x160] sm:$0xff]  ;;  %v7566_v38 = vld [vmem:[#allocation7 + $0x170] sm:$0xff] }
 0x271   :  { %v5527_v39 = vpop.eup %5526  ;;  %1456 = vmatprep.subr.mxu0 %v11164_v40  ;;  %1527 = vmatprep.subr.mxu1 %v11165_v41  ;;  %v7572_v40 = vld [vmem:[#allocation7 + $0x158] sm:$0xff]  ;;  %v7575_v41 = vld [vmem:[#allocation7 + $0x140] sm:$0xff] }
 0x272   :  { %v5529_v42 = vpop.eup %5528  ;;  %1457 = vmatpush1.msra.mxu0 %v11166_v43  ;;  %1528 = vmatpush1.msra.mxu1 %v11167_v47  ;;  %v7581_v43 = vld [vmem:[#allocation7 + $0x128] sm:$0xff]  ;;  %v7584_v47 = vld [vmem:[#allocation7 + $0x138] sm:$0xff] }
 0x273   :  { %v5531_v49 = vpop.eup %5530  ;;  %1458 = vmatprep.subr.mxu0 %v11168_v62  ;;  %1529 = vmatprep.subr.mxu1 %v11169_v1  ;;  %v1290_v56 = vmul.f32 %v5529_v42, %v5527_v39  ;;  %v7569_v39 = vld [vmem:[#allocation7 + $0x148] sm:$0xff]  ;;  %v7578_v42 = vld [vmem:[#allocation7 + $0x150] sm:$0xff]  ;;  %v7596_v1 = vld [vmem:[#allocation7 + $0x118] sm:$0xff] }
 0x274   :  { %v1289_v48 = vmul.f32 %v5531_v49, %v7246_v52  ;;  %1459 = vmatpush1.msra.mxu0 %v11170_v50  ;;  %1530 = vmatpush1.msra.mxu1 %v11171_v44  ;;  %v11178_v52 = vld [vmem:[#allocation168_spill] sm:$0xff]  ;;  %v5533_v17 = vpop.eup %5532  ;;  %v7593_v62 = vld [vmem:[#allocation7 + $0x108] sm:$0xff]  ;;  %v7608_v44 = vld [vmem:[#allocation7 + $0xf8] sm:$0xff] }
 0x275   :  { %1460 = vmatprep.subr.mxu0 %v11172_v57  ;;  %1531 = vmatprep.subr.mxu1 %v11173_v54  ;;  %v7587_v49 = vld [vmem:[#allocation7 + $0x120] sm:$0xff]  ;;  %v7605_v50 = vld [vmem:[#allocation7 + $0xe8] sm:$0xff]  ;;  %11188 = vst [vmem:[#allocation16_spill] sm:$0xff] %v7608_v44  ;;  %v7614_v54 = vld [vmem:[#allocation7 + $0xf0] sm:$0xff] }
 0x276   :  { %1461 = vmatpush1.msra.mxu0 %v11174_v60  ;;  %1532 = vmatpush1.msra.mxu1 %v11175_v7  ;;  %v7488_v58 = vadd.f32 %v1290_v56, %v1289_v48  ;;  %v7599_v56 = vld [vmem:[#allocation7 + $0x100] sm:$0xff]  ;;  %v7602_v48 = vld [vmem:[#allocation7 + $0x110] sm:$0xff]  ;;  %11190 = vst [vmem:[#allocation17_spill] sm:$0xff] %v7614_v54  ;;  %v7617_v60 = vld [vmem:[#allocation7 + $0xc8] sm:$0xff] }
 0x277   :  { %1462 = vmatprep.subr.mxu0 %v11176_v63  ;;  %1533 = vmatprep.subr.mxu1 %v11177_v2  ;;  %v7611_v57 = vld [vmem:[#allocation7 + $0xe0] sm:$0xff]  ;;  %11191 = vst [vmem:[#allocation22_spill] sm:$0xff] %v7617_v60  ;;  %v7620_v7 = vld [vmem:[#allocation7 + $0xd8] sm:$0xff]  ;;  %v7626_v2 = vld [vmem:[#allocation7 + $0xd0] sm:$0xff] }
 0x278   :  { %1463 = vmatpush1.msra.mxu0 %v11178_v52  ;;  %1534 = vmatpush1.msra.mxu1 %v11179_v3  ;;  %5534 = vtanh.f32 %v7488_v58  ;;  %11189 = vst [vmem:[#allocation20_spill] sm:$0xff] %v7611_v57  ;;  %11192 = vst [vmem:[#allocation18_spill] sm:$0xff] %v7620_v7  ;;  %v7623_v63 = vld [vmem:[#allocation7 + $0xc0] sm:$0xff]  ;;  %v7629_v52 = vld [vmem:[#allocation7 + $0xa8] sm:$0xff] }
 0x279   :  { %1464 = vmatprep.subr.mxu0 %v11180_v4  ;;  %1535 = vmatprep.subr.mxu1 %v11181_v5  ;;  %11193 = vst [vmem:[#allocation24_spill] sm:$0xff] %v7623_v63  ;;  %11194 = vst [vmem:[#allocation19_spill] sm:$0xff] %v7626_v2  ;;  %v7632_v3 = vld [vmem:[#allocation7 + $0xb8] sm:$0xff]  ;;  %v7635_v4 = vld [vmem:[#allocation7 + $0xa0] sm:$0xff] }
 0x27a   :  { %1465 = vmatpush1.msra.mxu0 %v11182_v6  ;;  %1536 = vmatpush1.msra.mxu1 %v11183_v8  ;;  %11195 = vst [vmem:[#allocation26_spill] sm:$0xff] %v7629_v52  ;;  %11196 = vst [vmem:[#allocation21_spill] sm:$0xff] %v7632_v3  ;;  %v7638_v5 = vld [vmem:[#allocation7 + $0xb0] sm:$0xff]  ;;  %v7641_v6 = vld [vmem:[#allocation7 + $0x88] sm:$0xff] }
 0x27b   :  { %1466 = vmatprep.subr.mxu0 %v11184_v10  ;;  %1537 = vmatprep.subr.mxu1 %v11185_v11  ;;  %11197 = vst [vmem:[#allocation28_spill] sm:$0xff] %v7635_v4  ;;  %11198 = vst [vmem:[#allocation23_spill] sm:$0xff] %v7638_v5  ;;  %v7644_v8 = vld [vmem:[#allocation7 + $0x98] sm:$0xff]  ;;  %v7647_v10 = vld [vmem:[#allocation7 + $0x80] sm:$0xff] }
 0x27c   :  { %1467 = vmatpush1.msra.mxu0 %v11186_v13  ;;  %1538 = vmatpush1.msra.mxu1 %v11187_v14  ;;  %11199 = vst [vmem:[#allocation30_spill] sm:$0xff] %v7641_v6  ;;  %11200 = vst [vmem:[#allocation25_spill] sm:$0xff] %v7644_v8  ;;  %v7650_v11 = vld [vmem:[#allocation7 + $0x90] sm:$0xff]  ;;  %v7653_v13 = vld [vmem:[#allocation7 + $0x68] sm:$0xff] }
 0x27d   :  { %1500 = vmatprep.mubr.f32.mxu0 %v11037_v20  ;;  %1571 = vmatprep.mubr.f32.mxu1 %v11037_v20  ;;  %11201 = vst [vmem:[#allocation33_spill] sm:$0xff] %v7647_v10  ;;  %11202 = vst [vmem:[#allocation27_spill] sm:$0xff] %v7650_v11  ;;  %v7656_v14 = vld [vmem:[#allocation7 + $0x78] sm:$0xff] }
 0x27e   :  { %1610 = vmatprep.subr.mxu0 %v7505_v15  ;;  %1681 = vmatprep.subr.mxu1 %v7508_v16  ;;  %11203 = vst [vmem:[#allocation35_spill] sm:$0xff] %v7653_v13  ;;  %11204 = vst [vmem:[#allocation29_spill] sm:$0xff] %v7656_v14 }
 0x285   :  { %v5535_v18 = vpop.eup %5534 }
 0x286   :  { %v7511_v19 = vmul.f32 %v5535_v18, %v5533_v17  ;;  %v7659_v17 = vld [vmem:[#allocation7 + $0x60] sm:$0xff]  ;;  %v7662_v18 = vld [vmem:[#allocation7 + $0x70] sm:$0xff] }
 0x287   :  { %11205 = vst [vmem:[#allocation38_spill] sm:$0xff] %v7659_v17  ;;  %11206 = vst [vmem:[#allocation31_spill] sm:$0xff] %v7662_v18 }
 0x288   :  { %1501 = vmatmul.mubr.f32.vlgmr.msra.gmra.mxu0 %v7511_v19  ;;  %1572 = vmatmul.mubr.f32.vlgmr.msra.gmra.mxu1 %v7511_v19 }
 0x289   :  { %1611 = vmatpush1.msra.mxu0 %v7515_v21  ;;  %1682 = vmatpush1.msra.mxu1 %v7518_v22 }
 0x28a   :  { %1612 = vmatprep.subr.mxu0 %v7521_v23  ;;  %1683 = vmatprep.subr.mxu1 %v7524_v24 }
 0x28b   :  { %1613 = vmatpush1.msra.mxu0 %v7527_v25  ;;  %1684 = vmatpush1.msra.mxu1 %v7530_v0 }
 0x28c   :  { %1614 = vmatprep.subr.mxu0 %v7533_v61  ;;  %1685 = vmatprep.subr.mxu1 %v7536_v26 }
 0x28d   :  { %1615 = vmatpush1.msra.mxu0 %v7539_v28  ;;  %1686 = vmatpush1.msra.mxu1 %v7542_v29 }
 0x28e   :  { %1616 = vmatprep.subr.mxu0 %v7545_v30  ;;  %1687 = vmatprep.subr.mxu1 %v7548_v31 }
 0x28f   :  { %1617 = vmatpush1.msra.mxu0 %v7551_v32  ;;  %1688 = vmatpush1.msra.mxu1 %v7554_v33 }
 0x290   :  { %1618 = vmatprep.subr.mxu0 %v7557_v34  ;;  %1689 = vmatprep.subr.mxu1 %v7560_v35 }
 0x291   :  { %1619 = vmatpush1.msra.mxu0 %v7563_v36  ;;  %1690 = vmatpush1.msra.mxu1 %v7566_v38 }
 0x292   :  { %1620 = vmatprep.subr.mxu0 %v7569_v39  ;;  %1691 = vmatprep.subr.mxu1 %v7572_v40 }
 0x293   :  { %1621 = vmatpush1.msra.mxu0 %v7575_v41  ;;  %1692 = vmatpush1.msra.mxu1 %v7578_v42 }
 0x294   :  { %1622 = vmatprep.subr.mxu0 %v7581_v43  ;;  %1693 = vmatprep.subr.mxu1 %v7584_v47 }
 0x295   :  { %1623 = vmatpush1.msra.mxu0 %v7587_v49  ;;  %1694 = vmatpush1.msra.mxu1 %v7590_v51 }
 0x296   :  { %1624 = vmatprep.subr.mxu0 %v7593_v62  ;;  %1695 = vmatprep.subr.mxu1 %v7596_v1 }
 0x297   :  { %1625 = vmatpush1.msra.mxu0 %v7599_v56  ;;  %1696 = vmatpush1.msra.mxu1 %v7602_v48 }
 0x298   :  { %1626 = vmatprep.subr.mxu0 %v7605_v50  ;;  %1697 = vmatprep.subr.mxu1 %v7608_v44 }
 0x299   :  { %1627 = vmatpush1.msra.mxu0 %v7611_v57  ;;  %1698 = vmatpush1.msra.mxu1 %v7614_v54 }
 0x29a   :  { %1628 = vmatprep.subr.mxu0 %v7617_v60  ;;  %1699 = vmatprep.subr.mxu1 %v7620_v7 }
 0x29b   :  { %1629 = vmatpush1.msra.mxu0 %v7623_v63  ;;  %1700 = vmatpush1.msra.mxu1 %v7626_v2 }
 0x29c   :  { %1630 = vmatprep.subr.mxu0 %v7629_v52  ;;  %1701 = vmatprep.subr.mxu1 %v7632_v3 }
 0x29d   :  { %1631 = vmatpush1.msra.mxu0 %v7635_v4  ;;  %1702 = vmatpush1.msra.mxu1 %v7638_v5 }
 0x29e   :  { %1632 = vmatprep.subr.mxu0 %v7641_v6  ;;  %1703 = vmatprep.subr.mxu1 %v7644_v8 }
 0x29f   :  { %1633 = vmatpush1.msra.mxu0 %v7647_v10  ;;  %1704 = vmatpush1.msra.mxu1 %v7650_v11  ;;  %v7665_v10 = vld [vmem:[#allocation7 + $0x48] sm:$0xff]  ;;  %v7668_v11 = vld [vmem:[#allocation7 + $0x58] sm:$0xff] }
 0x2a0   :  { %1634 = vmatprep.subr.mxu0 %v7653_v13  ;;  %1705 = vmatprep.subr.mxu1 %v7656_v14  ;;  %11207 = vst [vmem:[#allocation40_spill] sm:$0xff] %v7665_v10  ;;  %11208 = vst [vmem:[#allocation32_spill] sm:$0xff] %v7668_v11  ;;  %v7671_v13 = vld [vmem:[#allocation7 + $0x40] sm:$0xff]  ;;  %v7674_v14 = vld [vmem:[#allocation7 + $0x50] sm:$0xff] }
 0x2a1   :  { %1635 = vmatpush1.msra.mxu0 %v7659_v17  ;;  %1706 = vmatpush1.msra.mxu1 %v7662_v18  ;;  %11209 = vst [vmem:[#allocation43_spill] sm:$0xff] %v7671_v13  ;;  %11210 = vst [vmem:[#allocation34_spill] sm:$0xff] %v7674_v14  ;;  %v7677_v17 = vld [vmem:[#allocation7 + $0x28] sm:$0xff]  ;;  %v7680_v18 = vld [vmem:[#allocation7 + $0x38] sm:$0xff] }
 0x2a2   :  { %1636 = vmatprep.subr.mxu0 %v7665_v10  ;;  %1707 = vmatprep.subr.mxu1 %v7668_v11  ;;  %11211 = vst [vmem:[#allocation44_spill] sm:$0xff] %v7677_v17  ;;  %11212 = vst [vmem:[#allocation36_spill] sm:$0xff] %v7680_v18  ;;  %v7683_v10 = vld [vmem:[#allocation7 + $0x20] sm:$0xff]  ;;  %v7686_v11 = vld [vmem:[#allocation7 + $0x30] sm:$0xff] }
 0x2a3   :  { %1637 = vmatpush1.msra.mxu0 %v7671_v13  ;;  %1708 = vmatpush1.msra.mxu1 %v7674_v14  ;;  %11213 = vst [vmem:[#allocation45_spill] sm:$0xff] %v7683_v10  ;;  %11214 = vst [vmem:[#allocation37_spill] sm:$0xff] %v7686_v11  ;;  %v7689_v13 = vld [vmem:[#allocation7 + $0x8] sm:$0xff]  ;;  %v7692_v14 = vld [vmem:[#allocation7 + $0x18] sm:$0xff] }
 0x2a4   :  { %1638 = vmatprep.subr.mxu0 %v7677_v17  ;;  %1709 = vmatprep.subr.mxu1 %v7680_v18  ;;  %11215 = vst [vmem:[#allocation46_spill] sm:$0xff] %v7689_v13  ;;  %11216 = vst [vmem:[#allocation39_spill] sm:$0xff] %v7692_v14  ;;  %v7695_v17 = vld [vmem:[#allocation7] sm:$0xff]  ;;  %v7699_v18 = vld [vmem:[#allocation7 + $0x10] sm:$0xff] }
 0x2a5   :  { %1639 = vmatpush1.msra.mxu0 %v7683_v10  ;;  %1710 = vmatpush1.msra.mxu1 %v7686_v11  ;;  %11217 = vst [vmem:[#allocation47_spill] sm:$0xff] %v7695_v17  ;;  %11218 = vst [vmem:[#allocation41_spill] sm:$0xff] %v7699_v18  ;;  %v7714_v11 = vld [vmem:[#allocation5 + $0x70] sm:$0xff]  ;;  %v7747_v10 = vld [vmem:[#allocation5] sm:$0xff] }
 0x2a6   :  { %1640 = vmatprep.subr.mxu0 %v7689_v13  ;;  %1711 = vmatprep.subr.mxu1 %v7692_v14  ;;  %v7705_v13 = vld [vmem:[#allocation5 + $0x68] sm:$0xff]  ;;  %v7708_v14 = vld [vmem:[#allocation5 + $0x78] sm:$0xff]  ;;  %11222 = vst [vmem:[#allocation50_spill] sm:$0xff] %v7714_v11  ;;  %11233 = vst [vmem:[#allocation62_spill] sm:$0xff] %v7747_v10 }
 0x2a7   :  { %1641 = vmatpush1.msra.mxu0 %v7695_v17  ;;  %1674 = vmatprep.mubr.f32.mxu0 %v11037_v20  ;;  %11219 = vst [vmem:[#allocation48_spill] sm:$0xff] %v7705_v13  ;;  %11220 = vst [vmem:[#allocation42_spill] sm:$0xff] %v7708_v14  ;;  %v7711_v17 = vld [vmem:[#allocation5 + $0x60] sm:$0xff] }
 0x2a8   :  { %1712 = vmatpush1.msra.mxu1 %v7699_v18  ;;  %1745 = vmatprep.mubr.f32.mxu1 %v11037_v20  ;;  %11221 = vst [vmem:[#allocation49_spill] sm:$0xff] %v7711_v17  ;;  %v7717_v18 = vld [vmem:[#allocation5 + $0x48] sm:$0xff] }
 0x2a9   :  { %1675 = vmatmul.mubr.f32.vlgmr.msra.gmra.mxu0 %v7511_v19  ;;  %1746 = vmatmul.mubr.f32.vlgmr.msra.gmra.mxu1 %v7511_v19  ;;  %11223 = vst [vmem:[#allocation52_spill] sm:$0xff] %v7717_v18  ;;  %v7720_v19 = vld [vmem:[#allocation5 + $0x58] sm:$0xff] }
 0x2aa   :  { %1779 = vmatprep.subr.mxu0 %v7705_v13  ;;  %1850 = vmatprep.subr.mxu1 %v7708_v14  ;;  %11224 = vst [vmem:[#allocation51_spill] sm:$0xff] %v7720_v19  ;;  %v7723_v13 = vld [vmem:[#allocation5 + $0x40] sm:$0xff]  ;;  %v7726_v14 = vld [vmem:[#allocation5 + $0x50] sm:$0xff] }
 0x2ab   :  { %1780 = vmatpush1.msra.mxu0 %v7711_v17  ;;  %1851 = vmatpush1.msra.mxu1 %v7714_v11  ;;  %11225 = vst [vmem:[#allocation54_spill] sm:$0xff] %v7723_v13  ;;  %11226 = vst [vmem:[#allocation53_spill] sm:$0xff] %v7726_v14  ;;  %v7729_v17 = vld [vmem:[#allocation5 + $0x28] sm:$0xff]  ;;  %v7732_v11 = vld [vmem:[#allocation5 + $0x38] sm:$0xff] }
 0x2ac   :  { %1781 = vmatprep.subr.mxu0 %v7717_v18  ;;  %1852 = vmatprep.subr.mxu1 %v7720_v19  ;;  %11227 = vst [vmem:[#allocation56_spill] sm:$0xff] %v7729_v17  ;;  %11228 = vst [vmem:[#allocation55_spill] sm:$0xff] %v7732_v11  ;;  %v7735_v18 = vld [vmem:[#allocation5 + $0x20] sm:$0xff]  ;;  %v7738_v19 = vld [vmem:[#allocation5 + $0x30] sm:$0xff] }
 0x2ad   :  { %1782 = vmatpush1.msra.mxu0 %v7723_v13  ;;  %1853 = vmatpush1.msra.mxu1 %v7726_v14  ;;  %11229 = vst [vmem:[#allocation58_spill] sm:$0xff] %v7735_v18  ;;  %11230 = vst [vmem:[#allocation57_spill] sm:$0xff] %v7738_v19  ;;  %v7741_v13 = vld [vmem:[#allocation5 + $0x8] sm:$0xff]  ;;  %v7744_v14 = vld [vmem:[#allocation5 + $0x18] sm:$0xff] }
 0x2ae   :  { %1783 = vmatprep.subr.mxu0 %v7729_v17  ;;  %1854 = vmatprep.subr.mxu1 %v7732_v11  ;;  %11231 = vst [vmem:[#allocation60_spill] sm:$0xff] %v7741_v13  ;;  %11232 = vst [vmem:[#allocation59_spill] sm:$0xff] %v7744_v14  ;;  %v1609_v17 = vld [vmem:[#allocation2 + $0x10] sm:$0xff] }
 0x2af   :  { %1784 = vmatpush1.msra.mxu0 %v7735_v18  ;;  %1855 = vmatpush1.msra.mxu1 %v7738_v19  ;;  %v7751_v18 = vld [vmem:[#allocation5 + $0x10] sm:$0xff] }
 0x2b0   :  { %1785 = vmatprep.subr.mxu0 %v7741_v13  ;;  %1856 = vmatprep.subr.mxu1 %v7744_v14  ;;  %11234 = vst [vmem:[#allocation61_spill] sm:$0xff] %v7751_v18  ;;  %v7757_v13 = vld [vmem:[#allocation10 + $0x1e8] sm:$0xff]  ;;  %v7760_v14 = vld [vmem:[#allocation10 + $0x1f8] sm:$0xff]  ;;  %v7766_v19 = vld [vmem:[#allocation10 + $0x1f0] sm:$0xff] }
 0x2b1   :  { %1786 = vmatpush1.msra.mxu0 %v7747_v10  ;;  %1819 = vmatprep.mubr.f32.mxu0 %v11037_v20  ;;  %11235 = vst [vmem:[#allocation64_spill] sm:$0xff] %v7757_v13  ;;  %11236 = vst [vmem:[#allocation63_spill] sm:$0xff] %v7760_v14  ;;  %v7763_v10 = vld [vmem:[#allocation10 + $0x1e0] sm:$0xff] }
 0x2b2   :  { %1857 = vmatpush1.msra.mxu1 %v7751_v18  ;;  %1890 = vmatprep.mubr.f32.mxu1 %v11037_v20  ;;  %11237 = vst [vmem:[#allocation66_spill] sm:$0xff] %v7763_v10  ;;  %11238 = vst [vmem:[#allocation65_spill] sm:$0xff] %v7766_v19  ;;  %v7769_v18 = vld [vmem:[#allocation10 + $0x1c8] sm:$0xff] }
 0x2b3   :  { %5429 = vmatmul.mubr.msk.f32.vlgmr.msra.gmra.mxu0 %vm448_vm0, %v1609_v17  ;;  %5430 = vmatmul.mubr.msk.f32.vlgmr.msra.gmra.mxu1 %vm448_vm0, %v1609_v17  ;;  %11239 = vst [vmem:[#allocation68_spill] sm:$0xff] %v7769_v18  ;;  %v7772_v17 = vld [vmem:[#allocation10 + $0x1d8] sm:$0xff] }
 0x2b4   :  { %1925 = vmatprep.subr.mxu0 %v7757_v13  ;;  %1996 = vmatprep.subr.mxu1 %v7760_v14  ;;  %11240 = vst [vmem:[#allocation67_spill] sm:$0xff] %v7772_v17  ;;  %v7775_v13 = vld [vmem:[#allocation10 + $0x1c0] sm:$0xff]  ;;  %v7778_v14 = vld [vmem:[#allocation10 + $0x1d0] sm:$0xff] }
 0x2b5   :  { %1926 = vmatpush1.msra.mxu0 %v7763_v10  ;;  %1997 = vmatpush1.msra.mxu1 %v7766_v19  ;;  %11241 = vst [vmem:[#allocation70_spill] sm:$0xff] %v7775_v13  ;;  %11242 = vst [vmem:[#allocation69_spill] sm:$0xff] %v7778_v14  ;;  %v7781_v10 = vld [vmem:[#allocation10 + $0x1a8] sm:$0xff]  ;;  %v7784_v19 = vld [vmem:[#allocation10 + $0x1b8] sm:$0xff] }
 0x2b6   :  { %1927 = vmatprep.subr.mxu0 %v7769_v18  ;;  %1998 = vmatprep.subr.mxu1 %v7772_v17  ;;  %11243 = vst [vmem:[#allocation72_spill] sm:$0xff] %v7781_v10  ;;  %11244 = vst [vmem:[#allocation71_spill] sm:$0xff] %v7784_v19  ;;  %v7787_v18 = vld [vmem:[#allocation10 + $0x1a0] sm:$0xff]  ;;  %v7790_v17 = vld [vmem:[#allocation10 + $0x1b0] sm:$0xff] }
 0x2b7   :  { %1928 = vmatpush1.msra.mxu0 %v7775_v13  ;;  %1999 = vmatpush1.msra.mxu1 %v7778_v14  ;;  %11245 = vst [vmem:[#allocation74_spill] sm:$0xff] %v7787_v18  ;;  %11246 = vst [vmem:[#allocation73_spill] sm:$0xff] %v7790_v17  ;;  %v7793_v13 = vld [vmem:[#allocation10 + $0x188] sm:$0xff]  ;;  %v7796_v14 = vld [vmem:[#allocation10 + $0x198] sm:$0xff] }
 0x2b8   :  { %1929 = vmatprep.subr.mxu0 %v7781_v10  ;;  %2000 = vmatprep.subr.mxu1 %v7784_v19  ;;  %11247 = vst [vmem:[#allocation76_spill] sm:$0xff] %v7793_v13  ;;  %11248 = vst [vmem:[#allocation75_spill] sm:$0xff] %v7796_v14  ;;  %v7799_v10 = vld [vmem:[#allocation10 + $0x180] sm:$0xff]  ;;  %v7802_v19 = vld [vmem:[#allocation10 + $0x190] sm:$0xff] }
 0x2b9   :  { %1930 = vmatpush1.msra.mxu0 %v7787_v18  ;;  %2001 = vmatpush1.msra.mxu1 %v7790_v17  ;;  %11249 = vst [vmem:[#allocation78_spill] sm:$0xff] %v7799_v10  ;;  %11250 = vst [vmem:[#allocation77_spill] sm:$0xff] %v7802_v19  ;;  %v7805_v18 = vld [vmem:[#allocation10 + $0x168] sm:$0xff]  ;;  %v7808_v17 = vld [vmem:[#allocation10 + $0x178] sm:$0xff] }
 0x2ba   :  { %1931 = vmatprep.subr.mxu0 %v7793_v13  ;;  %2002 = vmatprep.subr.mxu1 %v7796_v14  ;;  %11251 = vst [vmem:[#allocation80_spill] sm:$0xff] %v7805_v18  ;;  %11252 = vst [vmem:[#allocation79_spill] sm:$0xff] %v7808_v17  ;;  %v7811_v13 = vld [vmem:[#allocation10 + $0x160] sm:$0xff]  ;;  %v7814_v14 = vld [vmem:[#allocation10 + $0x170] sm:$0xff] }
 0x2bb   :  { %1932 = vmatpush1.msra.mxu0 %v7799_v10  ;;  %2003 = vmatpush1.msra.mxu1 %v7802_v19  ;;  %11253 = vst [vmem:[#allocation82_spill] sm:$0xff] %v7811_v13  ;;  %11254 = vst [vmem:[#allocation81_spill] sm:$0xff] %v7814_v14  ;;  %v7817_v10 = vld [vmem:[#allocation10 + $0x148] sm:$0xff]  ;;  %v7820_v19 = vld [vmem:[#allocation10 + $0x158] sm:$0xff] }
 0x2bc   :  { %1933 = vmatprep.subr.mxu0 %v7805_v18  ;;  %2004 = vmatprep.subr.mxu1 %v7808_v17  ;;  %11255 = vst [vmem:[#allocation84_spill] sm:$0xff] %v7817_v10  ;;  %11256 = vst [vmem:[#allocation83_spill] sm:$0xff] %v7820_v19  ;;  %v7823_v18 = vld [vmem:[#allocation10 + $0x140] sm:$0xff]  ;;  %v7826_v17 = vld [vmem:[#allocation10 + $0x150] sm:$0xff] }
 0x2bd   :  { %1934 = vmatpush1.msra.mxu0 %v7811_v13  ;;  %2005 = vmatpush1.msra.mxu1 %v7814_v14  ;;  %11257 = vst [vmem:[#allocation86_spill] sm:$0xff] %v7823_v18  ;;  %11258 = vst [vmem:[#allocation85_spill] sm:$0xff] %v7826_v17  ;;  %v7829_v13 = vld [vmem:[#allocation10 + $0x128] sm:$0xff]  ;;  %v7832_v14 = vld [vmem:[#allocation10 + $0x138] sm:$0xff] }
 0x2be   :  { %1935 = vmatprep.subr.mxu0 %v7817_v10  ;;  %2006 = vmatprep.subr.mxu1 %v7820_v19  ;;  %11259 = vst [vmem:[#allocation88_spill] sm:$0xff] %v7829_v13  ;;  %11260 = vst [vmem:[#allocation87_spill] sm:$0xff] %v7832_v14  ;;  %v7835_v10 = vld [vmem:[#allocation10 + $0x120] sm:$0xff]  ;;  %v7838_v19 = vld [vmem:[#allocation10 + $0x130] sm:$0xff] }
 0x2bf   :  { %1936 = vmatpush1.msra.mxu0 %v7823_v18  ;;  %2007 = vmatpush1.msra.mxu1 %v7826_v17  ;;  %11261 = vst [vmem:[#allocation90_spill] sm:$0xff] %v7835_v10  ;;  %11262 = vst [vmem:[#allocation89_spill] sm:$0xff] %v7838_v19  ;;  %v7841_v18 = vld [vmem:[#allocation10 + $0x108] sm:$0xff]  ;;  %v7844_v17 = vld [vmem:[#allocation10 + $0x118] sm:$0xff] }
 0x2c0   :  { %1937 = vmatprep.subr.mxu0 %v7829_v13  ;;  %2008 = vmatprep.subr.mxu1 %v7832_v14  ;;  %11263 = vst [vmem:[#allocation92_spill] sm:$0xff] %v7841_v18  ;;  %11264 = vst [vmem:[#allocation91_spill] sm:$0xff] %v7844_v17  ;;  %v7847_v13 = vld [vmem:[#allocation10 + $0x100] sm:$0xff]  ;;  %v7850_v14 = vld [vmem:[#allocation10 + $0x110] sm:$0xff] }
 0x2c1   :  { %1938 = vmatpush1.msra.mxu0 %v7835_v10  ;;  %2009 = vmatpush1.msra.mxu1 %v7838_v19  ;;  %11265 = vst [vmem:[#allocation94_spill] sm:$0xff] %v7847_v13  ;;  %11266 = vst [vmem:[#allocation93_spill] sm:$0xff] %v7850_v14  ;;  %v7853_v10 = vld [vmem:[#allocation10 + $0xe8] sm:$0xff]  ;;  %v7856_v19 = vld [vmem:[#allocation10 + $0xf8] sm:$0xff] }
 0x2c2   :  { %1939 = vmatprep.subr.mxu0 %v7841_v18  ;;  %2010 = vmatprep.subr.mxu1 %v7844_v17  ;;  %11267 = vst [vmem:[#allocation96_spill] sm:$0xff] %v7853_v10  ;;  %11268 = vst [vmem:[#allocation95_spill] sm:$0xff] %v7856_v19  ;;  %v7859_v18 = vld [vmem:[#allocation10 + $0xe0] sm:$0xff]  ;;  %v7862_v17 = vld [vmem:[#allocation10 + $0xf0] sm:$0xff] }
 0x2c3   :  { %1940 = vmatpush1.msra.mxu0 %v7847_v13  ;;  %2011 = vmatpush1.msra.mxu1 %v7850_v14  ;;  %11269 = vst [vmem:[#allocation98_spill] sm:$0xff] %v7859_v18  ;;  %11270 = vst [vmem:[#allocation97_spill] sm:$0xff] %v7862_v17  ;;  %v7865_v13 = vld [vmem:[#allocation10 + $0xc8] sm:$0xff]  ;;  %v7868_v14 = vld [vmem:[#allocation10 + $0xd8] sm:$0xff] }
 0x2c4   :  { %1941 = vmatprep.subr.mxu0 %v7853_v10  ;;  %2012 = vmatprep.subr.mxu1 %v7856_v19  ;;  %11271 = vst [vmem:[#allocation100_spill] sm:$0xff] %v7865_v13  ;;  %11272 = vst [vmem:[#allocation99_spill] sm:$0xff] %v7868_v14  ;;  %v7871_v10 = vld [vmem:[#allocation10 + $0xc0] sm:$0xff]  ;;  %v7874_v19 = vld [vmem:[#allocation10 + $0xd0] sm:$0xff] }
 0x2c5   :  { %1942 = vmatpush1.msra.mxu0 %v7859_v18  ;;  %2013 = vmatpush1.msra.mxu1 %v7862_v17  ;;  %11273 = vst [vmem:[#allocation102_spill] sm:$0xff] %v7871_v10  ;;  %11274 = vst [vmem:[#allocation101_spill] sm:$0xff] %v7874_v19  ;;  %v7877_v18 = vld [vmem:[#allocation10 + $0xa8] sm:$0xff]  ;;  %v7880_v17 = vld [vmem:[#allocation10 + $0xb8] sm:$0xff] }
 0x2c6   :  { %1943 = vmatprep.subr.mxu0 %v7865_v13  ;;  %2014 = vmatprep.subr.mxu1 %v7868_v14  ;;  %11275 = vst [vmem:[#allocation104_spill] sm:$0xff] %v7877_v18  ;;  %11276 = vst [vmem:[#allocation103_spill] sm:$0xff] %v7880_v17  ;;  %v7883_v13 = vld [vmem:[#allocation10 + $0xa0] sm:$0xff]  ;;  %v7886_v14 = vld [vmem:[#allocation10 + $0xb0] sm:$0xff] }
 0x2c7   :  { %1944 = vmatpush1.msra.mxu0 %v7871_v10  ;;  %2015 = vmatpush1.msra.mxu1 %v7874_v19  ;;  %11277 = vst [vmem:[#allocation106_spill] sm:$0xff] %v7883_v13  ;;  %11278 = vst [vmem:[#allocation105_spill] sm:$0xff] %v7886_v14  ;;  %v7889_v10 = vld [vmem:[#allocation10 + $0x88] sm:$0xff]  ;;  %v7892_v19 = vld [vmem:[#allocation10 + $0x98] sm:$0xff] }
 0x2c8   :  { %1945 = vmatprep.subr.mxu0 %v7877_v18  ;;  %2016 = vmatprep.subr.mxu1 %v7880_v17  ;;  %11279 = vst [vmem:[#allocation108_spill] sm:$0xff] %v7889_v10  ;;  %11280 = vst [vmem:[#allocation107_spill] sm:$0xff] %v7892_v19  ;;  %v7895_v18 = vld [vmem:[#allocation10 + $0x80] sm:$0xff]  ;;  %v7898_v17 = vld [vmem:[#allocation10 + $0x90] sm:$0xff] }
 0x2c9   :  { %1946 = vmatpush1.msra.mxu0 %v7883_v13  ;;  %2017 = vmatpush1.msra.mxu1 %v7886_v14  ;;  %11281 = vst [vmem:[#allocation110_spill] sm:$0xff] %v7895_v18  ;;  %11282 = vst [vmem:[#allocation109_spill] sm:$0xff] %v7898_v17  ;;  %v7901_v13 = vld [vmem:[#allocation10 + $0x68] sm:$0xff]  ;;  %v7904_v14 = vld [vmem:[#allocation10 + $0x78] sm:$0xff] }
 0x2ca   :  { %1947 = vmatprep.subr.mxu0 %v7889_v10  ;;  %2018 = vmatprep.subr.mxu1 %v7892_v19  ;;  %11283 = vst [vmem:[#allocation112_spill] sm:$0xff] %v7901_v13  ;;  %11284 = vst [vmem:[#allocation111_spill] sm:$0xff] %v7904_v14  ;;  %v7907_v10 = vld [vmem:[#allocation10 + $0x60] sm:$0xff]  ;;  %v7910_v19 = vld [vmem:[#allocation10 + $0x70] sm:$0xff] }
 0x2cb   :  { %1948 = vmatpush1.msra.mxu0 %v7895_v18  ;;  %2019 = vmatpush1.msra.mxu1 %v7898_v17  ;;  %11285 = vst [vmem:[#allocation113_spill] sm:$0xff] %v7907_v10  ;;  %11286 = vst [vmem:[#allocation114_spill] sm:$0xff] %v7910_v19  ;;  %v7913_v18 = vld [vmem:[#allocation10 + $0x48] sm:$0xff]  ;;  %v7916_v17 = vld [vmem:[#allocation10 + $0x58] sm:$0xff] }
 0x2cc   :  { %1949 = vmatprep.subr.mxu0 %v7901_v13  ;;  %2020 = vmatprep.subr.mxu1 %v7904_v14  ;;  %11287 = vst [vmem:[#allocation115_spill] sm:$0xff] %v7913_v18  ;;  %11288 = vst [vmem:[#allocation178_spill] sm:$0xff] %v7916_v17  ;;  %v7919_v13 = vld [vmem:[#allocation10 + $0x40] sm:$0xff]  ;;  %v7922_v14 = vld [vmem:[#allocation10 + $0x50] sm:$0xff] }
 0x2cd   :  { %1950 = vmatpush1.msra.mxu0 %v7907_v10  ;;  %2021 = vmatpush1.msra.mxu1 %v7910_v19  ;;  %11289 = vst [vmem:[#allocation179_spill] sm:$0xff] %v7919_v13  ;;  %11290 = vst [vmem:[#allocation116_spill] sm:$0xff] %v7922_v14  ;;  %v7925_v10 = vld [vmem:[#allocation10 + $0x28] sm:$0xff]  ;;  %v7928_v19 = vld [vmem:[#allocation10 + $0x38] sm:$0xff] }
 0x2ce   :  { %1951 = vmatprep.subr.mxu0 %v7913_v18  ;;  %2022 = vmatprep.subr.mxu1 %v7916_v17  ;;  %11291 = vst [vmem:[#allocation117_spill] sm:$0xff] %v7925_v10  ;;  %11292 = vst [vmem:[#allocation118_spill] sm:$0xff] %v7928_v19  ;;  %v7931_v18 = vld [vmem:[#allocation10 + $0x20] sm:$0xff]  ;;  %v7934_v17 = vld [vmem:[#allocation10 + $0x30] sm:$0xff] }
 0x2cf   :  { %1952 = vmatpush1.msra.mxu0 %v7919_v13  ;;  %2023 = vmatpush1.msra.mxu1 %v7922_v14  ;;  %11293 = vst [vmem:[#allocation119_spill] sm:$0xff] %v7931_v18  ;;  %11294 = vst [vmem:[#allocation120_spill] sm:$0xff] %v7934_v17  ;;  %v7937_v13 = vld [vmem:[#allocation10 + $0x8] sm:$0xff]  ;;  %v7940_v14 = vld [vmem:[#allocation10 + $0x18] sm:$0xff] }
 0x2d0   :  { %1953 = vmatprep.subr.mxu0 %v7925_v10  ;;  %2024 = vmatprep.subr.mxu1 %v7928_v19  ;;  %11295 = vst [vmem:[#allocation121_spill] sm:$0xff] %v7937_v13  ;;  %11296 = vst [vmem:[#allocation122_spill] sm:$0xff] %v7940_v14  ;;  %v7943_v10 = vld [vmem:[#allocation10] sm:$0xff]  ;;  %v7947_v19 = vld [vmem:[#allocation10 + $0x10] sm:$0xff] }
 0x2d1   :  { %1954 = vmatpush1.msra.mxu0 %v7931_v18  ;;  %2025 = vmatpush1.msra.mxu1 %v7934_v17  ;;  %11297 = vst [vmem:[#allocation123_spill] sm:$0xff] %v7943_v10  ;;  %11298 = vst [vmem:[#allocation124_spill] sm:$0xff] %v7947_v19  ;;  %v7951_v17 = vld [vmem:[#allocation8 + $0x1e8] sm:$0xff] }
 0x2d2   :  { %1955 = vmatprep.subr.mxu0 %v7937_v13  ;;  %2026 = vmatprep.subr.mxu1 %v7940_v14  ;;  %11299 = vst [vmem:[#allocation125_spill] sm:$0xff] %v7951_v17  ;;  %v7954_v13 = vld [vmem:[#allocation8 + $0x1f8] sm:$0xff] }
 0x2d3   :  { %1956 = vmatpush1.msra.mxu0 %v7943_v10  ;;  %1989 = vmatprep.mubr.f32.mxu0 %v11037_v20  ;;  %11300 = vst [vmem:[#allocation126_spill] sm:$0xff] %v7954_v13 }
 0x2d4   :  { %2027 = vmatpush1.msra.mxu1 %v7947_v19  ;;  %2060 = vmatprep.mubr.f32.mxu1 %v11037_v20 }
 0x2d5   :  { %2067 = vmatprep.subr.mxu0 %v7951_v17  ;;  %2138 = vmatprep.subr.mxu1 %v7954_v13 }
 0x31d   :  { %v1360_v14 = vpop.f32.mrf.mxu0  ;;  %v1431_v18 = vpop.f32.mrf.mxu1 }
 0x31f   :  { %v1362_v11 = vpop.f32.mrf.mxu0  ;;  %v1433_v8 = vpop.f32.mrf.mxu1 }
 0x348   :  { %v1502_v10 = vpop.f32.mrf.mxu0  ;;  %v1573_v19 = vpop.f32.mrf.mxu1 }
 0x349   :  { %v1503_v6 = vadd.f32 %v1502_v10, %v1360_v14  ;;  %v1574_v60 = vadd.f32 %v1573_v19, %v1431_v18 }
 0x34a   :  { %v1504_v5 = vpop.f32.mrf.mxu0  ;;  %v1575_v63 = vpop.f32.mrf.mxu1 }
 0x34b   :  { %v1578_v4 = vadd.f32 %v1503_v6, %v7412_v53  ;;  %v1505_v3 = vadd.f32 %v1504_v5, %v1362_v11  ;;  %v1576_v7 = vadd.f32 %v1575_v63, %v1433_v8  ;;  %v1580_v10 = vadd.f32 %v1574_v60, %v7427_v12 }
 0x34d   :  { %v5426_v52 = vmul.f32 -1.442695, %v1578_v4  ;;  %v1579_v2 = vadd.f32 %v1505_v3, %v7416_v46  ;;  %v1581_v13 = vadd.f32 %v1576_v7, %v7422_v9 }
 0x34f   :  { %5536 = vpow2.f32 %v5426_v52  ;;  %v5427_v17 = vmul.f32 -1.442695, %v1579_v2  ;;  %v5428_v54 = vmul.f32 -1.442695, %v1581_v13 }
 0x351   :  { %5538 = vpow2.f32 %v5427_v17 }
 0x352   :  { %5540 = vpow2.f32 %v5428_v54 }
 0x35c   :  { %v5537_v57 = vpop.eup %5536 }
 0x35d   :  { %v1585_v14 = vadd.f32 1.0, %v5537_v57 }
 0x35e   :  { %v5539_v44 = vpop.eup %5538 }
 0x35f   :  { %5542 = vrcp.f32 %v1585_v14  ;;  %v1591_v5 = vadd.f32 1.0, %v5539_v44  ;;  %v5541_v3 = vpop.eup %5540 }
 0x360   :  { %5544 = vtanh.f32 %v1580_v10  ;;  %v1598_v63 = vadd.f32 1.0, %v5541_v3 }
 0x361   :  { %5546 = vrcp.f32 %v1591_v5 }
 0x362   :  { %5548 = vrcp.f32 %v1598_v63 }
 0x369   :  { %v1676_v4 = vpop.f32.mrf.mxu0  ;;  %v1747_v11 = vpop.f32.mrf.mxu1 }
 0x36b   :  { %v1678_v13 = vpop.f32.mrf.mxu0  ;;  %v1749_v44 = vpop.f32.mrf.mxu1 }
 0x36c   :  { %v5543_v52 = vpop.eup %5542 }
 0x36d   :  { %v5545_v2 = vpop.eup %5544 }
 0x36e   :  { %v5547_v6 = vpop.eup %5546  ;;  %v1602_v8 = vmul.f32 %v5545_v2, %v5543_v52 }
 0x36f   :  { %v1601_v7 = vmul.f32 %v5547_v6, %v7430_v27  ;;  %v5549_v2 = vpop.eup %5548 }
 0x371   :  { %v7962_v18 = vadd.f32 %v1602_v8, %v1601_v7 }
 0x373   :  { %v1821_v57 = vpop.f32.mrf.mxu0  ;;  %5550 = vtanh.f32 %v7962_v18  ;;  %v1892_v17 = vpop.f32.mrf.mxu1 }
 0x374   :  { %v1822_v54 = vadd.f32 %v1821_v57, %v1676_v4  ;;  %v1893_v7 = vadd.f32 %v1892_v17, %v1747_v11  ;;  %v7968_v4 = vld [vmem:[#allocation8 + $0x1e0] sm:$0xff] }
 0x375   :  { %v1823_v60 = vpop.f32.mrf.mxu0  ;;  %v1894_v3 = vpop.f32.mrf.mxu1  ;;  %v7980_v11 = vld [vmem:[#allocation8 + $0x1c0] sm:$0xff] }
 0x376   :  { %v1897_v19 = vadd.f32 %v1822_v54, %v7226_v59  ;;  %v1824_v10 = vadd.f32 %v1823_v60, %v1678_v13  ;;  %v1895_v52 = vadd.f32 %v1894_v3, %v1749_v44  ;;  %v7971_v13 = vld [vmem:[#allocation8 + $0x1f0] sm:$0xff]  ;;  %v7974_v54 = vld [vmem:[#allocation8 + $0x1c8] sm:$0xff]  ;;  %v7977_v44 = vld [vmem:[#allocation8 + $0x1d8] sm:$0xff]  ;;  %v1899_v17 = vadd.f32 %v1893_v7, %v7243_v55 }
 0x377   :  { %v7983_v60 = vld [vmem:[#allocation8 + $0x1d0] sm:$0xff] }
 0x378   :  { %v5431_v14 = vmul.f32 -1.442695, %v1897_v19  ;;  %v1898_v5 = vadd.f32 %v1824_v10, %v11124_v37  ;;  %v1900_v63 = vadd.f32 %v1895_v52, %v11125_v45  ;;  %v7987_v10 = vld [vmem:[#allocation8 + $0x1a8] sm:$0xff]  ;;  %v7996_v3 = vld [vmem:[#allocation8 + $0x1b0] sm:$0xff] }
 0x379   :  { %11302 = vst [vmem:[#allocation128_spill] sm:$0xff] %v7996_v3  ;;  %v8008_v7 = vld [vmem:[#allocation8 + $0x190] sm:$0xff] }
 0x37a   :  { %5552 = vpow2.f32 %v5431_v14  ;;  %v5432_v27 = vmul.f32 -1.442695, %v1898_v5  ;;  %v5433_v57 = vmul.f32 -1.442695, %v1900_v63  ;;  %v7990_v14 = vld [vmem:[#allocation8 + $0x1b8] sm:$0xff]  ;;  %11306 = vst [vmem:[#allocation132_spill] sm:$0xff] %v8008_v7 }
 0x37c   :  { %5554 = vpow2.f32 %v5432_v27  ;;  %v7993_v27 = vld [vmem:[#allocation8 + $0x1a0] sm:$0xff] }
 0x37d   :  { %11301 = vst [vmem:[#allocation127_spill] sm:$0xff] %v7993_v27  ;;  %5556 = vpow2.f32 %v5433_v57  ;;  %v8011_v57 = vld [vmem:[#allocation8 + $0x168] sm:$0xff] }
 0x37e   :  { %11307 = vst [vmem:[#allocation133_spill] sm:$0xff] %v8011_v57 }
 0x380   :  { %v5551_v6 = vpop.eup %5550 }
 0x381   :  { %v1605_v8 = vmul.f32 %v5551_v6, %v5549_v2  ;;  %v7999_v2 = vld [vmem:[#allocation8 + $0x188] sm:$0xff]  ;;  %v8002_v6 = vld [vmem:[#allocation8 + $0x198] sm:$0xff] }
 0x382   :  { %11303 = vst [vmem:[#allocation129_spill] sm:$0xff] %v7999_v2  ;;  %11304 = vst [vmem:[#allocation130_spill] sm:$0xff] %v8002_v6 }
 0x383   :  { %1607 = vst [vmem:[#allocation11 + $0x8] sm:$0xff] %v1605_v8  ;;  %1990 = vmatmul.mubr.f32.vlgmr.msra.gmra.mxu0 %v1605_v8  ;;  %2061 = vmatmul.mubr.f32.vlgmr.msra.gmra.mxu1 %v1605_v8  ;;  %v8005_v8 = vld [vmem:[#allocation8 + $0x180] sm:$0xff] }
 0x384   :  { %2068 = vmatpush1.msra.mxu0 %v7968_v4  ;;  %2139 = vmatpush1.msra.mxu1 %v7971_v13  ;;  %11305 = vst [vmem:[#allocation131_spill] sm:$0xff] %v8005_v8 }
 0x385   :  { %2069 = vmatprep.subr.mxu0 %v7974_v54  ;;  %2140 = vmatprep.subr.mxu1 %v7977_v44 }
 0x386   :  { %2070 = vmatpush1.msra.mxu0 %v7980_v11  ;;  %2141 = vmatpush1.msra.mxu1 %v7983_v60 }
 0x387   :  { %v5553_v19 = vpop.eup %5552  ;;  %2071 = vmatprep.subr.mxu0 %v7987_v10  ;;  %2142 = vmatprep.subr.mxu1 %v7990_v14 }
 0x388   :  { %v1904_v5 = vadd.f32 1.0, %v5553_v19  ;;  %2072 = vmatpush1.msra.mxu0 %v7993_v27  ;;  %2143 = vmatpush1.msra.mxu1 %v7996_v3  ;;  %v8014_v19 = vld [vmem:[#allocation8 + $0x178] sm:$0xff]  ;;  %v8102_v27 = vld [vmem:[#allocation8 + $0x80] sm:$0xff] }
 0x389   :  { %v5555_v52 = vpop.eup %5554  ;;  %2073 = vmatprep.subr.mxu0 %v7999_v2  ;;  %2144 = vmatprep.subr.mxu1 %v8002_v6  ;;  %11308 = vst [vmem:[#allocation134_spill] sm:$0xff] %v8014_v19  ;;  %v8092_v6 = vld [vmem:[#allocation8 + $0xb0] sm:$0xff]  ;;  %v8095_v2 = vld [vmem:[#allocation8 + $0x88] sm:$0xff] }
 0x38a   :  { %5558 = vrcp.f32 %v1904_v5  ;;  %v1910_v63 = vadd.f32 1.0, %v5555_v52  ;;  %2074 = vmatpush1.msra.mxu0 %v8005_v8  ;;  %2145 = vmatpush1.msra.mxu1 %v8008_v7  ;;  %v8017_v5 = vld [vmem:[#allocation8 + $0x160] sm:$0xff]  ;;  %v8020_v52 = vld [vmem:[#allocation8 + $0x170] sm:$0xff]  ;;  %v8023_v8 = vld [vmem:[#allocation8 + $0x148] sm:$0xff]  ;;  %11334 = vst [vmem:[#allocation160_spill] sm:$0xff] %v8095_v2 }
 0x38b   :  { %5560 = vtanh.f32 %v1899_v17  ;;  %2075 = vmatprep.subr.mxu0 %v8011_v57  ;;  %2146 = vmatprep.subr.mxu1 %v8014_v19  ;;  %11309 = vst [vmem:[#allocation135_spill] sm:$0xff] %v8017_v5  ;;  %11310 = vst [vmem:[#allocation136_spill] sm:$0xff] %v8020_v52  ;;  %v8026_v17 = vld [vmem:[#allocation8 + $0x158] sm:$0xff]  ;;  %v8029_v57 = vld [vmem:[#allocation8 + $0x140] sm:$0xff] }
 0x38c   :  { %5562 = vrcp.f32 %v1910_v63  ;;  %2076 = vmatpush1.msra.mxu0 %v8017_v5  ;;  %2147 = vmatpush1.msra.mxu1 %v8020_v52  ;;  %11311 = vst [vmem:[#allocation137_spill] sm:$0xff] %v8023_v8  ;;  %11312 = vst [vmem:[#allocation138_spill] sm:$0xff] %v8026_v17  ;;  %v8032_v63 = vld [vmem:[#allocation8 + $0x150] sm:$0xff]  ;;  %v8035_v5 = vld [vmem:[#allocation8 + $0x128] sm:$0xff] }
 0x38d   :  { %2077 = vmatprep.subr.mxu0 %v8023_v8  ;;  %2148 = vmatprep.subr.mxu1 %v8026_v17  ;;  %11313 = vst [vmem:[#allocation139_spill] sm:$0xff] %v8029_v57  ;;  %11314 = vst [vmem:[#allocation140_spill] sm:$0xff] %v8032_v63  ;;  %v8038_v52 = vld [vmem:[#allocation8 + $0x138] sm:$0xff]  ;;  %v8041_v8 = vld [vmem:[#allocation8 + $0x120] sm:$0xff] }
 0x38e   :  { %2078 = vmatpush1.msra.mxu0 %v8029_v57  ;;  %2149 = vmatpush1.msra.mxu1 %v8032_v63  ;;  %11315 = vst [vmem:[#allocation141_spill] sm:$0xff] %v8035_v5  ;;  %11316 = vst [vmem:[#allocation142_spill] sm:$0xff] %v8038_v52  ;;  %v8044_v17 = vld [vmem:[#allocation8 + $0x130] sm:$0xff]  ;;  %v8047_v57 = vld [vmem:[#allocation8 + $0x108] sm:$0xff] }
 0x38f   :  { %2079 = vmatprep.subr.mxu0 %v8035_v5  ;;  %2150 = vmatprep.subr.mxu1 %v8038_v52  ;;  %11317 = vst [vmem:[#allocation143_spill] sm:$0xff] %v8041_v8  ;;  %11318 = vst [vmem:[#allocation144_spill] sm:$0xff] %v8044_v17  ;;  %v8050_v63 = vld [vmem:[#allocation8 + $0x118] sm:$0xff]  ;;  %v8053_v5 = vld [vmem:[#allocation8 + $0x100] sm:$0xff] }
 0x390   :  { %2080 = vmatpush1.msra.mxu0 %v8041_v8  ;;  %2151 = vmatpush1.msra.mxu1 %v8044_v17  ;;  %11319 = vst [vmem:[#allocation145_spill] sm:$0xff] %v8047_v57  ;;  %11320 = vst [vmem:[#allocation146_spill] sm:$0xff] %v8050_v63  ;;  %v8056_v52 = vld [vmem:[#allocation8 + $0x110] sm:$0xff]  ;;  %v8059_v8 = vld [vmem:[#allocation8 + $0xe8] sm:$0xff] }
 0x391   :  { %2081 = vmatprep.subr.mxu0 %v8047_v57  ;;  %2152 = vmatprep.subr.mxu1 %v8050_v63  ;;  %11321 = vst [vmem:[#allocation147_spill] sm:$0xff] %v8053_v5  ;;  %11322 = vst [vmem:[#allocation148_spill] sm:$0xff] %v8056_v52  ;;  %v8062_v17 = vld [vmem:[#allocation8 + $0xf8] sm:$0xff]  ;;  %v8065_v57 = vld [vmem:[#allocation8 + $0xe0] sm:$0xff] }
 0x392   :  { %2082 = vmatpush1.msra.mxu0 %v8053_v5  ;;  %2153 = vmatpush1.msra.mxu1 %v8056_v52  ;;  %11323 = vst [vmem:[#allocation149_spill] sm:$0xff] %v8059_v8  ;;  %11324 = vst [vmem:[#allocation150_spill] sm:$0xff] %v8062_v17  ;;  %v8068_v63 = vld [vmem:[#allocation8 + $0xf0] sm:$0xff]  ;;  %v8071_v5 = vld [vmem:[#allocation8 + $0xc8] sm:$0xff] }
 0x393   :  { %2083 = vmatprep.subr.mxu0 %v8059_v8  ;;  %2154 = vmatprep.subr.mxu1 %v8062_v17  ;;  %11325 = vst [vmem:[#allocation151_spill] sm:$0xff] %v8065_v57  ;;  %11326 = vst [vmem:[#allocation152_spill] sm:$0xff] %v8068_v63  ;;  %v8074_v52 = vld [vmem:[#allocation8 + $0xd8] sm:$0xff]  ;;  %v5557_v8 = vpop.eup %5556  ;;  %v8077_v19 = vld [vmem:[#allocation8 + $0xc0] sm:$0xff] }
 0x394   :  { %2084 = vmatpush1.msra.mxu0 %v8065_v57  ;;  %2155 = vmatpush1.msra.mxu1 %v8068_v63  ;;  %11327 = vst [vmem:[#allocation153_spill] sm:$0xff] %v8071_v5  ;;  %11328 = vst [vmem:[#allocation154_spill] sm:$0xff] %v8074_v52  ;;  %v8080_v17 = vld [vmem:[#allocation8 + $0xd0] sm:$0xff]  ;;  %v8083_v7 = vld [vmem:[#allocation8 + $0xa8] sm:$0xff] }
 0x395   :  { %2085 = vmatprep.subr.mxu0 %v8071_v5  ;;  %2156 = vmatprep.subr.mxu1 %v8074_v52  ;;  %11329 = vst [vmem:[#allocation155_spill] sm:$0xff] %v8077_v19  ;;  %11330 = vst [vmem:[#allocation156_spill] sm:$0xff] %v8080_v17  ;;  %v8086_v63 = vld [vmem:[#allocation8 + $0xb8] sm:$0xff]  ;;  %v8089_v52 = vld [vmem:[#allocation8 + $0xa0] sm:$0xff] }
 0x396   :  { %2086 = vmatpush1.msra.mxu0 %v8077_v19  ;;  %2157 = vmatpush1.msra.mxu1 %v8080_v17  ;;  %11331 = vst [vmem:[#allocation157_spill] sm:$0xff] %v8083_v7  ;;  %11332 = vst [vmem:[#allocation158_spill] sm:$0xff] %v8086_v63  ;;  %v1917_v17 = vadd.f32 1.0, %v5557_v8  ;;  %v8108_v8 = vld [vmem:[#allocation8 + $0x68] sm:$0xff] }
 0x397   :  { %v5559_v57 = vpop.eup %5558  ;;  %2087 = vmatprep.subr.mxu0 %v8083_v7  ;;  %2158 = vmatprep.subr.mxu1 %v8086_v63  ;;  %11333 = vst [vmem:[#allocation159_spill] sm:$0xff] %v8089_v52  ;;  %v8098_v7 = vld [vmem:[#allocation8 + $0x98] sm:$0xff] }
 0x398   :  { %v5561_v5 = vpop.eup %5560  ;;  %2088 = vmatpush1.msra.mxu0 %v8089_v52  ;;  %2159 = vmatpush1.msra.mxu1 %v8092_v6  ;;  %11335 = vst [vmem:[#allocation161_spill] sm:$0xff] %v8098_v7  ;;  %v8105_v52 = vld [vmem:[#allocation8 + $0x90] sm:$0xff]  ;;  %5564 = vrcp.f32 %v1917_v17  ;;  %v8138_v17 = vld [vmem:[#allocation8 + $0x38] sm:$0xff] }
 0x399   :  { %v5563_v19 = vpop.eup %5562  ;;  %2089 = vmatprep.subr.mxu0 %v8095_v2  ;;  %2160 = vmatprep.subr.mxu1 %v8098_v7  ;;  %v1921_v63 = vmul.f32 %v5561_v5, %v5559_v57  ;;  %v8111_v2 = vld [vmem:[#allocation8 + $0x78] sm:$0xff]  ;;  %v8114_v7 = vld [vmem:[#allocation8 + $0x60] sm:$0xff]  ;;  %11342 = vst [vmem:[#allocation168_spill] sm:$0xff] %v8138_v17 }
 0x39a   :  { %v1920_v3 = vmul.f32 %v5563_v19, %v7488_v58  ;;  %2090 = vmatpush1.msra.mxu0 %v8102_v27  ;;  %2161 = vmatpush1.msra.mxu1 %v8105_v52  ;;  %11336 = vst [vmem:[#allocation162_spill] sm:$0xff] %v8111_v2  ;;  %11337 = vst [vmem:[#allocation163_spill] sm:$0xff] %v8114_v7  ;;  %v8117_v58 = vld [vmem:[#allocation8 + $0x70] sm:$0xff]  ;;  %v8122_v19 = vld [vmem:[#allocation8 + $0x48] sm:$0xff] }
 0x39b   :  { %2091 = vmatprep.subr.mxu0 %v8108_v8  ;;  %2162 = vmatprep.subr.mxu1 %v8111_v2  ;;  %v8125_v5 = vld [vmem:[#allocation8 + $0x58] sm:$0xff]  ;;  %v8128_v2 = vld [vmem:[#allocation8 + $0x40] sm:$0xff] }
 0x39c   :  { %2092 = vmatpush1.msra.mxu0 %v8114_v7  ;;  %2163 = vmatpush1.msra.mxu1 %v8117_v58  ;;  %v8120_v57 = vadd.f32 %v1921_v63, %v1920_v3  ;;  %11338 = vst [vmem:[#allocation164_spill] sm:$0xff] %v8125_v5  ;;  %11339 = vst [vmem:[#allocation165_spill] sm:$0xff] %v8128_v2  ;;  %v8131_v7 = vld [vmem:[#allocation8 + $0x50] sm:$0xff]  ;;  %v8135_v3 = vld [vmem:[#allocation8 + $0x28] sm:$0xff] }
 0x39d   :  { %2093 = vmatprep.subr.mxu0 %v8122_v19  ;;  %2164 = vmatprep.subr.mxu1 %v8125_v5  ;;  %11340 = vst [vmem:[#allocation166_spill] sm:$0xff] %v8131_v7  ;;  %11341 = vst [vmem:[#allocation167_spill] sm:$0xff] %v8135_v3  ;;  %v8141_v63 = vld [vmem:[#allocation8 + $0x20] sm:$0xff]  ;;  %v8144_v5 = vld [vmem:[#allocation8 + $0x30] sm:$0xff] }
 0x39e   :  { %2094 = vmatpush1.msra.mxu0 %v8128_v2  ;;  %2165 = vmatpush1.msra.mxu1 %v8131_v7  ;;  %5566 = vtanh.f32 %v8120_v57  ;;  %11343 = vst [vmem:[#allocation169_spill] sm:$0xff] %v8141_v63  ;;  %11344 = vst [vmem:[#allocation170_spill] sm:$0xff] %v8144_v5  ;;  %v8147_v2 = vld [vmem:[#allocation8 + $0x8] sm:$0xff]  ;;  %v8150_v7 = vld [vmem:[#allocation8 + $0x18] sm:$0xff] }
 0x39f   :  { %2095 = vmatprep.subr.mxu0 %v8135_v3  ;;  %2166 = vmatprep.subr.mxu1 %v8138_v17  ;;  %11345 = vst [vmem:[#allocation171_spill] sm:$0xff] %v8147_v2  ;;  %v8153_v3 = vld [vmem:[#allocation8] sm:$0xff]  ;;  %v8156_v17 = vld [vmem:[#allocation8 + $0x10] sm:$0xff] }
 0x3a0   :  { %2096 = vmatpush1.msra.mxu0 %v8141_v63  ;;  %2167 = vmatpush1.msra.mxu1 %v8144_v5 }
 0x3a1   :  { %2097 = vmatprep.subr.mxu0 %v8147_v2  ;;  %2168 = vmatprep.subr.mxu1 %v8150_v7 }
 0x3a2   :  { %2098 = vmatpush1.msra.mxu0 %v8153_v3  ;;  %2169 = vmatpush1.msra.mxu1 %v8156_v17 }
 0x3a3   :  { %2131 = vmatprep.mubr.f32.mxu0 %v11037_v20  ;;  %2202 = vmatprep.mubr.f32.mxu1 %v11037_v20 }
 0x3a4   :  { %2241 = vmatprep.subr.mxu0 %v7505_v15  ;;  %2312 = vmatprep.subr.mxu1 %v7508_v16  ;;  %v11346_v15 = vld [vmem:[#allocation16_spill] sm:$0xff] }
 0x3a5   :  { %v5565_v2 = vpop.eup %5564  ;;  %v11347_v16 = vld [vmem:[#allocation20_spill] sm:$0xff] }
 0x3ab   :  { %v5567_v5 = vpop.eup %5566 }
 0x3ac   :  { %v8163_v63 = vmul.f32 %v5567_v5, %v5565_v2  ;;  %v11379_v2 = vld [vmem:[#allocation49_spill] sm:$0xff]  ;;  %v11380_v5 = vld [vmem:[#allocation50_spill] sm:$0xff] }
 0x3ae   :  { %2132 = vmatmul.mubr.f32.vlgmr.msra.gmra.mxu0 %v8163_v63  ;;  %2203 = vmatmul.mubr.f32.vlgmr.msra.gmra.mxu1 %v8163_v63 }
 0x3af   :  { %2242 = vmatpush1.msra.mxu0 %v7515_v21  ;;  %2313 = vmatpush1.msra.mxu1 %v7518_v22  ;;  %v11348_v21 = vld [vmem:[#allocation17_spill] sm:$0xff]  ;;  %v11349_v22 = vld [vmem:[#allocation22_spill] sm:$0xff] }
 0x3b0   :  { %2243 = vmatprep.subr.mxu0 %v7521_v23  ;;  %2314 = vmatprep.subr.mxu1 %v7524_v24  ;;  %v11350_v23 = vld [vmem:[#allocation18_spill] sm:$0xff]  ;;  %v11351_v24 = vld [vmem:[#allocation24_spill] sm:$0xff] }
 0x3b1   :  { %2244 = vmatpush1.msra.mxu0 %v7527_v25  ;;  %2315 = vmatpush1.msra.mxu1 %v7530_v0  ;;  %v11352_v25 = vld [vmem:[#allocation19_spill] sm:$0xff]  ;;  %v11353_v0 = vld [vmem:[#allocation26_spill] sm:$0xff] }
 0x3b2   :  { %2245 = vmatprep.subr.mxu0 %v7533_v61  ;;  %2316 = vmatprep.subr.mxu1 %v7536_v26  ;;  %v11354_v61 = vld [vmem:[#allocation21_spill] sm:$0xff]  ;;  %v11355_v26 = vld [vmem:[#allocation28_spill] sm:$0xff] }
 0x3b3   :  { %2246 = vmatpush1.msra.mxu0 %v7539_v28  ;;  %2317 = vmatpush1.msra.mxu1 %v7542_v29  ;;  %v11356_v28 = vld [vmem:[#allocation23_spill] sm:$0xff]  ;;  %v11357_v29 = vld [vmem:[#allocation30_spill] sm:$0xff] }
 0x3b4   :  { %2247 = vmatprep.subr.mxu0 %v7545_v30  ;;  %2318 = vmatprep.subr.mxu1 %v7548_v31  ;;  %v11358_v30 = vld [vmem:[#allocation25_spill] sm:$0xff] }
 0x3b5   :  { %2248 = vmatpush1.msra.mxu0 %v7551_v32  ;;  %2319 = vmatpush1.msra.mxu1 %v7554_v33  ;;  %v11359_v31 = vld [vmem:[#allocation33_spill] sm:$0xff]  ;;  %v11360_v32 = vld [vmem:[#allocation27_spill] sm:$0xff] }
 0x3b6   :  { %2249 = vmatprep.subr.mxu0 %v7557_v34  ;;  %2320 = vmatprep.subr.mxu1 %v7560_v35  ;;  %v11361_v33 = vld [vmem:[#allocation35_spill] sm:$0xff]  ;;  %v11362_v34 = vld [vmem:[#allocation29_spill] sm:$0xff]  ;;  %v11363_v35 = vld [vmem:[#allocation38_spill] sm:$0xff] }
 0x3b7   :  { %2250 = vmatpush1.msra.mxu0 %v7563_v36  ;;  %2321 = vmatpush1.msra.mxu1 %v7566_v38  ;;  %v11364_v36 = vld [vmem:[#allocation31_spill] sm:$0xff]  ;;  %v11365_v38 = vld [vmem:[#allocation40_spill] sm:$0xff] }
 0x3b8   :  { %2251 = vmatprep.subr.mxu0 %v7569_v39  ;;  %2322 = vmatprep.subr.mxu1 %v7572_v40  ;;  %v11366_v39 = vld [vmem:[#allocation32_spill] sm:$0xff]  ;;  %v11367_v40 = vld [vmem:[#allocation43_spill] sm:$0xff] }
 0x3b9   :  { %2252 = vmatpush1.msra.mxu0 %v7575_v41  ;;  %2323 = vmatpush1.msra.mxu1 %v7578_v42  ;;  %v11368_v41 = vld [vmem:[#allocation34_spill] sm:$0xff]  ;;  %v11369_v42 = vld [vmem:[#allocation44_spill] sm:$0xff] }
 0x3ba   :  { %2253 = vmatprep.subr.mxu0 %v7581_v43  ;;  %2324 = vmatprep.subr.mxu1 %v7584_v47  ;;  %v11370_v43 = vld [vmem:[#allocation36_spill] sm:$0xff]  ;;  %v11371_v47 = vld [vmem:[#allocation45_spill] sm:$0xff] }
 0x3bb   :  { %2254 = vmatpush1.msra.mxu0 %v7587_v49  ;;  %2325 = vmatpush1.msra.mxu1 %v7590_v51  ;;  %v11372_v49 = vld [vmem:[#allocation37_spill] sm:$0xff]  ;;  %v11373_v51 = vld [vmem:[#allocation46_spill] sm:$0xff] }
 0x3bc   :  { %2255 = vmatprep.subr.mxu0 %v7593_v62  ;;  %2326 = vmatprep.subr.mxu1 %v7596_v1  ;;  %v11374_v62 = vld [vmem:[#allocation39_spill] sm:$0xff] }
 0x3bd   :  { %2256 = vmatpush1.msra.mxu0 %v7599_v56  ;;  %2327 = vmatpush1.msra.mxu1 %v7602_v48  ;;  %v11375_v1 = vld [vmem:[#allocation47_spill] sm:$0xff]  ;;  %v11376_v56 = vld [vmem:[#allocation41_spill] sm:$0xff]  ;;  %v11377_v48 = vld [vmem:[#allocation48_spill] sm:$0xff] }
 0x3be   :  { %2257 = vmatprep.subr.mxu0 %v7605_v50  ;;  %2328 = vmatprep.subr.mxu1 %v11346_v15  ;;  %v11378_v50 = vld [vmem:[#allocation42_spill] sm:$0xff]  ;;  %v11381_v15 = vld [vmem:[#allocation52_spill] sm:$0xff] }
 0x3bf   :  { %2258 = vmatpush1.msra.mxu0 %v11347_v16  ;;  %2329 = vmatpush1.msra.mxu1 %v11348_v21  ;;  %v11382_v16 = vld [vmem:[#allocation51_spill] sm:$0xff]  ;;  %v11383_v21 = vld [vmem:[#allocation54_spill] sm:$0xff] }
 0x3c0   :  { %2259 = vmatprep.subr.mxu0 %v11349_v22  ;;  %2330 = vmatprep.subr.mxu1 %v11350_v23  ;;  %v11384_v22 = vld [vmem:[#allocation53_spill] sm:$0xff]  ;;  %v11385_v23 = vld [vmem:[#allocation56_spill] sm:$0xff] }
 0x3c1   :  { %2260 = vmatpush1.msra.mxu0 %v11351_v24  ;;  %2331 = vmatpush1.msra.mxu1 %v11352_v25  ;;  %v11386_v24 = vld [vmem:[#allocation55_spill] sm:$0xff]  ;;  %v11388_v25 = vld [vmem:[#allocation57_spill] sm:$0xff] }
 0x3c2   :  { %2261 = vmatprep.subr.mxu0 %v11353_v0  ;;  %2332 = vmatprep.subr.mxu1 %v11354_v61  ;;  %v11389_v0 = vld [vmem:[#allocation60_spill] sm:$0xff]  ;;  %v11390_v61 = vld [vmem:[#allocation59_spill] sm:$0xff] }
 0x3c3   :  { %2262 = vmatpush1.msra.mxu0 %v11355_v26  ;;  %2333 = vmatpush1.msra.mxu1 %v11356_v28  ;;  %v2240_v26 = vld [vmem:[#allocation2 + $0x18] sm:$0xff]  ;;  %v11391_v28 = vld [vmem:[#allocation62_spill] sm:$0xff] }
 0x3c4   :  { %2263 = vmatprep.subr.mxu0 %v11357_v29  ;;  %2334 = vmatprep.subr.mxu1 %v11358_v30  ;;  %v11392_v29 = vld [vmem:[#allocation61_spill] sm:$0xff]  ;;  %v11393_v30 = vld [vmem:[#allocation64_spill] sm:$0xff] }
 0x3c5   :  { %2264 = vmatpush1.msra.mxu0 %v11359_v31  ;;  %2335 = vmatpush1.msra.mxu1 %v11360_v32  ;;  %v11394_v31 = vld [vmem:[#allocation63_spill] sm:$0xff]  ;;  %v11395_v32 = vld [vmem:[#allocation66_spill] sm:$0xff] }
 0x3c6   :  { %2265 = vmatprep.subr.mxu0 %v11361_v33  ;;  %2336 = vmatprep.subr.mxu1 %v11362_v34  ;;  %v11396_v33 = vld [vmem:[#allocation65_spill] sm:$0xff]  ;;  %v11397_v34 = vld [vmem:[#allocation68_spill] sm:$0xff] }
 0x3c7   :  { %2266 = vmatpush1.msra.mxu0 %v11363_v35  ;;  %2337 = vmatpush1.msra.mxu1 %v11364_v36  ;;  %v11398_v35 = vld [vmem:[#allocation67_spill] sm:$0xff]  ;;  %v11399_v36 = vld [vmem:[#allocation70_spill] sm:$0xff] }
 0x3c8   :  { %2267 = vmatprep.subr.mxu0 %v11365_v38  ;;  %2338 = vmatprep.subr.mxu1 %v11366_v39  ;;  %v11400_v38 = vld [vmem:[#allocation69_spill] sm:$0xff]  ;;  %v11401_v39 = vld [vmem:[#allocation72_spill] sm:$0xff] }
 0x3c9   :  { %2268 = vmatpush1.msra.mxu0 %v11367_v40  ;;  %2339 = vmatpush1.msra.mxu1 %v11368_v41  ;;  %v11402_v40 = vld [vmem:[#allocation71_spill] sm:$0xff]  ;;  %v11403_v41 = vld [vmem:[#allocation74_spill] sm:$0xff] }
 0x3ca   :  { %2269 = vmatprep.subr.mxu0 %v11369_v42  ;;  %2340 = vmatprep.subr.mxu1 %v11370_v43  ;;  %v11404_v42 = vld [vmem:[#allocation73_spill] sm:$0xff]  ;;  %v11405_v43 = vld [vmem:[#allocation76_spill] sm:$0xff] }
 0x3cb   :  { %2270 = vmatpush1.msra.mxu0 %v11371_v47  ;;  %2341 = vmatpush1.msra.mxu1 %v11372_v49  ;;  %v11406_v47 = vld [vmem:[#allocation75_spill] sm:$0xff]  ;;  %v11407_v49 = vld [vmem:[#allocation78_spill] sm:$0xff] }
 0x3cc   :  { %2271 = vmatprep.subr.mxu0 %v11373_v51  ;;  %2342 = vmatprep.subr.mxu1 %v11374_v62  ;;  %v11408_v51 = vld [vmem:[#allocation77_spill] sm:$0xff]  ;;  %v11409_v62 = vld [vmem:[#allocation80_spill] sm:$0xff] }
 0x3cd   :  { %2272 = vmatpush1.msra.mxu0 %v11375_v1  ;;  %2305 = vmatprep.mubr.f32.mxu0 %v11037_v20  ;;  %v11410_v1 = vld [vmem:[#allocation79_spill] sm:$0xff] }
 0x3ce   :  { %2343 = vmatpush1.msra.mxu1 %v11376_v56  ;;  %2376 = vmatprep.mubr.f32.mxu1 %v11037_v20  ;;  %v11411_v56 = vld [vmem:[#allocation82_spill] sm:$0xff] }
 0x3cf   :  { %2306 = vmatmul.mubr.f32.vlgmr.msra.gmra.mxu0 %v8163_v63  ;;  %2377 = vmatmul.mubr.f32.vlgmr.msra.gmra.mxu1 %v8163_v63  ;;  %v11387_v63 = vld [vmem:[#allocation58_spill] sm:$0xff] }
 0x3d0   :  { %2410 = vmatprep.subr.mxu0 %v11377_v48  ;;  %2481 = vmatprep.subr.mxu1 %v11378_v50  ;;  %v11412_v48 = vld [vmem:[#allocation81_spill] sm:$0xff]  ;;  %v11413_v50 = vld [vmem:[#allocation84_spill] sm:$0xff] }
 0x3d1   :  { %2411 = vmatpush1.msra.mxu0 %v11379_v2  ;;  %2482 = vmatpush1.msra.mxu1 %v11380_v5  ;;  %v11414_v2 = vld [vmem:[#allocation83_spill] sm:$0xff]  ;;  %v11415_v5 = vld [vmem:[#allocation86_spill] sm:$0xff] }
 0x3d2   :  { %2412 = vmatprep.subr.mxu0 %v11381_v15  ;;  %2483 = vmatprep.subr.mxu1 %v11382_v16  ;;  %v11416_v15 = vld [vmem:[#allocation85_spill] sm:$0xff]  ;;  %v11417_v16 = vld [vmem:[#allocation88_spill] sm:$0xff] }
 0x3d3   :  { %2413 = vmatpush1.msra.mxu0 %v11383_v21  ;;  %2484 = vmatpush1.msra.mxu1 %v11384_v22  ;;  %v11418_v21 = vld [vmem:[#allocation87_spill] sm:$0xff]  ;;  %v11419_v22 = vld [vmem:[#allocation90_spill] sm:$0xff] }
 0x3d4   :  { %2414 = vmatprep.subr.mxu0 %v11385_v23  ;;  %2485 = vmatprep.subr.mxu1 %v11386_v24  ;;  %v11420_v23 = vld [vmem:[#allocation89_spill] sm:$0xff]  ;;  %v11421_v24 = vld [vmem:[#allocation92_spill] sm:$0xff] }
 0x3d5   :  { %2415 = vmatpush1.msra.mxu0 %v11387_v63  ;;  %2486 = vmatpush1.msra.mxu1 %v11388_v25  ;;  %v11422_v63 = vld [vmem:[#allocation91_spill] sm:$0xff]  ;;  %v11423_v25 = vld [vmem:[#allocation94_spill] sm:$0xff] }
 0x3d6   :  { %2416 = vmatprep.subr.mxu0 %v11389_v0  ;;  %2487 = vmatprep.subr.mxu1 %v11390_v61  ;;  %v11424_v0 = vld [vmem:[#allocation93_spill] sm:$0xff]  ;;  %v11425_v61 = vld [vmem:[#allocation96_spill] sm:$0xff] }
 0x3d7   :  { %2417 = vmatpush1.msra.mxu0 %v11391_v28  ;;  %2450 = vmatprep.mubr.f32.mxu0 %v11037_v20  ;;  %v11427_v28 = vld [vmem:[#allocation98_spill] sm:$0xff] }
 0x3d8   :  { %2488 = vmatpush1.msra.mxu1 %v11392_v29  ;;  %2521 = vmatprep.mubr.f32.mxu1 %v11037_v20  ;;  %v11428_v29 = vld [vmem:[#allocation97_spill] sm:$0xff] }
 0x3d9   :  { %5437 = vmatmul.mubr.msk.f32.vlgmr.msra.gmra.mxu0 %vm448_vm0, %v2240_v26  ;;  %5438 = vmatmul.mubr.msk.f32.vlgmr.msra.gmra.mxu1 %vm448_vm0, %v2240_v26  ;;  %v11426_v26 = vld [vmem:[#allocation95_spill] sm:$0xff] }
 0x3da   :  { %2556 = vmatprep.subr.mxu0 %v11393_v30  ;;  %2627 = vmatprep.subr.mxu1 %v11394_v31  ;;  %v11429_v30 = vld [vmem:[#allocation100_spill] sm:$0xff]  ;;  %v11430_v31 = vld [vmem:[#allocation99_spill] sm:$0xff] }
 0x3db   :  { %2557 = vmatpush1.msra.mxu0 %v11395_v32  ;;  %2628 = vmatpush1.msra.mxu1 %v11396_v33  ;;  %v11431_v32 = vld [vmem:[#allocation102_spill] sm:$0xff]  ;;  %v11432_v33 = vld [vmem:[#allocation101_spill] sm:$0xff] }
 0x3dc   :  { %2558 = vmatprep.subr.mxu0 %v11397_v34  ;;  %2629 = vmatprep.subr.mxu1 %v11398_v35  ;;  %v11433_v34 = vld [vmem:[#allocation104_spill] sm:$0xff]  ;;  %v11434_v35 = vld [vmem:[#allocation103_spill] sm:$0xff] }
 0x3dd   :  { %2559 = vmatpush1.msra.mxu0 %v11399_v36  ;;  %2630 = vmatpush1.msra.mxu1 %v11400_v38  ;;  %v11435_v36 = vld [vmem:[#allocation106_spill] sm:$0xff]  ;;  %v11436_v38 = vld [vmem:[#allocation105_spill] sm:$0xff] }
 0x3de   :  { %2560 = vmatprep.subr.mxu0 %v11401_v39  ;;  %2631 = vmatprep.subr.mxu1 %v11402_v40  ;;  %v11437_v39 = vld [vmem:[#allocation108_spill] sm:$0xff]  ;;  %v11438_v40 = vld [vmem:[#allocation107_spill] sm:$0xff] }
 0x3df   :  { %2561 = vmatpush1.msra.mxu0 %v11403_v41  ;;  %2632 = vmatpush1.msra.mxu1 %v11404_v42  ;;  %v11439_v41 = vld [vmem:[#allocation110_spill] sm:$0xff]  ;;  %v11440_v42 = vld [vmem:[#allocation109_spill] sm:$0xff] }
 0x3e0   :  { %2562 = vmatprep.subr.mxu0 %v11405_v43  ;;  %2633 = vmatprep.subr.mxu1 %v11406_v47  ;;  %v11441_v43 = vld [vmem:[#allocation112_spill] sm:$0xff]  ;;  %v11442_v47 = vld [vmem:[#allocation111_spill] sm:$0xff] }
 0x3e1   :  { %2563 = vmatpush1.msra.mxu0 %v11407_v49  ;;  %2634 = vmatpush1.msra.mxu1 %v11408_v51  ;;  %v11443_v49 = vld [vmem:[#allocation113_spill] sm:$0xff]  ;;  %v11444_v51 = vld [vmem:[#allocation114_spill] sm:$0xff] }
 0x3e2   :  { %2564 = vmatprep.subr.mxu0 %v11409_v62  ;;  %2635 = vmatprep.subr.mxu1 %v11410_v1  ;;  %v11445_v62 = vld [vmem:[#allocation115_spill] sm:$0xff]  ;;  %v11446_v1 = vld [vmem:[#allocation178_spill] sm:$0xff] }
 0x3e3   :  { %2565 = vmatpush1.msra.mxu0 %v11411_v56  ;;  %2636 = vmatpush1.msra.mxu1 %v11412_v48  ;;  %v11447_v56 = vld [vmem:[#allocation179_spill] sm:$0xff]  ;;  %v11448_v48 = vld [vmem:[#allocation116_spill] sm:$0xff] }
 0x3e4   :  { %2566 = vmatprep.subr.mxu0 %v11413_v50  ;;  %2637 = vmatprep.subr.mxu1 %v11414_v2  ;;  %v11449_v50 = vld [vmem:[#allocation117_spill] sm:$0xff]  ;;  %v11450_v2 = vld [vmem:[#allocation118_spill] sm:$0xff] }
 0x3e5   :  { %2567 = vmatpush1.msra.mxu0 %v11415_v5  ;;  %2638 = vmatpush1.msra.mxu1 %v11416_v15  ;;  %v11451_v5 = vld [vmem:[#allocation119_spill] sm:$0xff]  ;;  %v11452_v15 = vld [vmem:[#allocation120_spill] sm:$0xff] }
 0x3e6   :  { %2568 = vmatprep.subr.mxu0 %v11417_v16  ;;  %2639 = vmatprep.subr.mxu1 %v11418_v21  ;;  %v11453_v16 = vld [vmem:[#allocation121_spill] sm:$0xff]  ;;  %v11454_v21 = vld [vmem:[#allocation122_spill] sm:$0xff] }
 0x3e7   :  { %2569 = vmatpush1.msra.mxu0 %v11419_v22  ;;  %2640 = vmatpush1.msra.mxu1 %v11420_v23  ;;  %v11455_v22 = vld [vmem:[#allocation123_spill] sm:$0xff]  ;;  %v11456_v23 = vld [vmem:[#allocation124_spill] sm:$0xff] }
 0x3e8   :  { %2570 = vmatprep.subr.mxu0 %v11421_v24  ;;  %2641 = vmatprep.subr.mxu1 %v11422_v63  ;;  %v11457_v24 = vld [vmem:[#allocation125_spill] sm:$0xff]  ;;  %v11458_v63 = vld [vmem:[#allocation126_spill] sm:$0xff] }
 0x3e9   :  { %2571 = vmatpush1.msra.mxu0 %v11423_v25  ;;  %2642 = vmatpush1.msra.mxu1 %v11424_v0 }
 0x3ea   :  { %2572 = vmatprep.subr.mxu0 %v11425_v61  ;;  %2643 = vmatprep.subr.mxu1 %v11426_v26 }
 0x3eb   :  { %2573 = vmatpush1.msra.mxu0 %v11427_v28  ;;  %2644 = vmatpush1.msra.mxu1 %v11428_v29 }
 0x3ec   :  { %2574 = vmatprep.subr.mxu0 %v11429_v30  ;;  %2645 = vmatprep.subr.mxu1 %v11430_v31 }
 0x3ed   :  { %2575 = vmatpush1.msra.mxu0 %v11431_v32  ;;  %2646 = vmatpush1.msra.mxu1 %v11432_v33 }
 0x3ee   :  { %2576 = vmatprep.subr.mxu0 %v11433_v34  ;;  %2647 = vmatprep.subr.mxu1 %v11434_v35 }
 0x3ef   :  { %2577 = vmatpush1.msra.mxu0 %v11435_v36  ;;  %2648 = vmatpush1.msra.mxu1 %v11436_v38 }
 0x3f0   :  { %2578 = vmatprep.subr.mxu0 %v11437_v39  ;;  %2649 = vmatprep.subr.mxu1 %v11438_v40 }
 0x3f1   :  { %2579 = vmatpush1.msra.mxu0 %v11439_v41  ;;  %2650 = vmatpush1.msra.mxu1 %v11440_v42 }
 0x3f2   :  { %2580 = vmatprep.subr.mxu0 %v11441_v43  ;;  %2651 = vmatprep.subr.mxu1 %v11442_v47 }
 0x3f3   :  { %2581 = vmatpush1.msra.mxu0 %v11443_v49  ;;  %2652 = vmatpush1.msra.mxu1 %v11444_v51 }
 0x3f4   :  { %2582 = vmatprep.subr.mxu0 %v11445_v62  ;;  %2653 = vmatprep.subr.mxu1 %v11446_v1 }
 0x3f5   :  { %2583 = vmatpush1.msra.mxu0 %v11447_v56  ;;  %2654 = vmatpush1.msra.mxu1 %v11448_v48 }
 0x3f6   :  { %2584 = vmatprep.subr.mxu0 %v11449_v50  ;;  %2655 = vmatprep.subr.mxu1 %v11450_v2 }
 0x3f7   :  { %2585 = vmatpush1.msra.mxu0 %v11451_v5  ;;  %2656 = vmatpush1.msra.mxu1 %v11452_v15 }
 0x3f8   :  { %2586 = vmatprep.subr.mxu0 %v11453_v16  ;;  %2657 = vmatprep.subr.mxu1 %v11454_v21 }
 0x3f9   :  { %2587 = vmatpush1.msra.mxu0 %v11455_v22  ;;  %2620 = vmatprep.mubr.f32.mxu0 %v11037_v20 }
 0x3fa   :  { %2658 = vmatpush1.msra.mxu1 %v11456_v23  ;;  %2691 = vmatprep.mubr.f32.mxu1 %v11037_v20 }
 0x3fb   :  { %2698 = vmatprep.subr.mxu0 %v11457_v24  ;;  %2769 = vmatprep.subr.mxu1 %v11458_v63 }
 0x443   :  { %v1991_v25 = vpop.f32.mrf.mxu0  ;;  %v2062_v0 = vpop.f32.mrf.mxu1 }
 0x445   :  { %v1993_v61 = vpop.f32.mrf.mxu0  ;;  %v2064_v28 = vpop.f32.mrf.mxu1 }
 0x46e   :  { %v2133_v26 = vpop.f32.mrf.mxu0  ;;  %v2204_v32 = vpop.f32.mrf.mxu1 }
 0x46f   :  { %v2134_v29 = vadd.f32 %v2133_v26, %v1991_v25  ;;  %v2205_v41 = vadd.f32 %v2204_v32, %v2062_v0 }
 0x470   :  { %v2135_v30 = vpop.f32.mrf.mxu0  ;;  %v2206_v38 = vpop.f32.mrf.mxu1 }
 0x471   :  { %v2209_v31 = vadd.f32 %v2134_v29, %v7412_v53  ;;  %v2136_v33 = vadd.f32 %v2135_v30, %v1993_v61  ;;  %v2207_v39 = vadd.f32 %v2206_v38, %v2064_v28  ;;  %v2211_v47 = vadd.f32 %v2205_v41, %v7427_v12 }
 0x473   :  { %v5434_v34 = vmul.f32 -1.442695, %v2209_v31  ;;  %v2210_v35 = vadd.f32 %v2136_v33, %v7416_v46  ;;  %v2212_v40 = vadd.f32 %v2207_v39, %v7422_v9 }
 0x475   :  { %5568 = vpow2.f32 %v5434_v34  ;;  %v5435_v36 = vmul.f32 -1.442695, %v2210_v35  ;;  %v5436_v42 = vmul.f32 -1.442695, %v2212_v40 }
 0x477   :  { %5570 = vpow2.f32 %v5435_v36 }
 0x478   :  { %5572 = vpow2.f32 %v5436_v42 }
 0x482   :  { %v5569_v43 = vpop.eup %5568 }
 0x483   :  { %v2216_v49 = vadd.f32 1.0, %v5569_v43 }
 0x484   :  { %v5571_v51 = vpop.eup %5570 }
 0x485   :  { %5574 = vrcp.f32 %v2216_v49  ;;  %v2222_v62 = vadd.f32 1.0, %v5571_v51  ;;  %v5573_v1 = vpop.eup %5572  ;;  %v11467_v49 = vld [vmem:[#allocation135_spill] sm:$0xff]  ;;  %v11468_v51 = vld [vmem:[#allocation136_spill] sm:$0xff] }
 0x486   :  { %5576 = vtanh.f32 %v2211_v47  ;;  %v2229_v5 = vadd.f32 1.0, %v5573_v1  ;;  %v11464_v47 = vld [vmem:[#allocation132_spill] sm:$0xff]  ;;  %v11470_v1 = vld [vmem:[#allocation138_spill] sm:$0xff] }
 0x487   :  { %5578 = vrcp.f32 %v2222_v62  ;;  %v11469_v62 = vld [vmem:[#allocation137_spill] sm:$0xff] }
 0x488   :  { %5580 = vrcp.f32 %v2229_v5  ;;  %v11475_v5 = vld [vmem:[#allocation143_spill] sm:$0xff] }
 0x48f   :  { %v2307_v50 = vpop.f32.mrf.mxu0  ;;  %v2378_v21 = vpop.f32.mrf.mxu1 }
 0x491   :  { %v2309_v22 = vpop.f32.mrf.mxu0  ;;  %v2380_v63 = vpop.f32.mrf.mxu1 }
 0x492   :  { %v5575_v56 = vpop.eup %5574 }
 0x493   :  { %v5577_v48 = vpop.eup %5576 }
 0x494   :  { %v5579_v2 = vpop.eup %5578  ;;  %v2233_v15 = vmul.f32 %v5577_v48, %v5575_v56  ;;  %v11471_v56 = vld [vmem:[#allocation139_spill] sm:$0xff]  ;;  %v11472_v48 = vld [vmem:[#allocation140_spill] sm:$0xff] }
 0x495   :  { %v2232_v16 = vmul.f32 %v5579_v2, %v7962_v18  ;;  %v5581_v33 = vpop.eup %5580  ;;  %v11474_v2 = vld [vmem:[#allocation142_spill] sm:$0xff] }
 0x497   :  { %v8326_v23 = vadd.f32 %v2233_v15, %v2232_v16  ;;  %v11476_v15 = vld [vmem:[#allocation144_spill] sm:$0xff]  ;;  %v11477_v16 = vld [vmem:[#allocation145_spill] sm:$0xff] }
 0x499   :  { %v2452_v24 = vpop.f32.mrf.mxu0  ;;  %5582 = vtanh.f32 %v8326_v23  ;;  %v2523_v26 = vpop.f32.mrf.mxu1 }
 0x49a   :  { %v2453_v25 = vadd.f32 %v2452_v24, %v2307_v50  ;;  %v2524_v38 = vadd.f32 %v2523_v26, %v2378_v21  ;;  %v11473_v50 = vld [vmem:[#allocation141_spill] sm:$0xff]  ;;  %v11478_v21 = vld [vmem:[#allocation146_spill] sm:$0xff]  ;;  %v11480_v24 = vld [vmem:[#allocation148_spill] sm:$0xff] }
 0x49b   :  { %v2454_v0 = vpop.f32.mrf.mxu0  ;;  %v2525_v31 = vpop.f32.mrf.mxu1  ;;  %v11485_v26 = vld [vmem:[#allocation153_spill] sm:$0xff] }
 0x49c   :  { %v2528_v61 = vadd.f32 %v2453_v25, %v7226_v59  ;;  %v2455_v28 = vadd.f32 %v2454_v0, %v2309_v22  ;;  %v2526_v32 = vadd.f32 %v2525_v31, %v2380_v63  ;;  %v2530_v41 = vadd.f32 %v2524_v38, %v7243_v55  ;;  %v11479_v22 = vld [vmem:[#allocation147_spill] sm:$0xff]  ;;  %v11481_v63 = vld [vmem:[#allocation149_spill] sm:$0xff]  ;;  %v11482_v25 = vld [vmem:[#allocation150_spill] sm:$0xff] }
 0x49d   :  { %v11483_v0 = vld [vmem:[#allocation151_spill] sm:$0xff] }
 0x49e   :  { %v5439_v29 = vmul.f32 -1.442695, %v2528_v61  ;;  %v2529_v30 = vadd.f32 %v2455_v28, %v11124_v37  ;;  %v2531_v35 = vadd.f32 %v2526_v32, %v11125_v45  ;;  %v11484_v61 = vld [vmem:[#allocation152_spill] sm:$0xff]  ;;  %v11486_v28 = vld [vmem:[#allocation154_spill] sm:$0xff]  ;;  %v11489_v32 = vld [vmem:[#allocation157_spill] sm:$0xff] }
 0x4a0   :  { %5584 = vpow2.f32 %v5439_v29  ;;  %v5440_v18 = vmul.f32 -1.442695, %v2529_v30  ;;  %v5441_v39 = vmul.f32 -1.442695, %v2531_v35  ;;  %v11487_v30 = vld [vmem:[#allocation155_spill] sm:$0xff] }
 0x4a1   :  { %v11491_v35 = vld [vmem:[#allocation159_spill] sm:$0xff] }
 0x4a2   :  { %5586 = vpow2.f32 %v5440_v18  ;;  %v11488_v18 = vld [vmem:[#allocation156_spill] sm:$0xff] }
 0x4a3   :  { %5588 = vpow2.f32 %v5441_v39  ;;  %v11492_v39 = vld [vmem:[#allocation160_spill] sm:$0xff] }
 0x4a6   :  { %v5583_v34 = vpop.eup %5582 }
 0x4a7   :  { %v2236_v36 = vmul.f32 %v5583_v34, %v5581_v33  ;;  %v11490_v33 = vld [vmem:[#allocation158_spill] sm:$0xff] }
 0x4a9   :  { %2238 = vst [vmem:[#allocation11 + $0x10] sm:$0xff] %v2236_v36  ;;  %2621 = vmatmul.mubr.f32.vlgmr.msra.gmra.mxu0 %v2236_v36  ;;  %2692 = vmatmul.mubr.f32.vlgmr.msra.gmra.mxu1 %v2236_v36 }
 0x4aa   :  { %2699 = vmatpush1.msra.mxu0 %v7968_v4  ;;  %2770 = vmatpush1.msra.mxu1 %v7971_v13  ;;  %v11459_v4 = vld [vmem:[#allocation127_spill] sm:$0xff]  ;;  %v11460_v13 = vld [vmem:[#allocation128_spill] sm:$0xff] }
 0x4ab   :  { %2700 = vmatprep.subr.mxu0 %v7974_v54  ;;  %2771 = vmatprep.subr.mxu1 %v7977_v44  ;;  %v11461_v54 = vld [vmem:[#allocation129_spill] sm:$0xff]  ;;  %v11462_v44 = vld [vmem:[#allocation130_spill] sm:$0xff] }
 0x4ac   :  { %2701 = vmatpush1.msra.mxu0 %v7980_v11  ;;  %2772 = vmatpush1.msra.mxu1 %v7983_v60  ;;  %v11463_v60 = vld [vmem:[#allocation131_spill] sm:$0xff] }
 0x4ad   :  { %v5585_v40 = vpop.eup %5584  ;;  %2702 = vmatprep.subr.mxu0 %v7987_v10  ;;  %2773 = vmatprep.subr.mxu1 %v7990_v14  ;;  %v11465_v10 = vld [vmem:[#allocation133_spill] sm:$0xff]  ;;  %v11466_v14 = vld [vmem:[#allocation134_spill] sm:$0xff] }
 0x4ae   :  { %v2535_v42 = vadd.f32 1.0, %v5585_v40  ;;  %2703 = vmatpush1.msra.mxu0 %v11459_v4  ;;  %2774 = vmatpush1.msra.mxu1 %v11460_v13  ;;  %v11493_v40 = vld [vmem:[#allocation161_spill] sm:$0xff]  ;;  %v11494_v4 = vld [vmem:[#allocation162_spill] sm:$0xff]  ;;  %v11495_v13 = vld [vmem:[#allocation163_spill] sm:$0xff] }
 0x4af   :  { %v5587_v43 = vpop.eup %5586  ;;  %2704 = vmatprep.subr.mxu0 %v11461_v54  ;;  %2775 = vmatprep.subr.mxu1 %v11462_v44  ;;  %v11501_v54 = vld [vmem:[#allocation169_spill] sm:$0xff]  ;;  %v11503_v44 = vld [vmem:[#allocation171_spill] sm:$0xff] }
 0x4b0   :  { %5590 = vrcp.f32 %v2535_v42  ;;  %v2541_v11 = vadd.f32 1.0, %v5587_v43  ;;  %2705 = vmatpush1.msra.mxu0 %v11463_v60  ;;  %2776 = vmatpush1.msra.mxu1 %v11464_v47  ;;  %v5589_v29 = vpop.eup %5588  ;;  %v11496_v43 = vld [vmem:[#allocation164_spill] sm:$0xff] }
 0x4b1   :  { %5592 = vtanh.f32 %v2530_v41  ;;  %2706 = vmatprep.subr.mxu0 %v11465_v10  ;;  %2777 = vmatprep.subr.mxu1 %v11466_v14  ;;  %v2548_v38 = vadd.f32 1.0, %v5589_v29  ;;  %v8420_v14 = vld [vmem:[#allocation7 + $0x1d8] sm:$0xff]  ;;  %v8483_v29 = vld [vmem:[#allocation7 + $0x120] sm:$0xff] }
 0x4b2   :  { %5594 = vrcp.f32 %v2541_v11  ;;  %2707 = vmatpush1.msra.mxu0 %v11467_v49  ;;  %2778 = vmatpush1.msra.mxu1 %v11468_v51  ;;  %v8404_v11 = vld [vmem:[#allocation7 + $0x1f8] sm:$0xff]  ;;  %v8423_v49 = vld [vmem:[#allocation7 + $0x1c0] sm:$0xff]  ;;  %v8426_v51 = vld [vmem:[#allocation7 + $0x1d0] sm:$0xff] }
 0x4b3   :  { %2708 = vmatprep.subr.mxu0 %v11469_v62  ;;  %2779 = vmatprep.subr.mxu1 %v11470_v1  ;;  %5596 = vrcp.f32 %v2548_v38  ;;  %v8429_v62 = vld [vmem:[#allocation7 + $0x1a8] sm:$0xff]  ;;  %v8432_v1 = vld [vmem:[#allocation7 + $0x1b8] sm:$0xff]  ;;  %v8510_v38 = vld [vmem:[#allocation7 + $0xf0] sm:$0xff] }
 0x4b4   :  { %2709 = vmatpush1.msra.mxu0 %v11471_v56  ;;  %2780 = vmatpush1.msra.mxu1 %v11472_v48  ;;  %v8435_v56 = vld [vmem:[#allocation7 + $0x1a0] sm:$0xff]  ;;  %v8438_v48 = vld [vmem:[#allocation7 + $0x1b0] sm:$0xff]  ;;  %11506 = vst [vmem:[#allocation174_spill] sm:$0xff] %v8510_v38 }
 0x4b5   :  { %2710 = vmatprep.subr.mxu0 %v11473_v50  ;;  %2781 = vmatprep.subr.mxu1 %v11474_v2  ;;  %v8441_v50 = vld [vmem:[#allocation7 + $0x188] sm:$0xff]  ;;  %v8444_v2 = vld [vmem:[#allocation7 + $0x198] sm:$0xff] }
 0x4b6   :  { %2711 = vmatpush1.msra.mxu0 %v11475_v5  ;;  %2782 = vmatpush1.msra.mxu1 %v11476_v15  ;;  %v8447_v5 = vld [vmem:[#allocation7 + $0x180] sm:$0xff]  ;;  %v8450_v15 = vld [vmem:[#allocation7 + $0x190] sm:$0xff] }
 0x4b7   :  { %2712 = vmatprep.subr.mxu0 %v11477_v16  ;;  %2783 = vmatprep.subr.mxu1 %v11478_v21  ;;  %v8453_v16 = vld [vmem:[#allocation7 + $0x168] sm:$0xff]  ;;  %v8456_v21 = vld [vmem:[#allocation7 + $0x178] sm:$0xff] }
 0x4b8   :  { %2713 = vmatpush1.msra.mxu0 %v11479_v22  ;;  %2784 = vmatpush1.msra.mxu1 %v11480_v24  ;;  %v8459_v22 = vld [vmem:[#allocation7 + $0x160] sm:$0xff]  ;;  %v8462_v24 = vld [vmem:[#allocation7 + $0x170] sm:$0xff] }
 0x4b9   :  { %2714 = vmatprep.subr.mxu0 %v11481_v63  ;;  %2785 = vmatprep.subr.mxu1 %v11482_v25  ;;  %v8465_v63 = vld [vmem:[#allocation7 + $0x148] sm:$0xff]  ;;  %v8468_v25 = vld [vmem:[#allocation7 + $0x158] sm:$0xff] }
 0x4ba   :  { %2715 = vmatpush1.msra.mxu0 %v11483_v0  ;;  %2786 = vmatpush1.msra.mxu1 %v11484_v61  ;;  %v8471_v0 = vld [vmem:[#allocation7 + $0x140] sm:$0xff]  ;;  %v8474_v61 = vld [vmem:[#allocation7 + $0x150] sm:$0xff] }
 0x4bb   :  { %2716 = vmatprep.subr.mxu0 %v11485_v26  ;;  %2787 = vmatprep.subr.mxu1 %v11486_v28  ;;  %v8477_v26 = vld [vmem:[#allocation7 + $0x128] sm:$0xff]  ;;  %v8480_v28 = vld [vmem:[#allocation7 + $0x138] sm:$0xff] }
 0x4bc   :  { %2717 = vmatpush1.msra.mxu0 %v11487_v30  ;;  %2788 = vmatpush1.msra.mxu1 %v11488_v18  ;;  %v8486_v30 = vld [vmem:[#allocation7 + $0x130] sm:$0xff]  ;;  %v8489_v18 = vld [vmem:[#allocation7 + $0x108] sm:$0xff] }
 0x4bd   :  { %v5591_v31 = vpop.eup %5590  ;;  %2718 = vmatprep.subr.mxu0 %v11489_v32  ;;  %2789 = vmatprep.subr.mxu1 %v11490_v33  ;;  %v8495_v32 = vld [vmem:[#allocation7 + $0x100] sm:$0xff]  ;;  %v8498_v33 = vld [vmem:[#allocation7 + $0x110] sm:$0xff] }
 0x4be   :  { %v5593_v34 = vpop.eup %5592  ;;  %2719 = vmatpush1.msra.mxu0 %v11491_v35  ;;  %2790 = vmatpush1.msra.mxu1 %v8092_v6  ;;  %v8504_v35 = vld [vmem:[#allocation7 + $0xf8] sm:$0xff] }
 0x4bf   :  { %v5595_v36 = vpop.eup %5594  ;;  %2720 = vmatprep.subr.mxu0 %v11492_v39  ;;  %2791 = vmatprep.subr.mxu1 %v11493_v40  ;;  %v2552_v41 = vmul.f32 %v5593_v34, %v5591_v31  ;;  %v8492_v31 = vld [vmem:[#allocation7 + $0x118] sm:$0xff]  ;;  %v8501_v34 = vld [vmem:[#allocation7 + $0xe8] sm:$0xff]  ;;  %11504 = vst [vmem:[#allocation172_spill] sm:$0xff] %v8504_v35 }
 0x4c0   :  { %v2551_v42 = vmul.f32 %v5595_v36, %v8120_v57  ;;  %2721 = vmatpush1.msra.mxu0 %v8102_v27  ;;  %2792 = vmatpush1.msra.mxu1 %v8105_v52  ;;  %v11497_v57 = vld [vmem:[#allocation165_spill] sm:$0xff]  ;;  %v11498_v27 = vld [vmem:[#allocation166_spill] sm:$0xff]  ;;  %v11499_v52 = vld [vmem:[#allocation167_spill] sm:$0xff]  ;;  %v5597_v60 = vpop.eup %5596 }
 0x4c1   :  { %2722 = vmatprep.subr.mxu0 %v8108_v8  ;;  %2793 = vmatprep.subr.mxu1 %v11494_v4  ;;  %v11500_v8 = vld [vmem:[#allocation168_spill] sm:$0xff]  ;;  %v8513_v39 = vld [vmem:[#allocation7 + $0xc8] sm:$0xff]  ;;  %v8516_v40 = vld [vmem:[#allocation7 + $0xd8] sm:$0xff] }
 0x4c2   :  { %2723 = vmatpush1.msra.mxu0 %v11495_v13  ;;  %2794 = vmatpush1.msra.mxu1 %v8117_v58  ;;  %v8384_v6 = vadd.f32 %v2552_v41, %v2551_v42  ;;  %v11502_v58 = vld [vmem:[#allocation170_spill] sm:$0xff]  ;;  %v8507_v36 = vld [vmem:[#allocation7 + $0xe0] sm:$0xff]  ;;  %11507 = vst [vmem:[#allocation175_spill] sm:$0xff] %v8513_v39  ;;  %11508 = vst [vmem:[#allocation176_spill] sm:$0xff] %v8516_v40 }
 0x4c3   :  { %2724 = vmatprep.subr.mxu0 %v8122_v19  ;;  %2795 = vmatprep.subr.mxu1 %v11496_v43  ;;  %v8401_v19 = vld [vmem:[#allocation7 + $0x1e8] sm:$0xff]  ;;  %11505 = vst [vmem:[#allocation173_spill] sm:$0xff] %v8507_v36  ;;  %v8519_v41 = vld [vmem:[#allocation7 + $0xc0] sm:$0xff]  ;;  %v8522_v42 = vld [vmem:[#allocation7 + $0xd0] sm:$0xff] }
 0x4c4   :  { %2725 = vmatpush1.msra.mxu0 %v11497_v57  ;;  %2796 = vmatpush1.msra.mxu1 %v11498_v27  ;;  %5598 = vtanh.f32 %v8384_v6  ;;  %11509 = vst [vmem:[#allocation177_spill] sm:$0xff] %v8519_v41  ;;  %11510 = vst [vmem:[#allocation16_spill] sm:$0xff] %v8522_v42  ;;  %v8525_v4 = vld [vmem:[#allocation7 + $0xa8] sm:$0xff]  ;;  %v8528_v13 = vld [vmem:[#allocation7 + $0xb8] sm:$0xff] }
 0x4c5   :  { %2726 = vmatprep.subr.mxu0 %v11499_v52  ;;  %2797 = vmatprep.subr.mxu1 %v11500_v8  ;;  %11511 = vst [vmem:[#allocation20_spill] sm:$0xff] %v8525_v4  ;;  %11512 = vst [vmem:[#allocation17_spill] sm:$0xff] %v8528_v13  ;;  %v8531_v43 = vld [vmem:[#allocation7 + $0xa0] sm:$0xff]  ;;  %v8534_v57 = vld [vmem:[#allocation7 + $0xb0] sm:$0xff] }
 0x4c6   :  { %2727 = vmatpush1.msra.mxu0 %v11501_v54  ;;  %2798 = vmatpush1.msra.mxu1 %v11502_v58  ;;  %11513 = vst [vmem:[#allocation22_spill] sm:$0xff] %v8531_v43  ;;  %11514 = vst [vmem:[#allocation18_spill] sm:$0xff] %v8534_v57  ;;  %v8537_v27 = vld [vmem:[#allocation7 + $0x88] sm:$0xff]  ;;  %v8540_v52 = vld [vmem:[#allocation7 + $0x98] sm:$0xff] }
 0x4c7   :  { %2728 = vmatprep.subr.mxu0 %v11503_v44  ;;  %2799 = vmatprep.subr.mxu1 %v8150_v7  ;;  %v8411_v7 = vld [vmem:[#allocation7 + $0x1e0] sm:$0xff]  ;;  %11515 = vst [vmem:[#allocation24_spill] sm:$0xff] %v8537_v27  ;;  %11516 = vst [vmem:[#allocation19_spill] sm:$0xff] %v8540_v52  ;;  %v8546_v54 = vld [vmem:[#allocation7 + $0x90] sm:$0xff] }
 0x4c8   :  { %2729 = vmatpush1.msra.mxu0 %v8153_v3  ;;  %2800 = vmatpush1.msra.mxu1 %v8156_v17  ;;  %v8414_v3 = vld [vmem:[#allocation7 + $0x1f0] sm:$0xff]  ;;  %v8417_v17 = vld [vmem:[#allocation7 + $0x1c8] sm:$0xff]  ;;  %v8543_v8 = vld [vmem:[#allocation7 + $0x80] sm:$0xff]  ;;  %11518 = vst [vmem:[#allocation21_spill] sm:$0xff] %v8546_v54 }
 0x4c9   :  { %2762 = vmatprep.mubr.f32.mxu0 %v11037_v20  ;;  %2833 = vmatprep.mubr.f32.mxu1 %v11037_v20  ;;  %11517 = vst [vmem:[#allocation26_spill] sm:$0xff] %v8543_v8  ;;  %v8549_v58 = vld [vmem:[#allocation7 + $0x68] sm:$0xff]  ;;  %v8552_v44 = vld [vmem:[#allocation7 + $0x78] sm:$0xff] }
 0x4ca   :  { %2872 = vmatprep.subr.mxu0 %v8401_v19  ;;  %2943 = vmatprep.subr.mxu1 %v8404_v11  ;;  %11519 = vst [vmem:[#allocation28_spill] sm:$0xff] %v8549_v58  ;;  %11520 = vst [vmem:[#allocation23_spill] sm:$0xff] %v8552_v44 }
 0x4d1   :  { %v5599_v47 = vpop.eup %5598 }
 0x4d2   :  { %v8407_v10 = vmul.f32 %v5599_v47, %v5597_v60  ;;  %v8555_v60 = vld [vmem:[#allocation7 + $0x60] sm:$0xff]  ;;  %v8558_v47 = vld [vmem:[#allocation7 + $0x70] sm:$0xff] }
 0x4d3   :  { %11521 = vst [vmem:[#allocation30_spill] sm:$0xff] %v8555_v60  ;;  %11522 = vst [vmem:[#allocation25_spill] sm:$0xff] %v8558_v47 }
 0x4d4   :  { %2763 = vmatmul.mubr.f32.vlgmr.msra.gmra.mxu0 %v8407_v10  ;;  %2834 = vmatmul.mubr.f32.vlgmr.msra.gmra.mxu1 %v8407_v10 }
 0x4d5   :  { %2873 = vmatpush1.msra.mxu0 %v8411_v7  ;;  %2944 = vmatpush1.msra.mxu1 %v8414_v3 }
 0x4d6   :  { %2874 = vmatprep.subr.mxu0 %v8417_v17  ;;  %2945 = vmatprep.subr.mxu1 %v8420_v14 }
 0x4d7   :  { %2875 = vmatpush1.msra.mxu0 %v8423_v49  ;;  %2946 = vmatpush1.msra.mxu1 %v8426_v51 }
 0x4d8   :  { %2876 = vmatprep.subr.mxu0 %v8429_v62  ;;  %2947 = vmatprep.subr.mxu1 %v8432_v1 }
 0x4d9   :  { %2877 = vmatpush1.msra.mxu0 %v8435_v56  ;;  %2948 = vmatpush1.msra.mxu1 %v8438_v48 }
 0x4da   :  { %2878 = vmatprep.subr.mxu0 %v8441_v50  ;;  %2949 = vmatprep.subr.mxu1 %v8444_v2 }
 0x4db   :  { %2879 = vmatpush1.msra.mxu0 %v8447_v5  ;;  %2950 = vmatpush1.msra.mxu1 %v8450_v15 }
 0x4dc   :  { %2880 = vmatprep.subr.mxu0 %v8453_v16  ;;  %2951 = vmatprep.subr.mxu1 %v8456_v21 }
 0x4dd   :  { %2881 = vmatpush1.msra.mxu0 %v8459_v22  ;;  %2952 = vmatpush1.msra.mxu1 %v8462_v24 }
 0x4de   :  { %2882 = vmatprep.subr.mxu0 %v8465_v63  ;;  %2953 = vmatprep.subr.mxu1 %v8468_v25 }
 0x4df   :  { %2883 = vmatpush1.msra.mxu0 %v8471_v0  ;;  %2954 = vmatpush1.msra.mxu1 %v8474_v61 }
 0x4e0   :  { %2884 = vmatprep.subr.mxu0 %v8477_v26  ;;  %2955 = vmatprep.subr.mxu1 %v8480_v28 }
 0x4e1   :  { %2885 = vmatpush1.msra.mxu0 %v8483_v29  ;;  %2956 = vmatpush1.msra.mxu1 %v8486_v30 }
 0x4e2   :  { %2886 = vmatprep.subr.mxu0 %v8489_v18  ;;  %2957 = vmatprep.subr.mxu1 %v8492_v31 }
 0x4e3   :  { %2887 = vmatpush1.msra.mxu0 %v8495_v32  ;;  %2958 = vmatpush1.msra.mxu1 %v8498_v33 }
 0x4e4   :  { %2888 = vmatprep.subr.mxu0 %v8501_v34  ;;  %2959 = vmatprep.subr.mxu1 %v8504_v35 }
 0x4e5   :  { %2889 = vmatpush1.msra.mxu0 %v8507_v36  ;;  %2960 = vmatpush1.msra.mxu1 %v8510_v38 }
 0x4e6   :  { %2890 = vmatprep.subr.mxu0 %v8513_v39  ;;  %2961 = vmatprep.subr.mxu1 %v8516_v40 }
 0x4e7   :  { %2891 = vmatpush1.msra.mxu0 %v8519_v41  ;;  %2962 = vmatpush1.msra.mxu1 %v8522_v42 }
 0x4e8   :  { %2892 = vmatprep.subr.mxu0 %v8525_v4  ;;  %2963 = vmatprep.subr.mxu1 %v8528_v13 }
 0x4e9   :  { %2893 = vmatpush1.msra.mxu0 %v8531_v43  ;;  %2964 = vmatpush1.msra.mxu1 %v8534_v57 }
 0x4ea   :  { %2894 = vmatprep.subr.mxu0 %v8537_v27  ;;  %2965 = vmatprep.subr.mxu1 %v8540_v52 }
 0x4eb   :  { %2895 = vmatpush1.msra.mxu0 %v8543_v8  ;;  %2966 = vmatpush1.msra.mxu1 %v8546_v54  ;;  %v8561_v8 = vld [vmem:[#allocation7 + $0x48] sm:$0xff]  ;;  %v8564_v54 = vld [vmem:[#allocation7 + $0x58] sm:$0xff] }
 0x4ec   :  { %2896 = vmatprep.subr.mxu0 %v8549_v58  ;;  %2967 = vmatprep.subr.mxu1 %v8552_v44  ;;  %11523 = vst [vmem:[#allocation33_spill] sm:$0xff] %v8561_v8  ;;  %11524 = vst [vmem:[#allocation27_spill] sm:$0xff] %v8564_v54  ;;  %v8567_v58 = vld [vmem:[#allocation7 + $0x40] sm:$0xff]  ;;  %v8570_v44 = vld [vmem:[#allocation7 + $0x50] sm:$0xff] }
 0x4ed   :  { %2897 = vmatpush1.msra.mxu0 %v8555_v60  ;;  %2968 = vmatpush1.msra.mxu1 %v8558_v47  ;;  %11525 = vst [vmem:[#allocation35_spill] sm:$0xff] %v8567_v58  ;;  %11526 = vst [vmem:[#allocation29_spill] sm:$0xff] %v8570_v44  ;;  %v8573_v60 = vld [vmem:[#allocation7 + $0x28] sm:$0xff]  ;;  %v8576_v47 = vld [vmem:[#allocation7 + $0x38] sm:$0xff] }
 0x4ee   :  { %2898 = vmatprep.subr.mxu0 %v8561_v8  ;;  %2969 = vmatprep.subr.mxu1 %v8564_v54  ;;  %11527 = vst [vmem:[#allocation38_spill] sm:$0xff] %v8573_v60  ;;  %11528 = vst [vmem:[#allocation31_spill] sm:$0xff] %v8576_v47  ;;  %v8579_v8 = vld [vmem:[#allocation7 + $0x20] sm:$0xff]  ;;  %v8582_v54 = vld [vmem:[#allocation7 + $0x30] sm:$0xff] }
 0x4ef   :  { %2899 = vmatpush1.msra.mxu0 %v8567_v58  ;;  %2970 = vmatpush1.msra.mxu1 %v8570_v44  ;;  %11529 = vst [vmem:[#allocation40_spill] sm:$0xff] %v8579_v8  ;;  %11530 = vst [vmem:[#allocation32_spill] sm:$0xff] %v8582_v54  ;;  %v8585_v58 = vld [vmem:[#allocation7 + $0x8] sm:$0xff]  ;;  %v8588_v44 = vld [vmem:[#allocation7 + $0x18] sm:$0xff] }
 0x4f0   :  { %2900 = vmatprep.subr.mxu0 %v8573_v60  ;;  %2971 = vmatprep.subr.mxu1 %v8576_v47  ;;  %11531 = vst [vmem:[#allocation43_spill] sm:$0xff] %v8585_v58  ;;  %11532 = vst [vmem:[#allocation34_spill] sm:$0xff] %v8588_v44  ;;  %v8591_v60 = vld [vmem:[#allocation7] sm:$0xff]  ;;  %v8595_v47 = vld [vmem:[#allocation7 + $0x10] sm:$0xff] }
 0x4f1   :  { %2901 = vmatpush1.msra.mxu0 %v8579_v8  ;;  %2972 = vmatpush1.msra.mxu1 %v8582_v54  ;;  %11533 = vst [vmem:[#allocation44_spill] sm:$0xff] %v8591_v60  ;;  %11534 = vst [vmem:[#allocation36_spill] sm:$0xff] %v8595_v47  ;;  %v8610_v54 = vld [vmem:[#allocation5 + $0x70] sm:$0xff]  ;;  %v8643_v8 = vld [vmem:[#allocation5] sm:$0xff] }
 0x4f2   :  { %2902 = vmatprep.subr.mxu0 %v8585_v58  ;;  %2973 = vmatprep.subr.mxu1 %v8588_v44  ;;  %v8601_v58 = vld [vmem:[#allocation5 + $0x68] sm:$0xff]  ;;  %v8604_v44 = vld [vmem:[#allocation5 + $0x78] sm:$0xff]  ;;  %11538 = vst [vmem:[#allocation39_spill] sm:$0xff] %v8610_v54  ;;  %11549 = vst [vmem:[#allocation56_spill] sm:$0xff] %v8643_v8 }
 0x4f3   :  { %2903 = vmatpush1.msra.mxu0 %v8591_v60  ;;  %2936 = vmatprep.mubr.f32.mxu0 %v11037_v20  ;;  %11535 = vst [vmem:[#allocation45_spill] sm:$0xff] %v8601_v58  ;;  %11536 = vst [vmem:[#allocation37_spill] sm:$0xff] %v8604_v44  ;;  %v8607_v60 = vld [vmem:[#allocation5 + $0x60] sm:$0xff] }
 0x4f4   :  { %2974 = vmatpush1.msra.mxu1 %v8595_v47  ;;  %3007 = vmatprep.mubr.f32.mxu1 %v11037_v20  ;;  %11537 = vst [vmem:[#allocation46_spill] sm:$0xff] %v8607_v60  ;;  %v8613_v47 = vld [vmem:[#allocation5 + $0x48] sm:$0xff] }
 0x4f5   :  { %2937 = vmatmul.mubr.f32.vlgmr.msra.gmra.mxu0 %v8407_v10  ;;  %3008 = vmatmul.mubr.f32.vlgmr.msra.gmra.mxu1 %v8407_v10  ;;  %11539 = vst [vmem:[#allocation47_spill] sm:$0xff] %v8613_v47  ;;  %v8616_v10 = vld [vmem:[#allocation5 + $0x58] sm:$0xff] }
 0x4f6   :  { %3041 = vmatprep.subr.mxu0 %v8601_v58  ;;  %3112 = vmatprep.subr.mxu1 %v8604_v44  ;;  %11540 = vst [vmem:[#allocation41_spill] sm:$0xff] %v8616_v10  ;;  %v8619_v58 = vld [vmem:[#allocation5 + $0x40] sm:$0xff]  ;;  %v8622_v44 = vld [vmem:[#allocation5 + $0x50] sm:$0xff] }
 0x4f7   :  { %3042 = vmatpush1.msra.mxu0 %v8607_v60  ;;  %3113 = vmatpush1.msra.mxu1 %v8610_v54  ;;  %11541 = vst [vmem:[#allocation48_spill] sm:$0xff] %v8619_v58  ;;  %11542 = vst [vmem:[#allocation42_spill] sm:$0xff] %v8622_v44  ;;  %v8625_v60 = vld [vmem:[#allocation5 + $0x28] sm:$0xff]  ;;  %v8628_v54 = vld [vmem:[#allocation5 + $0x38] sm:$0xff] }
 0x4f8   :  { %3043 = vmatprep.subr.mxu0 %v8613_v47  ;;  %3114 = vmatprep.subr.mxu1 %v8616_v10  ;;  %11543 = vst [vmem:[#allocation49_spill] sm:$0xff] %v8625_v60  ;;  %11544 = vst [vmem:[#allocation50_spill] sm:$0xff] %v8628_v54  ;;  %v8631_v47 = vld [vmem:[#allocation5 + $0x20] sm:$0xff]  ;;  %v8634_v10 = vld [vmem:[#allocation5 + $0x30] sm:$0xff] }
 0x4f9   :  { %3044 = vmatpush1.msra.mxu0 %v8619_v58  ;;  %3115 = vmatpush1.msra.mxu1 %v8622_v44  ;;  %11545 = vst [vmem:[#allocation52_spill] sm:$0xff] %v8631_v47  ;;  %11546 = vst [vmem:[#allocation51_spill] sm:$0xff] %v8634_v10  ;;  %v8637_v58 = vld [vmem:[#allocation5 + $0x8] sm:$0xff]  ;;  %v8640_v44 = vld [vmem:[#allocation5 + $0x18] sm:$0xff] }
 0x4fa   :  { %3045 = vmatprep.subr.mxu0 %v8625_v60  ;;  %3116 = vmatprep.subr.mxu1 %v8628_v54  ;;  %11547 = vst [vmem:[#allocation54_spill] sm:$0xff] %v8637_v58  ;;  %11548 = vst [vmem:[#allocation53_spill] sm:$0xff] %v8640_v44  ;;  %v2871_v60 = vld [vmem:[#allocation2 + $0x20] sm:$0xff] }
 0x4fb   :  { %3046 = vmatpush1.msra.mxu0 %v8631_v47  ;;  %3117 = vmatpush1.msra.mxu1 %v8634_v10  ;;  %v8647_v47 = vld [vmem:[#allocation5 + $0x10] sm:$0xff] }
 0x4fc   :  { %3047 = vmatprep.subr.mxu0 %v8637_v58  ;;  %3118 = vmatprep.subr.mxu1 %v8640_v44  ;;  %11550 = vst [vmem:[#allocation55_spill] sm:$0xff] %v8647_v47  ;;  %v8653_v58 = vld [vmem:[#allocation10 + $0x1e8] sm:$0xff]  ;;  %v8656_v44 = vld [vmem:[#allocation10 + $0x1f8] sm:$0xff]  ;;  %v8662_v10 = vld [vmem:[#allocation10 + $0x1f0] sm:$0xff] }
 0x4fd   :  { %3048 = vmatpush1.msra.mxu0 %v8643_v8  ;;  %3081 = vmatprep.mubr.f32.mxu0 %v11037_v20  ;;  %11551 = vst [vmem:[#allocation58_spill] sm:$0xff] %v8653_v58  ;;  %11552 = vst [vmem:[#allocation57_spill] sm:$0xff] %v8656_v44  ;;  %v8659_v8 = vld [vmem:[#allocation10 + $0x1e0] sm:$0xff] }
 0x4fe   :  { %3119 = vmatpush1.msra.mxu1 %v8647_v47  ;;  %3152 = vmatprep.mubr.f32.mxu1 %v11037_v20  ;;  %11553 = vst [vmem:[#allocation60_spill] sm:$0xff] %v8659_v8  ;;  %11554 = vst [vmem:[#allocation59_spill] sm:$0xff] %v8662_v10  ;;  %v8665_v47 = vld [vmem:[#allocation10 + $0x1c8] sm:$0xff] }
 0x4ff   :  { %5445 = vmatmul.mubr.msk.f32.vlgmr.msra.gmra.mxu0 %vm448_vm0, %v2871_v60  ;;  %5446 = vmatmul.mubr.msk.f32.vlgmr.msra.gmra.mxu1 %vm448_vm0, %v2871_v60  ;;  %11555 = vst [vmem:[#allocation62_spill] sm:$0xff] %v8665_v47  ;;  %v8668_v60 = vld [vmem:[#allocation10 + $0x1d8] sm:$0xff] }
 0x500   :  { %3187 = vmatprep.subr.mxu0 %v8653_v58  ;;  %3258 = vmatprep.subr.mxu1 %v8656_v44  ;;  %11556 = vst [vmem:[#allocation61_spill] sm:$0xff] %v8668_v60  ;;  %v8671_v58 = vld [vmem:[#allocation10 + $0x1c0] sm:$0xff]  ;;  %v8674_v44 = vld [vmem:[#allocation10 + $0x1d0] sm:$0xff] }
 0x501   :  { %3188 = vmatpush1.msra.mxu0 %v8659_v8  ;;  %3259 = vmatpush1.msra.mxu1 %v8662_v10  ;;  %11557 = vst [vmem:[#allocation64_spill] sm:$0xff] %v8671_v58  ;;  %11558 = vst [vmem:[#allocation63_spill] sm:$0xff] %v8674_v44  ;;  %v8677_v8 = vld [vmem:[#allocation10 + $0x1a8] sm:$0xff]  ;;  %v8680_v10 = vld [vmem:[#allocation10 + $0x1b8] sm:$0xff] }
 0x502   :  { %3189 = vmatprep.subr.mxu0 %v8665_v47  ;;  %3260 = vmatprep.subr.mxu1 %v8668_v60  ;;  %11559 = vst [vmem:[#allocation66_spill] sm:$0xff] %v8677_v8  ;;  %11560 = vst [vmem:[#allocation65_spill] sm:$0xff] %v8680_v10  ;;  %v8683_v47 = vld [vmem:[#allocation10 + $0x1a0] sm:$0xff]  ;;  %v8686_v60 = vld [vmem:[#allocation10 + $0x1b0] sm:$0xff] }
 0x503   :  { %3190 = vmatpush1.msra.mxu0 %v8671_v58  ;;  %3261 = vmatpush1.msra.mxu1 %v8674_v44  ;;  %11561 = vst [vmem:[#allocation68_spill] sm:$0xff] %v8683_v47  ;;  %11562 = vst [vmem:[#allocation67_spill] sm:$0xff] %v8686_v60  ;;  %v8689_v58 = vld [vmem:[#allocation10 + $0x188] sm:$0xff]  ;;  %v8692_v44 = vld [vmem:[#allocation10 + $0x198] sm:$0xff] }
 0x504   :  { %3191 = vmatprep.subr.mxu0 %v8677_v8  ;;  %3262 = vmatprep.subr.mxu1 %v8680_v10  ;;  %11563 = vst [vmem:[#allocation70_spill] sm:$0xff] %v8689_v58  ;;  %11564 = vst [vmem:[#allocation69_spill] sm:$0xff] %v8692_v44  ;;  %v8695_v8 = vld [vmem:[#allocation10 + $0x180] sm:$0xff]  ;;  %v8698_v10 = vld [vmem:[#allocation10 + $0x190] sm:$0xff] }
 0x505   :  { %3192 = vmatpush1.msra.mxu0 %v8683_v47  ;;  %3263 = vmatpush1.msra.mxu1 %v8686_v60  ;;  %11565 = vst [vmem:[#allocation72_spill] sm:$0xff] %v8695_v8  ;;  %11566 = vst [vmem:[#allocation71_spill] sm:$0xff] %v8698_v10  ;;  %v8701_v47 = vld [vmem:[#allocation10 + $0x168] sm:$0xff]  ;;  %v8704_v60 = vld [vmem:[#allocation10 + $0x178] sm:$0xff] }
 0x506   :  { %3193 = vmatprep.subr.mxu0 %v8689_v58  ;;  %3264 = vmatprep.subr.mxu1 %v8692_v44  ;;  %11567 = vst [vmem:[#allocation74_spill] sm:$0xff] %v8701_v47  ;;  %11568 = vst [vmem:[#allocation73_spill] sm:$0xff] %v8704_v60  ;;  %v8707_v58 = vld [vmem:[#allocation10 + $0x160] sm:$0xff]  ;;  %v8710_v44 = vld [vmem:[#allocation10 + $0x170] sm:$0xff] }
 0x507   :  { %3194 = vmatpush1.msra.mxu0 %v8695_v8  ;;  %3265 = vmatpush1.msra.mxu1 %v8698_v10  ;;  %11569 = vst [vmem:[#allocation76_spill] sm:$0xff] %v8707_v58  ;;  %11570 = vst [vmem:[#allocation75_spill] sm:$0xff] %v8710_v44  ;;  %v8713_v8 = vld [vmem:[#allocation10 + $0x148] sm:$0xff]  ;;  %v8716_v10 = vld [vmem:[#allocation10 + $0x158] sm:$0xff] }
 0x508   :  { %3195 = vmatprep.subr.mxu0 %v8701_v47  ;;  %3266 = vmatprep.subr.mxu1 %v8704_v60  ;;  %11571 = vst [vmem:[#allocation78_spill] sm:$0xff] %v8713_v8  ;;  %11572 = vst [vmem:[#allocation77_spill] sm:$0xff] %v8716_v10  ;;  %v8719_v47 = vld [vmem:[#allocation10 + $0x140] sm:$0xff]  ;;  %v8722_v60 = vld [vmem:[#allocation10 + $0x150] sm:$0xff] }
 0x509   :  { %3196 = vmatpush1.msra.mxu0 %v8707_v58  ;;  %3267 = vmatpush1.msra.mxu1 %v8710_v44  ;;  %11573 = vst [vmem:[#allocation80_spill] sm:$0xff] %v8719_v47  ;;  %11574 = vst [vmem:[#allocation79_spill] sm:$0xff] %v8722_v60  ;;  %v8725_v58 = vld [vmem:[#allocation10 + $0x128] sm:$0xff]  ;;  %v8728_v44 = vld [vmem:[#allocation10 + $0x138] sm:$0xff] }
 0x50a   :  { %3197 = vmatprep.subr.mxu0 %v8713_v8  ;;  %3268 = vmatprep.subr.mxu1 %v8716_v10  ;;  %11575 = vst [vmem:[#allocation82_spill] sm:$0xff] %v8725_v58  ;;  %11576 = vst [vmem:[#allocation81_spill] sm:$0xff] %v8728_v44  ;;  %v8731_v8 = vld [vmem:[#allocation10 + $0x120] sm:$0xff]  ;;  %v8734_v10 = vld [vmem:[#allocation10 + $0x130] sm:$0xff] }
 0x50b   :  { %3198 = vmatpush1.msra.mxu0 %v8719_v47  ;;  %3269 = vmatpush1.msra.mxu1 %v8722_v60  ;;  %11577 = vst [vmem:[#allocation84_spill] sm:$0xff] %v8731_v8  ;;  %11578 = vst [vmem:[#allocation83_spill] sm:$0xff] %v8734_v10  ;;  %v8737_v47 = vld [vmem:[#allocation10 + $0x108] sm:$0xff]  ;;  %v8740_v60 = vld [vmem:[#allocation10 + $0x118] sm:$0xff] }
 0x50c   :  { %3199 = vmatprep.subr.mxu0 %v8725_v58  ;;  %3270 = vmatprep.subr.mxu1 %v8728_v44  ;;  %11579 = vst [vmem:[#allocation86_spill] sm:$0xff] %v8737_v47  ;;  %11580 = vst [vmem:[#allocation85_spill] sm:$0xff] %v8740_v60  ;;  %v8743_v58 = vld [vmem:[#allocation10 + $0x100] sm:$0xff]  ;;  %v8746_v44 = vld [vmem:[#allocation10 + $0x110] sm:$0xff] }
 0x50d   :  { %3200 = vmatpush1.msra.mxu0 %v8731_v8  ;;  %3271 = vmatpush1.msra.mxu1 %v8734_v10  ;;  %11581 = vst [vmem:[#allocation88_spill] sm:$0xff] %v8743_v58  ;;  %11582 = vst [vmem:[#allocation87_spill] sm:$0xff] %v8746_v44  ;;  %v8749_v8 = vld [vmem:[#allocation10 + $0xe8] sm:$0xff]  ;;  %v8752_v10 = vld [vmem:[#allocation10 + $0xf8] sm:$0xff] }
 0x50e   :  { %3201 = vmatprep.subr.mxu0 %v8737_v47  ;;  %3272 = vmatprep.subr.mxu1 %v8740_v60  ;;  %11583 = vst [vmem:[#allocation90_spill] sm:$0xff] %v8749_v8  ;;  %11584 = vst [vmem:[#allocation89_spill] sm:$0xff] %v8752_v10  ;;  %v8755_v47 = vld [vmem:[#allocation10 + $0xe0] sm:$0xff]  ;;  %v8758_v60 = vld [vmem:[#allocation10 + $0xf0] sm:$0xff] }
 0x50f   :  { %3202 = vmatpush1.msra.mxu0 %v8743_v58  ;;  %3273 = vmatpush1.msra.mxu1 %v8746_v44  ;;  %11585 = vst [vmem:[#allocation92_spill] sm:$0xff] %v8755_v47  ;;  %11586 = vst [vmem:[#allocation91_spill] sm:$0xff] %v8758_v60  ;;  %v8761_v58 = vld [vmem:[#allocation10 + $0xc8] sm:$0xff]  ;;  %v8764_v44 = vld [vmem:[#allocation10 + $0xd8] sm:$0xff] }
 0x510   :  { %3203 = vmatprep.subr.mxu0 %v8749_v8  ;;  %3274 = vmatprep.subr.mxu1 %v8752_v10  ;;  %11587 = vst [vmem:[#allocation94_spill] sm:$0xff] %v8761_v58  ;;  %11588 = vst [vmem:[#allocation93_spill] sm:$0xff] %v8764_v44  ;;  %v8767_v8 = vld [vmem:[#allocation10 + $0xc0] sm:$0xff]  ;;  %v8770_v10 = vld [vmem:[#allocation10 + $0xd0] sm:$0xff] }
 0x511   :  { %3204 = vmatpush1.msra.mxu0 %v8755_v47  ;;  %3275 = vmatpush1.msra.mxu1 %v8758_v60  ;;  %11589 = vst [vmem:[#allocation96_spill] sm:$0xff] %v8767_v8  ;;  %11590 = vst [vmem:[#allocation95_spill] sm:$0xff] %v8770_v10  ;;  %v8773_v47 = vld [vmem:[#allocation10 + $0xa8] sm:$0xff]  ;;  %v8776_v60 = vld [vmem:[#allocation10 + $0xb8] sm:$0xff] }
 0x512   :  { %3205 = vmatprep.subr.mxu0 %v8761_v58  ;;  %3276 = vmatprep.subr.mxu1 %v8764_v44  ;;  %11591 = vst [vmem:[#allocation98_spill] sm:$0xff] %v8773_v47  ;;  %11592 = vst [vmem:[#allocation97_spill] sm:$0xff] %v8776_v60  ;;  %v8779_v58 = vld [vmem:[#allocation10 + $0xa0] sm:$0xff]  ;;  %v8782_v44 = vld [vmem:[#allocation10 + $0xb0] sm:$0xff] }
 0x513   :  { %3206 = vmatpush1.msra.mxu0 %v8767_v8  ;;  %3277 = vmatpush1.msra.mxu1 %v8770_v10  ;;  %11593 = vst [vmem:[#allocation100_spill] sm:$0xff] %v8779_v58  ;;  %11594 = vst [vmem:[#allocation99_spill] sm:$0xff] %v8782_v44  ;;  %v8785_v8 = vld [vmem:[#allocation10 + $0x88] sm:$0xff]  ;;  %v8788_v10 = vld [vmem:[#allocation10 + $0x98] sm:$0xff] }
 0x514   :  { %3207 = vmatprep.subr.mxu0 %v8773_v47  ;;  %3278 = vmatprep.subr.mxu1 %v8776_v60  ;;  %11595 = vst [vmem:[#allocation102_spill] sm:$0xff] %v8785_v8  ;;  %11596 = vst [vmem:[#allocation101_spill] sm:$0xff] %v8788_v10  ;;  %v8791_v47 = vld [vmem:[#allocation10 + $0x80] sm:$0xff]  ;;  %v8794_v60 = vld [vmem:[#allocation10 + $0x90] sm:$0xff] }
 0x515   :  { %3208 = vmatpush1.msra.mxu0 %v8779_v58  ;;  %3279 = vmatpush1.msra.mxu1 %v8782_v44  ;;  %11597 = vst [vmem:[#allocation104_spill] sm:$0xff] %v8791_v47  ;;  %11598 = vst [vmem:[#allocation103_spill] sm:$0xff] %v8794_v60  ;;  %v8797_v58 = vld [vmem:[#allocation10 + $0x68] sm:$0xff]  ;;  %v8800_v44 = vld [vmem:[#allocation10 + $0x78] sm:$0xff] }
 0x516   :  { %3209 = vmatprep.subr.mxu0 %v8785_v8  ;;  %3280 = vmatprep.subr.mxu1 %v8788_v10  ;;  %11599 = vst [vmem:[#allocation106_spill] sm:$0xff] %v8797_v58  ;;  %11600 = vst [vmem:[#allocation105_spill] sm:$0xff] %v8800_v44  ;;  %v8803_v8 = vld [vmem:[#allocation10 + $0x60] sm:$0xff]  ;;  %v8806_v10 = vld [vmem:[#allocation10 + $0x70] sm:$0xff] }
 0x517   :  { %3210 = vmatpush1.msra.mxu0 %v8791_v47  ;;  %3281 = vmatpush1.msra.mxu1 %v8794_v60  ;;  %11601 = vst [vmem:[#allocation108_spill] sm:$0xff] %v8803_v8  ;;  %11602 = vst [vmem:[#allocation107_spill] sm:$0xff] %v8806_v10  ;;  %v8809_v47 = vld [vmem:[#allocation10 + $0x48] sm:$0xff]  ;;  %v8812_v60 = vld [vmem:[#allocation10 + $0x58] sm:$0xff] }
 0x518   :  { %3211 = vmatprep.subr.mxu0 %v8797_v58  ;;  %3282 = vmatprep.subr.mxu1 %v8800_v44  ;;  %11603 = vst [vmem:[#allocation110_spill] sm:$0xff] %v8809_v47  ;;  %11604 = vst [vmem:[#allocation109_spill] sm:$0xff] %v8812_v60  ;;  %v8815_v58 = vld [vmem:[#allocation10 + $0x40] sm:$0xff]  ;;  %v8818_v44 = vld [vmem:[#allocation10 + $0x50] sm:$0xff] }
 0x519   :  { %3212 = vmatpush1.msra.mxu0 %v8803_v8  ;;  %3283 = vmatpush1.msra.mxu1 %v8806_v10  ;;  %11605 = vst [vmem:[#allocation112_spill] sm:$0xff] %v8815_v58  ;;  %11606 = vst [vmem:[#allocation111_spill] sm:$0xff] %v8818_v44  ;;  %v8821_v8 = vld [vmem:[#allocation10 + $0x28] sm:$0xff]  ;;  %v8824_v10 = vld [vmem:[#allocation10 + $0x38] sm:$0xff] }
 0x51a   :  { %3213 = vmatprep.subr.mxu0 %v8809_v47  ;;  %3284 = vmatprep.subr.mxu1 %v8812_v60  ;;  %11607 = vst [vmem:[#allocation113_spill] sm:$0xff] %v8821_v8  ;;  %11608 = vst [vmem:[#allocation114_spill] sm:$0xff] %v8824_v10  ;;  %v8827_v47 = vld [vmem:[#allocation10 + $0x20] sm:$0xff]  ;;  %v8830_v60 = vld [vmem:[#allocation10 + $0x30] sm:$0xff] }
 0x51b   :  { %3214 = vmatpush1.msra.mxu0 %v8815_v58  ;;  %3285 = vmatpush1.msra.mxu1 %v8818_v44  ;;  %11609 = vst [vmem:[#allocation115_spill] sm:$0xff] %v8827_v47  ;;  %11610 = vst [vmem:[#allocation178_spill] sm:$0xff] %v8830_v60  ;;  %v8833_v58 = vld [vmem:[#allocation10 + $0x8] sm:$0xff]  ;;  %v8836_v44 = vld [vmem:[#allocation10 + $0x18] sm:$0xff] }
 0x51c   :  { %3215 = vmatprep.subr.mxu0 %v8821_v8  ;;  %3286 = vmatprep.subr.mxu1 %v8824_v10  ;;  %11611 = vst [vmem:[#allocation179_spill] sm:$0xff] %v8833_v58  ;;  %11612 = vst [vmem:[#allocation116_spill] sm:$0xff] %v8836_v44  ;;  %v8839_v8 = vld [vmem:[#allocation10] sm:$0xff]  ;;  %v8843_v10 = vld [vmem:[#allocation10 + $0x10] sm:$0xff] }
 0x51d   :  { %3216 = vmatpush1.msra.mxu0 %v8827_v47  ;;  %3287 = vmatpush1.msra.mxu1 %v8830_v60  ;;  %11613 = vst [vmem:[#allocation117_spill] sm:$0xff] %v8839_v8  ;;  %11614 = vst [vmem:[#allocation118_spill] sm:$0xff] %v8843_v10  ;;  %v8847_v60 = vld [vmem:[#allocation8 + $0x1e8] sm:$0xff] }
 0x51e   :  { %3217 = vmatprep.subr.mxu0 %v8833_v58  ;;  %3288 = vmatprep.subr.mxu1 %v8836_v44  ;;  %11615 = vst [vmem:[#allocation119_spill] sm:$0xff] %v8847_v60  ;;  %v8850_v58 = vld [vmem:[#allocation8 + $0x1f8] sm:$0xff] }
 0x51f   :  { %3218 = vmatpush1.msra.mxu0 %v8839_v8  ;;  %3251 = vmatprep.mubr.f32.mxu0 %v11037_v20  ;;  %11616 = vst [vmem:[#allocation120_spill] sm:$0xff] %v8850_v58 }
 0x520   :  { %3289 = vmatpush1.msra.mxu1 %v8843_v10  ;;  %3322 = vmatprep.mubr.f32.mxu1 %v11037_v20 }
 0x521   :  { %3329 = vmatprep.subr.mxu0 %v8847_v60  ;;  %3400 = vmatprep.subr.mxu1 %v8850_v58 }
 0x569   :  { %v2622_v44 = vpop.f32.mrf.mxu0  ;;  %v2693_v47 = vpop.f32.mrf.mxu1 }
 0x56b   :  { %v2624_v54 = vpop.f32.mrf.mxu0  ;;  %v2695_v52 = vpop.f32.mrf.mxu1 }
 0x594   :  { %v2764_v8 = vpop.f32.mrf.mxu0  ;;  %v2835_v10 = vpop.f32.mrf.mxu1 }
 0x595   :  { %v2765_v27 = vadd.f32 %v2764_v8, %v2622_v44  ;;  %v2836_v39 = vadd.f32 %v2835_v10, %v2693_v47 }
 0x596   :  { %v2766_v57 = vpop.f32.mrf.mxu0  ;;  %v2837_v41 = vpop.f32.mrf.mxu1 }
 0x597   :  { %v2840_v43 = vadd.f32 %v2765_v27, %v7412_v53  ;;  %v2767_v13 = vadd.f32 %v2766_v57, %v2624_v54  ;;  %v2838_v40 = vadd.f32 %v2837_v41, %v2695_v52  ;;  %v2842_v8 = vadd.f32 %v2836_v39, %v7427_v12 }
 0x599   :  { %v5442_v4 = vmul.f32 -1.442695, %v2840_v43  ;;  %v2841_v42 = vadd.f32 %v2767_v13, %v7416_v46  ;;  %v2843_v58 = vadd.f32 %v2838_v40, %v7422_v9 }
 0x59b   :  { %5600 = vpow2.f32 %v5442_v4  ;;  %v5443_v60 = vmul.f32 -1.442695, %v2841_v42  ;;  %v5444_v38 = vmul.f32 -1.442695, %v2843_v58 }
 0x59d   :  { %5602 = vpow2.f32 %v5443_v60 }
 0x59e   :  { %5604 = vpow2.f32 %v5444_v38 }
 0x5a8   :  { %v5601_v36 = vpop.eup %5600 }
 0x5a9   :  { %v2847_v44 = vadd.f32 1.0, %v5601_v36 }
 0x5aa   :  { %v5603_v35 = vpop.eup %5602 }
 0x5ab   :  { %5606 = vrcp.f32 %v2847_v44  ;;  %v2853_v57 = vadd.f32 1.0, %v5603_v35  ;;  %v5605_v13 = vpop.eup %5604 }
 0x5ac   :  { %5608 = vtanh.f32 %v2842_v8  ;;  %v2860_v41 = vadd.f32 1.0, %v5605_v13 }
 0x5ad   :  { %5610 = vrcp.f32 %v2853_v57 }
 0x5ae   :  { %5612 = vrcp.f32 %v2860_v41 }
 0x5b5   :  { %v2938_v43 = vpop.f32.mrf.mxu0  ;;  %v3009_v54 = vpop.f32.mrf.mxu1 }
 0x5b7   :  { %v2940_v58 = vpop.f32.mrf.mxu0  ;;  %v3011_v35 = vpop.f32.mrf.mxu1 }
 0x5b8   :  { %v5607_v4 = vpop.eup %5606 }
 0x5b9   :  { %v5609_v42 = vpop.eup %5608 }
 0x5ba   :  { %v5611_v27 = vpop.eup %5610  ;;  %v2864_v52 = vmul.f32 %v5609_v42, %v5607_v4 }
 0x5bb   :  { %v2863_v40 = vmul.f32 %v5611_v27, %v8326_v23  ;;  %v5613_v42 = vpop.eup %5612 }
 0x5bd   :  { %v8858_v47 = vadd.f32 %v2864_v52, %v2863_v40 }
 0x5bf   :  { %v3083_v36 = vpop.f32.mrf.mxu0  ;;  %5614 = vtanh.f32 %v8858_v47  ;;  %v3154_v60 = vpop.f32.mrf.mxu1 }
 0x5c0   :  { %v3084_v38 = vadd.f32 %v3083_v36, %v2938_v43  ;;  %v3155_v40 = vadd.f32 %v3154_v60, %v3009_v54  ;;  %v8864_v43 = vld [vmem:[#allocation8 + $0x1e0] sm:$0xff] }
 0x5c1   :  { %v3085_v39 = vpop.f32.mrf.mxu0  ;;  %v3156_v13 = vpop.f32.mrf.mxu1  ;;  %v8876_v54 = vld [vmem:[#allocation8 + $0x1c0] sm:$0xff] }
 0x5c2   :  { %v3159_v10 = vadd.f32 %v3084_v38, %v7226_v59  ;;  %v3086_v8 = vadd.f32 %v3085_v39, %v2940_v58  ;;  %v3157_v4 = vadd.f32 %v3156_v13, %v3011_v35  ;;  %v8867_v58 = vld [vmem:[#allocation8 + $0x1f0] sm:$0xff]  ;;  %v8870_v38 = vld [vmem:[#allocation8 + $0x1c8] sm:$0xff]  ;;  %v8873_v35 = vld [vmem:[#allocation8 + $0x1d8] sm:$0xff]  ;;  %v3161_v60 = vadd.f32 %v3155_v40, %v7243_v55 }
 0x5c3   :  { %v8879_v39 = vld [vmem:[#allocation8 + $0x1d0] sm:$0xff] }
 0x5c4   :  { %v5447_v44 = vmul.f32 -1.442695, %v3159_v10  ;;  %v3160_v57 = vadd.f32 %v3086_v8, %v11124_v37  ;;  %v3162_v41 = vadd.f32 %v3157_v4, %v11125_v45  ;;  %v8883_v8 = vld [vmem:[#allocation8 + $0x1a8] sm:$0xff]  ;;  %v8892_v13 = vld [vmem:[#allocation8 + $0x1b0] sm:$0xff] }
 0x5c5   :  { %11618 = vst [vmem:[#allocation122_spill] sm:$0xff] %v8892_v13  ;;  %v8904_v40 = vld [vmem:[#allocation8 + $0x190] sm:$0xff] }
 0x5c6   :  { %5616 = vpow2.f32 %v5447_v44  ;;  %v5448_v23 = vmul.f32 -1.442695, %v3160_v57  ;;  %v5449_v36 = vmul.f32 -1.442695, %v3162_v41  ;;  %v8886_v44 = vld [vmem:[#allocation8 + $0x1b8] sm:$0xff]  ;;  %11622 = vst [vmem:[#allocation126_spill] sm:$0xff] %v8904_v40 }
 0x5c8   :  { %5618 = vpow2.f32 %v5448_v23  ;;  %v8889_v23 = vld [vmem:[#allocation8 + $0x1a0] sm:$0xff] }
 0x5c9   :  { %11617 = vst [vmem:[#allocation121_spill] sm:$0xff] %v8889_v23  ;;  %5620 = vpow2.f32 %v5449_v36  ;;  %v8907_v36 = vld [vmem:[#allocation8 + $0x168] sm:$0xff] }
 0x5ca   :  { %11623 = vst [vmem:[#allocation127_spill] sm:$0xff] %v8907_v36 }
 0x5cc   :  { %v5615_v27 = vpop.eup %5614 }
 0x5cd   :  { %v2867_v52 = vmul.f32 %v5615_v27, %v5613_v42  ;;  %v8895_v42 = vld [vmem:[#allocation8 + $0x188] sm:$0xff]  ;;  %v8898_v27 = vld [vmem:[#allocation8 + $0x198] sm:$0xff] }
 0x5ce   :  { %11619 = vst [vmem:[#allocation123_spill] sm:$0xff] %v8895_v42  ;;  %11620 = vst [vmem:[#allocation124_spill] sm:$0xff] %v8898_v27 }
 0x5cf   :  { %2869 = vst [vmem:[#allocation11 + $0x18] sm:$0xff] %v2867_v52  ;;  %3252 = vmatmul.mubr.f32.vlgmr.msra.gmra.mxu0 %v2867_v52  ;;  %3323 = vmatmul.mubr.f32.vlgmr.msra.gmra.mxu1 %v2867_v52  ;;  %v8901_v52 = vld [vmem:[#allocation8 + $0x180] sm:$0xff] }
 0x5d0   :  { %3330 = vmatpush1.msra.mxu0 %v8864_v43  ;;  %3401 = vmatpush1.msra.mxu1 %v8867_v58  ;;  %11621 = vst [vmem:[#allocation125_spill] sm:$0xff] %v8901_v52 }
 0x5d1   :  { %3331 = vmatprep.subr.mxu0 %v8870_v38  ;;  %3402 = vmatprep.subr.mxu1 %v8873_v35 }
 0x5d2   :  { %3332 = vmatpush1.msra.mxu0 %v8876_v54  ;;  %3403 = vmatpush1.msra.mxu1 %v8879_v39 }
 0x5d3   :  { %v5617_v10 = vpop.eup %5616  ;;  %3333 = vmatprep.subr.mxu0 %v8883_v8  ;;  %3404 = vmatprep.subr.mxu1 %v8886_v44 }
 0x5d4   :  { %v3166_v57 = vadd.f32 1.0, %v5617_v10  ;;  %3334 = vmatpush1.msra.mxu0 %v8889_v23  ;;  %3405 = vmatpush1.msra.mxu1 %v8892_v13  ;;  %v8910_v10 = vld [vmem:[#allocation8 + $0x178] sm:$0xff]  ;;  %v8998_v23 = vld [vmem:[#allocation8 + $0x80] sm:$0xff] }
 0x5d5   :  { %v5619_v4 = vpop.eup %5618  ;;  %3335 = vmatprep.subr.mxu0 %v8895_v42  ;;  %3406 = vmatprep.subr.mxu1 %v8898_v27  ;;  %11624 = vst [vmem:[#allocation128_spill] sm:$0xff] %v8910_v10  ;;  %v8988_v27 = vld [vmem:[#allocation8 + $0xb0] sm:$0xff]  ;;  %v8991_v42 = vld [vmem:[#allocation8 + $0x88] sm:$0xff] }
 0x5d6   :  { %5622 = vrcp.f32 %v3166_v57  ;;  %v3172_v41 = vadd.f32 1.0, %v5619_v4  ;;  %3336 = vmatpush1.msra.mxu0 %v8901_v52  ;;  %3407 = vmatpush1.msra.mxu1 %v8904_v40  ;;  %v8913_v57 = vld [vmem:[#allocation8 + $0x160] sm:$0xff]  ;;  %v8916_v4 = vld [vmem:[#allocation8 + $0x170] sm:$0xff]  ;;  %v8919_v52 = vld [vmem:[#allocation8 + $0x148] sm:$0xff]  ;;  %11650 = vst [vmem:[#allocation154_spill] sm:$0xff] %v8991_v42 }
 0x5d7   :  { %5624 = vtanh.f32 %v3161_v60  ;;  %3337 = vmatprep.subr.mxu0 %v8907_v36  ;;  %3408 = vmatprep.subr.mxu1 %v8910_v10  ;;  %11625 = vst [vmem:[#allocation129_spill] sm:$0xff] %v8913_v57  ;;  %11626 = vst [vmem:[#allocation130_spill] sm:$0xff] %v8916_v4  ;;  %v8922_v60 = vld [vmem:[#allocation8 + $0x158] sm:$0xff]  ;;  %v8925_v36 = vld [vmem:[#allocation8 + $0x140] sm:$0xff] }
 0x5d8   :  { %5626 = vrcp.f32 %v3172_v41  ;;  %3338 = vmatpush1.msra.mxu0 %v8913_v57  ;;  %3409 = vmatpush1.msra.mxu1 %v8916_v4  ;;  %11627 = vst [vmem:[#allocation131_spill] sm:$0xff] %v8919_v52  ;;  %11628 = vst [vmem:[#allocation132_spill] sm:$0xff] %v8922_v60  ;;  %v8928_v41 = vld [vmem:[#allocation8 + $0x150] sm:$0xff]  ;;  %v8931_v57 = vld [vmem:[#allocation8 + $0x128] sm:$0xff] }
 0x5d9   :  { %3339 = vmatprep.subr.mxu0 %v8919_v52  ;;  %3410 = vmatprep.subr.mxu1 %v8922_v60  ;;  %11629 = vst [vmem:[#allocation133_spill] sm:$0xff] %v8925_v36  ;;  %11630 = vst [vmem:[#allocation134_spill] sm:$0xff] %v8928_v41  ;;  %v8934_v4 = vld [vmem:[#allocation8 + $0x138] sm:$0xff]  ;;  %v8937_v52 = vld [vmem:[#allocation8 + $0x120] sm:$0xff] }
 0x5da   :  { %3340 = vmatpush1.msra.mxu0 %v8925_v36  ;;  %3411 = vmatpush1.msra.mxu1 %v8928_v41  ;;  %11631 = vst [vmem:[#allocation135_spill] sm:$0xff] %v8931_v57  ;;  %11632 = vst [vmem:[#allocation136_spill] sm:$0xff] %v8934_v4  ;;  %v8940_v60 = vld [vmem:[#allocation8 + $0x130] sm:$0xff]  ;;  %v8943_v36 = vld [vmem:[#allocation8 + $0x108] sm:$0xff] }
 0x5db   :  { %3341 = vmatprep.subr.mxu0 %v8931_v57  ;;  %3412 = vmatprep.subr.mxu1 %v8934_v4  ;;  %11633 = vst [vmem:[#allocation137_spill] sm:$0xff] %v8937_v52  ;;  %11634 = vst [vmem:[#allocation138_spill] sm:$0xff] %v8940_v60  ;;  %v8946_v41 = vld [vmem:[#allocation8 + $0x118] sm:$0xff]  ;;  %v8949_v57 = vld [vmem:[#allocation8 + $0x100] sm:$0xff] }
 0x5dc   :  { %3342 = vmatpush1.msra.mxu0 %v8937_v52  ;;  %3413 = vmatpush1.msra.mxu1 %v8940_v60  ;;  %11635 = vst [vmem:[#allocation139_spill] sm:$0xff] %v8943_v36  ;;  %11636 = vst [vmem:[#allocation140_spill] sm:$0xff] %v8946_v41  ;;  %v8952_v4 = vld [vmem:[#allocation8 + $0x110] sm:$0xff]  ;;  %v8955_v52 = vld [vmem:[#allocation8 + $0xe8] sm:$0xff] }
 0x5dd   :  { %3343 = vmatprep.subr.mxu0 %v8943_v36  ;;  %3414 = vmatprep.subr.mxu1 %v8946_v41  ;;  %11637 = vst [vmem:[#allocation141_spill] sm:$0xff] %v8949_v57  ;;  %11638 = vst [vmem:[#allocation142_spill] sm:$0xff] %v8952_v4  ;;  %v8958_v60 = vld [vmem:[#allocation8 + $0xf8] sm:$0xff]  ;;  %v8961_v36 = vld [vmem:[#allocation8 + $0xe0] sm:$0xff] }
 0x5de   :  { %3344 = vmatpush1.msra.mxu0 %v8949_v57  ;;  %3415 = vmatpush1.msra.mxu1 %v8952_v4  ;;  %11639 = vst [vmem:[#allocation143_spill] sm:$0xff] %v8955_v52  ;;  %11640 = vst [vmem:[#allocation144_spill] sm:$0xff] %v8958_v60  ;;  %v8964_v41 = vld [vmem:[#allocation8 + $0xf0] sm:$0xff]  ;;  %v8967_v57 = vld [vmem:[#allocation8 + $0xc8] sm:$0xff] }
 0x5df   :  { %3345 = vmatprep.subr.mxu0 %v8955_v52  ;;  %3416 = vmatprep.subr.mxu1 %v8958_v60  ;;  %11641 = vst [vmem:[#allocation145_spill] sm:$0xff] %v8961_v36  ;;  %11642 = vst [vmem:[#allocation146_spill] sm:$0xff] %v8964_v41  ;;  %v8970_v4 = vld [vmem:[#allocation8 + $0xd8] sm:$0xff]  ;;  %v5621_v52 = vpop.eup %5620  ;;  %v8973_v10 = vld [vmem:[#allocation8 + $0xc0] sm:$0xff] }
 0x5e0   :  { %3346 = vmatpush1.msra.mxu0 %v8961_v36  ;;  %3417 = vmatpush1.msra.mxu1 %v8964_v41  ;;  %11643 = vst [vmem:[#allocation147_spill] sm:$0xff] %v8967_v57  ;;  %11644 = vst [vmem:[#allocation148_spill] sm:$0xff] %v8970_v4  ;;  %v8976_v60 = vld [vmem:[#allocation8 + $0xd0] sm:$0xff]  ;;  %v8979_v40 = vld [vmem:[#allocation8 + $0xa8] sm:$0xff] }
 0x5e1   :  { %3347 = vmatprep.subr.mxu0 %v8967_v57  ;;  %3418 = vmatprep.subr.mxu1 %v8970_v4  ;;  %11645 = vst [vmem:[#allocation149_spill] sm:$0xff] %v8973_v10  ;;  %11646 = vst [vmem:[#allocation150_spill] sm:$0xff] %v8976_v60  ;;  %v8982_v41 = vld [vmem:[#allocation8 + $0xb8] sm:$0xff]  ;;  %v8985_v4 = vld [vmem:[#allocation8 + $0xa0] sm:$0xff] }
 0x5e2   :  { %3348 = vmatpush1.msra.mxu0 %v8973_v10  ;;  %3419 = vmatpush1.msra.mxu1 %v8976_v60  ;;  %11647 = vst [vmem:[#allocation151_spill] sm:$0xff] %v8979_v40  ;;  %11648 = vst [vmem:[#allocation152_spill] sm:$0xff] %v8982_v41  ;;  %v3179_v60 = vadd.f32 1.0, %v5621_v52  ;;  %v9004_v52 = vld [vmem:[#allocation8 + $0x68] sm:$0xff] }
 0x5e3   :  { %v5623_v36 = vpop.eup %5622  ;;  %3349 = vmatprep.subr.mxu0 %v8979_v40  ;;  %3420 = vmatprep.subr.mxu1 %v8982_v41  ;;  %11649 = vst [vmem:[#allocation153_spill] sm:$0xff] %v8985_v4  ;;  %v8994_v40 = vld [vmem:[#allocation8 + $0x98] sm:$0xff] }
 0x5e4   :  { %v5625_v57 = vpop.eup %5624  ;;  %3350 = vmatpush1.msra.mxu0 %v8985_v4  ;;  %3421 = vmatpush1.msra.mxu1 %v8988_v27  ;;  %11651 = vst [vmem:[#allocation155_spill] sm:$0xff] %v8994_v40  ;;  %v9001_v4 = vld [vmem:[#allocation8 + $0x90] sm:$0xff]  ;;  %5628 = vrcp.f32 %v3179_v60  ;;  %v9034_v60 = vld [vmem:[#allocation8 + $0x38] sm:$0xff] }
 0x5e5   :  { %v5627_v10 = vpop.eup %5626  ;;  %3351 = vmatprep.subr.mxu0 %v8991_v42  ;;  %3422 = vmatprep.subr.mxu1 %v8994_v40  ;;  %v3183_v41 = vmul.f32 %v5625_v57, %v5623_v36  ;;  %v9007_v42 = vld [vmem:[#allocation8 + $0x78] sm:$0xff]  ;;  %v9010_v40 = vld [vmem:[#allocation8 + $0x60] sm:$0xff]  ;;  %11658 = vst [vmem:[#allocation162_spill] sm:$0xff] %v9034_v60 }
 0x5e6   :  { %v3182_v13 = vmul.f32 %v5627_v10, %v8384_v6  ;;  %3352 = vmatpush1.msra.mxu0 %v8998_v23  ;;  %3423 = vmatpush1.msra.mxu1 %v9001_v4  ;;  %11652 = vst [vmem:[#allocation156_spill] sm:$0xff] %v9007_v42  ;;  %11653 = vst [vmem:[#allocation157_spill] sm:$0xff] %v9010_v40  ;;  %v9013_v6 = vld [vmem:[#allocation8 + $0x70] sm:$0xff]  ;;  %v9018_v10 = vld [vmem:[#allocation8 + $0x48] sm:$0xff] }
 0x5e7   :  { %3353 = vmatprep.subr.mxu0 %v9004_v52  ;;  %3424 = vmatprep.subr.mxu1 %v9007_v42  ;;  %v9021_v57 = vld [vmem:[#allocation8 + $0x58] sm:$0xff]  ;;  %v9024_v42 = vld [vmem:[#allocation8 + $0x40] sm:$0xff] }
 0x5e8   :  { %3354 = vmatpush1.msra.mxu0 %v9010_v40  ;;  %3425 = vmatpush1.msra.mxu1 %v9013_v6  ;;  %v9016_v36 = vadd.f32 %v3183_v41, %v3182_v13  ;;  %11654 = vst [vmem:[#allocation158_spill] sm:$0xff] %v9021_v57  ;;  %11655 = vst [vmem:[#allocation159_spill] sm:$0xff] %v9024_v42  ;;  %v9027_v40 = vld [vmem:[#allocation8 + $0x50] sm:$0xff]  ;;  %v9031_v13 = vld [vmem:[#allocation8 + $0x28] sm:$0xff] }
 0x5e9   :  { %3355 = vmatprep.subr.mxu0 %v9018_v10  ;;  %3426 = vmatprep.subr.mxu1 %v9021_v57  ;;  %11656 = vst [vmem:[#allocation160_spill] sm:$0xff] %v9027_v40  ;;  %11657 = vst [vmem:[#allocation161_spill] sm:$0xff] %v9031_v13  ;;  %v9037_v41 = vld [vmem:[#allocation8 + $0x20] sm:$0xff]  ;;  %v9040_v57 = vld [vmem:[#allocation8 + $0x30] sm:$0xff] }
 0x5ea   :  { %3356 = vmatpush1.msra.mxu0 %v9024_v42  ;;  %3427 = vmatpush1.msra.mxu1 %v9027_v40  ;;  %5630 = vtanh.f32 %v9016_v36  ;;  %11659 = vst [vmem:[#allocation163_spill] sm:$0xff] %v9037_v41  ;;  %11660 = vst [vmem:[#allocation164_spill] sm:$0xff] %v9040_v57  ;;  %v9043_v42 = vld [vmem:[#allocation8 + $0x8] sm:$0xff]  ;;  %v9046_v40 = vld [vmem:[#allocation8 + $0x18] sm:$0xff] }
 0x5eb   :  { %3357 = vmatprep.subr.mxu0 %v9031_v13  ;;  %3428 = vmatprep.subr.mxu1 %v9034_v60  ;;  %11661 = vst [vmem:[#allocation165_spill] sm:$0xff] %v9043_v42  ;;  %v9049_v13 = vld [vmem:[#allocation8] sm:$0xff]  ;;  %v9052_v60 = vld [vmem:[#allocation8 + $0x10] sm:$0xff] }
 0x5ec   :  { %3358 = vmatpush1.msra.mxu0 %v9037_v41  ;;  %3429 = vmatpush1.msra.mxu1 %v9040_v57 }
 0x5ed   :  { %3359 = vmatprep.subr.mxu0 %v9043_v42  ;;  %3430 = vmatprep.subr.mxu1 %v9046_v40 }
 0x5ee   :  { %3360 = vmatpush1.msra.mxu0 %v9049_v13  ;;  %3431 = vmatpush1.msra.mxu1 %v9052_v60 }
 0x5ef   :  { %3393 = vmatprep.mubr.f32.mxu0 %v11037_v20  ;;  %3464 = vmatprep.mubr.f32.mxu1 %v11037_v20 }
 0x5f0   :  { %3503 = vmatprep.subr.mxu0 %v8401_v19  ;;  %3574 = vmatprep.subr.mxu1 %v8404_v11  ;;  %v11662_v19 = vld [vmem:[#allocation172_spill] sm:$0xff]  ;;  %v11663_v11 = vld [vmem:[#allocation173_spill] sm:$0xff] }
 0x5f1   :  { %v5629_v42 = vpop.eup %5628 }
 0x5f7   :  { %v5631_v57 = vpop.eup %5630 }
 0x5f8   :  { %v9059_v41 = vmul.f32 %v5631_v57, %v5629_v42  ;;  %v11695_v42 = vld [vmem:[#allocation46_spill] sm:$0xff]  ;;  %v11696_v57 = vld [vmem:[#allocation39_spill] sm:$0xff] }
 0x5fa   :  { %3394 = vmatmul.mubr.f32.vlgmr.msra.gmra.mxu0 %v9059_v41  ;;  %3465 = vmatmul.mubr.f32.vlgmr.msra.gmra.mxu1 %v9059_v41 }
 0x5fb   :  { %3504 = vmatpush1.msra.mxu0 %v8411_v7  ;;  %3575 = vmatpush1.msra.mxu1 %v8414_v3  ;;  %v11664_v7 = vld [vmem:[#allocation174_spill] sm:$0xff]  ;;  %v11665_v3 = vld [vmem:[#allocation175_spill] sm:$0xff] }
 0x5fc   :  { %3505 = vmatprep.subr.mxu0 %v8417_v17  ;;  %3576 = vmatprep.subr.mxu1 %v8420_v14  ;;  %v11666_v17 = vld [vmem:[#allocation176_spill] sm:$0xff]  ;;  %v11667_v14 = vld [vmem:[#allocation177_spill] sm:$0xff] }
 0x5fd   :  { %3506 = vmatpush1.msra.mxu0 %v8423_v49  ;;  %3577 = vmatpush1.msra.mxu1 %v8426_v51  ;;  %v11668_v49 = vld [vmem:[#allocation16_spill] sm:$0xff] }
 0x5fe   :  { %3507 = vmatprep.subr.mxu0 %v8429_v62  ;;  %3578 = vmatprep.subr.mxu1 %v8432_v1  ;;  %v11669_v51 = vld [vmem:[#allocation20_spill] sm:$0xff]  ;;  %v11670_v62 = vld [vmem:[#allocation17_spill] sm:$0xff]  ;;  %v11671_v1 = vld [vmem:[#allocation22_spill] sm:$0xff] }
 0x5ff   :  { %3508 = vmatpush1.msra.mxu0 %v8435_v56  ;;  %3579 = vmatpush1.msra.mxu1 %v8438_v48  ;;  %v11672_v56 = vld [vmem:[#allocation18_spill] sm:$0xff]  ;;  %v11673_v48 = vld [vmem:[#allocation24_spill] sm:$0xff] }
 0x600   :  { %3509 = vmatprep.subr.mxu0 %v8441_v50  ;;  %3580 = vmatprep.subr.mxu1 %v8444_v2  ;;  %v11674_v50 = vld [vmem:[#allocation19_spill] sm:$0xff]  ;;  %v11675_v2 = vld [vmem:[#allocation26_spill] sm:$0xff] }
 0x601   :  { %3510 = vmatpush1.msra.mxu0 %v8447_v5  ;;  %3581 = vmatpush1.msra.mxu1 %v8450_v15  ;;  %v11676_v5 = vld [vmem:[#allocation21_spill] sm:$0xff]  ;;  %v11677_v15 = vld [vmem:[#allocation28_spill] sm:$0xff] }
 0x602   :  { %3511 = vmatprep.subr.mxu0 %v8453_v16  ;;  %3582 = vmatprep.subr.mxu1 %v8456_v21  ;;  %v11678_v16 = vld [vmem:[#allocation23_spill] sm:$0xff]  ;;  %v11679_v21 = vld [vmem:[#allocation30_spill] sm:$0xff] }
 0x603   :  { %3512 = vmatpush1.msra.mxu0 %v8459_v22  ;;  %3583 = vmatpush1.msra.mxu1 %v8462_v24  ;;  %v11680_v22 = vld [vmem:[#allocation25_spill] sm:$0xff] }
 0x604   :  { %3513 = vmatprep.subr.mxu0 %v8465_v63  ;;  %3584 = vmatprep.subr.mxu1 %v8468_v25  ;;  %v11681_v24 = vld [vmem:[#allocation33_spill] sm:$0xff]  ;;  %v11682_v63 = vld [vmem:[#allocation27_spill] sm:$0xff] }
 0x605   :  { %3514 = vmatpush1.msra.mxu0 %v8471_v0  ;;  %3585 = vmatpush1.msra.mxu1 %v8474_v61  ;;  %v11683_v25 = vld [vmem:[#allocation35_spill] sm:$0xff]  ;;  %v11684_v0 = vld [vmem:[#allocation29_spill] sm:$0xff]  ;;  %v11685_v61 = vld [vmem:[#allocation38_spill] sm:$0xff] }
 0x606   :  { %3515 = vmatprep.subr.mxu0 %v8477_v26  ;;  %3586 = vmatprep.subr.mxu1 %v8480_v28  ;;  %v11686_v26 = vld [vmem:[#allocation31_spill] sm:$0xff]  ;;  %v11687_v28 = vld [vmem:[#allocation40_spill] sm:$0xff] }
 0x607   :  { %3516 = vmatpush1.msra.mxu0 %v8483_v29  ;;  %3587 = vmatpush1.msra.mxu1 %v8486_v30  ;;  %v11688_v29 = vld [vmem:[#allocation32_spill] sm:$0xff]  ;;  %v11689_v30 = vld [vmem:[#allocation43_spill] sm:$0xff] }
 0x608   :  { %3517 = vmatprep.subr.mxu0 %v8489_v18  ;;  %3588 = vmatprep.subr.mxu1 %v8492_v31  ;;  %v11690_v18 = vld [vmem:[#allocation34_spill] sm:$0xff]  ;;  %v11691_v31 = vld [vmem:[#allocation44_spill] sm:$0xff] }
 0x609   :  { %3518 = vmatpush1.msra.mxu0 %v8495_v32  ;;  %3589 = vmatpush1.msra.mxu1 %v8498_v33  ;;  %v11692_v32 = vld [vmem:[#allocation36_spill] sm:$0xff]  ;;  %v11693_v33 = vld [vmem:[#allocation45_spill] sm:$0xff] }
 0x60a   :  { %3519 = vmatprep.subr.mxu0 %v8501_v34  ;;  %3590 = vmatprep.subr.mxu1 %v11662_v19  ;;  %v11694_v34 = vld [vmem:[#allocation37_spill] sm:$0xff]  ;;  %v11697_v19 = vld [vmem:[#allocation47_spill] sm:$0xff] }
 0x60b   :  { %3520 = vmatpush1.msra.mxu0 %v11663_v11  ;;  %3591 = vmatpush1.msra.mxu1 %v11664_v7  ;;  %v11698_v11 = vld [vmem:[#allocation41_spill] sm:$0xff]  ;;  %v11699_v7 = vld [vmem:[#allocation48_spill] sm:$0xff] }
 0x60c   :  { %3521 = vmatprep.subr.mxu0 %v11665_v3  ;;  %3592 = vmatprep.subr.mxu1 %v11666_v17  ;;  %v11700_v3 = vld [vmem:[#allocation42_spill] sm:$0xff]  ;;  %v11701_v17 = vld [vmem:[#allocation49_spill] sm:$0xff] }
 0x60d   :  { %3522 = vmatpush1.msra.mxu0 %v11667_v14  ;;  %3593 = vmatpush1.msra.mxu1 %v11668_v49  ;;  %v11702_v14 = vld [vmem:[#allocation50_spill] sm:$0xff]  ;;  %v11704_v49 = vld [vmem:[#allocation51_spill] sm:$0xff] }
 0x60e   :  { %3523 = vmatprep.subr.mxu0 %v11669_v51  ;;  %3594 = vmatprep.subr.mxu1 %v11670_v62  ;;  %v11705_v51 = vld [vmem:[#allocation54_spill] sm:$0xff]  ;;  %v11706_v62 = vld [vmem:[#allocation53_spill] sm:$0xff] }
 0x60f   :  { %3524 = vmatpush1.msra.mxu0 %v11671_v1  ;;  %3595 = vmatpush1.msra.mxu1 %v11672_v56  ;;  %v3502_v1 = vld [vmem:[#allocation2 + $0x28] sm:$0xff]  ;;  %v11707_v56 = vld [vmem:[#allocation56_spill] sm:$0xff] }
 0x610   :  { %3525 = vmatprep.subr.mxu0 %v11673_v48  ;;  %3596 = vmatprep.subr.mxu1 %v11674_v50  ;;  %v11708_v48 = vld [vmem:[#allocation55_spill] sm:$0xff]  ;;  %v11709_v50 = vld [vmem:[#allocation58_spill] sm:$0xff] }
 0x611   :  { %3526 = vmatpush1.msra.mxu0 %v11675_v2  ;;  %3597 = vmatpush1.msra.mxu1 %v11676_v5  ;;  %v11710_v2 = vld [vmem:[#allocation57_spill] sm:$0xff]  ;;  %v11711_v5 = vld [vmem:[#allocation60_spill] sm:$0xff] }
 0x612   :  { %3527 = vmatprep.subr.mxu0 %v11677_v15  ;;  %3598 = vmatprep.subr.mxu1 %v11678_v16  ;;  %v11712_v15 = vld [vmem:[#allocation59_spill] sm:$0xff]  ;;  %v11713_v16 = vld [vmem:[#allocation62_spill] sm:$0xff] }
 0x613   :  { %3528 = vmatpush1.msra.mxu0 %v11679_v21  ;;  %3599 = vmatpush1.msra.mxu1 %v11680_v22  ;;  %v11714_v21 = vld [vmem:[#allocation61_spill] sm:$0xff]  ;;  %v11715_v22 = vld [vmem:[#allocation64_spill] sm:$0xff] }
 0x614   :  { %3529 = vmatprep.subr.mxu0 %v11681_v24  ;;  %3600 = vmatprep.subr.mxu1 %v11682_v63  ;;  %v11716_v24 = vld [vmem:[#allocation63_spill] sm:$0xff]  ;;  %v11717_v63 = vld [vmem:[#allocation66_spill] sm:$0xff] }
 0x615   :  { %3530 = vmatpush1.msra.mxu0 %v11683_v25  ;;  %3601 = vmatpush1.msra.mxu1 %v11684_v0  ;;  %v11718_v25 = vld [vmem:[#allocation65_spill] sm:$0xff]  ;;  %v11719_v0 = vld [vmem:[#allocation68_spill] sm:$0xff] }
 0x616   :  { %3531 = vmatprep.subr.mxu0 %v11685_v61  ;;  %3602 = vmatprep.subr.mxu1 %v11686_v26  ;;  %v11720_v61 = vld [vmem:[#allocation67_spill] sm:$0xff]  ;;  %v11721_v26 = vld [vmem:[#allocation70_spill] sm:$0xff] }
 0x617   :  { %3532 = vmatpush1.msra.mxu0 %v11687_v28  ;;  %3603 = vmatpush1.msra.mxu1 %v11688_v29  ;;  %v11722_v28 = vld [vmem:[#allocation69_spill] sm:$0xff]  ;;  %v11723_v29 = vld [vmem:[#allocation72_spill] sm:$0xff] }
 0x618   :  { %3533 = vmatprep.subr.mxu0 %v11689_v30  ;;  %3604 = vmatprep.subr.mxu1 %v11690_v18  ;;  %v11724_v30 = vld [vmem:[#allocation71_spill] sm:$0xff]  ;;  %v11725_v18 = vld [vmem:[#allocation74_spill] sm:$0xff] }
 0x619   :  { %3534 = vmatpush1.msra.mxu0 %v11691_v31  ;;  %3567 = vmatprep.mubr.f32.mxu0 %v11037_v20  ;;  %v11726_v31 = vld [vmem:[#allocation73_spill] sm:$0xff] }
 0x61a   :  { %3605 = vmatpush1.msra.mxu1 %v11692_v32  ;;  %3638 = vmatprep.mubr.f32.mxu1 %v11037_v20  ;;  %v11727_v32 = vld [vmem:[#allocation76_spill] sm:$0xff] }
 0x61b   :  { %3568 = vmatmul.mubr.f32.vlgmr.msra.gmra.mxu0 %v9059_v41  ;;  %3639 = vmatmul.mubr.f32.vlgmr.msra.gmra.mxu1 %v9059_v41  ;;  %v11703_v41 = vld [vmem:[#allocation52_spill] sm:$0xff] }
 0x61c   :  { %3672 = vmatprep.subr.mxu0 %v11693_v33  ;;  %3743 = vmatprep.subr.mxu1 %v11694_v34  ;;  %v11728_v33 = vld [vmem:[#allocation75_spill] sm:$0xff]  ;;  %v11729_v34 = vld [vmem:[#allocation78_spill] sm:$0xff] }
 0x61d   :  { %3673 = vmatpush1.msra.mxu0 %v11695_v42  ;;  %3744 = vmatpush1.msra.mxu1 %v11696_v57  ;;  %v11730_v42 = vld [vmem:[#allocation77_spill] sm:$0xff]  ;;  %v11731_v57 = vld [vmem:[#allocation80_spill] sm:$0xff] }
 0x61e   :  { %3674 = vmatprep.subr.mxu0 %v11697_v19  ;;  %3745 = vmatprep.subr.mxu1 %v11698_v11  ;;  %v11732_v19 = vld [vmem:[#allocation79_spill] sm:$0xff]  ;;  %v11733_v11 = vld [vmem:[#allocation82_spill] sm:$0xff] }
 0x61f   :  { %3675 = vmatpush1.msra.mxu0 %v11699_v7  ;;  %3746 = vmatpush1.msra.mxu1 %v11700_v3  ;;  %v11734_v7 = vld [vmem:[#allocation81_spill] sm:$0xff]  ;;  %v11735_v3 = vld [vmem:[#allocation84_spill] sm:$0xff] }
 0x620   :  { %3676 = vmatprep.subr.mxu0 %v11701_v17  ;;  %3747 = vmatprep.subr.mxu1 %v11702_v14  ;;  %v11736_v17 = vld [vmem:[#allocation83_spill] sm:$0xff]  ;;  %v11737_v14 = vld [vmem:[#allocation86_spill] sm:$0xff] }
 0x621   :  { %3677 = vmatpush1.msra.mxu0 %v11703_v41  ;;  %3748 = vmatpush1.msra.mxu1 %v11704_v49  ;;  %v11738_v41 = vld [vmem:[#allocation85_spill] sm:$0xff]  ;;  %v11739_v49 = vld [vmem:[#allocation88_spill] sm:$0xff] }
 0x622   :  { %3678 = vmatprep.subr.mxu0 %v11705_v51  ;;  %3749 = vmatprep.subr.mxu1 %v11706_v62  ;;  %v11740_v51 = vld [vmem:[#allocation87_spill] sm:$0xff]  ;;  %v11741_v62 = vld [vmem:[#allocation90_spill] sm:$0xff] }
 0x623   :  { %3679 = vmatpush1.msra.mxu0 %v11707_v56  ;;  %3712 = vmatprep.mubr.f32.mxu0 %v11037_v20  ;;  %v11743_v56 = vld [vmem:[#allocation92_spill] sm:$0xff] }
 0x624   :  { %3750 = vmatpush1.msra.mxu1 %v11708_v48  ;;  %3783 = vmatprep.mubr.f32.mxu1 %v11037_v20  ;;  %v11744_v48 = vld [vmem:[#allocation91_spill] sm:$0xff] }
 0x625   :  { %5453 = vmatmul.mubr.msk.f32.vlgmr.msra.gmra.mxu0 %vm448_vm0, %v3502_v1  ;;  %5454 = vmatmul.mubr.msk.f32.vlgmr.msra.gmra.mxu1 %vm448_vm0, %v3502_v1  ;;  %v11742_v1 = vld [vmem:[#allocation89_spill] sm:$0xff] }
 0x626   :  { %3818 = vmatprep.subr.mxu0 %v11709_v50  ;;  %3889 = vmatprep.subr.mxu1 %v11710_v2  ;;  %v11745_v50 = vld [vmem:[#allocation94_spill] sm:$0xff]  ;;  %v11746_v2 = vld [vmem:[#allocation93_spill] sm:$0xff] }
 0x627   :  { %3819 = vmatpush1.msra.mxu0 %v11711_v5  ;;  %3890 = vmatpush1.msra.mxu1 %v11712_v15  ;;  %v11747_v5 = vld [vmem:[#allocation96_spill] sm:$0xff]  ;;  %v11748_v15 = vld [vmem:[#allocation95_spill] sm:$0xff] }
 0x628   :  { %3820 = vmatprep.subr.mxu0 %v11713_v16  ;;  %3891 = vmatprep.subr.mxu1 %v11714_v21  ;;  %v11749_v16 = vld [vmem:[#allocation98_spill] sm:$0xff]  ;;  %v11750_v21 = vld [vmem:[#allocation97_spill] sm:$0xff] }
 0x629   :  { %3821 = vmatpush1.msra.mxu0 %v11715_v22  ;;  %3892 = vmatpush1.msra.mxu1 %v11716_v24  ;;  %v11751_v22 = vld [vmem:[#allocation100_spill] sm:$0xff]  ;;  %v11752_v24 = vld [vmem:[#allocation99_spill] sm:$0xff] }
 0x62a   :  { %3822 = vmatprep.subr.mxu0 %v11717_v63  ;;  %3893 = vmatprep.subr.mxu1 %v11718_v25  ;;  %v11753_v63 = vld [vmem:[#allocation102_spill] sm:$0xff]  ;;  %v11754_v25 = vld [vmem:[#allocation101_spill] sm:$0xff] }
 0x62b   :  { %3823 = vmatpush1.msra.mxu0 %v11719_v0  ;;  %3894 = vmatpush1.msra.mxu1 %v11720_v61  ;;  %v11755_v0 = vld [vmem:[#allocation104_spill] sm:$0xff]  ;;  %v11756_v61 = vld [vmem:[#allocation103_spill] sm:$0xff] }
 0x62c   :  { %3824 = vmatprep.subr.mxu0 %v11721_v26  ;;  %3895 = vmatprep.subr.mxu1 %v11722_v28  ;;  %v11757_v26 = vld [vmem:[#allocation106_spill] sm:$0xff]  ;;  %v11758_v28 = vld [vmem:[#allocation105_spill] sm:$0xff] }
 0x62d   :  { %3825 = vmatpush1.msra.mxu0 %v11723_v29  ;;  %3896 = vmatpush1.msra.mxu1 %v11724_v30  ;;  %v11759_v29 = vld [vmem:[#allocation108_spill] sm:$0xff]  ;;  %v11760_v30 = vld [vmem:[#allocation107_spill] sm:$0xff] }
 0x62e   :  { %3826 = vmatprep.subr.mxu0 %v11725_v18  ;;  %3897 = vmatprep.subr.mxu1 %v11726_v31  ;;  %v11761_v18 = vld [vmem:[#allocation110_spill] sm:$0xff]  ;;  %v11762_v31 = vld [vmem:[#allocation109_spill] sm:$0xff] }
 0x62f   :  { %3827 = vmatpush1.msra.mxu0 %v11727_v32  ;;  %3898 = vmatpush1.msra.mxu1 %v11728_v33  ;;  %v11763_v32 = vld [vmem:[#allocation112_spill] sm:$0xff]  ;;  %v11764_v33 = vld [vmem:[#allocation111_spill] sm:$0xff] }
 0x630   :  { %3828 = vmatprep.subr.mxu0 %v11729_v34  ;;  %3899 = vmatprep.subr.mxu1 %v11730_v42  ;;  %v11765_v34 = vld [vmem:[#allocation113_spill] sm:$0xff]  ;;  %v11766_v42 = vld [vmem:[#allocation114_spill] sm:$0xff] }
 0x631   :  { %3829 = vmatpush1.msra.mxu0 %v11731_v57  ;;  %3900 = vmatpush1.msra.mxu1 %v11732_v19  ;;  %v11767_v57 = vld [vmem:[#allocation115_spill] sm:$0xff]  ;;  %v11768_v19 = vld [vmem:[#allocation178_spill] sm:$0xff] }
 0x632   :  { %3830 = vmatprep.subr.mxu0 %v11733_v11  ;;  %3901 = vmatprep.subr.mxu1 %v11734_v7  ;;  %v11769_v11 = vld [vmem:[#allocation179_spill] sm:$0xff]  ;;  %v11770_v7 = vld [vmem:[#allocation116_spill] sm:$0xff] }
 0x633   :  { %3831 = vmatpush1.msra.mxu0 %v11735_v3  ;;  %3902 = vmatpush1.msra.mxu1 %v11736_v17  ;;  %v11771_v3 = vld [vmem:[#allocation117_spill] sm:$0xff]  ;;  %v11772_v17 = vld [vmem:[#allocation118_spill] sm:$0xff] }
 0x634   :  { %3832 = vmatprep.subr.mxu0 %v11737_v14  ;;  %3903 = vmatprep.subr.mxu1 %v11738_v41  ;;  %v11773_v14 = vld [vmem:[#allocation119_spill] sm:$0xff]  ;;  %v11774_v41 = vld [vmem:[#allocation120_spill] sm:$0xff] }
 0x635   :  { %3833 = vmatpush1.msra.mxu0 %v11739_v49  ;;  %3904 = vmatpush1.msra.mxu1 %v11740_v51 }
 0x636   :  { %3834 = vmatprep.subr.mxu0 %v11741_v62  ;;  %3905 = vmatprep.subr.mxu1 %v11742_v1 }
 0x637   :  { %3835 = vmatpush1.msra.mxu0 %v11743_v56  ;;  %3906 = vmatpush1.msra.mxu1 %v11744_v48 }
 0x638   :  { %3836 = vmatprep.subr.mxu0 %v11745_v50  ;;  %3907 = vmatprep.subr.mxu1 %v11746_v2 }
 0x639   :  { %3837 = vmatpush1.msra.mxu0 %v11747_v5  ;;  %3908 = vmatpush1.msra.mxu1 %v11748_v15 }
 0x63a   :  { %3838 = vmatprep.subr.mxu0 %v11749_v16  ;;  %3909 = vmatprep.subr.mxu1 %v11750_v21 }
 0x63b   :  { %3839 = vmatpush1.msra.mxu0 %v11751_v22  ;;  %3910 = vmatpush1.msra.mxu1 %v11752_v24 }
 0x63c   :  { %3840 = vmatprep.subr.mxu0 %v11753_v63  ;;  %3911 = vmatprep.subr.mxu1 %v11754_v25 }
 0x63d   :  { %3841 = vmatpush1.msra.mxu0 %v11755_v0  ;;  %3912 = vmatpush1.msra.mxu1 %v11756_v61 }
 0x63e   :  { %3842 = vmatprep.subr.mxu0 %v11757_v26  ;;  %3913 = vmatprep.subr.mxu1 %v11758_v28 }
 0x63f   :  { %3843 = vmatpush1.msra.mxu0 %v11759_v29  ;;  %3914 = vmatpush1.msra.mxu1 %v11760_v30 }
 0x640   :  { %3844 = vmatprep.subr.mxu0 %v11761_v18  ;;  %3915 = vmatprep.subr.mxu1 %v11762_v31 }
 0x641   :  { %3845 = vmatpush1.msra.mxu0 %v11763_v32  ;;  %3916 = vmatpush1.msra.mxu1 %v11764_v33 }
 0x642   :  { %3846 = vmatprep.subr.mxu0 %v11765_v34  ;;  %3917 = vmatprep.subr.mxu1 %v11766_v42 }
 0x643   :  { %3847 = vmatpush1.msra.mxu0 %v11767_v57  ;;  %3918 = vmatpush1.msra.mxu1 %v11768_v19 }
 0x644   :  { %3848 = vmatprep.subr.mxu0 %v11769_v11  ;;  %3919 = vmatprep.subr.mxu1 %v11770_v7 }
 0x645   :  { %3849 = vmatpush1.msra.mxu0 %v11771_v3  ;;  %3882 = vmatprep.mubr.f32.mxu0 %v11037_v20 }
 0x646   :  { %3920 = vmatpush1.msra.mxu1 %v11772_v17  ;;  %3953 = vmatprep.mubr.f32.mxu1 %v11037_v20 }
 0x647   :  { %3960 = vmatprep.subr.mxu0 %v11773_v14  ;;  %4031 = vmatprep.subr.mxu1 %v11774_v41 }
 0x68f   :  { %v3253_v49 = vpop.f32.mrf.mxu0  ;;  %v3324_v51 = vpop.f32.mrf.mxu1 }
 0x691   :  { %v3255_v62 = vpop.f32.mrf.mxu0  ;;  %v3326_v56 = vpop.f32.mrf.mxu1 }
 0x6ba   :  { %v3395_v1 = vpop.f32.mrf.mxu0  ;;  %v3466_v5 = vpop.f32.mrf.mxu1 }
 0x6bb   :  { %v3396_v48 = vadd.f32 %v3395_v1, %v3253_v49  ;;  %v3467_v0 = vadd.f32 %v3466_v5, %v3324_v51 }
 0x6bc   :  { %v3397_v50 = vpop.f32.mrf.mxu0  ;;  %v3468_v24 = vpop.f32.mrf.mxu1 }
 0x6bd   :  { %v3471_v2 = vadd.f32 %v3396_v48, %v7412_v53  ;;  %v3398_v15 = vadd.f32 %v3397_v50, %v3255_v62  ;;  %v3469_v63 = vadd.f32 %v3468_v24, %v3326_v56  ;;  %v3473_v28 = vadd.f32 %v3467_v0, %v7427_v12 }
 0x6bf   :  { %v5450_v16 = vmul.f32 -1.442695, %v3471_v2  ;;  %v3472_v21 = vadd.f32 %v3398_v15, %v7416_v46  ;;  %v3474_v25 = vadd.f32 %v3469_v63, %v7422_v9 }
 0x6c1   :  { %5632 = vpow2.f32 %v5450_v16  ;;  %v5451_v22 = vmul.f32 -1.442695, %v3472_v21  ;;  %v5452_v61 = vmul.f32 -1.442695, %v3474_v25 }
 0x6c3   :  { %5634 = vpow2.f32 %v5451_v22 }
 0x6c4   :  { %5636 = vpow2.f32 %v5452_v61 }
 0x6ce   :  { %v5633_v26 = vpop.eup %5632 }
 0x6cf   :  { %v3478_v29 = vadd.f32 1.0, %v5633_v26 }
 0x6d0   :  { %v5635_v30 = vpop.eup %5634 }
 0x6d1   :  { %5638 = vrcp.f32 %v3478_v29  ;;  %v3484_v18 = vadd.f32 1.0, %v5635_v30  ;;  %v5637_v31 = vpop.eup %5636  ;;  %v11783_v29 = vld [vmem:[#allocation129_spill] sm:$0xff]  ;;  %v11784_v30 = vld [vmem:[#allocation130_spill] sm:$0xff] }
 0x6d2   :  { %5640 = vtanh.f32 %v3473_v28  ;;  %v3491_v57 = vadd.f32 1.0, %v5637_v31  ;;  %v11780_v28 = vld [vmem:[#allocation126_spill] sm:$0xff]  ;;  %v11786_v31 = vld [vmem:[#allocation132_spill] sm:$0xff] }
 0x6d3   :  { %5642 = vrcp.f32 %v3484_v18  ;;  %v11785_v18 = vld [vmem:[#allocation131_spill] sm:$0xff] }
 0x6d4   :  { %5644 = vrcp.f32 %v3491_v57  ;;  %v11791_v57 = vld [vmem:[#allocation137_spill] sm:$0xff] }
 0x6db   :  { %v3569_v34 = vpop.f32.mrf.mxu0  ;;  %v3640_v7 = vpop.f32.mrf.mxu1 }
 0x6dd   :  { %v3571_v3 = vpop.f32.mrf.mxu0  ;;  %v3642_v41 = vpop.f32.mrf.mxu1 }
 0x6de   :  { %v5639_v32 = vpop.eup %5638 }
 0x6df   :  { %v5641_v33 = vpop.eup %5640 }
 0x6e0   :  { %v5643_v42 = vpop.eup %5642  ;;  %v3495_v19 = vmul.f32 %v5641_v33, %v5639_v32  ;;  %v11787_v32 = vld [vmem:[#allocation133_spill] sm:$0xff]  ;;  %v11788_v33 = vld [vmem:[#allocation134_spill] sm:$0xff] }
 0x6e1   :  { %v3494_v11 = vmul.f32 %v5643_v42, %v8858_v47  ;;  %v5645_v15 = vpop.eup %5644  ;;  %v11790_v42 = vld [vmem:[#allocation136_spill] sm:$0xff] }
 0x6e3   :  { %v9222_v17 = vadd.f32 %v3495_v19, %v3494_v11  ;;  %v11792_v19 = vld [vmem:[#allocation138_spill] sm:$0xff]  ;;  %v11793_v11 = vld [vmem:[#allocation139_spill] sm:$0xff] }
 0x6e5   :  { %v3714_v14 = vpop.f32.mrf.mxu0  ;;  %5646 = vtanh.f32 %v9222_v17  ;;  %v3785_v1 = vpop.f32.mrf.mxu1 }
 0x6e6   :  { %v3715_v49 = vadd.f32 %v3714_v14, %v3569_v34  ;;  %v3786_v24 = vadd.f32 %v3785_v1, %v3640_v7  ;;  %v11789_v34 = vld [vmem:[#allocation135_spill] sm:$0xff]  ;;  %v11794_v7 = vld [vmem:[#allocation140_spill] sm:$0xff]  ;;  %v11796_v14 = vld [vmem:[#allocation142_spill] sm:$0xff] }
 0x6e7   :  { %v3716_v51 = vpop.f32.mrf.mxu0  ;;  %v3787_v2 = vpop.f32.mrf.mxu1  ;;  %v11801_v1 = vld [vmem:[#allocation147_spill] sm:$0xff] }
 0x6e8   :  { %v3790_v62 = vadd.f32 %v3715_v49, %v7226_v59  ;;  %v3717_v56 = vadd.f32 %v3716_v51, %v3571_v3  ;;  %v3788_v5 = vadd.f32 %v3787_v2, %v3642_v41  ;;  %v3792_v0 = vadd.f32 %v3786_v24, %v7243_v55  ;;  %v11795_v3 = vld [vmem:[#allocation141_spill] sm:$0xff]  ;;  %v11797_v41 = vld [vmem:[#allocation143_spill] sm:$0xff]  ;;  %v11798_v49 = vld [vmem:[#allocation144_spill] sm:$0xff] }
 0x6e9   :  { %v11799_v51 = vld [vmem:[#allocation145_spill] sm:$0xff] }
 0x6ea   :  { %v5455_v48 = vmul.f32 -1.442695, %v3790_v62  ;;  %v3791_v50 = vadd.f32 %v3717_v56, %v11124_v37  ;;  %v3793_v21 = vadd.f32 %v3788_v5, %v11125_v45  ;;  %v11800_v62 = vld [vmem:[#allocation146_spill] sm:$0xff]  ;;  %v11802_v56 = vld [vmem:[#allocation148_spill] sm:$0xff]  ;;  %v11805_v5 = vld [vmem:[#allocation151_spill] sm:$0xff] }
 0x6ec   :  { %5648 = vpow2.f32 %v5455_v48  ;;  %v5456_v47 = vmul.f32 -1.442695, %v3791_v50  ;;  %v5457_v63 = vmul.f32 -1.442695, %v3793_v21  ;;  %v11803_v50 = vld [vmem:[#allocation149_spill] sm:$0xff] }
 0x6ed   :  { %v11807_v21 = vld [vmem:[#allocation153_spill] sm:$0xff] }
 0x6ee   :  { %5650 = vpow2.f32 %v5456_v47  ;;  %v11804_v47 = vld [vmem:[#allocation150_spill] sm:$0xff] }
 0x6ef   :  { %5652 = vpow2.f32 %v5457_v63  ;;  %v11808_v63 = vld [vmem:[#allocation154_spill] sm:$0xff] }
 0x6f2   :  { %v5647_v16 = vpop.eup %5646 }
 0x6f3   :  { %v3498_v22 = vmul.f32 %v5647_v16, %v5645_v15  ;;  %v11806_v15 = vld [vmem:[#allocation152_spill] sm:$0xff] }
 0x6f5   :  { %3500 = vst [vmem:[#allocation11 + $0x20] sm:$0xff] %v3498_v22  ;;  %3883 = vmatmul.mubr.f32.vlgmr.msra.gmra.mxu0 %v3498_v22  ;;  %3954 = vmatmul.mubr.f32.vlgmr.msra.gmra.mxu1 %v3498_v22 }
 0x6f6   :  { %3961 = vmatpush1.msra.mxu0 %v8864_v43  ;;  %4032 = vmatpush1.msra.mxu1 %v8867_v58  ;;  %v11775_v43 = vld [vmem:[#allocation121_spill] sm:$0xff]  ;;  %v11776_v58 = vld [vmem:[#allocation122_spill] sm:$0xff] }
 0x6f7   :  { %3962 = vmatprep.subr.mxu0 %v8870_v38  ;;  %4033 = vmatprep.subr.mxu1 %v8873_v35  ;;  %v11777_v38 = vld [vmem:[#allocation123_spill] sm:$0xff]  ;;  %v11778_v35 = vld [vmem:[#allocation124_spill] sm:$0xff] }
 0x6f8   :  { %3963 = vmatpush1.msra.mxu0 %v8876_v54  ;;  %4034 = vmatpush1.msra.mxu1 %v8879_v39  ;;  %v11779_v39 = vld [vmem:[#allocation125_spill] sm:$0xff] }
 0x6f9   :  { %v5649_v25 = vpop.eup %5648  ;;  %3964 = vmatprep.subr.mxu0 %v8883_v8  ;;  %4035 = vmatprep.subr.mxu1 %v8886_v44  ;;  %v11781_v8 = vld [vmem:[#allocation127_spill] sm:$0xff]  ;;  %v11782_v44 = vld [vmem:[#allocation128_spill] sm:$0xff] }
 0x6fa   :  { %v3797_v61 = vadd.f32 1.0, %v5649_v25  ;;  %3965 = vmatpush1.msra.mxu0 %v11775_v43  ;;  %4036 = vmatpush1.msra.mxu1 %v11776_v58  ;;  %v11809_v25 = vld [vmem:[#allocation155_spill] sm:$0xff]  ;;  %v11810_v43 = vld [vmem:[#allocation156_spill] sm:$0xff]  ;;  %v11811_v58 = vld [vmem:[#allocation157_spill] sm:$0xff] }
 0x6fb   :  { %v5651_v26 = vpop.eup %5650  ;;  %3966 = vmatprep.subr.mxu0 %v11777_v38  ;;  %4037 = vmatprep.subr.mxu1 %v11778_v35  ;;  %v11817_v38 = vld [vmem:[#allocation163_spill] sm:$0xff]  ;;  %v11819_v35 = vld [vmem:[#allocation165_spill] sm:$0xff] }
 0x6fc   :  { %5654 = vrcp.f32 %v3797_v61  ;;  %v3803_v54 = vadd.f32 1.0, %v5651_v26  ;;  %3967 = vmatpush1.msra.mxu0 %v11779_v39  ;;  %4038 = vmatpush1.msra.mxu1 %v11780_v28  ;;  %v5653_v48 = vpop.eup %5652  ;;  %v11812_v26 = vld [vmem:[#allocation158_spill] sm:$0xff] }
 0x6fd   :  { %5656 = vtanh.f32 %v3792_v0  ;;  %3968 = vmatprep.subr.mxu0 %v11781_v8  ;;  %4039 = vmatprep.subr.mxu1 %v11782_v44  ;;  %v3810_v24 = vadd.f32 1.0, %v5653_v48  ;;  %v9316_v44 = vld [vmem:[#allocation7 + $0x1d8] sm:$0xff]  ;;  %v9379_v48 = vld [vmem:[#allocation7 + $0x120] sm:$0xff] }
 0x6fe   :  { %5658 = vrcp.f32 %v3803_v54  ;;  %3969 = vmatpush1.msra.mxu0 %v11783_v29  ;;  %4040 = vmatpush1.msra.mxu1 %v11784_v30  ;;  %v9300_v54 = vld [vmem:[#allocation7 + $0x1f8] sm:$0xff]  ;;  %v9319_v29 = vld [vmem:[#allocation7 + $0x1c0] sm:$0xff]  ;;  %v9322_v30 = vld [vmem:[#allocation7 + $0x1d0] sm:$0xff] }
 0x6ff   :  { %3970 = vmatprep.subr.mxu0 %v11785_v18  ;;  %4041 = vmatprep.subr.mxu1 %v11786_v31  ;;  %5660 = vrcp.f32 %v3810_v24  ;;  %v9325_v18 = vld [vmem:[#allocation7 + $0x1a8] sm:$0xff]  ;;  %v9328_v31 = vld [vmem:[#allocation7 + $0x1b8] sm:$0xff]  ;;  %v9406_v24 = vld [vmem:[#allocation7 + $0xf0] sm:$0xff] }
 0x700   :  { %3971 = vmatpush1.msra.mxu0 %v11787_v32  ;;  %4042 = vmatpush1.msra.mxu1 %v11788_v33  ;;  %v9331_v32 = vld [vmem:[#allocation7 + $0x1a0] sm:$0xff]  ;;  %v9334_v33 = vld [vmem:[#allocation7 + $0x1b0] sm:$0xff]  ;;  %11822 = vst [vmem:[#allocation168_spill] sm:$0xff] %v9406_v24 }
 0x701   :  { %3972 = vmatprep.subr.mxu0 %v11789_v34  ;;  %4043 = vmatprep.subr.mxu1 %v11790_v42  ;;  %v9337_v34 = vld [vmem:[#allocation7 + $0x188] sm:$0xff]  ;;  %v9340_v42 = vld [vmem:[#allocation7 + $0x198] sm:$0xff] }
 0x702   :  { %3973 = vmatpush1.msra.mxu0 %v11791_v57  ;;  %4044 = vmatpush1.msra.mxu1 %v11792_v19  ;;  %v9343_v57 = vld [vmem:[#allocation7 + $0x180] sm:$0xff]  ;;  %v9346_v19 = vld [vmem:[#allocation7 + $0x190] sm:$0xff] }
 0x703   :  { %3974 = vmatprep.subr.mxu0 %v11793_v11  ;;  %4045 = vmatprep.subr.mxu1 %v11794_v7  ;;  %v9349_v11 = vld [vmem:[#allocation7 + $0x168] sm:$0xff]  ;;  %v9352_v7 = vld [vmem:[#allocation7 + $0x178] sm:$0xff] }
 0x704   :  { %3975 = vmatpush1.msra.mxu0 %v11795_v3  ;;  %4046 = vmatpush1.msra.mxu1 %v11796_v14  ;;  %v9355_v3 = vld [vmem:[#allocation7 + $0x160] sm:$0xff]  ;;  %v9358_v14 = vld [vmem:[#allocation7 + $0x170] sm:$0xff] }
 0x705   :  { %3976 = vmatprep.subr.mxu0 %v11797_v41  ;;  %4047 = vmatprep.subr.mxu1 %v11798_v49  ;;  %v9361_v41 = vld [vmem:[#allocation7 + $0x148] sm:$0xff]  ;;  %v9364_v49 = vld [vmem:[#allocation7 + $0x158] sm:$0xff] }
 0x706   :  { %3977 = vmatpush1.msra.mxu0 %v11799_v51  ;;  %4048 = vmatpush1.msra.mxu1 %v11800_v62  ;;  %v9367_v51 = vld [vmem:[#allocation7 + $0x140] sm:$0xff]  ;;  %v9370_v62 = vld [vmem:[#allocation7 + $0x150] sm:$0xff] }
 0x707   :  { %3978 = vmatprep.subr.mxu0 %v11801_v1  ;;  %4049 = vmatprep.subr.mxu1 %v11802_v56  ;;  %v9373_v1 = vld [vmem:[#allocation7 + $0x128] sm:$0xff]  ;;  %v9376_v56 = vld [vmem:[#allocation7 + $0x138] sm:$0xff] }
 0x708   :  { %3979 = vmatpush1.msra.mxu0 %v11803_v50  ;;  %4050 = vmatpush1.msra.mxu1 %v11804_v47  ;;  %v9382_v50 = vld [vmem:[#allocation7 + $0x130] sm:$0xff]  ;;  %v9385_v47 = vld [vmem:[#allocation7 + $0x108] sm:$0xff] }
 0x709   :  { %v5655_v2 = vpop.eup %5654  ;;  %3980 = vmatprep.subr.mxu0 %v11805_v5  ;;  %4051 = vmatprep.subr.mxu1 %v11806_v15  ;;  %v9391_v5 = vld [vmem:[#allocation7 + $0x100] sm:$0xff]  ;;  %v9394_v15 = vld [vmem:[#allocation7 + $0x110] sm:$0xff] }
 0x70a   :  { %v5657_v16 = vpop.eup %5656  ;;  %3981 = vmatpush1.msra.mxu0 %v11807_v21  ;;  %4052 = vmatpush1.msra.mxu1 %v8988_v27  ;;  %v9400_v21 = vld [vmem:[#allocation7 + $0xf8] sm:$0xff] }
 0x70b   :  { %v5659_v22 = vpop.eup %5658  ;;  %3982 = vmatprep.subr.mxu0 %v11808_v63  ;;  %4053 = vmatprep.subr.mxu1 %v11809_v25  ;;  %v3814_v0 = vmul.f32 %v5657_v16, %v5655_v2  ;;  %v9388_v2 = vld [vmem:[#allocation7 + $0x118] sm:$0xff]  ;;  %v9397_v16 = vld [vmem:[#allocation7 + $0xe8] sm:$0xff]  ;;  %11820 = vst [vmem:[#allocation166_spill] sm:$0xff] %v9400_v21 }
 0x70c   :  { %v3813_v61 = vmul.f32 %v5659_v22, %v9016_v36  ;;  %3983 = vmatpush1.msra.mxu0 %v8998_v23  ;;  %4054 = vmatpush1.msra.mxu1 %v9001_v4  ;;  %v11813_v36 = vld [vmem:[#allocation159_spill] sm:$0xff]  ;;  %v11814_v23 = vld [vmem:[#allocation160_spill] sm:$0xff]  ;;  %v11815_v4 = vld [vmem:[#allocation161_spill] sm:$0xff]  ;;  %v5661_v39 = vpop.eup %5660 }
 0x70d   :  { %3984 = vmatprep.subr.mxu0 %v9004_v52  ;;  %4055 = vmatprep.subr.mxu1 %v11810_v43  ;;  %v11816_v52 = vld [vmem:[#allocation162_spill] sm:$0xff]  ;;  %v9403_v22 = vld [vmem:[#allocation7 + $0xe0] sm:$0xff]  ;;  %v9409_v63 = vld [vmem:[#allocation7 + $0xc8] sm:$0xff] }
 0x70e   :  { %3985 = vmatpush1.msra.mxu0 %v11811_v58  ;;  %4056 = vmatpush1.msra.mxu1 %v9013_v6  ;;  %v9280_v27 = vadd.f32 %v3814_v0, %v3813_v61  ;;  %v11818_v6 = vld [vmem:[#allocation164_spill] sm:$0xff]  ;;  %11821 = vst [vmem:[#allocation167_spill] sm:$0xff] %v9403_v22  ;;  %11823 = vst [vmem:[#allocation169_spill] sm:$0xff] %v9409_v63  ;;  %v9412_v25 = vld [vmem:[#allocation7 + $0xd8] sm:$0xff] }
 0x70f   :  { %3986 = vmatprep.subr.mxu0 %v9018_v10  ;;  %4057 = vmatprep.subr.mxu1 %v11812_v26  ;;  %v9297_v10 = vld [vmem:[#allocation7 + $0x1e8] sm:$0xff]  ;;  %11824 = vst [vmem:[#allocation170_spill] sm:$0xff] %v9412_v25  ;;  %v9415_v0 = vld [vmem:[#allocation7 + $0xc0] sm:$0xff]  ;;  %v9418_v61 = vld [vmem:[#allocation7 + $0xd0] sm:$0xff] }
 0x710   :  { %3987 = vmatpush1.msra.mxu0 %v11813_v36  ;;  %4058 = vmatpush1.msra.mxu1 %v11814_v23  ;;  %5662 = vtanh.f32 %v9280_v27  ;;  %11825 = vst [vmem:[#allocation171_spill] sm:$0xff] %v9415_v0  ;;  %11826 = vst [vmem:[#allocation172_spill] sm:$0xff] %v9418_v61  ;;  %v9421_v43 = vld [vmem:[#allocation7 + $0xa8] sm:$0xff]  ;;  %v9424_v58 = vld [vmem:[#allocation7 + $0xb8] sm:$0xff] }
 0x711   :  { %3988 = vmatprep.subr.mxu0 %v11815_v4  ;;  %4059 = vmatprep.subr.mxu1 %v11816_v52  ;;  %11827 = vst [vmem:[#allocation173_spill] sm:$0xff] %v9421_v43  ;;  %11828 = vst [vmem:[#allocation174_spill] sm:$0xff] %v9424_v58  ;;  %v9427_v26 = vld [vmem:[#allocation7 + $0xa0] sm:$0xff]  ;;  %v9430_v36 = vld [vmem:[#allocation7 + $0xb0] sm:$0xff] }
 0x712   :  { %3989 = vmatpush1.msra.mxu0 %v11817_v38  ;;  %4060 = vmatpush1.msra.mxu1 %v11818_v6  ;;  %11829 = vst [vmem:[#allocation175_spill] sm:$0xff] %v9427_v26  ;;  %11830 = vst [vmem:[#allocation176_spill] sm:$0xff] %v9430_v36  ;;  %v9433_v23 = vld [vmem:[#allocation7 + $0x88] sm:$0xff]  ;;  %v9436_v4 = vld [vmem:[#allocation7 + $0x98] sm:$0xff] }
 0x713   :  { %3990 = vmatprep.subr.mxu0 %v11819_v35  ;;  %4061 = vmatprep.subr.mxu1 %v9046_v40  ;;  %v9307_v40 = vld [vmem:[#allocation7 + $0x1e0] sm:$0xff]  ;;  %11831 = vst [vmem:[#allocation177_spill] sm:$0xff] %v9433_v23  ;;  %11832 = vst [vmem:[#allocation16_spill] sm:$0xff] %v9436_v4  ;;  %v9442_v38 = vld [vmem:[#allocation7 + $0x90] sm:$0xff] }
 0x714   :  { %3991 = vmatpush1.msra.mxu0 %v9049_v13  ;;  %4062 = vmatpush1.msra.mxu1 %v9052_v60  ;;  %v9310_v13 = vld [vmem:[#allocation7 + $0x1f0] sm:$0xff]  ;;  %v9313_v60 = vld [vmem:[#allocation7 + $0x1c8] sm:$0xff]  ;;  %v9439_v52 = vld [vmem:[#allocation7 + $0x80] sm:$0xff]  ;;  %11834 = vst [vmem:[#allocation17_spill] sm:$0xff] %v9442_v38 }
 0x715   :  { %4024 = vmatprep.mubr.f32.mxu0 %v11037_v20  ;;  %4095 = vmatprep.mubr.f32.mxu1 %v11037_v20  ;;  %11833 = vst [vmem:[#allocation20_spill] sm:$0xff] %v9439_v52  ;;  %v9445_v6 = vld [vmem:[#allocation7 + $0x68] sm:$0xff]  ;;  %v9448_v35 = vld [vmem:[#allocation7 + $0x78] sm:$0xff] }
 0x716   :  { %4134 = vmatprep.subr.mxu0 %v9297_v10  ;;  %4205 = vmatprep.subr.mxu1 %v9300_v54  ;;  %11835 = vst [vmem:[#allocation22_spill] sm:$0xff] %v9445_v6  ;;  %11836 = vst [vmem:[#allocation18_spill] sm:$0xff] %v9448_v35 }
 0x71d   :  { %v5663_v28 = vpop.eup %5662 }
 0x71e   :  { %v9303_v8 = vmul.f32 %v5663_v28, %v5661_v39  ;;  %v9451_v39 = vld [vmem:[#allocation7 + $0x60] sm:$0xff]  ;;  %v9454_v28 = vld [vmem:[#allocation7 + $0x70] sm:$0xff] }
 0x71f   :  { %11837 = vst [vmem:[#allocation24_spill] sm:$0xff] %v9451_v39  ;;  %11838 = vst [vmem:[#allocation19_spill] sm:$0xff] %v9454_v28 }
 0x720   :  { %4025 = vmatmul.mubr.f32.vlgmr.msra.gmra.mxu0 %v9303_v8  ;;  %4096 = vmatmul.mubr.f32.vlgmr.msra.gmra.mxu1 %v9303_v8 }
 0x721   :  { %4135 = vmatpush1.msra.mxu0 %v9307_v40  ;;  %4206 = vmatpush1.msra.mxu1 %v9310_v13 }
 0x722   :  { %4136 = vmatprep.subr.mxu0 %v9313_v60  ;;  %4207 = vmatprep.subr.mxu1 %v9316_v44 }
 0x723   :  { %4137 = vmatpush1.msra.mxu0 %v9319_v29  ;;  %4208 = vmatpush1.msra.mxu1 %v9322_v30 }
 0x724   :  { %4138 = vmatprep.subr.mxu0 %v9325_v18  ;;  %4209 = vmatprep.subr.mxu1 %v9328_v31 }
 0x725   :  { %4139 = vmatpush1.msra.mxu0 %v9331_v32  ;;  %4210 = vmatpush1.msra.mxu1 %v9334_v33 }
 0x726   :  { %4140 = vmatprep.subr.mxu0 %v9337_v34  ;;  %4211 = vmatprep.subr.mxu1 %v9340_v42 }
 0x727   :  { %4141 = vmatpush1.msra.mxu0 %v9343_v57  ;;  %4212 = vmatpush1.msra.mxu1 %v9346_v19 }
 0x728   :  { %4142 = vmatprep.subr.mxu0 %v9349_v11  ;;  %4213 = vmatprep.subr.mxu1 %v9352_v7 }
 0x729   :  { %4143 = vmatpush1.msra.mxu0 %v9355_v3  ;;  %4214 = vmatpush1.msra.mxu1 %v9358_v14 }
 0x72a   :  { %4144 = vmatprep.subr.mxu0 %v9361_v41  ;;  %4215 = vmatprep.subr.mxu1 %v9364_v49 }
 0x72b   :  { %4145 = vmatpush1.msra.mxu0 %v9367_v51  ;;  %4216 = vmatpush1.msra.mxu1 %v9370_v62 }
 0x72c   :  { %4146 = vmatprep.subr.mxu0 %v9373_v1  ;;  %4217 = vmatprep.subr.mxu1 %v9376_v56 }
 0x72d   :  { %4147 = vmatpush1.msra.mxu0 %v9379_v48  ;;  %4218 = vmatpush1.msra.mxu1 %v9382_v50 }
 0x72e   :  { %4148 = vmatprep.subr.mxu0 %v9385_v47  ;;  %4219 = vmatprep.subr.mxu1 %v9388_v2 }
 0x72f   :  { %4149 = vmatpush1.msra.mxu0 %v9391_v5  ;;  %4220 = vmatpush1.msra.mxu1 %v9394_v15 }
 0x730   :  { %4150 = vmatprep.subr.mxu0 %v9397_v16  ;;  %4221 = vmatprep.subr.mxu1 %v9400_v21 }
 0x731   :  { %4151 = vmatpush1.msra.mxu0 %v9403_v22  ;;  %4222 = vmatpush1.msra.mxu1 %v9406_v24 }
 0x732   :  { %4152 = vmatprep.subr.mxu0 %v9409_v63  ;;  %4223 = vmatprep.subr.mxu1 %v9412_v25 }
 0x733   :  { %4153 = vmatpush1.msra.mxu0 %v9415_v0  ;;  %4224 = vmatpush1.msra.mxu1 %v9418_v61 }
 0x734   :  { %4154 = vmatprep.subr.mxu0 %v9421_v43  ;;  %4225 = vmatprep.subr.mxu1 %v9424_v58 }
 0x735   :  { %4155 = vmatpush1.msra.mxu0 %v9427_v26  ;;  %4226 = vmatpush1.msra.mxu1 %v9430_v36 }
 0x736   :  { %4156 = vmatprep.subr.mxu0 %v9433_v23  ;;  %4227 = vmatprep.subr.mxu1 %v9436_v4 }
 0x737   :  { %4157 = vmatpush1.msra.mxu0 %v9439_v52  ;;  %4228 = vmatpush1.msra.mxu1 %v9442_v38  ;;  %v9457_v52 = vld [vmem:[#allocation7 + $0x48] sm:$0xff]  ;;  %v9460_v38 = vld [vmem:[#allocation7 + $0x58] sm:$0xff] }
 0x738   :  { %4158 = vmatprep.subr.mxu0 %v9445_v6  ;;  %4229 = vmatprep.subr.mxu1 %v9448_v35  ;;  %11839 = vst [vmem:[#allocation26_spill] sm:$0xff] %v9457_v52  ;;  %11840 = vst [vmem:[#allocation21_spill] sm:$0xff] %v9460_v38  ;;  %v9463_v6 = vld [vmem:[#allocation7 + $0x40] sm:$0xff]  ;;  %v9466_v35 = vld [vmem:[#allocation7 + $0x50] sm:$0xff] }
 0x739   :  { %4159 = vmatpush1.msra.mxu0 %v9451_v39  ;;  %4230 = vmatpush1.msra.mxu1 %v9454_v28  ;;  %11841 = vst [vmem:[#allocation28_spill] sm:$0xff] %v9463_v6  ;;  %11842 = vst [vmem:[#allocation23_spill] sm:$0xff] %v9466_v35  ;;  %v9469_v39 = vld [vmem:[#allocation7 + $0x28] sm:$0xff]  ;;  %v9472_v28 = vld [vmem:[#allocation7 + $0x38] sm:$0xff] }
 0x73a   :  { %4160 = vmatprep.subr.mxu0 %v9457_v52  ;;  %4231 = vmatprep.subr.mxu1 %v9460_v38  ;;  %11843 = vst [vmem:[#allocation30_spill] sm:$0xff] %v9469_v39  ;;  %11844 = vst [vmem:[#allocation25_spill] sm:$0xff] %v9472_v28  ;;  %v9475_v52 = vld [vmem:[#allocation7 + $0x20] sm:$0xff]  ;;  %v9478_v38 = vld [vmem:[#allocation7 + $0x30] sm:$0xff] }
 0x73b   :  { %4161 = vmatpush1.msra.mxu0 %v9463_v6  ;;  %4232 = vmatpush1.msra.mxu1 %v9466_v35  ;;  %11845 = vst [vmem:[#allocation33_spill] sm:$0xff] %v9475_v52  ;;  %11846 = vst [vmem:[#allocation27_spill] sm:$0xff] %v9478_v38  ;;  %v9481_v6 = vld [vmem:[#allocation7 + $0x8] sm:$0xff]  ;;  %v9484_v35 = vld [vmem:[#allocation7 + $0x18] sm:$0xff] }
 0x73c   :  { %4162 = vmatprep.subr.mxu0 %v9469_v39  ;;  %4233 = vmatprep.subr.mxu1 %v9472_v28  ;;  %11847 = vst [vmem:[#allocation35_spill] sm:$0xff] %v9481_v6  ;;  %11848 = vst [vmem:[#allocation29_spill] sm:$0xff] %v9484_v35  ;;  %v9487_v39 = vld [vmem:[#allocation7] sm:$0xff]  ;;  %v9491_v28 = vld [vmem:[#allocation7 + $0x10] sm:$0xff] }
 0x73d   :  { %4163 = vmatpush1.msra.mxu0 %v9475_v52  ;;  %4234 = vmatpush1.msra.mxu1 %v9478_v38  ;;  %11849 = vst [vmem:[#allocation38_spill] sm:$0xff] %v9487_v39  ;;  %11850 = vst [vmem:[#allocation31_spill] sm:$0xff] %v9491_v28  ;;  %v9506_v38 = vld [vmem:[#allocation5 + $0x70] sm:$0xff]  ;;  %v9539_v52 = vld [vmem:[#allocation5] sm:$0xff] }
 0x73e   :  { %4164 = vmatprep.subr.mxu0 %v9481_v6  ;;  %4235 = vmatprep.subr.mxu1 %v9484_v35  ;;  %v9497_v6 = vld [vmem:[#allocation5 + $0x68] sm:$0xff]  ;;  %v9500_v35 = vld [vmem:[#allocation5 + $0x78] sm:$0xff]  ;;  %11854 = vst [vmem:[#allocation34_spill] sm:$0xff] %v9506_v38  ;;  %11865 = vst [vmem:[#allocation49_spill] sm:$0xff] %v9539_v52 }
 0x73f   :  { %4165 = vmatpush1.msra.mxu0 %v9487_v39  ;;  %4198 = vmatprep.mubr.f32.mxu0 %v11037_v20  ;;  %11851 = vst [vmem:[#allocation40_spill] sm:$0xff] %v9497_v6  ;;  %11852 = vst [vmem:[#allocation32_spill] sm:$0xff] %v9500_v35  ;;  %v9503_v39 = vld [vmem:[#allocation5 + $0x60] sm:$0xff] }
 0x740   :  { %4236 = vmatpush1.msra.mxu1 %v9491_v28  ;;  %4269 = vmatprep.mubr.f32.mxu1 %v11037_v20  ;;  %11853 = vst [vmem:[#allocation43_spill] sm:$0xff] %v9503_v39  ;;  %v9509_v28 = vld [vmem:[#allocation5 + $0x48] sm:$0xff] }
 0x741   :  { %4199 = vmatmul.mubr.f32.vlgmr.msra.gmra.mxu0 %v9303_v8  ;;  %4270 = vmatmul.mubr.f32.vlgmr.msra.gmra.mxu1 %v9303_v8  ;;  %11855 = vst [vmem:[#allocation44_spill] sm:$0xff] %v9509_v28  ;;  %v9512_v8 = vld [vmem:[#allocation5 + $0x58] sm:$0xff] }
 0x742   :  { %4303 = vmatprep.subr.mxu0 %v9497_v6  ;;  %4374 = vmatprep.subr.mxu1 %v9500_v35  ;;  %11856 = vst [vmem:[#allocation36_spill] sm:$0xff] %v9512_v8  ;;  %v9515_v6 = vld [vmem:[#allocation5 + $0x40] sm:$0xff]  ;;  %v9518_v35 = vld [vmem:[#allocation5 + $0x50] sm:$0xff] }
 0x743   :  { %4304 = vmatpush1.msra.mxu0 %v9503_v39  ;;  %4375 = vmatpush1.msra.mxu1 %v9506_v38  ;;  %11857 = vst [vmem:[#allocation45_spill] sm:$0xff] %v9515_v6  ;;  %11858 = vst [vmem:[#allocation37_spill] sm:$0xff] %v9518_v35  ;;  %v9521_v39 = vld [vmem:[#allocation5 + $0x28] sm:$0xff]  ;;  %v9524_v38 = vld [vmem:[#allocation5 + $0x38] sm:$0xff] }
 0x744   :  { %4305 = vmatprep.subr.mxu0 %v9509_v28  ;;  %4376 = vmatprep.subr.mxu1 %v9512_v8  ;;  %11859 = vst [vmem:[#allocation46_spill] sm:$0xff] %v9521_v39  ;;  %11860 = vst [vmem:[#allocation39_spill] sm:$0xff] %v9524_v38  ;;  %v9527_v28 = vld [vmem:[#allocation5 + $0x20] sm:$0xff]  ;;  %v9530_v8 = vld [vmem:[#allocation5 + $0x30] sm:$0xff] }
 0x745   :  { %4306 = vmatpush1.msra.mxu0 %v9515_v6  ;;  %4377 = vmatpush1.msra.mxu1 %v9518_v35  ;;  %11861 = vst [vmem:[#allocation47_spill] sm:$0xff] %v9527_v28  ;;  %11862 = vst [vmem:[#allocation41_spill] sm:$0xff] %v9530_v8  ;;  %v9533_v6 = vld [vmem:[#allocation5 + $0x8] sm:$0xff]  ;;  %v9536_v35 = vld [vmem:[#allocation5 + $0x18] sm:$0xff] }
 0x746   :  { %4307 = vmatprep.subr.mxu0 %v9521_v39  ;;  %4378 = vmatprep.subr.mxu1 %v9524_v38  ;;  %11863 = vst [vmem:[#allocation48_spill] sm:$0xff] %v9533_v6  ;;  %11864 = vst [vmem:[#allocation42_spill] sm:$0xff] %v9536_v35  ;;  %v4133_v39 = vld [vmem:[#allocation2 + $0x30] sm:$0xff] }
 0x747   :  { %4308 = vmatpush1.msra.mxu0 %v9527_v28  ;;  %4379 = vmatpush1.msra.mxu1 %v9530_v8  ;;  %v9543_v28 = vld [vmem:[#allocation5 + $0x10] sm:$0xff] }
 0x748   :  { %4309 = vmatprep.subr.mxu0 %v9533_v6  ;;  %4380 = vmatprep.subr.mxu1 %v9536_v35  ;;  %11866 = vst [vmem:[#allocation50_spill] sm:$0xff] %v9543_v28  ;;  %v9549_v6 = vld [vmem:[#allocation10 + $0x1e8] sm:$0xff]  ;;  %v9552_v35 = vld [vmem:[#allocation10 + $0x1f8] sm:$0xff]  ;;  %v9558_v8 = vld [vmem:[#allocation10 + $0x1f0] sm:$0xff] }
 0x749   :  { %4310 = vmatpush1.msra.mxu0 %v9539_v52  ;;  %4343 = vmatprep.mubr.f32.mxu0 %v11037_v20  ;;  %11867 = vst [vmem:[#allocation52_spill] sm:$0xff] %v9549_v6  ;;  %11868 = vst [vmem:[#allocation51_spill] sm:$0xff] %v9552_v35  ;;  %v9555_v52 = vld [vmem:[#allocation10 + $0x1e0] sm:$0xff] }
 0x74a   :  { %4381 = vmatpush1.msra.mxu1 %v9543_v28  ;;  %4414 = vmatprep.mubr.f32.mxu1 %v11037_v20  ;;  %11869 = vst [vmem:[#allocation54_spill] sm:$0xff] %v9555_v52  ;;  %11870 = vst [vmem:[#allocation53_spill] sm:$0xff] %v9558_v8  ;;  %v9561_v28 = vld [vmem:[#allocation10 + $0x1c8] sm:$0xff] }
 0x74b   :  { %5461 = vmatmul.mubr.msk.f32.vlgmr.msra.gmra.mxu0 %vm448_vm0, %v4133_v39  ;;  %5462 = vmatmul.mubr.msk.f32.vlgmr.msra.gmra.mxu1 %vm448_vm0, %v4133_v39  ;;  %11871 = vst [vmem:[#allocation56_spill] sm:$0xff] %v9561_v28  ;;  %v9564_v39 = vld [vmem:[#allocation10 + $0x1d8] sm:$0xff] }
 0x74c   :  { %4449 = vmatprep.subr.mxu0 %v9549_v6  ;;  %4520 = vmatprep.subr.mxu1 %v9552_v35  ;;  %11872 = vst [vmem:[#allocation55_spill] sm:$0xff] %v9564_v39  ;;  %v9567_v6 = vld [vmem:[#allocation10 + $0x1c0] sm:$0xff]  ;;  %v9570_v35 = vld [vmem:[#allocation10 + $0x1d0] sm:$0xff] }
 0x74d   :  { %4450 = vmatpush1.msra.mxu0 %v9555_v52  ;;  %4521 = vmatpush1.msra.mxu1 %v9558_v8  ;;  %11873 = vst [vmem:[#allocation58_spill] sm:$0xff] %v9567_v6  ;;  %11874 = vst [vmem:[#allocation57_spill] sm:$0xff] %v9570_v35  ;;  %v9573_v52 = vld [vmem:[#allocation10 + $0x1a8] sm:$0xff]  ;;  %v9576_v8 = vld [vmem:[#allocation10 + $0x1b8] sm:$0xff] }
 0x74e   :  { %4451 = vmatprep.subr.mxu0 %v9561_v28  ;;  %4522 = vmatprep.subr.mxu1 %v9564_v39  ;;  %11875 = vst [vmem:[#allocation60_spill] sm:$0xff] %v9573_v52  ;;  %11876 = vst [vmem:[#allocation59_spill] sm:$0xff] %v9576_v8  ;;  %v9579_v28 = vld [vmem:[#allocation10 + $0x1a0] sm:$0xff]  ;;  %v9582_v39 = vld [vmem:[#allocation10 + $0x1b0] sm:$0xff] }
 0x74f   :  { %4452 = vmatpush1.msra.mxu0 %v9567_v6  ;;  %4523 = vmatpush1.msra.mxu1 %v9570_v35  ;;  %11877 = vst [vmem:[#allocation62_spill] sm:$0xff] %v9579_v28  ;;  %11878 = vst [vmem:[#allocation61_spill] sm:$0xff] %v9582_v39  ;;  %v9585_v6 = vld [vmem:[#allocation10 + $0x188] sm:$0xff]  ;;  %v9588_v35 = vld [vmem:[#allocation10 + $0x198] sm:$0xff] }
 0x750   :  { %4453 = vmatprep.subr.mxu0 %v9573_v52  ;;  %4524 = vmatprep.subr.mxu1 %v9576_v8  ;;  %11879 = vst [vmem:[#allocation64_spill] sm:$0xff] %v9585_v6  ;;  %11880 = vst [vmem:[#allocation63_spill] sm:$0xff] %v9588_v35  ;;  %v9591_v52 = vld [vmem:[#allocation10 + $0x180] sm:$0xff]  ;;  %v9594_v8 = vld [vmem:[#allocation10 + $0x190] sm:$0xff] }
 0x751   :  { %4454 = vmatpush1.msra.mxu0 %v9579_v28  ;;  %4525 = vmatpush1.msra.mxu1 %v9582_v39  ;;  %11881 = vst [vmem:[#allocation66_spill] sm:$0xff] %v9591_v52  ;;  %11882 = vst [vmem:[#allocation65_spill] sm:$0xff] %v9594_v8  ;;  %v9597_v28 = vld [vmem:[#allocation10 + $0x168] sm:$0xff]  ;;  %v9600_v39 = vld [vmem:[#allocation10 + $0x178] sm:$0xff] }
 0x752   :  { %4455 = vmatprep.subr.mxu0 %v9585_v6  ;;  %4526 = vmatprep.subr.mxu1 %v9588_v35  ;;  %11883 = vst [vmem:[#allocation68_spill] sm:$0xff] %v9597_v28  ;;  %11884 = vst [vmem:[#allocation67_spill] sm:$0xff] %v9600_v39  ;;  %v9603_v6 = vld [vmem:[#allocation10 + $0x160] sm:$0xff]  ;;  %v9606_v35 = vld [vmem:[#allocation10 + $0x170] sm:$0xff] }
 0x753   :  { %4456 = vmatpush1.msra.mxu0 %v9591_v52  ;;  %4527 = vmatpush1.msra.mxu1 %v9594_v8  ;;  %11885 = vst [vmem:[#allocation70_spill] sm:$0xff] %v9603_v6  ;;  %11886 = vst [vmem:[#allocation69_spill] sm:$0xff] %v9606_v35  ;;  %v9609_v52 = vld [vmem:[#allocation10 + $0x148] sm:$0xff]  ;;  %v9612_v8 = vld [vmem:[#allocation10 + $0x158] sm:$0xff] }
 0x754   :  { %4457 = vmatprep.subr.mxu0 %v9597_v28  ;;  %4528 = vmatprep.subr.mxu1 %v9600_v39  ;;  %11887 = vst [vmem:[#allocation72_spill] sm:$0xff] %v9609_v52  ;;  %11888 = vst [vmem:[#allocation71_spill] sm:$0xff] %v9612_v8  ;;  %v9615_v28 = vld [vmem:[#allocation10 + $0x140] sm:$0xff]  ;;  %v9618_v39 = vld [vmem:[#allocation10 + $0x150] sm:$0xff] }
 0x755   :  { %4458 = vmatpush1.msra.mxu0 %v9603_v6  ;;  %4529 = vmatpush1.msra.mxu1 %v9606_v35  ;;  %11889 = vst [vmem:[#allocation74_spill] sm:$0xff] %v9615_v28  ;;  %11890 = vst [vmem:[#allocation73_spill] sm:$0xff] %v9618_v39  ;;  %v9621_v6 = vld [vmem:[#allocation10 + $0x128] sm:$0xff]  ;;  %v9624_v35 = vld [vmem:[#allocation10 + $0x138] sm:$0xff] }
 0x756   :  { %4459 = vmatprep.subr.mxu0 %v9609_v52  ;;  %4530 = vmatprep.subr.mxu1 %v9612_v8  ;;  %11891 = vst [vmem:[#allocation76_spill] sm:$0xff] %v9621_v6  ;;  %11892 = vst [vmem:[#allocation75_spill] sm:$0xff] %v9624_v35  ;;  %v9627_v52 = vld [vmem:[#allocation10 + $0x120] sm:$0xff]  ;;  %v9630_v8 = vld [vmem:[#allocation10 + $0x130] sm:$0xff] }
 0x757   :  { %4460 = vmatpush1.msra.mxu0 %v9615_v28  ;;  %4531 = vmatpush1.msra.mxu1 %v9618_v39  ;;  %11893 = vst [vmem:[#allocation78_spill] sm:$0xff] %v9627_v52  ;;  %11894 = vst [vmem:[#allocation77_spill] sm:$0xff] %v9630_v8  ;;  %v9633_v28 = vld [vmem:[#allocation10 + $0x108] sm:$0xff]  ;;  %v9636_v39 = vld [vmem:[#allocation10 + $0x118] sm:$0xff] }
 0x758   :  { %4461 = vmatprep.subr.mxu0 %v9621_v6  ;;  %4532 = vmatprep.subr.mxu1 %v9624_v35  ;;  %11895 = vst [vmem:[#allocation80_spill] sm:$0xff] %v9633_v28  ;;  %11896 = vst [vmem:[#allocation79_spill] sm:$0xff] %v9636_v39  ;;  %v9639_v6 = vld [vmem:[#allocation10 + $0x100] sm:$0xff]  ;;  %v9642_v35 = vld [vmem:[#allocation10 + $0x110] sm:$0xff] }
 0x759   :  { %4462 = vmatpush1.msra.mxu0 %v9627_v52  ;;  %4533 = vmatpush1.msra.mxu1 %v9630_v8  ;;  %11897 = vst [vmem:[#allocation82_spill] sm:$0xff] %v9639_v6  ;;  %11898 = vst [vmem:[#allocation81_spill] sm:$0xff] %v9642_v35  ;;  %v9645_v52 = vld [vmem:[#allocation10 + $0xe8] sm:$0xff]  ;;  %v9648_v8 = vld [vmem:[#allocation10 + $0xf8] sm:$0xff] }
 0x75a   :  { %4463 = vmatprep.subr.mxu0 %v9633_v28  ;;  %4534 = vmatprep.subr.mxu1 %v9636_v39  ;;  %11899 = vst [vmem:[#allocation84_spill] sm:$0xff] %v9645_v52  ;;  %11900 = vst [vmem:[#allocation83_spill] sm:$0xff] %v9648_v8  ;;  %v9651_v28 = vld [vmem:[#allocation10 + $0xe0] sm:$0xff]  ;;  %v9654_v39 = vld [vmem:[#allocation10 + $0xf0] sm:$0xff] }
 0x75b   :  { %4464 = vmatpush1.msra.mxu0 %v9639_v6  ;;  %4535 = vmatpush1.msra.mxu1 %v9642_v35  ;;  %11901 = vst [vmem:[#allocation86_spill] sm:$0xff] %v9651_v28  ;;  %11902 = vst [vmem:[#allocation85_spill] sm:$0xff] %v9654_v39  ;;  %v9657_v6 = vld [vmem:[#allocation10 + $0xc8] sm:$0xff]  ;;  %v9660_v35 = vld [vmem:[#allocation10 + $0xd8] sm:$0xff] }
 0x75c   :  { %4465 = vmatprep.subr.mxu0 %v9645_v52  ;;  %4536 = vmatprep.subr.mxu1 %v9648_v8  ;;  %11903 = vst [vmem:[#allocation88_spill] sm:$0xff] %v9657_v6  ;;  %11904 = vst [vmem:[#allocation87_spill] sm:$0xff] %v9660_v35  ;;  %v9663_v52 = vld [vmem:[#allocation10 + $0xc0] sm:$0xff]  ;;  %v9666_v8 = vld [vmem:[#allocation10 + $0xd0] sm:$0xff] }
 0x75d   :  { %4466 = vmatpush1.msra.mxu0 %v9651_v28  ;;  %4537 = vmatpush1.msra.mxu1 %v9654_v39  ;;  %11905 = vst [vmem:[#allocation90_spill] sm:$0xff] %v9663_v52  ;;  %11906 = vst [vmem:[#allocation89_spill] sm:$0xff] %v9666_v8  ;;  %v9669_v28 = vld [vmem:[#allocation10 + $0xa8] sm:$0xff]  ;;  %v9672_v39 = vld [vmem:[#allocation10 + $0xb8] sm:$0xff] }
 0x75e   :  { %4467 = vmatprep.subr.mxu0 %v9657_v6  ;;  %4538 = vmatprep.subr.mxu1 %v9660_v35  ;;  %11907 = vst [vmem:[#allocation92_spill] sm:$0xff] %v9669_v28  ;;  %11908 = vst [vmem:[#allocation91_spill] sm:$0xff] %v9672_v39  ;;  %v9675_v6 = vld [vmem:[#allocation10 + $0xa0] sm:$0xff]  ;;  %v9678_v35 = vld [vmem:[#allocation10 + $0xb0] sm:$0xff] }
 0x75f   :  { %4468 = vmatpush1.msra.mxu0 %v9663_v52  ;;  %4539 = vmatpush1.msra.mxu1 %v9666_v8  ;;  %11909 = vst [vmem:[#allocation94_spill] sm:$0xff] %v9675_v6  ;;  %11910 = vst [vmem:[#allocation93_spill] sm:$0xff] %v9678_v35  ;;  %v9681_v52 = vld [vmem:[#allocation10 + $0x88] sm:$0xff]  ;;  %v9684_v8 = vld [vmem:[#allocation10 + $0x98] sm:$0xff] }
 0x760   :  { %4469 = vmatprep.subr.mxu0 %v9669_v28  ;;  %4540 = vmatprep.subr.mxu1 %v9672_v39  ;;  %11911 = vst [vmem:[#allocation96_spill] sm:$0xff] %v9681_v52  ;;  %11912 = vst [vmem:[#allocation95_spill] sm:$0xff] %v9684_v8  ;;  %v9687_v28 = vld [vmem:[#allocation10 + $0x80] sm:$0xff]  ;;  %v9690_v39 = vld [vmem:[#allocation10 + $0x90] sm:$0xff] }
 0x761   :  { %4470 = vmatpush1.msra.mxu0 %v9675_v6  ;;  %4541 = vmatpush1.msra.mxu1 %v9678_v35  ;;  %11913 = vst [vmem:[#allocation98_spill] sm:$0xff] %v9687_v28  ;;  %11914 = vst [vmem:[#allocation97_spill] sm:$0xff] %v9690_v39  ;;  %v9693_v6 = vld [vmem:[#allocation10 + $0x68] sm:$0xff]  ;;  %v9696_v35 = vld [vmem:[#allocation10 + $0x78] sm:$0xff] }
 0x762   :  { %4471 = vmatprep.subr.mxu0 %v9681_v52  ;;  %4542 = vmatprep.subr.mxu1 %v9684_v8  ;;  %11915 = vst [vmem:[#allocation100_spill] sm:$0xff] %v9693_v6  ;;  %11916 = vst [vmem:[#allocation99_spill] sm:$0xff] %v9696_v35  ;;  %v9699_v52 = vld [vmem:[#allocation10 + $0x60] sm:$0xff]  ;;  %v9702_v8 = vld [vmem:[#allocation10 + $0x70] sm:$0xff] }
 0x763   :  { %4472 = vmatpush1.msra.mxu0 %v9687_v28  ;;  %4543 = vmatpush1.msra.mxu1 %v9690_v39  ;;  %11917 = vst [vmem:[#allocation102_spill] sm:$0xff] %v9699_v52  ;;  %11918 = vst [vmem:[#allocation101_spill] sm:$0xff] %v9702_v8  ;;  %v9705_v28 = vld [vmem:[#allocation10 + $0x48] sm:$0xff]  ;;  %v9708_v39 = vld [vmem:[#allocation10 + $0x58] sm:$0xff] }
 0x764   :  { %4473 = vmatprep.subr.mxu0 %v9693_v6  ;;  %4544 = vmatprep.subr.mxu1 %v9696_v35  ;;  %11919 = vst [vmem:[#allocation104_spill] sm:$0xff] %v9705_v28  ;;  %11920 = vst [vmem:[#allocation103_spill] sm:$0xff] %v9708_v39  ;;  %v9711_v6 = vld [vmem:[#allocation10 + $0x40] sm:$0xff]  ;;  %v9714_v35 = vld [vmem:[#allocation10 + $0x50] sm:$0xff] }
 0x765   :  { %4474 = vmatpush1.msra.mxu0 %v9699_v52  ;;  %4545 = vmatpush1.msra.mxu1 %v9702_v8  ;;  %11921 = vst [vmem:[#allocation106_spill] sm:$0xff] %v9711_v6  ;;  %11922 = vst [vmem:[#allocation105_spill] sm:$0xff] %v9714_v35  ;;  %v9717_v52 = vld [vmem:[#allocation10 + $0x28] sm:$0xff]  ;;  %v9720_v8 = vld [vmem:[#allocation10 + $0x38] sm:$0xff] }
 0x766   :  { %4475 = vmatprep.subr.mxu0 %v9705_v28  ;;  %4546 = vmatprep.subr.mxu1 %v9708_v39  ;;  %11923 = vst [vmem:[#allocation108_spill] sm:$0xff] %v9717_v52  ;;  %11924 = vst [vmem:[#allocation107_spill] sm:$0xff] %v9720_v8  ;;  %v9723_v28 = vld [vmem:[#allocation10 + $0x20] sm:$0xff]  ;;  %v9726_v39 = vld [vmem:[#allocation10 + $0x30] sm:$0xff] }
 0x767   :  { %4476 = vmatpush1.msra.mxu0 %v9711_v6  ;;  %4547 = vmatpush1.msra.mxu1 %v9714_v35  ;;  %11925 = vst [vmem:[#allocation110_spill] sm:$0xff] %v9723_v28  ;;  %11926 = vst [vmem:[#allocation109_spill] sm:$0xff] %v9726_v39  ;;  %v9729_v6 = vld [vmem:[#allocation10 + $0x8] sm:$0xff]  ;;  %v9732_v35 = vld [vmem:[#allocation10 + $0x18] sm:$0xff] }
 0x768   :  { %4477 = vmatprep.subr.mxu0 %v9717_v52  ;;  %4548 = vmatprep.subr.mxu1 %v9720_v8  ;;  %11927 = vst [vmem:[#allocation112_spill] sm:$0xff] %v9729_v6  ;;  %11928 = vst [vmem:[#allocation111_spill] sm:$0xff] %v9732_v35  ;;  %v9735_v52 = vld [vmem:[#allocation10] sm:$0xff]  ;;  %v9739_v8 = vld [vmem:[#allocation10 + $0x10] sm:$0xff] }
 0x769   :  { %4478 = vmatpush1.msra.mxu0 %v9723_v28  ;;  %4549 = vmatpush1.msra.mxu1 %v9726_v39  ;;  %11929 = vst [vmem:[#allocation113_spill] sm:$0xff] %v9735_v52  ;;  %11930 = vst [vmem:[#allocation114_spill] sm:$0xff] %v9739_v8  ;;  %v9743_v39 = vld [vmem:[#allocation8 + $0x1e8] sm:$0xff] }
 0x76a   :  { %4479 = vmatprep.subr.mxu0 %v9729_v6  ;;  %4550 = vmatprep.subr.mxu1 %v9732_v35  ;;  %11931 = vst [vmem:[#allocation115_spill] sm:$0xff] %v9743_v39  ;;  %v9746_v6 = vld [vmem:[#allocation8 + $0x1f8] sm:$0xff] }
 0x76b   :  { %4480 = vmatpush1.msra.mxu0 %v9735_v52  ;;  %4513 = vmatprep.mubr.f32.mxu0 %v11037_v20  ;;  %11932 = vst [vmem:[#allocation178_spill] sm:$0xff] %v9746_v6 }
 0x76c   :  { %4551 = vmatpush1.msra.mxu1 %v9739_v8  ;;  %4584 = vmatprep.mubr.f32.mxu1 %v11037_v20 }
 0x76d   :  { %4591 = vmatprep.subr.mxu0 %v9743_v39  ;;  %4662 = vmatprep.subr.mxu1 %v9746_v6 }
 0x7b5   :  { %v3884_v35 = vpop.f32.mrf.mxu0  ;;  %v3955_v28 = vpop.f32.mrf.mxu1 }
 0x7b7   :  { %v3886_v38 = vpop.f32.mrf.mxu0  ;;  %v3957_v4 = vpop.f32.mrf.mxu1 }
 0x7e0   :  { %v4026_v52 = vpop.f32.mrf.mxu0  ;;  %v4097_v8 = vpop.f32.mrf.mxu1 }
 0x7e1   :  { %v4027_v23 = vadd.f32 %v4026_v52, %v3884_v35  ;;  %v4098_v63 = vadd.f32 %v4097_v8, %v3955_v28 }
 0x7e2   :  { %v4028_v36 = vpop.f32.mrf.mxu0  ;;  %v4099_v0 = vpop.f32.mrf.mxu1 }
 0x7e3   :  { %v4102_v26 = vadd.f32 %v4027_v23, %v7412_v53  ;;  %v4029_v58 = vadd.f32 %v4028_v36, %v3886_v38  ;;  %v4100_v25 = vadd.f32 %v4099_v0, %v3957_v4  ;;  %v4104_v52 = vadd.f32 %v4098_v63, %v7427_v12 }
 0x7e5   :  { %v5458_v43 = vmul.f32 -1.442695, %v4102_v26  ;;  %v4103_v61 = vadd.f32 %v4029_v58, %v7416_v46  ;;  %v4105_v6 = vadd.f32 %v4100_v25, %v7422_v9 }
 0x7e7   :  { %5664 = vpow2.f32 %v5458_v43  ;;  %v5459_v39 = vmul.f32 -1.442695, %v4103_v61  ;;  %v5460_v24 = vmul.f32 -1.442695, %v4105_v6 }
 0x7e9   :  { %5666 = vpow2.f32 %v5459_v39 }
 0x7ea   :  { %5668 = vpow2.f32 %v5460_v24 }
 0x7f4   :  { %v5665_v22 = vpop.eup %5664 }
 0x7f5   :  { %v4109_v35 = vadd.f32 1.0, %v5665_v22 }
 0x7f6   :  { %v5667_v21 = vpop.eup %5666 }
 0x7f7   :  { %5670 = vrcp.f32 %v4109_v35  ;;  %v4115_v36 = vadd.f32 1.0, %v5667_v21  ;;  %v5669_v58 = vpop.eup %5668 }
 0x7f8   :  { %5672 = vtanh.f32 %v4104_v52  ;;  %v4122_v0 = vadd.f32 1.0, %v5669_v58 }
 0x7f9   :  { %5674 = vrcp.f32 %v4115_v36 }
 0x7fa   :  { %5676 = vrcp.f32 %v4122_v0 }
 0x801   :  { %v4200_v26 = vpop.f32.mrf.mxu0  ;;  %v4271_v38 = vpop.f32.mrf.mxu1 }
 0x803   :  { %v4202_v6 = vpop.f32.mrf.mxu0  ;;  %v4273_v21 = vpop.f32.mrf.mxu1 }
 0x804   :  { %v5671_v43 = vpop.eup %5670 }
 0x805   :  { %v5673_v61 = vpop.eup %5672 }
 0x806   :  { %v5675_v23 = vpop.eup %5674  ;;  %v4126_v4 = vmul.f32 %v5673_v61, %v5671_v43 }
 0x807   :  { %v4125_v25 = vmul.f32 %v5675_v23, %v9222_v17  ;;  %v5677_v61 = vpop.eup %5676 }
 0x809   :  { %v9754_v28 = vadd.f32 %v4126_v4, %v4125_v25 }
 0x80b   :  { %v4345_v22 = vpop.f32.mrf.mxu0  ;;  %5678 = vtanh.f32 %v9754_v28  ;;  %v4416_v39 = vpop.f32.mrf.mxu1 }
 0x80c   :  { %v4346_v24 = vadd.f32 %v4345_v22, %v4200_v26  ;;  %v4417_v25 = vadd.f32 %v4416_v39, %v4271_v38  ;;  %v9760_v26 = vld [vmem:[#allocation8 + $0x1e0] sm:$0xff] }
 0x80d   :  { %v4347_v63 = vpop.f32.mrf.mxu0  ;;  %v4418_v58 = vpop.f32.mrf.mxu1  ;;  %v9772_v38 = vld [vmem:[#allocation8 + $0x1c0] sm:$0xff] }
 0x80e   :  { %v4421_v8 = vadd.f32 %v4346_v24, %v7226_v59  ;;  %v4348_v52 = vadd.f32 %v4347_v63, %v4202_v6  ;;  %v4419_v43 = vadd.f32 %v4418_v58, %v4273_v21  ;;  %v9763_v6 = vld [vmem:[#allocation8 + $0x1f0] sm:$0xff]  ;;  %v9766_v24 = vld [vmem:[#allocation8 + $0x1c8] sm:$0xff]  ;;  %v9769_v21 = vld [vmem:[#allocation8 + $0x1d8] sm:$0xff]  ;;  %v4423_v39 = vadd.f32 %v4417_v25, %v7243_v55 }
 0x80f   :  { %v9775_v63 = vld [vmem:[#allocation8 + $0x1d0] sm:$0xff] }
 0x810   :  { %v5463_v35 = vmul.f32 -1.442695, %v4421_v8  ;;  %v4422_v36 = vadd.f32 %v4348_v52, %v11124_v37  ;;  %v4424_v0 = vadd.f32 %v4419_v43, %v11125_v45  ;;  %v9779_v52 = vld [vmem:[#allocation8 + $0x1a8] sm:$0xff]  ;;  %v9788_v58 = vld [vmem:[#allocation8 + $0x1b0] sm:$0xff] }
 0x811   :  { %11934 = vst [vmem:[#allocation116_spill] sm:$0xff] %v9788_v58  ;;  %v9800_v25 = vld [vmem:[#allocation8 + $0x190] sm:$0xff] }
 0x812   :  { %5680 = vpow2.f32 %v5463_v35  ;;  %v5464_v17 = vmul.f32 -1.442695, %v4422_v36  ;;  %v5465_v22 = vmul.f32 -1.442695, %v4424_v0  ;;  %v9782_v35 = vld [vmem:[#allocation8 + $0x1b8] sm:$0xff]  ;;  %11938 = vst [vmem:[#allocation120_spill] sm:$0xff] %v9800_v25 }
 0x814   :  { %5682 = vpow2.f32 %v5464_v17  ;;  %v9785_v17 = vld [vmem:[#allocation8 + $0x1a0] sm:$0xff] }
 0x815   :  { %11933 = vst [vmem:[#allocation179_spill] sm:$0xff] %v9785_v17  ;;  %5684 = vpow2.f32 %v5465_v22  ;;  %v9803_v22 = vld [vmem:[#allocation8 + $0x168] sm:$0xff] }
 0x816   :  { %11939 = vst [vmem:[#allocation121_spill] sm:$0xff] %v9803_v22 }
 0x818   :  { %v5679_v23 = vpop.eup %5678 }
 0x819   :  { %v4129_v4 = vmul.f32 %v5679_v23, %v5677_v61  ;;  %v9791_v61 = vld [vmem:[#allocation8 + $0x188] sm:$0xff]  ;;  %v9794_v23 = vld [vmem:[#allocation8 + $0x198] sm:$0xff] }
 0x81a   :  { %11935 = vst [vmem:[#allocation117_spill] sm:$0xff] %v9791_v61  ;;  %11936 = vst [vmem:[#allocation118_spill] sm:$0xff] %v9794_v23 }
 0x81b   :  { %4131 = vst [vmem:[#allocation11 + $0x28] sm:$0xff] %v4129_v4  ;;  %4514 = vmatmul.mubr.f32.vlgmr.msra.gmra.mxu0 %v4129_v4  ;;  %4585 = vmatmul.mubr.f32.vlgmr.msra.gmra.mxu1 %v4129_v4  ;;  %v9797_v4 = vld [vmem:[#allocation8 + $0x180] sm:$0xff] }
 0x81c   :  { %4592 = vmatpush1.msra.mxu0 %v9760_v26  ;;  %4663 = vmatpush1.msra.mxu1 %v9763_v6  ;;  %11937 = vst [vmem:[#allocation119_spill] sm:$0xff] %v9797_v4 }
 0x81d   :  { %4593 = vmatprep.subr.mxu0 %v9766_v24  ;;  %4664 = vmatprep.subr.mxu1 %v9769_v21 }
 0x81e   :  { %4594 = vmatpush1.msra.mxu0 %v9772_v38  ;;  %4665 = vmatpush1.msra.mxu1 %v9775_v63 }
 0x81f   :  { %v5681_v8 = vpop.eup %5680  ;;  %4595 = vmatprep.subr.mxu0 %v9779_v52  ;;  %4666 = vmatprep.subr.mxu1 %v9782_v35 }
 0x820   :  { %v4428_v36 = vadd.f32 1.0, %v5681_v8  ;;  %4596 = vmatpush1.msra.mxu0 %v9785_v17  ;;  %4667 = vmatpush1.msra.mxu1 %v9788_v58  ;;  %v9806_v8 = vld [vmem:[#allocation8 + $0x178] sm:$0xff]  ;;  %v9894_v17 = vld [vmem:[#allocation8 + $0x80] sm:$0xff] }
 0x821   :  { %v5683_v43 = vpop.eup %5682  ;;  %4597 = vmatprep.subr.mxu0 %v9791_v61  ;;  %4668 = vmatprep.subr.mxu1 %v9794_v23  ;;  %11940 = vst [vmem:[#allocation122_spill] sm:$0xff] %v9806_v8  ;;  %v9884_v23 = vld [vmem:[#allocation8 + $0xb0] sm:$0xff]  ;;  %v9887_v61 = vld [vmem:[#allocation8 + $0x88] sm:$0xff] }
 0x822   :  { %5686 = vrcp.f32 %v4428_v36  ;;  %v4434_v0 = vadd.f32 1.0, %v5683_v43  ;;  %4598 = vmatpush1.msra.mxu0 %v9797_v4  ;;  %4669 = vmatpush1.msra.mxu1 %v9800_v25  ;;  %v9809_v36 = vld [vmem:[#allocation8 + $0x160] sm:$0xff]  ;;  %v9812_v43 = vld [vmem:[#allocation8 + $0x170] sm:$0xff]  ;;  %v9815_v4 = vld [vmem:[#allocation8 + $0x148] sm:$0xff]  ;;  %11966 = vst [vmem:[#allocation148_spill] sm:$0xff] %v9887_v61 }
 0x823   :  { %5688 = vtanh.f32 %v4423_v39  ;;  %4599 = vmatprep.subr.mxu0 %v9803_v22  ;;  %4670 = vmatprep.subr.mxu1 %v9806_v8  ;;  %11941 = vst [vmem:[#allocation123_spill] sm:$0xff] %v9809_v36  ;;  %11942 = vst [vmem:[#allocation124_spill] sm:$0xff] %v9812_v43  ;;  %v9818_v39 = vld [vmem:[#allocation8 + $0x158] sm:$0xff]  ;;  %v9821_v22 = vld [vmem:[#allocation8 + $0x140] sm:$0xff] }
 0x824   :  { %5690 = vrcp.f32 %v4434_v0  ;;  %4600 = vmatpush1.msra.mxu0 %v9809_v36  ;;  %4671 = vmatpush1.msra.mxu1 %v9812_v43  ;;  %11943 = vst [vmem:[#allocation125_spill] sm:$0xff] %v9815_v4  ;;  %11944 = vst [vmem:[#allocation126_spill] sm:$0xff] %v9818_v39  ;;  %v9824_v0 = vld [vmem:[#allocation8 + $0x150] sm:$0xff]  ;;  %v9827_v36 = vld [vmem:[#allocation8 + $0x128] sm:$0xff] }
 0x825   :  { %4601 = vmatprep.subr.mxu0 %v9815_v4  ;;  %4672 = vmatprep.subr.mxu1 %v9818_v39  ;;  %11945 = vst [vmem:[#allocation127_spill] sm:$0xff] %v9821_v22  ;;  %11946 = vst [vmem:[#allocation128_spill] sm:$0xff] %v9824_v0  ;;  %v9830_v43 = vld [vmem:[#allocation8 + $0x138] sm:$0xff]  ;;  %v9833_v4 = vld [vmem:[#allocation8 + $0x120] sm:$0xff] }
 0x826   :  { %4602 = vmatpush1.msra.mxu0 %v9821_v22  ;;  %4673 = vmatpush1.msra.mxu1 %v9824_v0  ;;  %11947 = vst [vmem:[#allocation129_spill] sm:$0xff] %v9827_v36  ;;  %11948 = vst [vmem:[#allocation130_spill] sm:$0xff] %v9830_v43  ;;  %v9836_v39 = vld [vmem:[#allocation8 + $0x130] sm:$0xff]  ;;  %v9839_v22 = vld [vmem:[#allocation8 + $0x108] sm:$0xff] }
 0x827   :  { %4603 = vmatprep.subr.mxu0 %v9827_v36  ;;  %4674 = vmatprep.subr.mxu1 %v9830_v43  ;;  %11949 = vst [vmem:[#allocation131_spill] sm:$0xff] %v9833_v4  ;;  %11950 = vst [vmem:[#allocation132_spill] sm:$0xff] %v9836_v39  ;;  %v9842_v0 = vld [vmem:[#allocation8 + $0x118] sm:$0xff]  ;;  %v9845_v36 = vld [vmem:[#allocation8 + $0x100] sm:$0xff] }
 0x828   :  { %4604 = vmatpush1.msra.mxu0 %v9833_v4  ;;  %4675 = vmatpush1.msra.mxu1 %v9836_v39  ;;  %11951 = vst [vmem:[#allocation133_spill] sm:$0xff] %v9839_v22  ;;  %11952 = vst [vmem:[#allocation134_spill] sm:$0xff] %v9842_v0  ;;  %v9848_v43 = vld [vmem:[#allocation8 + $0x110] sm:$0xff]  ;;  %v9851_v4 = vld [vmem:[#allocation8 + $0xe8] sm:$0xff] }
 0x829   :  { %4605 = vmatprep.subr.mxu0 %v9839_v22  ;;  %4676 = vmatprep.subr.mxu1 %v9842_v0  ;;  %11953 = vst [vmem:[#allocation135_spill] sm:$0xff] %v9845_v36  ;;  %11954 = vst [vmem:[#allocation136_spill] sm:$0xff] %v9848_v43  ;;  %v9854_v39 = vld [vmem:[#allocation8 + $0xf8] sm:$0xff]  ;;  %v9857_v22 = vld [vmem:[#allocation8 + $0xe0] sm:$0xff] }
 0x82a   :  { %4606 = vmatpush1.msra.mxu0 %v9845_v36  ;;  %4677 = vmatpush1.msra.mxu1 %v9848_v43  ;;  %11955 = vst [vmem:[#allocation137_spill] sm:$0xff] %v9851_v4  ;;  %11956 = vst [vmem:[#allocation138_spill] sm:$0xff] %v9854_v39  ;;  %v9860_v0 = vld [vmem:[#allocation8 + $0xf0] sm:$0xff]  ;;  %v9863_v36 = vld [vmem:[#allocation8 + $0xc8] sm:$0xff] }
 0x82b   :  { %4607 = vmatprep.subr.mxu0 %v9851_v4  ;;  %4678 = vmatprep.subr.mxu1 %v9854_v39  ;;  %11957 = vst [vmem:[#allocation139_spill] sm:$0xff] %v9857_v22  ;;  %11958 = vst [vmem:[#allocation140_spill] sm:$0xff] %v9860_v0  ;;  %v9866_v43 = vld [vmem:[#allocation8 + $0xd8] sm:$0xff]  ;;  %v5685_v4 = vpop.eup %5684  ;;  %v9869_v8 = vld [vmem:[#allocation8 + $0xc0] sm:$0xff] }
 0x82c   :  { %4608 = vmatpush1.msra.mxu0 %v9857_v22  ;;  %4679 = vmatpush1.msra.mxu1 %v9860_v0  ;;  %11959 = vst [vmem:[#allocation141_spill] sm:$0xff] %v9863_v36  ;;  %11960 = vst [vmem:[#allocation142_spill] sm:$0xff] %v9866_v43  ;;  %v9872_v39 = vld [vmem:[#allocation8 + $0xd0] sm:$0xff]  ;;  %v9875_v25 = vld [vmem:[#allocation8 + $0xa8] sm:$0xff] }
 0x82d   :  { %4609 = vmatprep.subr.mxu0 %v9863_v36  ;;  %4680 = vmatprep.subr.mxu1 %v9866_v43  ;;  %11961 = vst [vmem:[#allocation143_spill] sm:$0xff] %v9869_v8  ;;  %11962 = vst [vmem:[#allocation144_spill] sm:$0xff] %v9872_v39  ;;  %v9878_v0 = vld [vmem:[#allocation8 + $0xb8] sm:$0xff]  ;;  %v9881_v43 = vld [vmem:[#allocation8 + $0xa0] sm:$0xff] }
 0x82e   :  { %4610 = vmatpush1.msra.mxu0 %v9869_v8  ;;  %4681 = vmatpush1.msra.mxu1 %v9872_v39  ;;  %11963 = vst [vmem:[#allocation145_spill] sm:$0xff] %v9875_v25  ;;  %11964 = vst [vmem:[#allocation146_spill] sm:$0xff] %v9878_v0  ;;  %v4441_v39 = vadd.f32 1.0, %v5685_v4  ;;  %v9900_v4 = vld [vmem:[#allocation8 + $0x68] sm:$0xff] }
 0x82f   :  { %v5687_v22 = vpop.eup %5686  ;;  %4611 = vmatprep.subr.mxu0 %v9875_v25  ;;  %4682 = vmatprep.subr.mxu1 %v9878_v0  ;;  %11965 = vst [vmem:[#allocation147_spill] sm:$0xff] %v9881_v43  ;;  %v9890_v25 = vld [vmem:[#allocation8 + $0x98] sm:$0xff] }
 0x830   :  { %v5689_v36 = vpop.eup %5688  ;;  %4612 = vmatpush1.msra.mxu0 %v9881_v43  ;;  %4683 = vmatpush1.msra.mxu1 %v9884_v23  ;;  %11967 = vst [vmem:[#allocation149_spill] sm:$0xff] %v9890_v25  ;;  %v9897_v43 = vld [vmem:[#allocation8 + $0x90] sm:$0xff]  ;;  %5692 = vrcp.f32 %v4441_v39  ;;  %v9930_v39 = vld [vmem:[#allocation8 + $0x38] sm:$0xff] }
 0x831   :  { %v5691_v8 = vpop.eup %5690  ;;  %4613 = vmatprep.subr.mxu0 %v9887_v61  ;;  %4684 = vmatprep.subr.mxu1 %v9890_v25  ;;  %v4445_v0 = vmul.f32 %v5689_v36, %v5687_v22  ;;  %v9903_v61 = vld [vmem:[#allocation8 + $0x78] sm:$0xff]  ;;  %v9906_v25 = vld [vmem:[#allocation8 + $0x60] sm:$0xff]  ;;  %11974 = vst [vmem:[#allocation156_spill] sm:$0xff] %v9930_v39 }
 0x832   :  { %v4444_v58 = vmul.f32 %v5691_v8, %v9280_v27  ;;  %4614 = vmatpush1.msra.mxu0 %v9894_v17  ;;  %4685 = vmatpush1.msra.mxu1 %v9897_v43  ;;  %11968 = vst [vmem:[#allocation150_spill] sm:$0xff] %v9903_v61  ;;  %11969 = vst [vmem:[#allocation151_spill] sm:$0xff] %v9906_v25  ;;  %v9909_v27 = vld [vmem:[#allocation8 + $0x70] sm:$0xff]  ;;  %v9914_v8 = vld [vmem:[#allocation8 + $0x48] sm:$0xff] }
 0x833   :  { %4615 = vmatprep.subr.mxu0 %v9900_v4  ;;  %4686 = vmatprep.subr.mxu1 %v9903_v61  ;;  %v9917_v36 = vld [vmem:[#allocation8 + $0x58] sm:$0xff]  ;;  %v9920_v61 = vld [vmem:[#allocation8 + $0x40] sm:$0xff] }
 0x834   :  { %4616 = vmatpush1.msra.mxu0 %v9906_v25  ;;  %4687 = vmatpush1.msra.mxu1 %v9909_v27  ;;  %v9912_v22 = vadd.f32 %v4445_v0, %v4444_v58  ;;  %11970 = vst [vmem:[#allocation152_spill] sm:$0xff] %v9917_v36  ;;  %11971 = vst [vmem:[#allocation153_spill] sm:$0xff] %v9920_v61  ;;  %v9923_v25 = vld [vmem:[#allocation8 + $0x50] sm:$0xff]  ;;  %v9927_v58 = vld [vmem:[#allocation8 + $0x28] sm:$0xff] }
 0x835   :  { %4617 = vmatprep.subr.mxu0 %v9914_v8  ;;  %4688 = vmatprep.subr.mxu1 %v9917_v36  ;;  %11972 = vst [vmem:[#allocation154_spill] sm:$0xff] %v9923_v25  ;;  %11973 = vst [vmem:[#allocation155_spill] sm:$0xff] %v9927_v58  ;;  %v9933_v0 = vld [vmem:[#allocation8 + $0x20] sm:$0xff]  ;;  %v9936_v36 = vld [vmem:[#allocation8 + $0x30] sm:$0xff] }
 0x836   :  { %4618 = vmatpush1.msra.mxu0 %v9920_v61  ;;  %4689 = vmatpush1.msra.mxu1 %v9923_v25  ;;  %5694 = vtanh.f32 %v9912_v22  ;;  %11975 = vst [vmem:[#allocation157_spill] sm:$0xff] %v9933_v0  ;;  %11976 = vst [vmem:[#allocation158_spill] sm:$0xff] %v9936_v36  ;;  %v9939_v61 = vld [vmem:[#allocation8 + $0x8] sm:$0xff]  ;;  %v9942_v25 = vld [vmem:[#allocation8 + $0x18] sm:$0xff] }
 0x837   :  { %4619 = vmatprep.subr.mxu0 %v9927_v58  ;;  %4690 = vmatprep.subr.mxu1 %v9930_v39  ;;  %11977 = vst [vmem:[#allocation159_spill] sm:$0xff] %v9939_v61  ;;  %v9945_v58 = vld [vmem:[#allocation8] sm:$0xff]  ;;  %v9948_v39 = vld [vmem:[#allocation8 + $0x10] sm:$0xff] }
 0x838   :  { %4620 = vmatpush1.msra.mxu0 %v9933_v0  ;;  %4691 = vmatpush1.msra.mxu1 %v9936_v36 }
 0x839   :  { %4621 = vmatprep.subr.mxu0 %v9939_v61  ;;  %4692 = vmatprep.subr.mxu1 %v9942_v25 }
 0x83a   :  { %4622 = vmatpush1.msra.mxu0 %v9945_v58  ;;  %4693 = vmatpush1.msra.mxu1 %v9948_v39 }
 0x83b   :  { %4655 = vmatprep.mubr.f32.mxu0 %v11037_v20  ;;  %4726 = vmatprep.mubr.f32.mxu1 %v11037_v20 }
 0x83c   :  { %4765 = vmatprep.subr.mxu0 %v9297_v10  ;;  %4836 = vmatprep.subr.mxu1 %v9300_v54  ;;  %v11978_v10 = vld [vmem:[#allocation166_spill] sm:$0xff]  ;;  %v11979_v54 = vld [vmem:[#allocation167_spill] sm:$0xff] }
 0x83d   :  { %v5693_v61 = vpop.eup %5692 }
 0x843   :  { %v5695_v36 = vpop.eup %5694 }
 0x844   :  { %v9955_v0 = vmul.f32 %v5695_v36, %v5693_v61  ;;  %v12011_v61 = vld [vmem:[#allocation43_spill] sm:$0xff]  ;;  %v12012_v36 = vld [vmem:[#allocation34_spill] sm:$0xff] }
 0x846   :  { %4656 = vmatmul.mubr.f32.vlgmr.msra.gmra.mxu0 %v9955_v0  ;;  %4727 = vmatmul.mubr.f32.vlgmr.msra.gmra.mxu1 %v9955_v0 }
 0x847   :  { %4766 = vmatpush1.msra.mxu0 %v9307_v40  ;;  %4837 = vmatpush1.msra.mxu1 %v9310_v13  ;;  %v11980_v40 = vld [vmem:[#allocation168_spill] sm:$0xff]  ;;  %v11981_v13 = vld [vmem:[#allocation169_spill] sm:$0xff] }
 0x848   :  { %4767 = vmatprep.subr.mxu0 %v9313_v60  ;;  %4838 = vmatprep.subr.mxu1 %v9316_v44  ;;  %v11982_v60 = vld [vmem:[#allocation170_spill] sm:$0xff]  ;;  %v11983_v44 = vld [vmem:[#allocation171_spill] sm:$0xff] }
 0x849   :  { %4768 = vmatpush1.msra.mxu0 %v9319_v29  ;;  %4839 = vmatpush1.msra.mxu1 %v9322_v30  ;;  %v11984_v29 = vld [vmem:[#allocation172_spill] sm:$0xff]  ;;  %v11985_v30 = vld [vmem:[#allocation173_spill] sm:$0xff] }
 0x84a   :  { %4769 = vmatprep.subr.mxu0 %v9325_v18  ;;  %4840 = vmatprep.subr.mxu1 %v9328_v31  ;;  %v11986_v18 = vld [vmem:[#allocation174_spill] sm:$0xff]  ;;  %v11987_v31 = vld [vmem:[#allocation175_spill] sm:$0xff] }
 0x84b   :  { %4770 = vmatpush1.msra.mxu0 %v9331_v32  ;;  %4841 = vmatpush1.msra.mxu1 %v9334_v33  ;;  %v11988_v32 = vld [vmem:[#allocation176_spill] sm:$0xff]  ;;  %v11989_v33 = vld [vmem:[#allocation177_spill] sm:$0xff] }
 0x84c   :  { %4771 = vmatprep.subr.mxu0 %v9337_v34  ;;  %4842 = vmatprep.subr.mxu1 %v9340_v42  ;;  %v11990_v34 = vld [vmem:[#allocation16_spill] sm:$0xff] }
 0x84d   :  { %4772 = vmatpush1.msra.mxu0 %v9343_v57  ;;  %4843 = vmatpush1.msra.mxu1 %v9346_v19  ;;  %v11991_v42 = vld [vmem:[#allocation20_spill] sm:$0xff]  ;;  %v11992_v57 = vld [vmem:[#allocation17_spill] sm:$0xff]  ;;  %v11993_v19 = vld [vmem:[#allocation22_spill] sm:$0xff] }
 0x84e   :  { %4773 = vmatprep.subr.mxu0 %v9349_v11  ;;  %4844 = vmatprep.subr.mxu1 %v9352_v7  ;;  %v11994_v11 = vld [vmem:[#allocation18_spill] sm:$0xff]  ;;  %v11995_v7 = vld [vmem:[#allocation24_spill] sm:$0xff] }
 0x84f   :  { %4774 = vmatpush1.msra.mxu0 %v9355_v3  ;;  %4845 = vmatpush1.msra.mxu1 %v9358_v14  ;;  %v11996_v3 = vld [vmem:[#allocation19_spill] sm:$0xff]  ;;  %v11997_v14 = vld [vmem:[#allocation26_spill] sm:$0xff] }
 0x850   :  { %4775 = vmatprep.subr.mxu0 %v9361_v41  ;;  %4846 = vmatprep.subr.mxu1 %v9364_v49  ;;  %v11998_v41 = vld [vmem:[#allocation21_spill] sm:$0xff]  ;;  %v11999_v49 = vld [vmem:[#allocation28_spill] sm:$0xff] }
 0x851   :  { %4776 = vmatpush1.msra.mxu0 %v9367_v51  ;;  %4847 = vmatpush1.msra.mxu1 %v9370_v62  ;;  %v12000_v51 = vld [vmem:[#allocation23_spill] sm:$0xff]  ;;  %v12001_v62 = vld [vmem:[#allocation30_spill] sm:$0xff] }
 0x852   :  { %4777 = vmatprep.subr.mxu0 %v9373_v1  ;;  %4848 = vmatprep.subr.mxu1 %v9376_v56  ;;  %v12002_v1 = vld [vmem:[#allocation25_spill] sm:$0xff] }
 0x853   :  { %4778 = vmatpush1.msra.mxu0 %v9379_v48  ;;  %4849 = vmatpush1.msra.mxu1 %v9382_v50  ;;  %v12003_v56 = vld [vmem:[#allocation33_spill] sm:$0xff]  ;;  %v12004_v48 = vld [vmem:[#allocation27_spill] sm:$0xff] }
 0x854   :  { %4779 = vmatprep.subr.mxu0 %v9385_v47  ;;  %4850 = vmatprep.subr.mxu1 %v9388_v2  ;;  %v12005_v50 = vld [vmem:[#allocation35_spill] sm:$0xff]  ;;  %v12006_v47 = vld [vmem:[#allocation29_spill] sm:$0xff]  ;;  %v12007_v2 = vld [vmem:[#allocation38_spill] sm:$0xff] }
 0x855   :  { %4780 = vmatpush1.msra.mxu0 %v9391_v5  ;;  %4851 = vmatpush1.msra.mxu1 %v9394_v15  ;;  %v12008_v5 = vld [vmem:[#allocation31_spill] sm:$0xff]  ;;  %v12009_v15 = vld [vmem:[#allocation40_spill] sm:$0xff] }
 0x856   :  { %4781 = vmatprep.subr.mxu0 %v9397_v16  ;;  %4852 = vmatprep.subr.mxu1 %v11978_v10  ;;  %v12010_v16 = vld [vmem:[#allocation32_spill] sm:$0xff] }
 0x857   :  { %4782 = vmatpush1.msra.mxu0 %v11979_v54  ;;  %4853 = vmatpush1.msra.mxu1 %v11980_v40  ;;  %v12013_v10 = vld [vmem:[#allocation44_spill] sm:$0xff]  ;;  %v12015_v40 = vld [vmem:[#allocation45_spill] sm:$0xff] }
 0x858   :  { %4783 = vmatprep.subr.mxu0 %v11981_v13  ;;  %4854 = vmatprep.subr.mxu1 %v11982_v60  ;;  %v12014_v54 = vld [vmem:[#allocation36_spill] sm:$0xff]  ;;  %v12016_v13 = vld [vmem:[#allocation37_spill] sm:$0xff]  ;;  %v12017_v60 = vld [vmem:[#allocation46_spill] sm:$0xff] }
 0x859   :  { %4784 = vmatpush1.msra.mxu0 %v11983_v44  ;;  %4855 = vmatpush1.msra.mxu1 %v11984_v29  ;;  %v12018_v44 = vld [vmem:[#allocation39_spill] sm:$0xff]  ;;  %v12020_v29 = vld [vmem:[#allocation41_spill] sm:$0xff] }
 0x85a   :  { %4785 = vmatprep.subr.mxu0 %v11985_v30  ;;  %4856 = vmatprep.subr.mxu1 %v11986_v18  ;;  %v12021_v30 = vld [vmem:[#allocation48_spill] sm:$0xff]  ;;  %v12022_v18 = vld [vmem:[#allocation42_spill] sm:$0xff] }
 0x85b   :  { %4786 = vmatpush1.msra.mxu0 %v11987_v31  ;;  %4857 = vmatpush1.msra.mxu1 %v11988_v32  ;;  %v4764_v31 = vld [vmem:[#allocation2 + $0x38] sm:$0xff]  ;;  %v12023_v32 = vld [vmem:[#allocation49_spill] sm:$0xff] }
 0x85c   :  { %4787 = vmatprep.subr.mxu0 %v11989_v33  ;;  %4858 = vmatprep.subr.mxu1 %v11990_v34  ;;  %v12024_v33 = vld [vmem:[#allocation50_spill] sm:$0xff]  ;;  %v12025_v34 = vld [vmem:[#allocation52_spill] sm:$0xff] }
 0x85d   :  { %4788 = vmatpush1.msra.mxu0 %v11991_v42  ;;  %4859 = vmatpush1.msra.mxu1 %v11992_v57  ;;  %v12026_v42 = vld [vmem:[#allocation51_spill] sm:$0xff]  ;;  %v12027_v57 = vld [vmem:[#allocation54_spill] sm:$0xff] }
 0x85e   :  { %4789 = vmatprep.subr.mxu0 %v11993_v19  ;;  %4860 = vmatprep.subr.mxu1 %v11994_v11  ;;  %v12028_v19 = vld [vmem:[#allocation53_spill] sm:$0xff]  ;;  %v12029_v11 = vld [vmem:[#allocation56_spill] sm:$0xff] }
 0x85f   :  { %4790 = vmatpush1.msra.mxu0 %v11995_v7  ;;  %4861 = vmatpush1.msra.mxu1 %v11996_v3  ;;  %v12030_v7 = vld [vmem:[#allocation55_spill] sm:$0xff]  ;;  %v12031_v3 = vld [vmem:[#allocation58_spill] sm:$0xff] }
 0x860   :  { %4791 = vmatprep.subr.mxu0 %v11997_v14  ;;  %4862 = vmatprep.subr.mxu1 %v11998_v41  ;;  %v12032_v14 = vld [vmem:[#allocation57_spill] sm:$0xff]  ;;  %v12033_v41 = vld [vmem:[#allocation60_spill] sm:$0xff] }
 0x861   :  { %4792 = vmatpush1.msra.mxu0 %v11999_v49  ;;  %4863 = vmatpush1.msra.mxu1 %v12000_v51  ;;  %v12034_v49 = vld [vmem:[#allocation59_spill] sm:$0xff]  ;;  %v12035_v51 = vld [vmem:[#allocation62_spill] sm:$0xff] }
 0x862   :  { %4793 = vmatprep.subr.mxu0 %v12001_v62  ;;  %4864 = vmatprep.subr.mxu1 %v12002_v1  ;;  %v12036_v62 = vld [vmem:[#allocation61_spill] sm:$0xff]  ;;  %v12037_v1 = vld [vmem:[#allocation64_spill] sm:$0xff] }
 0x863   :  { %4794 = vmatpush1.msra.mxu0 %v12003_v56  ;;  %4865 = vmatpush1.msra.mxu1 %v12004_v48  ;;  %v12038_v56 = vld [vmem:[#allocation63_spill] sm:$0xff]  ;;  %v12039_v48 = vld [vmem:[#allocation66_spill] sm:$0xff] }
 0x864   :  { %4795 = vmatprep.subr.mxu0 %v12005_v50  ;;  %4866 = vmatprep.subr.mxu1 %v12006_v47  ;;  %v12040_v50 = vld [vmem:[#allocation65_spill] sm:$0xff]  ;;  %v12041_v47 = vld [vmem:[#allocation68_spill] sm:$0xff] }
 0x865   :  { %4796 = vmatpush1.msra.mxu0 %v12007_v2  ;;  %4829 = vmatprep.mubr.f32.mxu0 %v11037_v20  ;;  %v12042_v2 = vld [vmem:[#allocation67_spill] sm:$0xff] }
 0x866   :  { %4867 = vmatpush1.msra.mxu1 %v12008_v5  ;;  %4900 = vmatprep.mubr.f32.mxu1 %v11037_v20  ;;  %v12043_v5 = vld [vmem:[#allocation70_spill] sm:$0xff] }
 0x867   :  { %4830 = vmatmul.mubr.f32.vlgmr.msra.gmra.mxu0 %v9955_v0  ;;  %4901 = vmatmul.mubr.f32.vlgmr.msra.gmra.mxu1 %v9955_v0  ;;  %v12019_v0 = vld [vmem:[#allocation47_spill] sm:$0xff] }
 0x868   :  { %4934 = vmatprep.subr.mxu0 %v12009_v15  ;;  %5005 = vmatprep.subr.mxu1 %v12010_v16  ;;  %v12044_v15 = vld [vmem:[#allocation69_spill] sm:$0xff]  ;;  %v12045_v16 = vld [vmem:[#allocation72_spill] sm:$0xff] }
 0x869   :  { %4935 = vmatpush1.msra.mxu0 %v12011_v61  ;;  %5006 = vmatpush1.msra.mxu1 %v12012_v36  ;;  %v12046_v61 = vld [vmem:[#allocation71_spill] sm:$0xff]  ;;  %v12047_v36 = vld [vmem:[#allocation74_spill] sm:$0xff] }
 0x86a   :  { %4936 = vmatprep.subr.mxu0 %v12013_v10  ;;  %5007 = vmatprep.subr.mxu1 %v12014_v54  ;;  %v12048_v10 = vld [vmem:[#allocation73_spill] sm:$0xff]  ;;  %v12049_v54 = vld [vmem:[#allocation76_spill] sm:$0xff] }
 0x86b   :  { %4937 = vmatpush1.msra.mxu0 %v12015_v40  ;;  %5008 = vmatpush1.msra.mxu1 %v12016_v13  ;;  %v12050_v40 = vld [vmem:[#allocation75_spill] sm:$0xff]  ;;  %v12051_v13 = vld [vmem:[#allocation78_spill] sm:$0xff] }
 0x86c   :  { %4938 = vmatprep.subr.mxu0 %v12017_v60  ;;  %5009 = vmatprep.subr.mxu1 %v12018_v44  ;;  %v12052_v60 = vld [vmem:[#allocation77_spill] sm:$0xff]  ;;  %v12053_v44 = vld [vmem:[#allocation80_spill] sm:$0xff] }
 0x86d   :  { %4939 = vmatpush1.msra.mxu0 %v12019_v0  ;;  %5010 = vmatpush1.msra.mxu1 %v12020_v29  ;;  %v12054_v0 = vld [vmem:[#allocation79_spill] sm:$0xff]  ;;  %v12055_v29 = vld [vmem:[#allocation82_spill] sm:$0xff] }
 0x86e   :  { %4940 = vmatprep.subr.mxu0 %v12021_v30  ;;  %5011 = vmatprep.subr.mxu1 %v12022_v18  ;;  %v12056_v30 = vld [vmem:[#allocation81_spill] sm:$0xff]  ;;  %v12057_v18 = vld [vmem:[#allocation84_spill] sm:$0xff] }
 0x86f   :  { %4941 = vmatpush1.msra.mxu0 %v12023_v32  ;;  %4974 = vmatprep.mubr.f32.mxu0 %v11037_v20  ;;  %v12059_v32 = vld [vmem:[#allocation86_spill] sm:$0xff] }
 0x870   :  { %5012 = vmatpush1.msra.mxu1 %v12024_v33  ;;  %5045 = vmatprep.mubr.f32.mxu1 %v11037_v20  ;;  %v12060_v33 = vld [vmem:[#allocation85_spill] sm:$0xff] }
 0x871   :  { %5469 = vmatmul.mubr.msk.f32.vlgmr.msra.gmra.mxu0 %vm448_vm0, %v4764_v31  ;;  %5470 = vmatmul.mubr.msk.f32.vlgmr.msra.gmra.mxu1 %vm448_vm0, %v4764_v31  ;;  %v12058_v31 = vld [vmem:[#allocation83_spill] sm:$0xff] }
 0x872   :  { %5080 = vmatprep.subr.mxu0 %v12025_v34  ;;  %5151 = vmatprep.subr.mxu1 %v12026_v42  ;;  %v12061_v34 = vld [vmem:[#allocation88_spill] sm:$0xff]  ;;  %v12062_v42 = vld [vmem:[#allocation87_spill] sm:$0xff] }
 0x873   :  { %5081 = vmatpush1.msra.mxu0 %v12027_v57  ;;  %5152 = vmatpush1.msra.mxu1 %v12028_v19  ;;  %v12063_v57 = vld [vmem:[#allocation90_spill] sm:$0xff]  ;;  %v12064_v19 = vld [vmem:[#allocation89_spill] sm:$0xff] }
 0x874   :  { %5082 = vmatprep.subr.mxu0 %v12029_v11  ;;  %5153 = vmatprep.subr.mxu1 %v12030_v7  ;;  %v12065_v11 = vld [vmem:[#allocation92_spill] sm:$0xff]  ;;  %v12066_v7 = vld [vmem:[#allocation91_spill] sm:$0xff] }
 0x875   :  { %5083 = vmatpush1.msra.mxu0 %v12031_v3  ;;  %5154 = vmatpush1.msra.mxu1 %v12032_v14  ;;  %v12067_v3 = vld [vmem:[#allocation94_spill] sm:$0xff]  ;;  %v12068_v14 = vld [vmem:[#allocation93_spill] sm:$0xff] }
 0x876   :  { %5084 = vmatprep.subr.mxu0 %v12033_v41  ;;  %5155 = vmatprep.subr.mxu1 %v12034_v49  ;;  %v12069_v41 = vld [vmem:[#allocation96_spill] sm:$0xff]  ;;  %v12070_v49 = vld [vmem:[#allocation95_spill] sm:$0xff] }
 0x877   :  { %5085 = vmatpush1.msra.mxu0 %v12035_v51  ;;  %5156 = vmatpush1.msra.mxu1 %v12036_v62  ;;  %v12071_v51 = vld [vmem:[#allocation98_spill] sm:$0xff]  ;;  %v12072_v62 = vld [vmem:[#allocation97_spill] sm:$0xff] }
 0x878   :  { %5086 = vmatprep.subr.mxu0 %v12037_v1  ;;  %5157 = vmatprep.subr.mxu1 %v12038_v56  ;;  %v12073_v1 = vld [vmem:[#allocation100_spill] sm:$0xff]  ;;  %v12074_v56 = vld [vmem:[#allocation99_spill] sm:$0xff] }
 0x879   :  { %5087 = vmatpush1.msra.mxu0 %v12039_v48  ;;  %5158 = vmatpush1.msra.mxu1 %v12040_v50  ;;  %v12075_v48 = vld [vmem:[#allocation102_spill] sm:$0xff]  ;;  %v12076_v50 = vld [vmem:[#allocation101_spill] sm:$0xff] }
 0x87a   :  { %5088 = vmatprep.subr.mxu0 %v12041_v47  ;;  %5159 = vmatprep.subr.mxu1 %v12042_v2  ;;  %v12077_v47 = vld [vmem:[#allocation104_spill] sm:$0xff]  ;;  %v12078_v2 = vld [vmem:[#allocation103_spill] sm:$0xff] }
 0x87b   :  { %5089 = vmatpush1.msra.mxu0 %v12043_v5  ;;  %5160 = vmatpush1.msra.mxu1 %v12044_v15  ;;  %v12079_v5 = vld [vmem:[#allocation106_spill] sm:$0xff]  ;;  %v12080_v15 = vld [vmem:[#allocation105_spill] sm:$0xff] }
 0x87c   :  { %5090 = vmatprep.subr.mxu0 %v12045_v16  ;;  %5161 = vmatprep.subr.mxu1 %v12046_v61  ;;  %v12081_v16 = vld [vmem:[#allocation108_spill] sm:$0xff]  ;;  %v12082_v61 = vld [vmem:[#allocation107_spill] sm:$0xff] }
 0x87d   :  { %5091 = vmatpush1.msra.mxu0 %v12047_v36  ;;  %5162 = vmatpush1.msra.mxu1 %v12048_v10  ;;  %v12083_v36 = vld [vmem:[#allocation110_spill] sm:$0xff]  ;;  %v12084_v10 = vld [vmem:[#allocation109_spill] sm:$0xff] }
 0x87e   :  { %5092 = vmatprep.subr.mxu0 %v12049_v54  ;;  %5163 = vmatprep.subr.mxu1 %v12050_v40  ;;  %v12085_v54 = vld [vmem:[#allocation112_spill] sm:$0xff]  ;;  %v12086_v40 = vld [vmem:[#allocation111_spill] sm:$0xff] }
 0x87f   :  { %5093 = vmatpush1.msra.mxu0 %v12051_v13  ;;  %5164 = vmatpush1.msra.mxu1 %v12052_v60  ;;  %v12087_v13 = vld [vmem:[#allocation113_spill] sm:$0xff]  ;;  %v12088_v60 = vld [vmem:[#allocation114_spill] sm:$0xff] }
 0x880   :  { %5094 = vmatprep.subr.mxu0 %v12053_v44  ;;  %5165 = vmatprep.subr.mxu1 %v12054_v0  ;;  %v12089_v44 = vld [vmem:[#allocation115_spill] sm:$0xff]  ;;  %v12090_v0 = vld [vmem:[#allocation178_spill] sm:$0xff] }
 0x881   :  { %5095 = vmatpush1.msra.mxu0 %v12055_v29  ;;  %5166 = vmatpush1.msra.mxu1 %v12056_v30 }
 0x882   :  { %5096 = vmatprep.subr.mxu0 %v12057_v18  ;;  %5167 = vmatprep.subr.mxu1 %v12058_v31 }
 0x883   :  { %5097 = vmatpush1.msra.mxu0 %v12059_v32  ;;  %5168 = vmatpush1.msra.mxu1 %v12060_v33 }
 0x884   :  { %5098 = vmatprep.subr.mxu0 %v12061_v34  ;;  %5169 = vmatprep.subr.mxu1 %v12062_v42 }
 0x885   :  { %5099 = vmatpush1.msra.mxu0 %v12063_v57  ;;  %5170 = vmatpush1.msra.mxu1 %v12064_v19 }
 0x886   :  { %5100 = vmatprep.subr.mxu0 %v12065_v11  ;;  %5171 = vmatprep.subr.mxu1 %v12066_v7 }
 0x887   :  { %5101 = vmatpush1.msra.mxu0 %v12067_v3  ;;  %5172 = vmatpush1.msra.mxu1 %v12068_v14 }
 0x888   :  { %5102 = vmatprep.subr.mxu0 %v12069_v41  ;;  %5173 = vmatprep.subr.mxu1 %v12070_v49 }
 0x889   :  { %5103 = vmatpush1.msra.mxu0 %v12071_v51  ;;  %5174 = vmatpush1.msra.mxu1 %v12072_v62 }
 0x88a   :  { %5104 = vmatprep.subr.mxu0 %v12073_v1  ;;  %5175 = vmatprep.subr.mxu1 %v12074_v56 }
 0x88b   :  { %5105 = vmatpush1.msra.mxu0 %v12075_v48  ;;  %5176 = vmatpush1.msra.mxu1 %v12076_v50 }
 0x88c   :  { %5106 = vmatprep.subr.mxu0 %v12077_v47  ;;  %5177 = vmatprep.subr.mxu1 %v12078_v2 }
 0x88d   :  { %5107 = vmatpush1.msra.mxu0 %v12079_v5  ;;  %5178 = vmatpush1.msra.mxu1 %v12080_v15 }
 0x88e   :  { %5108 = vmatprep.subr.mxu0 %v12081_v16  ;;  %5179 = vmatprep.subr.mxu1 %v12082_v61 }
 0x88f   :  { %5109 = vmatpush1.msra.mxu0 %v12083_v36  ;;  %5180 = vmatpush1.msra.mxu1 %v12084_v10 }
 0x890   :  { %5110 = vmatprep.subr.mxu0 %v12085_v54  ;;  %5181 = vmatprep.subr.mxu1 %v12086_v40 }
 0x891   :  { %5111 = vmatpush1.msra.mxu0 %v12087_v13  ;;  %5144 = vmatprep.mubr.f32.mxu0 %v11037_v20 }
 0x892   :  { %5182 = vmatpush1.msra.mxu1 %v12088_v60  ;;  %5215 = vmatprep.mubr.f32.mxu1 %v11037_v20 }
 0x893   :  { %5222 = vmatprep.subr.mxu0 %v12089_v44  ;;  %5293 = vmatprep.subr.mxu1 %v12090_v0 }
 0x8db   :  { %v4515_v29 = vpop.f32.mrf.mxu0  ;;  %v4586_v30 = vpop.f32.mrf.mxu1 }
 0x8dd   :  { %v4517_v18 = vpop.f32.mrf.mxu0  ;;  %v4588_v32 = vpop.f32.mrf.mxu1 }
 0x906   :  { %v4657_v31 = vpop.f32.mrf.mxu0  ;;  %v4728_v57 = vpop.f32.mrf.mxu1 }
 0x907   :  { %v4658_v33 = vadd.f32 %v4657_v31, %v4515_v29  ;;  %v4729_v51 = vadd.f32 %v4728_v57, %v4586_v30 }
 0x908   :  { %v4659_v34 = vpop.f32.mrf.mxu0  ;;  %v4730_v14 = vpop.f32.mrf.mxu1 }
 0x909   :  { %v4733_v42 = vadd.f32 %v4658_v33, %v7412_v53  ;;  %v4660_v19 = vadd.f32 %v4659_v34, %v4517_v18  ;;  %v4731_v41 = vadd.f32 %v4730_v14, %v4588_v32  ;;  %v4735_v56 = vadd.f32 %v4729_v51, %v7427_v12  ;;  %v12099_v51 = vld [vmem:[#allocation123_spill] sm:$0xff] }
 0x90b   :  { %v5466_v11 = vmul.f32 -1.442695, %v4733_v42  ;;  %v4734_v7 = vadd.f32 %v4660_v19, %v7416_v46  ;;  %v4736_v49 = vadd.f32 %v4731_v41, %v7422_v9 }
 0x90d   :  { %5696 = vpow2.f32 %v5466_v11  ;;  %v5467_v3 = vmul.f32 -1.442695, %v4734_v7  ;;  %v5468_v62 = vmul.f32 -1.442695, %v4736_v49 }
 0x90f   :  { %5698 = vpow2.f32 %v5467_v3 }
 0x910   :  { %5700 = vpow2.f32 %v5468_v62  ;;  %v12100_v62 = vld [vmem:[#allocation124_spill] sm:$0xff] }
 0x91a   :  { %v5697_v1 = vpop.eup %5696 }
 0x91b   :  { %v4740_v48 = vadd.f32 1.0, %v5697_v1  ;;  %v12101_v1 = vld [vmem:[#allocation125_spill] sm:$0xff] }
 0x91c   :  { %v5699_v50 = vpop.eup %5698 }
 0x91d   :  { %5702 = vrcp.f32 %v4740_v48  ;;  %v4746_v47 = vadd.f32 1.0, %v5699_v50  ;;  %v5701_v2 = vpop.eup %5700  ;;  %v12103_v48 = vld [vmem:[#allocation127_spill] sm:$0xff]  ;;  %v12104_v50 = vld [vmem:[#allocation128_spill] sm:$0xff] }
 0x91e   :  { %5704 = vtanh.f32 %v4735_v56  ;;  %v4753_v36 = vadd.f32 1.0, %v5701_v2  ;;  %v12102_v56 = vld [vmem:[#allocation126_spill] sm:$0xff] }
 0x91f   :  { %5706 = vrcp.f32 %v4746_v47  ;;  %v12105_v47 = vld [vmem:[#allocation129_spill] sm:$0xff]  ;;  %v12106_v2 = vld [vmem:[#allocation130_spill] sm:$0xff] }
 0x920   :  { %5708 = vrcp.f32 %v4753_v36  ;;  %v12111_v36 = vld [vmem:[#allocation135_spill] sm:$0xff] }
 0x927   :  { %v4831_v16 = vpop.f32.mrf.mxu0  ;;  %v4902_v40 = vpop.f32.mrf.mxu1 }
 0x929   :  { %v4833_v13 = vpop.f32.mrf.mxu0  ;;  %v4904_v0 = vpop.f32.mrf.mxu1 }
 0x92a   :  { %v5703_v5 = vpop.eup %5702 }
 0x92b   :  { %v5705_v15 = vpop.eup %5704 }
 0x92c   :  { %v5707_v61 = vpop.eup %5706  ;;  %v4757_v10 = vmul.f32 %v5705_v15, %v5703_v5  ;;  %v12107_v5 = vld [vmem:[#allocation131_spill] sm:$0xff]  ;;  %v12108_v15 = vld [vmem:[#allocation132_spill] sm:$0xff] }
 0x92d   :  { %v4756_v54 = vmul.f32 %v5707_v61, %v9754_v28  ;;  %v5709_v19 = vpop.eup %5708  ;;  %v12110_v61 = vld [vmem:[#allocation134_spill] sm:$0xff] }
 0x92f   :  { %v10118_v60 = vadd.f32 %v4757_v10, %v4756_v54  ;;  %v12112_v10 = vld [vmem:[#allocation136_spill] sm:$0xff]  ;;  %v12113_v54 = vld [vmem:[#allocation137_spill] sm:$0xff] }
 0x931   :  { %v4976_v44 = vpop.f32.mrf.mxu0  ;;  %5710 = vtanh.f32 %v10118_v60  ;;  %v5047_v31 = vpop.f32.mrf.mxu1 }
 0x932   :  { %v4977_v29 = vadd.f32 %v4976_v44, %v4831_v16  ;;  %v5048_v14 = vadd.f32 %v5047_v31, %v4902_v40  ;;  %v12109_v16 = vld [vmem:[#allocation133_spill] sm:$0xff]  ;;  %v12114_v40 = vld [vmem:[#allocation138_spill] sm:$0xff]  ;;  %v12116_v44 = vld [vmem:[#allocation140_spill] sm:$0xff] }
 0x933   :  { %v4978_v30 = vpop.f32.mrf.mxu0  ;;  %v5049_v42 = vpop.f32.mrf.mxu1  ;;  %v12120_v31 = vld [vmem:[#allocation144_spill] sm:$0xff] }
 0x934   :  { %v5052_v18 = vadd.f32 %v4977_v29, %v7226_v59  ;;  %v4979_v32 = vadd.f32 %v4978_v30, %v4833_v13  ;;  %v5050_v57 = vadd.f32 %v5049_v42, %v4904_v0  ;;  %v12115_v13 = vld [vmem:[#allocation139_spill] sm:$0xff]  ;;  %v12117_v0 = vld [vmem:[#allocation141_spill] sm:$0xff]  ;;  %v12118_v29 = vld [vmem:[#allocation142_spill] sm:$0xff] }
 0x935   :  { %v12123_v42 = vld [vmem:[#allocation147_spill] sm:$0xff] }
 0x936   :  { %v5471_v33 = vmul.f32 -1.442695, %v5052_v18  ;;  %v5053_v34 = vadd.f32 %v4979_v32, %v11124_v37  ;;  %v5055_v7 = vadd.f32 %v5050_v57, %v11125_v45  ;;  %v5054_v45 = vadd.f32 %v5048_v14, %v7243_v55  ;;  %v12096_v55 = vld [vmem:[#allocation120_spill] sm:$0xff]  ;;  %v12119_v18 = vld [vmem:[#allocation143_spill] sm:$0xff] }
 0x938   :  { %5712 = vpow2.f32 %v5471_v33  ;;  %v5472_v28 = vmul.f32 -1.442695, %v5053_v34  ;;  %v5473_v59 = vmul.f32 -1.442695, %v5055_v7  ;;  %v12121_v33 = vld [vmem:[#allocation145_spill] sm:$0xff]  ;;  %v12122_v34 = vld [vmem:[#allocation146_spill] sm:$0xff] }
 0x939   :  { %v12125_v7 = vld [vmem:[#allocation149_spill] sm:$0xff] }
 0x93a   :  { %5714 = vpow2.f32 %v5472_v28 }
 0x93b   :  { %5716 = vpow2.f32 %v5473_v59  ;;  %v12126_v59 = vld [vmem:[#allocation150_spill] sm:$0xff] }
 0x93e   :  { %v5711_v11 = vpop.eup %5710 }
 0x93f   :  { %v4760_v3 = vmul.f32 %v5711_v11, %v5709_v19  ;;  %v12124_v11 = vld [vmem:[#allocation148_spill] sm:$0xff] }
 0x941   :  { %4762 = vst [vmem:[#allocation11 + $0x30] sm:$0xff] %v4760_v3  ;;  %5145 = vmatmul.mubr.f32.vlgmr.msra.gmra.mxu0 %v4760_v3  ;;  %5216 = vmatmul.mubr.f32.vlgmr.msra.gmra.mxu1 %v4760_v3 }
 0x942   :  { %5223 = vmatpush1.msra.mxu0 %v9760_v26  ;;  %5294 = vmatpush1.msra.mxu1 %v9763_v6  ;;  %v12091_v26 = vld [vmem:[#allocation179_spill] sm:$0xff]  ;;  %v12092_v6 = vld [vmem:[#allocation116_spill] sm:$0xff] }
 0x943   :  { %5224 = vmatprep.subr.mxu0 %v9766_v24  ;;  %5295 = vmatprep.subr.mxu1 %v9769_v21  ;;  %v12093_v24 = vld [vmem:[#allocation117_spill] sm:$0xff]  ;;  %v12094_v21 = vld [vmem:[#allocation118_spill] sm:$0xff] }
 0x944   :  { %5225 = vmatpush1.msra.mxu0 %v9772_v38  ;;  %5296 = vmatpush1.msra.mxu1 %v9775_v63  ;;  %v12095_v63 = vld [vmem:[#allocation119_spill] sm:$0xff] }
 0x945   :  { %v5713_v37 = vpop.eup %5712  ;;  %5226 = vmatprep.subr.mxu0 %v9779_v52  ;;  %5297 = vmatprep.subr.mxu1 %v9782_v35  ;;  %v12097_v52 = vld [vmem:[#allocation121_spill] sm:$0xff]  ;;  %v12098_v35 = vld [vmem:[#allocation122_spill] sm:$0xff] }
 0x946   :  { %v5059_v41 = vadd.f32 1.0, %v5713_v37  ;;  %5227 = vmatpush1.msra.mxu0 %v12091_v26  ;;  %5298 = vmatpush1.msra.mxu1 %v12092_v6  ;;  %v12127_v37 = vld [vmem:[#allocation151_spill] sm:$0xff]  ;;  %v12134_v26 = vld [vmem:[#allocation158_spill] sm:$0xff] }
 0x947   :  { %v5715_v49 = vpop.eup %5714  ;;  %5228 = vmatprep.subr.mxu0 %v12093_v24  ;;  %5299 = vmatprep.subr.mxu1 %v12094_v21 }
 0x948   :  { %5718 = vrcp.f32 %v5059_v41  ;;  %v5065_v38 = vadd.f32 1.0, %v5715_v49  ;;  %5229 = vmatpush1.msra.mxu0 %v12095_v63  ;;  %5300 = vmatpush1.msra.mxu1 %v12096_v55  ;;  %v5717_v30 = vpop.eup %5716  ;;  %v12129_v41 = vld [vmem:[#allocation153_spill] sm:$0xff] }
 0x949   :  { %5720 = vtanh.f32 %v5054_v45  ;;  %5230 = vmatprep.subr.mxu0 %v12097_v52  ;;  %5301 = vmatprep.subr.mxu1 %v12098_v35  ;;  %v5072_v19 = vadd.f32 1.0, %v5717_v30  ;;  %v12128_v45 = vld [vmem:[#allocation152_spill] sm:$0xff] }
 0x94a   :  { %5722 = vrcp.f32 %v5065_v38  ;;  %5231 = vmatpush1.msra.mxu0 %v12099_v51  ;;  %5302 = vmatpush1.msra.mxu1 %v12100_v62 }
 0x94b   :  { %5232 = vmatprep.subr.mxu0 %v12101_v1  ;;  %5303 = vmatprep.subr.mxu1 %v12102_v56  ;;  %5724 = vrcp.f32 %v5072_v19 }
 0x94c   :  { %5233 = vmatpush1.msra.mxu0 %v12103_v48  ;;  %5304 = vmatpush1.msra.mxu1 %v12104_v50 }
 0x94d   :  { %5234 = vmatprep.subr.mxu0 %v12105_v47  ;;  %5305 = vmatprep.subr.mxu1 %v12106_v2 }
 0x94e   :  { %5235 = vmatpush1.msra.mxu0 %v12107_v5  ;;  %5306 = vmatpush1.msra.mxu1 %v12108_v15 }
 0x94f   :  { %5236 = vmatprep.subr.mxu0 %v12109_v16  ;;  %5307 = vmatprep.subr.mxu1 %v12110_v61 }
 0x950   :  { %5237 = vmatpush1.msra.mxu0 %v12111_v36  ;;  %5308 = vmatpush1.msra.mxu1 %v12112_v10 }
 0x951   :  { %5238 = vmatprep.subr.mxu0 %v12113_v54  ;;  %5309 = vmatprep.subr.mxu1 %v12114_v40 }
 0x952   :  { %5239 = vmatpush1.msra.mxu0 %v12115_v13  ;;  %5310 = vmatpush1.msra.mxu1 %v12116_v44 }
 0x953   :  { %5240 = vmatprep.subr.mxu0 %v12117_v0  ;;  %5311 = vmatprep.subr.mxu1 %v12118_v29 }
 0x954   :  { %5241 = vmatpush1.msra.mxu0 %v12119_v18  ;;  %5312 = vmatpush1.msra.mxu1 %v12120_v31 }
 0x955   :  { %v5719_v32 = vpop.eup %5718  ;;  %5242 = vmatprep.subr.mxu0 %v12121_v33  ;;  %5313 = vmatprep.subr.mxu1 %v12122_v34 }
 0x956   :  { %v5721_v28 = vpop.eup %5720  ;;  %5243 = vmatpush1.msra.mxu0 %v12123_v42  ;;  %5314 = vmatpush1.msra.mxu1 %v9884_v23 }
 0x957   :  { %v5723_v57 = vpop.eup %5722  ;;  %5244 = vmatprep.subr.mxu0 %v12124_v11  ;;  %5315 = vmatprep.subr.mxu1 %v12125_v7  ;;  %v5076_v3 = vmul.f32 %v5721_v28, %v5719_v32 }
 0x958   :  { %v5075_v14 = vmul.f32 %v5723_v57, %v9912_v22  ;;  %5245 = vmatpush1.msra.mxu0 %v9894_v17  ;;  %5316 = vmatpush1.msra.mxu1 %v9897_v43  ;;  %v12130_v22 = vld [vmem:[#allocation154_spill] sm:$0xff]  ;;  %v12131_v17 = vld [vmem:[#allocation155_spill] sm:$0xff]  ;;  %v12132_v43 = vld [vmem:[#allocation156_spill] sm:$0xff] }
 0x959   :  { %5246 = vmatprep.subr.mxu0 %v9900_v4  ;;  %5317 = vmatprep.subr.mxu1 %v12126_v59  ;;  %v12133_v4 = vld [vmem:[#allocation157_spill] sm:$0xff] }
 0x95a   :  { %5247 = vmatpush1.msra.mxu0 %v12127_v37  ;;  %5318 = vmatpush1.msra.mxu1 %v9909_v27  ;;  %v5077_v23 = vadd.f32 %v5076_v3, %v5075_v14  ;;  %v12135_v27 = vld [vmem:[#allocation159_spill] sm:$0xff] }
 0x95b   :  { %5248 = vmatprep.subr.mxu0 %v9914_v8  ;;  %5319 = vmatprep.subr.mxu1 %v12128_v45  ;;  %v5725_v8 = vpop.eup %5724 }
 0x95c   :  { %5249 = vmatpush1.msra.mxu0 %v12129_v41  ;;  %5320 = vmatpush1.msra.mxu1 %v12130_v22  ;;  %5726 = vtanh.f32 %v5077_v23 }
 0x95d   :  { %5250 = vmatprep.subr.mxu0 %v12131_v17  ;;  %5321 = vmatprep.subr.mxu1 %v12132_v43 }
 0x95e   :  { %5251 = vmatpush1.msra.mxu0 %v12133_v4  ;;  %5322 = vmatpush1.msra.mxu1 %v12134_v26 }
 0x95f   :  { %5252 = vmatprep.subr.mxu0 %v12135_v27  ;;  %5323 = vmatprep.subr.mxu1 %v9942_v25 }
 0x960   :  { %5253 = vmatpush1.msra.mxu0 %v9945_v58  ;;  %5286 = vmatprep.mubr.f32.mxu0 %v11037_v20 }
 0x961   :  { %5324 = vmatpush1.msra.mxu1 %v9948_v39  ;;  %5357 = vmatprep.mubr.f32.mxu1 %v11037_v20 }
 0x969   :  { %v5727_v6 = vpop.eup %5726 }
 0x96a   :  { %v5079_v49 = vmul.f32 %v5727_v6, %v5725_v8 }
 0x96c   :  { %5287 = vmatmul.mubr.f32.vlgmr.msra.gmra.mxu0 %v5079_v49  ;;  %5358 = vmatmul.mubr.f32.vlgmr.msra.gmra.mxu1 %v5079_v49 }
 0xa01   :  { %v5146_v24 = vpop.f32.mrf.mxu0  ;;  %v5217_v21 = vpop.f32.mrf.mxu1 }
 0xa03   :  { %v5148_v38 = vpop.f32.mrf.mxu0  ;;  %v5219_v55 = vpop.f32.mrf.mxu1 }
 0xa2c   :  { %v5288_v63 = vpop.f32.mrf.mxu0  ;;  %v5359_v35 = vpop.f32.mrf.mxu1 }
 0xa2d   :  { %v5289_v52 = vadd.f32 %v5288_v63, %v5146_v24  ;;  %v5360_v50 = vadd.f32 %v5359_v35, %v5217_v21 }
 0xa2e   :  { %v5290_v25 = vpop.f32.mrf.mxu0  ;;  %v5361_v1 = vpop.f32.mrf.mxu1 }
 0xa2f   :  { %v5364_v58 = vadd.f32 %v5289_v52, %v7412_v53  ;;  %v5291_v51 = vadd.f32 %v5290_v25, %v5148_v38  ;;  %v5362_v56 = vadd.f32 %v5361_v1, %v5219_v55  ;;  %v5366_v5 = vadd.f32 %v5360_v50, %v7427_v12 }
 0xa31   :  { %v5474_v62 = vmul.f32 -1.442695, %v5364_v58  ;;  %v5365_v39 = vadd.f32 %v5291_v51, %v7416_v46  ;;  %v5367_v48 = vadd.f32 %v5362_v56, %v7422_v9 }
 0xa33   :  { %5728 = vpow2.f32 %v5474_v62  ;;  %v5475_v20 = vmul.f32 -1.442695, %v5365_v39  ;;  %v5476_v47 = vmul.f32 -1.442695, %v5367_v48 }
 0xa35   :  { %5730 = vpow2.f32 %v5475_v20 }
 0xa36   :  { %5732 = vpow2.f32 %v5476_v47 }
 0xa40   :  { %v5729_v2 = vpop.eup %5728 }
 0xa41   :  { %v5371_v15 = vadd.f32 1.0, %v5729_v2 }
 0xa42   :  { %v5731_v16 = vpop.eup %5730 }
 0xa43   :  { %5734 = vrcp.f32 %v5371_v15  ;;  %v5377_v53 = vadd.f32 1.0, %v5731_v16  ;;  %v5733_v46 = vpop.eup %5732 }
 0xa44   :  { %5736 = vtanh.f32 %v5366_v5  ;;  %v5384_v54 = vadd.f32 1.0, %v5733_v46 }
 0xa45   :  { %5738 = vrcp.f32 %v5377_v53 }
 0xa46   :  { %5740 = vrcp.f32 %v5384_v54 }
 0xa50   :  { %v5735_v61 = vpop.eup %5734 }
 0xa51   :  { %v5737_v36 = vpop.eup %5736 }
 0xa52   :  { %v5739_v10 = vpop.eup %5738  ;;  %v5388_v40 = vmul.f32 %v5737_v36, %v5735_v61 }
 0xa53   :  { %v5387_v9 = vmul.f32 %v5739_v10, %v10118_v60  ;;  %v5741_v12 = vpop.eup %5740 }
 0xa55   :  { %v5389_v13 = vadd.f32 %v5388_v40, %v5387_v9 }
 0xa57   :  { %5742 = vtanh.f32 %v5389_v13 }
 0xa64   :  { %v5743_v44 = vpop.eup %5742 }
 0xa65   :  { %v5391_v0 = vmul.f32 %v5743_v44, %v5741_v12 }
 0xa67   :  { %5393 = vst [vmem:[#allocation11 + $0x38] sm:$0xff] %v5391_v0 }
 0xa68   :  { %6479 = shalt.err (!%p6476_p1)
}
 0xa69   :  { %5405 = dma.vmem_to_hbm [thread:$0]  %s5400_s28, 1024, %s10208_s7, [#allocation4], %s6501_s15, %s6501_s15, %s6502_s16  }
 0xa6a   :  { %6494 = dma.done.wait [#allocation4], 1024  }
 0xa6b   :  { %6495 = vsyncadd [#allocation4], 4294966272 }
 0xa6c   :  { %5409 = vsyncpa [#allocation3], 1 }
 0xa6d   :  { %5410 = vsyncpa [#allocation6], 1 }
 0xa6e   :  { %5411 = vsyncpa [#allocation9], 1 }
 0xa6f   :  { %5412 = vsyncpa [#allocation4], 1 }

</bundles_post_ra>
